<compile_context>
chip_gen: v5e
topology: v5e:2x2
jax: 0.10.0
libtpu: 0.0.40
codegen_flags: <defaults>
</compile_context>

<pallas_src>
import jax
import jax.numpy as jnp
from jax.experimental import pallas as pl
from jax.experimental.pallas import tpu as pltpu

HIDDEN_SIZE = 128
INPUT_SIZE = 2048
NUM_CLASSES = 11


# ---------------------------------------------------------------------------
# Fused kernel, one grid step per (batch tile, direction).
#
# Packed weight layouts (built host-side in init_params), gate order i,f,o,g:
#   wih  : (D, 8H)   bf16, columns = [fwd i,f,o,g | bwd i,f,o,g]; blocked (D,4H) by d
#   whh  : (2, H, 4H) f32, [d] = W_hh_d^T (rows reordered to i,f,o,g)
#   b    : (2, 1, 4H) f32, b_ih + b_hh per direction, same column order
# ---------------------------------------------------------------------------
def fused_rnn_kernel(x_ref, wih_ref, whh_ref, b_ref,
                     w1_ref, b1_ref, w2_ref, b2_ref, w3_ref, b3_ref,
                     probs_ref, hn_ref, cn_ref,
                     xg_ref, feat_ref):
    d = pl.program_id(1)                       # 0 = forward, 1 = backward
    TB, T, _ = xg_ref.shape
    H = hn_ref.shape[-1]
    is_fwd = d == 0

    # ---- 1) Hoisted input projection for this direction: all timesteps at once.
    # x_ref rows are batch-major: row = b_local * T + t.
    xg = jnp.dot(x_ref[...], wih_ref[...], preferred_element_type=jnp.float32)
    xg_ref[...] = (xg + b_ref[0]).reshape(TB, T, 4 * H)      # bias folded in

    # ---- 2) Serial recurrence, single direction; per-direction (H,4H) W_hh.
    whh = whh_ref[0]                                         # (H, 4H) f32
    h = jnp.zeros((TB, H), jnp.float32)
    c = jnp.zeros((TB, H), jnp.float32)
    h_first = h
    for s in range(T):                                       # static unroll, T small
        # forward reads time s, backward reads time T-1-s
        gx = jnp.where(is_fwd, xg_ref[:, s, :], xg_ref[:, T - 1 - s, :])
        g4 = gx + jnp.dot(h, whh, preferred_element_type=jnp.float32)   # (TB, 4H)
        s3 = jax.nn.sigmoid(g4[:, 0:3 * H])      # fused sigmoid slab over [i, f, o]
        g_g = jnp.tanh(g4[:, 3 * H:4 * H])
        c = s3[:, H:2 * H] * c + s3[:, 0:H] * g_g
        h = s3[:, 2 * H:3 * H] * jnp.tanh(c)
        if s == 0:
            h_first = h       # backward LSTM's first step -> output[:, -1, H:]

    hn_ref[0] = h.astype(hn_ref.dtype)                       # final hidden, this dir
    cn_ref[0] = c.astype(cn_ref.dtype)

    # ---- 3) Stash output[:, -1, :] halves; MLP head + softmax on the last step.
    @pl.when(d == 0)
    def _():
        feat_ref[:, 0:H] = h                                 # fwd hidden at t = T-1

    @pl.when(d == 1)
    def _():
        feat_ref[:, H:2 * H] = h_first                       # bwd hidden at t = T-1
        # TODO(synk): nn.Dropout(p=0.3) reproduced as eval-mode identity (train-mode
        # dropout RNG is not reproducible against torch).
        feat = feat_ref[...].astype(jnp.bfloat16)
        h1 = jnp.dot(feat, w1_ref[...], preferred_element_type=jnp.float32) + b1_ref[...]
        h2 = jnp.dot(h1.astype(jnp.bfloat16), w2_ref[...],
                     preferred_element_type=jnp.float32) + b2_ref[...]
        logits = jnp.dot(h2, w3_ref[...], preferred_element_type=jnp.float32) + b3_ref[...]
        m = jnp.max(logits, axis=-1, keepdims=True)
        e = jnp.exp(logits - m)
        probs_ref[...] = (e / jnp.sum(e, axis=-1, keepdims=True)).astype(probs_ref.dtype)


@jax.jit
def rnn_model_forward(params, x):
    B, T, D = x.shape
    H = HIDDEN_SIZE
    NC = NUM_CLASSES

    # Batch tiling: amortize the weight load across sequences; tile when B is large.
    TB = 8 if (B % 8 == 0 and B > 8) else B
    nb = B // TB

    # Flatten to batch-major rows and cast to bf16 in the wrapper (cheap XLA ops,
    # halves the x DMA inside the kernel).
    x2 = x.reshape(B * T, D).astype(jnp.bfloat16)

    inputs = (x2, params["w_ih"], params["w_hh"], params["b"],
              params["w1"], params["b1"], params["w2"], params["b2"],
              params["w3"], params["b3"])

    in_specs = [
        pl.BlockSpec((TB * T, D), lambda b, d: (b, 0)),         # x rows, per batch tile
        pl.BlockSpec((D, 4 * H), lambda b, d: (0, d)),          # per-direction W_ih half
        pl.BlockSpec((1, H, 4 * H), lambda b, d: (d, 0, 0)),    # per-direction W_hh
        pl.BlockSpec((1, 1, 4 * H), lambda b, d: (d, 0, 0)),    # per-direction fused bias
        pl.BlockSpec((2 * H, 256), lambda b, d: (0, 0)),        # fc1 (bf16)
        pl.BlockSpec((1, 256), lambda b, d: (0, 0)),
        pl.BlockSpec((256, 64), lambda b, d: (0, 0)),           # fc2 (bf16)
        pl.BlockSpec((1, 64), lambda b, d: (0, 0)),
        pl.BlockSpec((64, NC), lambda b, d: (0, 0)),            # fc3
        pl.BlockSpec((1, NC), lambda b, d: (0, 0)),
    ]
    out_specs = (
        pl.BlockSpec((TB, NC), lambda b, d: (b, 0)),            # probs (written at d=1)
        pl.BlockSpec((1, TB, H), lambda b, d: (d, b, 0)),       # h_n
        pl.BlockSpec((1, TB, H), lambda b, d: (d, b, 0)),       # c_n
    )

    probs, h_n, c_n = pl.pallas_call(
        fused_rnn_kernel,
        out_shape=(jax.ShapeDtypeStruct((B, NC), jnp.float32),
                   jax.ShapeDtypeStruct((2, B, H), jnp.float32),
                   jax.ShapeDtypeStruct((2, B, H), jnp.float32)),
        grid=(nb, 2),
        in_specs=in_specs,
        out_specs=out_specs,
        scratch_shapes=[pltpu.VMEM((TB, T, 4 * H), jnp.float32),   # per-dir gate cache
                        pltpu.VMEM((TB, 2 * H), jnp.float32)],     # output[:, -1, :]
        compiler_params=pltpu.CompilerParams(
            dimension_semantics=("parallel", "arbitrary")),
    )(*inputs)
    return probs, (h_n, c_n)


# ---------------------------------------------------------------------------
# Parameters (PyTorch-style init, packed into the fused-kernel layout)
# ---------------------------------------------------------------------------
def init_params(key, hidden_size=HIDDEN_SIZE, input_size=INPUT_SIZE):
    H, D = hidden_size, input_size
    ks = jax.random.split(key, 14)
    u = lambda k, shape, s: jax.random.uniform(k, shape, jnp.float32, -s, s)
    stdv = 1.0 / float(H) ** 0.5

    def reorder(w):
        # PyTorch LSTM gate-row order i, f, g, o  ->  i, f, o, g (sigmoids grouped).
        return jnp.concatenate([w[0:2 * H], w[3 * H:4 * H], w[2 * H:3 * H]], axis=0)

    # PyTorch LSTM layout: (4H, in) per direction.
    w_ih_f = reorder(u(ks[0], (4 * H, D), stdv))
    w_ih_b = reorder(u(ks[1], (4 * H, D), stdv))
    w_hh_f = reorder(u(ks[2], (4 * H, H), stdv))
    w_hh_b = reorder(u(ks[3], (4 * H, H), stdv))
    b_f = reorder(u(ks[4], (4 * H,), stdv) + u(ks[5], (4 * H,), stdv))   # b_ih + b_hh
    b_b = reorder(u(ks[6], (4 * H,), stdv) + u(ks[7], (4 * H,), stdv))

    w_ih = jnp.concatenate([w_ih_f.T, w_ih_b.T], axis=-1).astype(jnp.bfloat16)  # (D, 8H)
    w_hh = jnp.stack([w_hh_f.T, w_hh_b.T], axis=0)                              # (2, H, 4H) f32
    b = jnp.stack([b_f, b_b], axis=0)[:, None, :]                               # (2, 1, 4H) f32

    def lin(kw, kb, out_f, in_f, wdtype):
        s = 1.0 / float(in_f) ** 0.5
        return u(kw, (out_f, in_f), s).T.astype(wdtype), u(kb, (1, out_f), s)

    w1, b1 = lin(ks[8], ks[9], 256, 2 * H, jnp.bfloat16)
    w2, b2 = lin(ks[10], ks[11], 64, 256, jnp.bfloat16)
    w3, b3 = lin(ks[12], ks[13], NUM_CLASSES, 64, jnp.float32)

    return dict(w_ih=w_ih, w_hh=w_hh, b=b,
                w1=w1, b1=b1, w2=w2, b2=b2, w3=w3, b3=b3)


if __name__ == "__main__":
    key = jax.random.PRNGKey(0)
    k_param, k_x = jax.random.split(key)

    B, T = 2, 8
    x = jax.random.normal(k_x, (B, T, INPUT_SIZE), jnp.float32)
    params = init_params(k_param)

    probs, (h_n, c_n) = rnn_model_forward(params, x)
    probs = jax.block_until_ready(probs)
    jax.block_until_ready(h_n)
    jax.block_until_ready(c_n)

    assert probs.shape == (B, NUM_CLASSES)
    assert h_n.shape == (2, B, HIDDEN_SIZE) and c_n.shape == (2, B, HIDDEN_SIZE)
    assert bool(jnp.all(jnp.isfinite(probs)))
    assert bool(jnp.allclose(jnp.sum(probs, axis=-1), 1.0, atol=1e-5))
    print("KERNEL_OK")
</pallas_src>

<mosaic_0001>
module attributes {stable_mosaic.version = 11 : i64} {
  func.func @fused_rnn_kernel(%arg0: i32, %arg1: i32, %arg2: memref<16x2048xbf16, #tpu.memory_space<vmem>>, %arg3: memref<2048x512xbf16, #tpu.memory_space<vmem>>, %arg4: memref<1x128x512xf32, #tpu.memory_space<vmem>>, %arg5: memref<1x1x512xf32, #tpu.memory_space<vmem>>, %arg6: memref<256x256xbf16, #tpu.memory_space<vmem>>, %arg7: memref<1x256xf32, #tpu.memory_space<vmem>>, %arg8: memref<256x64xbf16, #tpu.memory_space<vmem>>, %arg9: memref<1x64xf32, #tpu.memory_space<vmem>>, %arg10: memref<64x11xf32, #tpu.memory_space<vmem>>, %arg11: memref<1x11xf32, #tpu.memory_space<vmem>>, %arg12: memref<2x11xf32, #tpu.memory_space<vmem>>, %arg13: memref<1x2x128xf32, #tpu.memory_space<vmem>>, %arg14: memref<1x2x128xf32, #tpu.memory_space<vmem>>, %arg15: memref<2x8x512xf32, #tpu.memory_space<vmem>>, %arg16: memref<2x256xf32, #tpu.memory_space<vmem>>) attributes {dimension_semantics = [#tpu.dimension_semantics<parallel>, #tpu.dimension_semantics<arbitrary>], iteration_bounds = array<i64: 1, 2>, scalar_prefetch = 0 : i64, scratch_operands = 2 : i64, tpu.core_type = #tpu.core_type<tc>, window_params = [{transform_indices = @transform_0, window_bounds = array<i64: 16, 2048>}, {transform_indices = @transform_1, window_bounds = array<i64: 2048, 512>}, {transform_indices = @transform_2, window_bounds = array<i64: 1, 128, 512>}, {transform_indices = @transform_3, window_bounds = array<i64: 1, 1, 512>}, {pipeline_mode = #tpu.pipeline_mode<synchronous>, transform_indices = @transform_4, window_bounds = array<i64: 256, 256>}, {pipeline_mode = #tpu.pipeline_mode<synchronous>, transform_indices = @transform_5, window_bounds = array<i64: 1, 256>}, {pipeline_mode = #tpu.pipeline_mode<synchronous>, transform_indices = @transform_6, window_bounds = array<i64: 256, 64>}, {pipeline_mode = #tpu.pipeline_mode<synchronous>, transform_indices = @transform_7, window_bounds = array<i64: 1, 64>}, {pipeline_mode = #tpu.pipeline_mode<synchronous>, transform_indices = @transform_8, window_bounds = array<i64: 64, 11>}, {pipeline_mode = #tpu.pipeline_mode<synchronous>, transform_indices = @transform_9, window_bounds = array<i64: 1, 11>}, {transform_indices = @transform_10, window_bounds = array<i64: 2, 11>}, {transform_indices = @transform_11, window_bounds = array<i64: 1, 2, 128>}, {transform_indices = @transform_12, window_bounds = array<i64: 1, 2, 128>}]} {
    %c0_i32 = arith.constant 0 : i32
    %0 = arith.cmpi eq, %arg1, %c0_i32 : i32
    %c0 = arith.constant 0 : index
    %c0_0 = arith.constant 0 : index
    %1 = vector.load %arg2[%c0, %c0_0] : memref<16x2048xbf16, #tpu.memory_space<vmem>>, vector<16x2048xbf16>
    %c0_1 = arith.constant 0 : index
    %c0_2 = arith.constant 0 : index
    %2 = vector.load %arg3[%c0_1, %c0_2] : memref<2048x512xbf16, #tpu.memory_space<vmem>>, vector<2048x512xbf16>
    %cst = arith.constant dense<0.000000e+00> : vector<16x512xf32>
    %3 = tpu.matmul %1, %2, %cst {dimension_numbers = #tpu.dot_dimension_numbers<[1], [0], [0], [1], [0, 0, 1, 1], [], []>} : vector<16x2048xbf16>, vector<2048x512xbf16>, vector<16x512xf32> -> vector<16x512xf32>
    %c0_3 = arith.constant 0 : index
    %c0_4 = arith.constant 0 : index
    %c0_5 = arith.constant 0 : index
    %4 = vector.load %arg5[%c0_3, %c0_4, %c0_5] : memref<1x1x512xf32, #tpu.memory_space<vmem>>, vector<1x1x512xf32>
    %5 = vector.shape_cast %4 : vector<1x1x512xf32> to vector<1x512xf32>
    %6 = vector.broadcast %5 : vector<1x512xf32> to vector<16x512xf32>
    %7 = arith.addf %3, %6 : vector<16x512xf32>
    %8 = vector.shape_cast %7 : vector<16x512xf32> to vector<2x8x512xf32>
    %c0_6 = arith.constant 0 : index
    %c0_7 = arith.constant 0 : index
    %c0_8 = arith.constant 0 : index
    %9 = vector.load %arg15[%c0_6, %c0_7, %c0_8] : memref<2x8x512xf32, #tpu.memory_space<vmem>>, vector<2x8x512xf32>
    tpu.vector_store %arg15[%c0_6, %c0_7, %c0_8], %8 {strides = array<i32>} : memref<2x8x512xf32, #tpu.memory_space<vmem>>, vector<2x8x512xf32>,
    %c0_9 = arith.constant 0 : index
    %c0_10 = arith.constant 0 : index
    %c0_11 = arith.constant 0 : index
    %10 = vector.load %arg4[%c0_9, %c0_10, %c0_11] : memref<1x128x512xf32, #tpu.memory_space<vmem>>, vector<1x128x512xf32>
    %11 = vector.shape_cast %10 : vector<1x128x512xf32> to vector<128x512xf32>
    %cst_12 = arith.constant 0.000000e+00 : f32
    %12 = vector.broadcast %cst_12 : f32 to vector<2x128xf32>
    %cst_13 = arith.constant 0.000000e+00 : f32
    %13 = vector.broadcast %cst_13 : f32 to vector<2x128xf32>
    %c0_14 = arith.constant 0 : index
    %c0_15 = arith.constant 0 : index
    %c0_16 = arith.constant 0 : index
    %14 = vector.load %arg15[%c0_14, %c0_15, %c0_16] : memref<2x8x512xf32, #tpu.memory_space<vmem>>, vector<2x1x512xf32>
    %15 = vector.shape_cast %14 : vector<2x1x512xf32> to vector<2x512xf32>
    %c0_17 = arith.constant 0 : index
    %c7 = arith.constant 7 : index
    %c0_18 = arith.constant 0 : index
    %16 = vector.load %arg15[%c0_17, %c7, %c0_18] : memref<2x8x512xf32, #tpu.memory_space<vmem>>, vector<2x1x512xf32>
    %17 = vector.shape_cast %16 : vector<2x1x512xf32> to vector<2x512xf32>
    %18 = arith.select %0, %15, %17 : vector<2x512xf32>
    %cst_19 = arith.constant dense<0.000000e+00> : vector<2x512xf32>
    %19 = tpu.matmul %12, %11, %cst_19 {dimension_numbers = #tpu.dot_dimension_numbers<[1], [0], [0], [1], [0, 0, 1, 1], [], []>} : vector<2x128xf32>, vector<128x512xf32>, vector<2x512xf32> -> vector<2x512xf32>
    %20 = arith.addf %18, %19 : vector<2x512xf32>
    %21 = vector.extract_strided_slice %20 {offsets = [0, 0], sizes = [2, 384], strides = [1, 1]} : vector<2x512xf32> to vector<2x384xf32>
    %22 = arith.negf %21 : vector<2x384xf32>
    %23 = math.exp %22 : vector<2x384xf32>
    %cst_20 = arith.constant 1.000000e+00 : f32
    %24 = vector.broadcast %cst_20 : f32 to vector<2x384xf32>
    %25 = arith.addf %24, %23 : vector<2x384xf32>
    %26 = arith.divf %24, %25 : vector<2x384xf32>
    %27 = vector.extract_strided_slice %20 {offsets = [0, 384], sizes = [2, 128], strides = [1, 1]} : vector<2x512xf32> to vector<2x128xf32>
    %28 = math.tanh %27 : vector<2x128xf32>
    %29 = vector.extract_strided_slice %26 {offsets = [0, 128], sizes = [2, 128], strides = [1, 1]} : vector<2x384xf32> to vector<2x128xf32>
    %30 = arith.mulf %29, %13 : vector<2x128xf32>
    %31 = vector.extract_strided_slice %26 {offsets = [0, 0], sizes = [2, 128], strides = [1, 1]} : vector<2x384xf32> to vector<2x128xf32>
    %32 = arith.mulf %31, %28 : vector<2x128xf32>
    %33 = arith.addf %30, %32 : vector<2x128xf32>
    %34 = vector.extract_strided_slice %26 {offsets = [0, 256], sizes = [2, 128], strides = [1, 1]} : vector<2x384xf32> to vector<2x128xf32>
    %35 = math.tanh %33 : vector<2x128xf32>
    %36 = arith.mulf %34, %35 : vector<2x128xf32>
    %c0_21 = arith.constant 0 : index
    %c1 = arith.constant 1 : index
    %c0_22 = arith.constant 0 : index
    %37 = vector.load %arg15[%c0_21, %c1, %c0_22] : memref<2x8x512xf32, #tpu.memory_space<vmem>>, vector<2x1x512xf32>
    %38 = vector.shape_cast %37 : vector<2x1x512xf32> to vector<2x512xf32>
    %c0_23 = arith.constant 0 : index
    %c6 = arith.constant 6 : index
    %c0_24 = arith.constant 0 : index
    %39 = vector.load %arg15[%c0_23, %c6, %c0_24] : memref<2x8x512xf32, #tpu.memory_space<vmem>>, vector<2x1x512xf32>
    %40 = vector.shape_cast %39 : vector<2x1x512xf32> to vector<2x512xf32>
    %41 = arith.select %0, %38, %40 : vector<2x512xf32>
    %cst_25 = arith.constant dense<0.000000e+00> : vector<2x512xf32>
    %42 = tpu.matmul %36, %11, %cst_25 {dimension_numbers = #tpu.dot_dimension_numbers<[1], [0], [0], [1], [0, 0, 1, 1], [], []>} : vector<2x128xf32>, vector<128x512xf32>, vector<2x512xf32> -> vector<2x512xf32>
    %43 = arith.addf %41, %42 : vector<2x512xf32>
    %44 = vector.extract_strided_slice %43 {offsets = [0, 0], sizes = [2, 384], strides = [1, 1]} : vector<2x512xf32> to vector<2x384xf32>
    %45 = arith.negf %44 : vector<2x384xf32>
    %46 = math.exp %45 : vector<2x384xf32>
    %cst_26 = arith.constant 1.000000e+00 : f32
    %47 = vector.broadcast %cst_26 : f32 to vector<2x384xf32>
    %48 = arith.addf %47, %46 : vector<2x384xf32>
    %49 = arith.divf %47, %48 : vector<2x384xf32>
    %50 = vector.extract_strided_slice %43 {offsets = [0, 384], sizes = [2, 128], strides = [1, 1]} : vector<2x512xf32> to vector<2x128xf32>
    %51 = math.tanh %50 : vector<2x128xf32>
    %52 = vector.extract_strided_slice %49 {offsets = [0, 128], sizes = [2, 128], strides = [1, 1]} : vector<2x384xf32> to vector<2x128xf32>
    %53 = arith.mulf %52, %33 : vector<2x128xf32>
    %54 = vector.extract_strided_slice %49 {offsets = [0, 0], sizes = [2, 128], strides = [1, 1]} : vector<2x384xf32> to vector<2x128xf32>
    %55 = arith.mulf %54, %51 : vector<2x128xf32>
    %56 = arith.addf %53, %55 : vector<2x128xf32>
    %57 = vector.extract_strided_slice %49 {offsets = [0, 256], sizes = [2, 128], strides = [1, 1]} : vector<2x384xf32> to vector<2x128xf32>
    %58 = math.tanh %56 : vector<2x128xf32>
    %59 = arith.mulf %57, %58 : vector<2x128xf32>
    %c0_27 = arith.constant 0 : index
    %c2 = arith.constant 2 : index
    %c0_28 = arith.constant 0 : index
    %60 = vector.load %arg15[%c0_27, %c2, %c0_28] : memref<2x8x512xf32, #tpu.memory_space<vmem>>, vector<2x1x512xf32>
    %61 = vector.shape_cast %60 : vector<2x1x512xf32> to vector<2x512xf32>
    %c0_29 = arith.constant 0 : index
    %c5 = arith.constant 5 : index
    %c0_30 = arith.constant 0 : index
    %62 = vector.load %arg15[%c0_29, %c5, %c0_30] : memref<2x8x512xf32, #tpu.memory_space<vmem>>, vector<2x1x512xf32>
    %63 = vector.shape_cast %62 : vector<2x1x512xf32> to vector<2x512xf32>
    %64 = arith.select %0, %61, %63 : vector<2x512xf32>
    %cst_31 = arith.constant dense<0.000000e+00> : vector<2x512xf32>
    %65 = tpu.matmul %59, %11, %cst_31 {dimension_numbers = #tpu.dot_dimension_numbers<[1], [0], [0], [1], [0, 0, 1, 1], [], []>} : vector<2x128xf32>, vector<128x512xf32>, vector<2x512xf32> -> vector<2x512xf32>
    %66 = arith.addf %64, %65 : vector<2x512xf32>
    %67 = vector.extract_strided_slice %66 {offsets = [0, 0], sizes = [2, 384], strides = [1, 1]} : vector<2x512xf32> to vector<2x384xf32>
    %68 = arith.negf %67 : vector<2x384xf32>
    %69 = math.exp %68 : vector<2x384xf32>
    %cst_32 = arith.constant 1.000000e+00 : f32
    %70 = vector.broadcast %cst_32 : f32 to vector<2x384xf32>
    %71 = arith.addf %70, %69 : vector<2x384xf32>
    %72 = arith.divf %70, %71 : vector<2x384xf32>
    %73 = vector.extract_strided_slice %66 {offsets = [0, 384], sizes = [2, 128], strides = [1, 1]} : vector<2x512xf32> to vector<2x128xf32>
    %74 = math.tanh %73 : vector<2x128xf32>
    %75 = vector.extract_strided_slice %72 {offsets = [0, 128], sizes = [2, 128], strides = [1, 1]} : vector<2x384xf32> to vector<2x128xf32>
    %76 = arith.mulf %75, %56 : vector<2x128xf32>
    %77 = vector.extract_strided_slice %72 {offsets = [0, 0], sizes = [2, 128], strides = [1, 1]} : vector<2x384xf32> to vector<2x128xf32>
    %78 = arith.mulf %77, %74 : vector<2x128xf32>
    %79 = arith.addf %76, %78 : vector<2x128xf32>
    %80 = vector.extract_strided_slice %72 {offsets = [0, 256], sizes = [2, 128], strides = [1, 1]} : vector<2x384xf32> to vector<2x128xf32>
    %81 = math.tanh %79 : vector<2x128xf32>
    %82 = arith.mulf %80, %81 : vector<2x128xf32>
    %c0_33 = arith.constant 0 : index
    %c3 = arith.constant 3 : index
    %c0_34 = arith.constant 0 : index
    %83 = vector.load %arg15[%c0_33, %c3, %c0_34] : memref<2x8x512xf32, #tpu.memory_space<vmem>>, vector<2x1x512xf32>
    %84 = vector.shape_cast %83 : vector<2x1x512xf32> to vector<2x512xf32>
    %c0_35 = arith.constant 0 : index
    %c4 = arith.constant 4 : index
    %c0_36 = arith.constant 0 : index
    %85 = vector.load %arg15[%c0_35, %c4, %c0_36] : memref<2x8x512xf32, #tpu.memory_space<vmem>>, vector<2x1x512xf32>
    %86 = vector.shape_cast %85 : vector<2x1x512xf32> to vector<2x512xf32>
    %87 = arith.select %0, %84, %86 : vector<2x512xf32>
    %cst_37 = arith.constant dense<0.000000e+00> : vector<2x512xf32>
    %88 = tpu.matmul %82, %11, %cst_37 {dimension_numbers = #tpu.dot_dimension_numbers<[1], [0], [0], [1], [0, 0, 1, 1], [], []>} : vector<2x128xf32>, vector<128x512xf32>, vector<2x512xf32> -> vector<2x512xf32>
    %89 = arith.addf %87, %88 : vector<2x512xf32>
    %90 = vector.extract_strided_slice %89 {offsets = [0, 0], sizes = [2, 384], strides = [1, 1]} : vector<2x512xf32> to vector<2x384xf32>
    %91 = arith.negf %90 : vector<2x384xf32>
    %92 = math.exp %91 : vector<2x384xf32>
    %cst_38 = arith.constant 1.000000e+00 : f32
    %93 = vector.broadcast %cst_38 : f32 to vector<2x384xf32>
    %94 = arith.addf %93, %92 : vector<2x384xf32>
    %95 = arith.divf %93, %94 : vector<2x384xf32>
    %96 = vector.extract_strided_slice %89 {offsets = [0, 384], sizes = [2, 128], strides = [1, 1]} : vector<2x512xf32> to vector<2x128xf32>
    %97 = math.tanh %96 : vector<2x128xf32>
    %98 = vector.extract_strided_slice %95 {offsets = [0, 128], sizes = [2, 128], strides = [1, 1]} : vector<2x384xf32> to vector<2x128xf32>
    %99 = arith.mulf %98, %79 : vector<2x128xf32>
    %100 = vector.extract_strided_slice %95 {offsets = [0, 0], sizes = [2, 128], strides = [1, 1]} : vector<2x384xf32> to vector<2x128xf32>
    %101 = arith.mulf %100, %97 : vector<2x128xf32>
    %102 = arith.addf %99, %101 : vector<2x128xf32>
    %103 = vector.extract_strided_slice %95 {offsets = [0, 256], sizes = [2, 128], strides = [1, 1]} : vector<2x384xf32> to vector<2x128xf32>
    %104 = math.tanh %102 : vector<2x128xf32>
    %105 = arith.mulf %103, %104 : vector<2x128xf32>
    %c0_39 = arith.constant 0 : index
    %c4_40 = arith.constant 4 : index
    %c0_41 = arith.constant 0 : index
    %106 = vector.load %arg15[%c0_39, %c4_40, %c0_41] : memref<2x8x512xf32, #tpu.memory_space<vmem>>, vector<2x1x512xf32>
    %107 = vector.shape_cast %106 : vector<2x1x512xf32> to vector<2x512xf32>
    %c0_42 = arith.constant 0 : index
    %c3_43 = arith.constant 3 : index
    %c0_44 = arith.constant 0 : index
    %108 = vector.load %arg15[%c0_42, %c3_43, %c0_44] : memref<2x8x512xf32, #tpu.memory_space<vmem>>, vector<2x1x512xf32>
    %109 = vector.shape_cast %108 : vector<2x1x512xf32> to vector<2x512xf32>
    %110 = arith.select %0, %107, %109 : vector<2x512xf32>
    %cst_45 = arith.constant dense<0.000000e+00> : vector<2x512xf32>
    %111 = tpu.matmul %105, %11, %cst_45 {dimension_numbers = #tpu.dot_dimension_numbers<[1], [0], [0], [1], [0, 0, 1, 1], [], []>} : vector<2x128xf32>, vector<128x512xf32>, vector<2x512xf32> -> vector<2x512xf32>
    %112 = arith.addf %110, %111 : vector<2x512xf32>
    %113 = vector.extract_strided_slice %112 {offsets = [0, 0], sizes = [2, 384], strides = [1, 1]} : vector<2x512xf32> to vector<2x384xf32>
    %114 = arith.negf %113 : vector<2x384xf32>
    %115 = math.exp %114 : vector<2x384xf32>
    %cst_46 = arith.constant 1.000000e+00 : f32
    %116 = vector.broadcast %cst_46 : f32 to vector<2x384xf32>
    %117 = arith.addf %116, %115 : vector<2x384xf32>
    %118 = arith.divf %116, %117 : vector<2x384xf32>
    %119 = vector.extract_strided_slice %112 {offsets = [0, 384], sizes = [2, 128], strides = [1, 1]} : vector<2x512xf32> to vector<2x128xf32>
    %120 = math.tanh %119 : vector<2x128xf32>
    %121 = vector.extract_strided_slice %118 {offsets = [0, 128], sizes = [2, 128], strides = [1, 1]} : vector<2x384xf32> to vector<2x128xf32>
    %122 = arith.mulf %121, %102 : vector<2x128xf32>
    %123 = vector.extract_strided_slice %118 {offsets = [0, 0], sizes = [2, 128], strides = [1, 1]} : vector<2x384xf32> to vector<2x128xf32>
    %124 = arith.mulf %123, %120 : vector<2x128xf32>
    %125 = arith.addf %122, %124 : vector<2x128xf32>
    %126 = vector.extract_strided_slice %118 {offsets = [0, 256], sizes = [2, 128], strides = [1, 1]} : vector<2x384xf32> to vector<2x128xf32>
    %127 = math.tanh %125 : vector<2x128xf32>
    %128 = arith.mulf %126, %127 : vector<2x128xf32>
    %c0_47 = arith.constant 0 : index
    %c5_48 = arith.constant 5 : index
    %c0_49 = arith.constant 0 : index
    %129 = vector.load %arg15[%c0_47, %c5_48, %c0_49] : memref<2x8x512xf32, #tpu.memory_space<vmem>>, vector<2x1x512xf32>
    %130 = vector.shape_cast %129 : vector<2x1x512xf32> to vector<2x512xf32>
    %c0_50 = arith.constant 0 : index
    %c2_51 = arith.constant 2 : index
    %c0_52 = arith.constant 0 : index
    %131 = vector.load %arg15[%c0_50, %c2_51, %c0_52] : memref<2x8x512xf32, #tpu.memory_space<vmem>>, vector<2x1x512xf32>
    %132 = vector.shape_cast %131 : vector<2x1x512xf32> to vector<2x512xf32>
    %133 = arith.select %0, %130, %132 : vector<2x512xf32>
    %cst_53 = arith.constant dense<0.000000e+00> : vector<2x512xf32>
    %134 = tpu.matmul %128, %11, %cst_53 {dimension_numbers = #tpu.dot_dimension_numbers<[1], [0], [0], [1], [0, 0, 1, 1], [], []>} : vector<2x128xf32>, vector<128x512xf32>, vector<2x512xf32> -> vector<2x512xf32>
    %135 = arith.addf %133, %134 : vector<2x512xf32>
    %136 = vector.extract_strided_slice %135 {offsets = [0, 0], sizes = [2, 384], strides = [1, 1]} : vector<2x512xf32> to vector<2x384xf32>
    %137 = arith.negf %136 : vector<2x384xf32>
    %138 = math.exp %137 : vector<2x384xf32>
    %cst_54 = arith.constant 1.000000e+00 : f32
    %139 = vector.broadcast %cst_54 : f32 to vector<2x384xf32>
    %140 = arith.addf %139, %138 : vector<2x384xf32>
    %141 = arith.divf %139, %140 : vector<2x384xf32>
    %142 = vector.extract_strided_slice %135 {offsets = [0, 384], sizes = [2, 128], strides = [1, 1]} : vector<2x512xf32> to vector<2x128xf32>
    %143 = math.tanh %142 : vector<2x128xf32>
    %144 = vector.extract_strided_slice %141 {offsets = [0, 128], sizes = [2, 128], strides = [1, 1]} : vector<2x384xf32> to vector<2x128xf32>
    %145 = arith.mulf %144, %125 : vector<2x128xf32>
    %146 = vector.extract_strided_slice %141 {offsets = [0, 0], sizes = [2, 128], strides = [1, 1]} : vector<2x384xf32> to vector<2x128xf32>
    %147 = arith.mulf %146, %143 : vector<2x128xf32>
    %148 = arith.addf %145, %147 : vector<2x128xf32>
    %149 = vector.extract_strided_slice %141 {offsets = [0, 256], sizes = [2, 128], strides = [1, 1]} : vector<2x384xf32> to vector<2x128xf32>
    %150 = math.tanh %148 : vector<2x128xf32>
    %151 = arith.mulf %149, %150 : vector<2x128xf32>
    %c0_55 = arith.constant 0 : index
    %c6_56 = arith.constant 6 : index
    %c0_57 = arith.constant 0 : index
    %152 = vector.load %arg15[%c0_55, %c6_56, %c0_57] : memref<2x8x512xf32, #tpu.memory_space<vmem>>, vector<2x1x512xf32>
    %153 = vector.shape_cast %152 : vector<2x1x512xf32> to vector<2x512xf32>
    %c0_58 = arith.constant 0 : index
    %c1_59 = arith.constant 1 : index
    %c0_60 = arith.constant 0 : index
    %154 = vector.load %arg15[%c0_58, %c1_59, %c0_60] : memref<2x8x512xf32, #tpu.memory_space<vmem>>, vector<2x1x512xf32>
    %155 = vector.shape_cast %154 : vector<2x1x512xf32> to vector<2x512xf32>
    %156 = arith.select %0, %153, %155 : vector<2x512xf32>
    %cst_61 = arith.constant dense<0.000000e+00> : vector<2x512xf32>
    %157 = tpu.matmul %151, %11, %cst_61 {dimension_numbers = #tpu.dot_dimension_numbers<[1], [0], [0], [1], [0, 0, 1, 1], [], []>} : vector<2x128xf32>, vector<128x512xf32>, vector<2x512xf32> -> vector<2x512xf32>
    %158 = arith.addf %156, %157 : vector<2x512xf32>
    %159 = vector.extract_strided_slice %158 {offsets = [0, 0], sizes = [2, 384], strides = [1, 1]} : vector<2x512xf32> to vector<2x384xf32>
    %160 = arith.negf %159 : vector<2x384xf32>
    %161 = math.exp %160 : vector<2x384xf32>
    %cst_62 = arith.constant 1.000000e+00 : f32
    %162 = vector.broadcast %cst_62 : f32 to vector<2x384xf32>
    %163 = arith.addf %162, %161 : vector<2x384xf32>
    %164 = arith.divf %162, %163 : vector<2x384xf32>
    %165 = vector.extract_strided_slice %158 {offsets = [0, 384], sizes = [2, 128], strides = [1, 1]} : vector<2x512xf32> to vector<2x128xf32>
    %166 = math.tanh %165 : vector<2x128xf32>
    %167 = vector.extract_strided_slice %164 {offsets = [0, 128], sizes = [2, 128], strides = [1, 1]} : vector<2x384xf32> to vector<2x128xf32>
    %168 = arith.mulf %167, %148 : vector<2x128xf32>
    %169 = vector.extract_strided_slice %164 {offsets = [0, 0], sizes = [2, 128], strides = [1, 1]} : vector<2x384xf32> to vector<2x128xf32>
    %170 = arith.mulf %169, %166 : vector<2x128xf32>
    %171 = arith.addf %168, %170 : vector<2x128xf32>
    %172 = vector.extract_strided_slice %164 {offsets = [0, 256], sizes = [2, 128], strides = [1, 1]} : vector<2x384xf32> to vector<2x128xf32>
    %173 = math.tanh %171 : vector<2x128xf32>
    %174 = arith.mulf %172, %173 : vector<2x128xf32>
    %c0_63 = arith.constant 0 : index
    %c7_64 = arith.constant 7 : index
    %c0_65 = arith.constant 0 : index
    %175 = vector.load %arg15[%c0_63, %c7_64, %c0_65] : memref<2x8x512xf32, #tpu.memory_space<vmem>>, vector<2x1x512xf32>
    %176 = vector.shape_cast %175 : vector<2x1x512xf32> to vector<2x512xf32>
    %c0_66 = arith.constant 0 : index
    %c0_67 = arith.constant 0 : index
    %c0_68 = arith.constant 0 : index
    %177 = vector.load %arg15[%c0_66, %c0_67, %c0_68] : memref<2x8x512xf32, #tpu.memory_space<vmem>>, vector<2x1x512xf32>
    %178 = vector.shape_cast %177 : vector<2x1x512xf32> to vector<2x512xf32>
    %179 = arith.select %0, %176, %178 : vector<2x512xf32>
    %cst_69 = arith.constant dense<0.000000e+00> : vector<2x512xf32>
    %180 = tpu.matmul %174, %11, %cst_69 {dimension_numbers = #tpu.dot_dimension_numbers<[1], [0], [0], [1], [0, 0, 1, 1], [], []>} : vector<2x128xf32>, vector<128x512xf32>, vector<2x512xf32> -> vector<2x512xf32>
    %181 = arith.addf %179, %180 : vector<2x512xf32>
    %182 = vector.extract_strided_slice %181 {offsets = [0, 0], sizes = [2, 384], strides = [1, 1]} : vector<2x512xf32> to vector<2x384xf32>
    %183 = arith.negf %182 : vector<2x384xf32>
    %184 = math.exp %183 : vector<2x384xf32>
    %cst_70 = arith.constant 1.000000e+00 : f32
    %185 = vector.broadcast %cst_70 : f32 to vector<2x384xf32>
    %186 = arith.addf %185, %184 : vector<2x384xf32>
    %187 = arith.divf %185, %186 : vector<2x384xf32>
    %188 = vector.extract_strided_slice %181 {offsets = [0, 384], sizes = [2, 128], strides = [1, 1]} : vector<2x512xf32> to vector<2x128xf32>
    %189 = math.tanh %188 : vector<2x128xf32>
    %190 = vector.extract_strided_slice %187 {offsets = [0, 128], sizes = [2, 128], strides = [1, 1]} : vector<2x384xf32> to vector<2x128xf32>
    %191 = arith.mulf %190, %171 : vector<2x128xf32>
    %192 = vector.extract_strided_slice %187 {offsets = [0, 0], sizes = [2, 128], strides = [1, 1]} : vector<2x384xf32> to vector<2x128xf32>
    %193 = arith.mulf %192, %189 : vector<2x128xf32>
    %194 = arith.addf %191, %193 : vector<2x128xf32>
    %195 = vector.extract_strided_slice %187 {offsets = [0, 256], sizes = [2, 128], strides = [1, 1]} : vector<2x384xf32> to vector<2x128xf32>
    %196 = math.tanh %194 : vector<2x128xf32>
    %197 = arith.mulf %195, %196 : vector<2x128xf32>
    %c0_71 = arith.constant 0 : index
    %c0_72 = arith.constant 0 : index
    %c0_73 = arith.constant 0 : index
    %198 = vector.load %arg13[%c0_71, %c0_72, %c0_73] : memref<1x2x128xf32, #tpu.memory_space<vmem>>, vector<1x2x128xf32>
    %199 = vector.shape_cast %198 : vector<1x2x128xf32> to vector<2x128xf32>
    %200 = vector.shape_cast %197 : vector<2x128xf32> to vector<1x2x128xf32>
    tpu.vector_store %arg13[%c0_71, %c0_72, %c0_73], %200 {strides = array<i32>} : memref<1x2x128xf32, #tpu.memory_space<vmem>>, vector<1x2x128xf32>,
    %c0_74 = arith.constant 0 : index
    %c0_75 = arith.constant 0 : index
    %c0_76 = arith.constant 0 : index
    %201 = vector.load %arg14[%c0_74, %c0_75, %c0_76] : memref<1x2x128xf32, #tpu.memory_space<vmem>>, vector<1x2x128xf32>
    %202 = vector.shape_cast %201 : vector<1x2x128xf32> to vector<2x128xf32>
    %203 = vector.shape_cast %194 : vector<2x128xf32> to vector<1x2x128xf32>
    tpu.vector_store %arg14[%c0_74, %c0_75, %c0_76], %203 {strides = array<i32>} : memref<1x2x128xf32, #tpu.memory_space<vmem>>, vector<1x2x128xf32>,
    %c0_i32_77 = arith.constant 0 : i32
    %204 = arith.cmpi eq, %arg1, %c0_i32_77 : i32
    %205 = arith.extui %204 : i1 to i32
    %c0_i32_78 = arith.constant 0 : i32
    %206 = arith.cmpi ne, %205, %c0_i32_78 : i32
    scf.if %206 {
      %c0_80 = arith.constant 0 : index
      %c0_81 = arith.constant 0 : index
      %210 = vector.load %arg16[%c0_80, %c0_81] : memref<2x256xf32, #tpu.memory_space<vmem>>, vector<2x128xf32>
      tpu.vector_store %arg16[%c0_80, %c0_81], %197 {strides = array<i32>} : memref<2x256xf32, #tpu.memory_space<vmem>>, vector<2x128xf32>,
    } else {
    }
    %c1_i32 = arith.constant 1 : i32
    %207 = arith.cmpi eq, %arg1, %c1_i32 : i32
    %208 = arith.extui %207 : i1 to i32
    %c0_i32_79 = arith.constant 0 : i32
    %209 = arith.cmpi ne, %208, %c0_i32_79 : i32
    scf.if %209 {
      %c0_80 = arith.constant 0 : index
      %c128 = arith.constant 128 : index
      %210 = vector.load %arg16[%c0_80, %c128] : memref<2x256xf32, #tpu.memory_space<vmem>>, vector<2x128xf32>
      tpu.vector_store %arg16[%c0_80, %c128], %36 {strides = array<i32>} : memref<2x256xf32, #tpu.memory_space<vmem>>, vector<2x128xf32>,
      %c0_81 = arith.constant 0 : index
      %c0_82 = arith.constant 0 : index
      %211 = vector.load %arg16[%c0_81, %c0_82] : memref<2x256xf32, #tpu.memory_space<vmem>>, vector<2x256xf32>
      %212 = arith.truncf %211 : vector<2x256xf32> to vector<2x256xbf16>
      %c0_83 = arith.constant 0 : index
      %c0_84 = arith.constant 0 : index
      %213 = vector.load %arg6[%c0_83, %c0_84] : memref<256x256xbf16, #tpu.memory_space<vmem>>, vector<256x256xbf16>
      %cst_85 = arith.constant dense<0.000000e+00> : vector<2x256xf32>
      %214 = tpu.matmul %212, %213, %cst_85 {dimension_numbers = #tpu.dot_dimension_numbers<[1], [0], [0], [1], [0, 0, 1, 1], [], []>} : vector<2x256xbf16>, vector<256x256xbf16>, vector<2x256xf32> -> vector<2x256xf32>
      %c0_86 = arith.constant 0 : index
      %c0_87 = arith.constant 0 : index
      %215 = vector.load %arg7[%c0_86, %c0_87] : memref<1x256xf32, #tpu.memory_space<vmem>>, vector<1x256xf32>
      %216 = vector.broadcast %215 : vector<1x256xf32> to vector<2x256xf32>
      %217 = arith.addf %214, %216 : vector<2x256xf32>
      %218 = arith.truncf %217 : vector<2x256xf32> to vector<2x256xbf16>
      %c0_88 = arith.constant 0 : index
      %c0_89 = arith.constant 0 : index
      %219 = vector.load %arg8[%c0_88, %c0_89] : memref<256x64xbf16, #tpu.memory_space<vmem>>, vector<256x64xbf16>
      %cst_90 = arith.constant dense<0.000000e+00> : vector<2x64xf32>
      %220 = tpu.matmul %218, %219, %cst_90 {dimension_numbers = #tpu.dot_dimension_numbers<[1], [0], [0], [1], [0, 0, 1, 1], [], []>} : vector<2x256xbf16>, vector<256x64xbf16>, vector<2x64xf32> -> vector<2x64xf32>
      %c0_91 = arith.constant 0 : index
      %c0_92 = arith.constant 0 : index
      %221 = vector.load %arg9[%c0_91, %c0_92] : memref<1x64xf32, #tpu.memory_space<vmem>>, vector<1x64xf32>
      %222 = vector.broadcast %221 : vector<1x64xf32> to vector<2x64xf32>
      %223 = arith.addf %220, %222 : vector<2x64xf32>
      %c0_93 = arith.constant 0 : index
      %c0_94 = arith.constant 0 : index
      %224 = vector.load %arg10[%c0_93, %c0_94] : memref<64x11xf32, #tpu.memory_space<vmem>>, vector<64x11xf32>
      %cst_95 = arith.constant dense<0.000000e+00> : vector<2x11xf32>
      %225 = tpu.matmul %223, %224, %cst_95 {dimension_numbers = #tpu.dot_dimension_numbers<[1], [0], [0], [1], [0, 0, 1, 1], [], []>} : vector<2x64xf32>, vector<64x11xf32>, vector<2x11xf32> -> vector<2x11xf32>
      %c0_96 = arith.constant 0 : index
      %c0_97 = arith.constant 0 : index
      %226 = vector.load %arg11[%c0_96, %c0_97] : memref<1x11xf32, #tpu.memory_space<vmem>>, vector<1x11xf32>
      %227 = vector.broadcast %226 : vector<1x11xf32> to vector<2x11xf32>
      %228 = arith.addf %225, %227 : vector<2x11xf32>
      %cst_98 = arith.constant dense<0xFF800000> : vector<2xf32>
      %229 = vector.multi_reduction <maximumf>, %228, %cst_98 [1] : vector<2x11xf32> to vector<2xf32>
      %230 = vector.shape_cast %229 : vector<2xf32> to vector<2x1xf32>
      %231 = vector.broadcast %230 : vector<2x1xf32> to vector<2x11xf32>
      %232 = arith.subf %228, %231 : vector<2x11xf32>
      %233 = math.exp %232 : vector<2x11xf32>
      %cst_99 = arith.constant dense<0.000000e+00> : vector<2xf32>
      %234 = vector.multi_reduction <add>, %233, %cst_99 [1] : vector<2x11xf32> to vector<2xf32>
      %235 = vector.shape_cast %234 : vector<2xf32> to vector<2x1xf32>
      %236 = vector.broadcast %235 : vector<2x1xf32> to vector<2x11xf32>
      %237 = arith.divf %233, %236 : vector<2x11xf32>
      %c0_100 = arith.constant 0 : index
      %c0_101 = arith.constant 0 : index
      %238 = vector.load %arg12[%c0_100, %c0_101] : memref<2x11xf32, #tpu.memory_space<vmem>>, vector<2x11xf32>
      tpu.vector_store %arg12[%c0_100, %c0_101], %237 {strides = array<i32>} : memref<2x11xf32, #tpu.memory_space<vmem>>, vector<2x11xf32>,
    } else {
    }
    return
  }
  func.func @transform_0(%arg0: i32, %arg1: i32) -> (i32, i32) {
    %c0_i32 = arith.constant 0 : i32
    %c0_i32_0 = arith.constant 0 : i32
    return %arg0, %c0_i32 : i32, i32
  }
  func.func @transform_1(%arg0: i32, %arg1: i32) -> (i32, i32) {
    %c0_i32 = arith.constant 0 : i32
    %c0_i32_0 = arith.constant 0 : i32
    return %c0_i32, %arg1 : i32, i32
  }
  func.func @transform_2(%arg0: i32, %arg1: i32) -> (i32, i32, i32) {
    %c0_i32 = arith.constant 0 : i32
    %c0_i32_0 = arith.constant 0 : i32
    %c0_i32_1 = arith.constant 0 : i32
    return %arg1, %c0_i32, %c0_i32_0 : i32, i32, i32
  }
  func.func @transform_3(%arg0: i32, %arg1: i32) -> (i32, i32, i32) {
    %c0_i32 = arith.constant 0 : i32
    %c0_i32_0 = arith.constant 0 : i32
    %c0_i32_1 = arith.constant 0 : i32
    return %arg1, %c0_i32, %c0_i32_0 : i32, i32, i32
  }
  func.func @transform_4(%arg0: i32, %arg1: i32) -> (i32, i32) {
    %c0_i32 = arith.constant 0 : i32
    %c0_i32_0 = arith.constant 0 : i32
    %c0_i32_1 = arith.constant 0 : i32
    return %c0_i32, %c0_i32_0 : i32, i32
  }
  func.func @transform_5(%arg0: i32, %arg1: i32) -> (i32, i32) {
    %c0_i32 = arith.constant 0 : i32
    %c0_i32_0 = arith.constant 0 : i32
    %c0_i32_1 = arith.constant 0 : i32
    return %c0_i32, %c0_i32_0 : i32, i32
  }
  func.func @transform_6(%arg0: i32, %arg1: i32) -> (i32, i32) {
    %c0_i32 = arith.constant 0 : i32
    %c0_i32_0 = arith.constant 0 : i32
    %c0_i32_1 = arith.constant 0 : i32
    return %c0_i32, %c0_i32_0 : i32, i32
  }
  func.func @transform_7(%arg0: i32, %arg1: i32) -> (i32, i32) {
    %c0_i32 = arith.constant 0 : i32
    %c0_i32_0 = arith.constant 0 : i32
    %c0_i32_1 = arith.constant 0 : i32
    return %c0_i32, %c0_i32_0 : i32, i32
  }
  func.func @transform_8(%arg0: i32, %arg1: i32) -> (i32, i32) {
    %c0_i32 = arith.constant 0 : i32
    %c0_i32_0 = arith.constant 0 : i32
    %c0_i32_1 = arith.constant 0 : i32
    return %c0_i32, %c0_i32_0 : i32, i32
  }
  func.func @transform_9(%arg0: i32, %arg1: i32) -> (i32, i32) {
    %c0_i32 = arith.constant 0 : i32
    %c0_i32_0 = arith.constant 0 : i32
    %c0_i32_1 = arith.constant 0 : i32
    return %c0_i32, %c0_i32_0 : i32, i32
  }
  func.func @transform_10(%arg0: i32, %arg1: i32) -> (i32, i32) {
    %c0_i32 = arith.constant 0 : i32
    %c0_i32_0 = arith.constant 0 : i32
    return %arg0, %c0_i32 : i32, i32
  }
  func.func @transform_11(%arg0: i32, %arg1: i32) -> (i32, i32, i32) {
    %c0_i32 = arith.constant 0 : i32
    %c0_i32_0 = arith.constant 0 : i32
    return %arg1, %arg0, %c0_i32 : i32, i32, i32
  }
  func.func @transform_12(%arg0: i32, %arg1: i32) -> (i32, i32, i32) {
    %c0_i32 = arith.constant 0 : i32
    %c0_i32_0 = arith.constant 0 : i32
    return %arg1, %arg0, %c0_i32 : i32, i32, i32
  }
}

</mosaic_0001>

<bundles_post_ra>
// kernel: rnn_model_forward.1
= control target key start
LH: loop header
LB: loop body
LE: loop exit
PB: predicated region body
PF: predicated region fallthrough
CT: control target
= control target key end

     0   :  { %s13514_s0 = inlined_call_operand.vmem [shape: bf16[16,2048], index: 0, kind: input, shape index: {}]   ;;  %s13515_s1 = inlined_call_operand.hbm [shape: bf16[2048,1024], index: 1, kind: input, shape index: {}]   ;;  %s13516_s2 = inlined_call_operand.hbm [shape: f32[2,128,512], index: 2, kind: input, shape index: {}]   ;;  %s13517_s3 = inlined_call_operand.hbm [shape: f32[2,1,512], index: 3, kind: input, shape index: {}]   ;;  %s13518_s4 = inlined_call_operand.hbm [shape: bf16[256,256], index: 4, kind: input, shape index: {}]   ;;  %s13519_s5 = inlined_call_operand.hbm [shape: f32[1,256], index: 5, kind: input, shape index: {}]   ;;  %s13520_s6 = inlined_call_operand.vmem [shape: bf16[256,64], index: 6, kind: input, shape index: {}]   ;;  %s13521_s7 = inlined_call_operand.hbm [shape: f32[1,64], index: 7, kind: input, shape index: {}]   ;;  %s13522_s8 = inlined_call_operand.vmem [shape: f32[64,11], index: 8, kind: input, shape index: {}]   ;;  %s13523_s9 = inlined_call_operand.hbm [shape: f32[1,11], index: 9, kind: input, shape index: {}]   ;;  %s13524_s10 = inlined_call_operand.hbm [shape: f32[2,11], index: 10, kind: output, shape index: {0}]   ;;  %s13525_s11 = inlined_call_operand.hbm [shape: f32[2,2,128], index: 11, kind: output, shape index: {1}]   ;;  %s13526_s12 = inlined_call_operand.hbm [shape: f32[2,2,128], index: 12, kind: output, shape index: {2}]  }
   0x1   :  { %13651 = sst [smem:[#allocation79_spill]] %s13516_s2 }
   0x2   :  { %13652 = sst [smem:[#allocation80_spill]] %s13518_s4 }
   0x3   :  { %13653 = sst [smem:[#allocation81_spill]] %s13520_s6 }
   0x4   :  { %13654 = sst [smem:[#allocation82_spill]] %s13521_s7 }
   0x5   :  { %13655 = sst [smem:[#allocation83_spill]] %s13522_s8 }
   0x6   :  { %13656 = sst [smem:[#allocation84_spill]] %s13524_s10 }
   0x7   :  { %13657 = sst [smem:[#allocation85_spill]] %s13525_s11 }
   0x8   :  { %13658 = sst [smem:[#allocation86_spill]] %s13526_s12 }
   0x9   :  { %18 = vsyncpa [#allocation5], 0 }
   0xa   :  { %20 = vsyncpa [#allocation5 + $0x1], 0 }
   0xb   :  { %21 = vsyncpa [#allocation8], 0 }
   0xc   :  { %23 = vsyncpa [#allocation8 + $0x1], 0 }
   0xd   :  { %24 = vsyncpa [#allocation11], 0 }
   0xe   :  { %25 = vsyncpa [#allocation14], 0 }
   0xf   :  { %26 = vsyncpa [#allocation6], 0 }
  0x10   :  { %27 = vsyncpa [#allocation18], 0 }
  0x11   :  { %29 = vsyncpa [#allocation18 + $0x1], 0  ;;  %s10689_s21 = smov 0   ;;  %s10691_s22 = smov 0  }
  0x12   :  { %s10693_s23 = smov 0   ;;  %s10695_s24 = smov 0  }
  0x13   :  { %s10697_s25 = smov 0   ;;  %s10699_s26 = smov 0  }
  0x14 LB: > { %13659 = sst [smem:[#allocation26_spill]] %s10598_s23  ;;  %s10718_s27 = sadd.s32 4294967295, %s10610_s26   ;;  %s10610_s26 = sphi %s10699_s26, %s35_s26   ;;  %s10606_s25 = sphi %s10697_s25, %s13909_s25   ;;  %s10602_s24 = sphi %s10695_s24, %s13908_s24   ;;  %s10598_s23 = sphi %s10693_s23, %s13904_s23   ;;  %s10594_s22 = sphi %s10691_s22, %s13907_s22   ;;  %s10590_s21 = sphi %s10689_s21, %s13906_s21  }
  0x15   : > { %s13527_s28 = sadd.s32 4294967294, %s10610_s26   ;;  %p93_p0 = scmp.ne.s32.totalorder %s10594_s22, %s10590_s21 }
  0x16   : > { %p94_p1 = scmp.eq.s32.totalorder %s10718_s27, 0  ;;  %p323_p2 = scmp.eq.s32.totalorder %s10718_s27, 1 }
  0x17   : > { %p329_p3 = scmp.eq.s32.totalorder %s13527_s28, 1  ;;  %p6980_p5 = scmp.ge.s32.totalorder %s10610_s26, 1 }
  0x18   : > { %p10728_p4 = por %p94_p1, %p93_p0  ;;  %p364_p7 = scmp.lt.s32.totalorder %s10610_s26, 3 }
  0x19   : > { %p10733_p6 = por %p329_p3, %p93_p0  ;;  %s13663_s4 = sld [smem:[#allocation80_spill]] }
  0x1a   : > { %p10741_p8 = pnand %p6980_p5, %p364_p7  ;;  %s10612_s17 = smov [#allocation10]  }
  0x1b   : > { %s13661_s30 = scalar_select %p10733_p6, 1, 0 }
  0x1c   : > { %p9944_p9 = pneg %p10741_p8  ;;  %s387_s18 = sshll.u32 %s10612_s17, 4  ;;  %s388_s18 = int_to_ptr.vmem [resolvable:$true] %s387_s18 }
  0x1d   : > { %13662 = sst [smem:[#allocation27_spill]] %s13661_s30  ;;  %s10613_s14 = smov 128  }
  0x1e   : > { %p10749_p10 = pnand %p9944_p9, %p94_p1  ;;  %s13666_s7 = sld [smem:[#allocation82_spill]] }
  0x1f   : > { %s385_s15 = sshll.u32 %s13663_s4, 4  ;;  %s10614_s17 = smov 8   ;;  %s386_s15 = int_to_ptr.hbm [resolvable:$true] %s385_s15 }
  0x20   : > { %9947 = dma.hbm_to_vmem [thread:$0]  (!%p10749_p10), %s386_s15, 4096, %s388_s18, [#allocation11], %s10613_s14, %s10613_s14, %s10614_s17  }
  0x21   : > { %s10615_s28 = smov [#allocation13]   ;;  %s44_s30 = sadd.s32 1, %s10606_s25 }
  0x22   : > { %s417_s4 = sshll.u32 %s10615_s28, 4  ;;  %s80_s12 = sadd.s32 1, %s10598_s23  ;;  %s418_s4 = int_to_ptr.vmem [resolvable:$true] %s417_s4 }
  0x23   : > { %p45_p12 = scmp.ge.s32.totalorder %s44_s30, 2  ;;  %p87_p13 = scmp.ne.s32.totalorder %s10598_s23, %s10594_s22 }
  0x24   : > { %s415_s13 = sshll.u32 %s13666_s7, 4  ;;  %p88_p0 = scmp.eq.s32.totalorder %s10610_s26, 0  ;;  %s416_s13 = int_to_ptr.hbm [resolvable:$true] %s415_s13 }
  0x25   : > { %9953 = dma.hbm_to_vmem [thread:$0]  (!%p10749_p10), %s416_s13, 16, %s418_s4, [#allocation14]  }
  0x26   : > { %p9978_p3 = scmp.lt.s32.totalorder %s10610_s26, 2  ;;  %s13911_s30 = smov (%p45_p12, %s44_s30), 0 }
  0x27   : > { %13667 = sst [smem:[#allocation28_spill]] %s13911_s30  ;;  %p89_p5 = por %p88_p0, %p87_p13 }
  0x28   : > { %p10771_p7 = por %p323_p2, %p87_p13  ;;  %s77_s28 = ssub.s32 %s10606_s25, %s13911_s30 }
  0x29   : > { %s10778_s18 = sand.u32 1, %s10598_s23   ;;  %p78_p9 = scmp.eq.s32.totalorder %s77_s28, 0 }
  0x2a   : > { %s13668_s15 = scalar_select %p10771_p7, 1, 0 }
  0x2b   : > { %p10780_p11 = pnand %p9978_p3, %p89_p5  ;;  %s465_s20 = sand.u32 1, %s10610_s26  }
  0x2c   : > { %13669 = sst [smem:[#allocation29_spill]] %s13668_s15  ;;  %s6990_s13 = sshll.u32 %s10778_s18, 9 }
  0x2d   : > { %s10786_s21 = scalar_select %p78_p9, %s10598_s23, %s80_s12  }
  0x2e   : > { %s9337_s14 = sshll.u32 %s10606_s25, 9  ;;  %s13672_s2 = sld [smem:[#allocation79_spill]] }
  0x2f   : > { %13671 = sst [smem:[#allocation30_spill]] %s10786_s21  ;;  %s469_s30 = scalar_lea.vmem [#allocation7], %s6990_s13 }
  0x30   : > { %s477_s15 = sshll.u32 %s469_s30, 4  ;;  %s400_s6 = sshll.u32 %s13519_s5, 4  ;;  %s478_s15 = int_to_ptr.vmem [resolvable:$true] %s477_s15  ;;  %s401_s6 = int_to_ptr.hbm [resolvable:$true] %s400_s6 }
  0x31   : > { %s10796_s12 = scalar_lea.sflag [#allocation8], %s465_s20  ;;  %s10616_s21 = smov 512  }
  0x32   : > { %s10617_s23 = smov 32   ;;  %s10618_s7 = smov [#allocation12]  }
  0x33   : > { %s10619_s8 = smov [#allocation15]   ;;  %s6987_s17 = sshll.u32 %s10778_s18, 12 }
  0x34   : > { %s474_s10 = scalar_lea.hbm %s13672_s2, %s9337_s14  ;;  %s430_s14 = sshll.u32 %s13523_s9, 4  ;;  %s431_s14 = int_to_ptr.hbm [resolvable:$true] %s430_s14 }
  0x35   : > { %s475_s11 = sshll.u32 %s474_s10, 4  ;;  %s402_s10 = sshll.u32 %s10618_s7, 4  ;;  %s476_s11 = int_to_ptr.hbm [resolvable:$true] %s475_s11  ;;  %s403_s10 = int_to_ptr.vmem [resolvable:$true] %s402_s10 }
  0x36   : > { %9963 = dma.hbm_to_vmem [thread:$0]  (!%p10780_p11), %s476_s11, 8192, %s478_s15, %s10796_s12, %s10616_s21, %s10616_s21, %s10617_s23  }
  0x37   : > { %9950 = dma.hbm_to_vmem [thread:$0]  (!%p10749_p10), %s401_s6, 32, %s403_s10, [#allocation11]  }
  0x38   : > { %s432_s20 = sshll.u32 %s10619_s8, 4  ;;  %s9336_s11 = sshll.u32 %s10606_s25, 4  ;;  %s433_s20 = int_to_ptr.vmem [resolvable:$true] %s432_s20 }
  0x39   : > { %9956 = dma.hbm_to_vmem [thread:$0]  (!%p10749_p10), %s431_s14, 16, %s433_s20, [#allocation14]  }
  0x3a   : > { %s447_s23 = scalar_lea.vmem [#allocation4], %s6987_s17  ;;  %s452_s30 = scalar_lea.hbm %s13515_s1, %s9336_s11 }
  0x3b   : > { %s455_s15 = sshll.u32 %s447_s23, 4  ;;  %s453_s6 = sshll.u32 %s452_s30, 4  ;;  %s456_s15 = int_to_ptr.vmem [resolvable:$true] %s455_s15  ;;  %s454_s6 = int_to_ptr.hbm [resolvable:$true] %s453_s6 }
  0x3c   : > { %s444_s10 = scalar_lea.sflag [#allocation5], %s10778_s18  ;;  %s10620_s13 = smov 256  }
  0x3d   : > { %s10621_s8 = smov 16   ;;  %s6993_s19 = sshll.u32 %s10778_s18, 2 }
  0x3e   : > { %9960 = dma.hbm_to_vmem [thread:$0]  (!%p10780_p11), %s454_s6, 65536, %s456_s15, %s444_s10, %s10616_s21, %s10620_s13, %s10621_s8  }
  0x3f   : > { %s6994_s14 = sshll.u32 %s10606_s25, 2  ;;  %s491_s28 = scalar_lea.vmem [#allocation9], %s6993_s19 }
  0x40   : > { %s495_s23 = scalar_lea.hbm %s13517_s3, %s6994_s14  ;;  %s499_s11 = sshll.u32 %s491_s28, 4  ;;  %s500_s11 = int_to_ptr.vmem [resolvable:$true] %s499_s11 }
  0x41   : > { %s497_s2 = sshll.u32 %s495_s23, 4  ;;  %508 = sbr.rel (%p10741_p8) target bundleno = 2954 (0xb8a), region = 60  ;;  %s498_s2 = int_to_ptr.hbm [resolvable:$true] %s497_s2 }
  0x42   : > { %9966 = dma.hbm_to_vmem [thread:$0]  (!%p10780_p11), %s498_s2, 64, %s500_s11, %s10796_s12  }
  0x46   : > { %s10830_s7 = sand.u32 1, %s10594_s22  }
  0x47   : > { %s6996_s18 = sshll.u32 %s10830_s7, 12  ;;  %s511_s21 = scalar_lea.sflag [#allocation5], %s10830_s7 }
  0x48   : > { %s10834_s15 = scalar_lea.vmem [#allocation4], %s6996_s18 }
  0x49   : > { %10565 = dma.done.wait (%p10728_p4), %s511_s21, 65536  }
  0x4a   : > { %10567 = vsyncadd (%p10728_p4), %s511_s21, 4294901760  ;;  %s520_s2 = sand.u32 1, %s10718_s27   ;;  %s6997_s16 = sshll.u32 %s10830_s7, 9 }
  0x4b   : > { %s521_s4 = scalar_lea.sflag [#allocation8], %s520_s2  ;;  %s10844_s12 = scalar_lea.vmem [#allocation7], %s6997_s16 }
  0x4c   : > { %10569 = dma.done.wait (%p10728_p4), %s521_s4, 8256  }
  0x4d   : > { %10571 = vsyncadd (%p10728_p4), %s521_s4, 4294959040  ;;  %s6998_s30 = sshll.u32 %s10830_s7, 2 }
  0x4e   : > { %s10851_s6 = scalar_lea.vmem [#allocation9], %s6998_s30 }
  0x4f   : > { %10573 = dma.done.wait (%p94_p1), [#allocation11], 4128  }
  0x50   : > { %10575 = vsyncadd (%p94_p1), [#allocation11], 4294963168 }
  0x51   : > { %10577 = dma.done.wait (%p94_p1), [#allocation14], 32  }
  0x52   : > { %10579 = vsyncadd (%p94_p1), [#allocation14], 4294967264  ;;  %v7183_v0 = vld [vmem:[%s10834_s15 + $0xe0] sm:$0xf]  ;;  %v9384_v1 = vld [vmem:[%s10834_s15 + $0xec] sm:$0xf0] }
  0x53   : > { %v7439_v2 = vld [vmem:[%s10834_s15 + $0x2e0] sm:$0xf]  ;;  %v7184_v3 = vor.u32 %v9384_v1, %v7183_v0  ;;  %v9448_v4 = vld [vmem:[%s10834_s15 + $0x2ec] sm:$0xf0]  ;;  %p625_p1 = scmp.eq.s32.totalorder %s10602_s24, 0  ;;  %vm4871_vm1 = vcmask 1040384  }
  0x54   : > { %v7567_v5 = vld [vmem:[%s10834_s15 + $0x3e0] sm:$0xf]  ;;  %v9480_v6 = vld [vmem:[%s10834_s15 + $0x3ec] sm:$0xf0]  ;;  %v7440_v7 = vor.u32 %v9448_v4, %v7439_v2  ;;  %vm4877_vm2 = vcmask 1041409   ;;  %vm4873_vm3 = vcmask 1042434  }
  0x55   : > { %v7568_v8 = vor.u32 %v9480_v6, %v7567_v5  ;;  %v7311_v9 = vld [vmem:[%s10834_s15 + $0x1e0] sm:$0xf]  ;;  %v9416_v10 = vld [vmem:[%s10834_s15 + $0x1ec] sm:$0xf0]  ;;  %3804 = vmatpush.bf16.msra.mxu0 %v7184_v3  ;;  %vm4879_vm4 = vcmask 1043459   ;;  %vm4875_vm5 = vcmask 1041408  }
  0x56   : > { %v7167_v11 = vld [vmem:[%s10834_s15 + $0xc0] sm:$0xf]  ;;  %v7312_v12 = vor.u32 %v9416_v10, %v7311_v9  ;;  %v9380_v13 = vld [vmem:[%s10834_s15 + $0xcc] sm:$0xf0]  ;;  %3832 = vmatpush.bf16.msra.mxu2 %v7440_v7  ;;  %vm4881_vm6 = vcmask 1042433   ;;  %p9133_p4 = scmp.ne.s32.totalorder %s10602_s24, 0 }
  0x57   : > { %v7423_v14 = vld [vmem:[%s10834_s15 + $0x2c0] sm:$0xf]  ;;  %v9444_v15 = vld [vmem:[%s10834_s15 + $0x2cc] sm:$0xf0]  ;;  %3846 = vmatpush.bf16.msra.mxu3 %v7568_v8  ;;  %v7168_v16 = vor.u32 %v9380_v13, %v7167_v11 }
  0x58   : > { %v7424_v17 = vor.u32 %v9444_v15, %v7423_v14  ;;  %v7551_v18 = vld [vmem:[%s10834_s15 + $0x3c0] sm:$0xf]  ;;  %v9476_v19 = vld [vmem:[%s10834_s15 + $0x3cc] sm:$0xf0]  ;;  %3818 = vmatpush.bf16.msra.mxu1 %v7312_v12 }
  0x59   : > { %v7295_v20 = vld [vmem:[%s10834_s15 + $0x1c0] sm:$0xf]  ;;  %v7552_v21 = vor.u32 %v9476_v19, %v7551_v18  ;;  %v9412_v22 = vld [vmem:[%s10834_s15 + $0x1cc] sm:$0xf0]  ;;  %3805 = vmatpush.bf16.msra.mxu0 %v7168_v16 }
  0x5a   : > { %v7151_v23 = vld [vmem:[%s10834_s15 + $0xa0] sm:$0xf]  ;;  %v9376_v24 = vld [vmem:[%s10834_s15 + $0xac] sm:$0xf0]  ;;  %v7296_v25 = vor.u32 %v9412_v22, %v7295_v20  ;;  %3833 = vmatpush.bf16.msra.mxu2 %v7424_v17 }
  0x5b   : > { %v7407_v26 = vld [vmem:[%s10834_s15 + $0x2a0] sm:$0xf]  ;;  %v9440_v27 = vld [vmem:[%s10834_s15 + $0x2ac] sm:$0xf0]  ;;  %v7152_v29 = vor.u32 %v9376_v24, %v7151_v23  ;;  %3847 = vmatpush.bf16.msra.mxu3 %v7552_v21 }
  0x5c   : > { %v7535_v28 = vld [vmem:[%s10834_s15 + $0x3a0] sm:$0xf]  ;;  %v9472_v30 = vld [vmem:[%s10834_s15 + $0x3ac] sm:$0xf0]  ;;  %v7408_v33 = vor.u32 %v9440_v27, %v7407_v26  ;;  %3819 = vmatpush.bf16.msra.mxu1 %v7296_v25 }
  0x5d   : > { %v7279_v31 = vld [vmem:[%s10834_s15 + $0x1a0] sm:$0xf]  ;;  %v9408_v32 = vld [vmem:[%s10834_s15 + $0x1ac] sm:$0xf0]  ;;  %v7536_v34 = vor.u32 %v9472_v30, %v7535_v28  ;;  %3806 = vmatpush.bf16.msra.mxu0 %v7152_v29 }
  0x5e   : > { %v7135_v35 = vld [vmem:[%s10834_s15 + $0x80] sm:$0xf]  ;;  %v9372_v36 = vld [vmem:[%s10834_s15 + $0x8c] sm:$0xf0]  ;;  %v7280_v38 = vor.u32 %v9408_v32, %v7279_v31  ;;  %3834 = vmatpush.bf16.msra.mxu2 %v7408_v33 }
  0x5f   : > { %v7391_v37 = vld [vmem:[%s10834_s15 + $0x280] sm:$0xf]  ;;  %v9436_v39 = vld [vmem:[%s10834_s15 + $0x28c] sm:$0xf0]  ;;  %v7136_v44 = vor.u32 %v9372_v36, %v7135_v35  ;;  %3848 = vmatpush.bf16.msra.mxu3 %v7536_v34 }
  0x60   : > { %v7519_v40 = vld [vmem:[%s10834_s15 + $0x380] sm:$0xf]  ;;  %v9468_v41 = vld [vmem:[%s10834_s15 + $0x38c] sm:$0xf0]  ;;  %v7392_v45 = vor.u32 %v9436_v39, %v7391_v37  ;;  %3820 = vmatpush.bf16.msra.mxu1 %v7280_v38 }
  0x61   : > { %v7263_v42 = vld [vmem:[%s10834_s15 + $0x180] sm:$0xf]  ;;  %v9404_v43 = vld [vmem:[%s10834_s15 + $0x18c] sm:$0xf0]  ;;  %v7520_v46 = vor.u32 %v9468_v41, %v7519_v40  ;;  %3807 = vmatpush.bf16.msra.mxu0 %v7136_v44 }
  0x62   : > { %v7119_v47 = vld [vmem:[%s10834_s15 + $0x60] sm:$0xf]  ;;  %v9368_v48 = vld [vmem:[%s10834_s15 + $0x6c] sm:$0xf0]  ;;  %v7264_v50 = vor.u32 %v9404_v43, %v7263_v42  ;;  %3835 = vmatpush.bf16.msra.mxu2 %v7392_v45 }
  0x63   : > { %v7375_v49 = vld [vmem:[%s10834_s15 + $0x260] sm:$0xf]  ;;  %v9432_v51 = vld [vmem:[%s10834_s15 + $0x26c] sm:$0xf0]  ;;  %v7120_v56 = vor.u32 %v9368_v48, %v7119_v47  ;;  %3849 = vmatpush.bf16.msra.mxu3 %v7520_v46 }
  0x64   : > { %v7503_v52 = vld [vmem:[%s10834_s15 + $0x360] sm:$0xf]  ;;  %v9464_v53 = vld [vmem:[%s10834_s15 + $0x36c] sm:$0xf0]  ;;  %v7376_v57 = vor.u32 %v9432_v51, %v7375_v49  ;;  %3821 = vmatpush.bf16.msra.mxu1 %v7264_v50 }
  0x65   : > { %v7247_v54 = vld [vmem:[%s10834_s15 + $0x160] sm:$0xf]  ;;  %v9400_v55 = vld [vmem:[%s10834_s15 + $0x16c] sm:$0xf0]  ;;  %v7504_v58 = vor.u32 %v9464_v53, %v7503_v52  ;;  %3808 = vmatpush.bf16.msra.mxu0 %v7120_v56  ;;  %v7007_v53 = vld [vmem:[%s13514_s0] sm:$0xf] }
  0x66   : > { %v7103_v59 = vld [vmem:[%s10834_s15 + $0x40] sm:$0xf]  ;;  %v9364_v60 = vld [vmem:[%s10834_s15 + $0x4c] sm:$0xf0]  ;;  %v7248_v62 = vor.u32 %v9400_v55, %v7247_v54  ;;  %3836 = vmatpush.bf16.msra.mxu2 %v7376_v57  ;;  %v9346_v54 = vld [vmem:[%s13514_s0 + $0x3c] sm:$0xf0] }
  0x67   : > { %v7359_v61 = vld [vmem:[%s10834_s15 + $0x240] sm:$0xf]  ;;  %v9428_v63 = vld [vmem:[%s10834_s15 + $0x24c] sm:$0xf0]  ;;  %v7104_v4 = vor.u32 %v9364_v60, %v7103_v59  ;;  %3850 = vmatpush.bf16.msra.mxu3 %v7504_v58  ;;  %v7015_v55 = vld [vmem:[%s13514_s0 + $0x8] sm:$0xf]  ;;  %v10953_v60 = vor.u32 %v9346_v54, %v7007_v53 }
  0x68   : > { %v7487_v0 = vld [vmem:[%s10834_s15 + $0x340] sm:$0xf]  ;;  %v9460_v1 = vld [vmem:[%s10834_s15 + $0x34c] sm:$0xf0]  ;;  %v7360_v5 = vor.u32 %v9428_v63, %v7359_v61  ;;  %3822 = vmatpush.bf16.msra.mxu1 %v7248_v62  ;;  %v9347_v61 = vld [vmem:[%s13514_s0 + $0x44] sm:$0xf0] }
  0x69   : > { %v7231_v2 = vld [vmem:[%s10834_s15 + $0x140] sm:$0xf]  ;;  %v9396_v3 = vld [vmem:[%s10834_s15 + $0x14c] sm:$0xf0]  ;;  %v7488_v6 = vor.u32 %v9460_v1, %v7487_v0  ;;  %3809 = vmatpush.bf16.msra.mxu0 %v7104_v4 }
  0x6a   : > { %v7087_v7 = vld [vmem:[%s10834_s15 + $0x20] sm:$0xf]  ;;  %v9360_v8 = vld [vmem:[%s10834_s15 + $0x2c] sm:$0xf0]  ;;  %v7232_v10 = vor.u32 %v9396_v3, %v7231_v2  ;;  %3837 = vmatpush.bf16.msra.mxu2 %v7360_v5  ;;  %v10961_v2 = vor.u32 %v9347_v61, %v7015_v55  ;;  %v9338_v5 = vld [vmem:[%s13514_s0 + $0x4] sm:$0xf] }
  0x6b   : > { %v7343_v9 = vld [vmem:[%s10834_s15 + $0x220] sm:$0xf]  ;;  %v9424_v11 = vld [vmem:[%s10834_s15 + $0x22c] sm:$0xf0]  ;;  %v7088_v16 = vor.u32 %v9360_v8, %v7087_v7  ;;  %3851 = vmatpush.bf16.msra.mxu3 %v7488_v6  ;;  %v7009_v6 = vld [vmem:[%s13514_s0 + $0x40] sm:$0xf0] }
  0x6c   : > { %v7471_v12 = vld [vmem:[%s10834_s15 + $0x320] sm:$0xf]  ;;  %v9456_v13 = vld [vmem:[%s10834_s15 + $0x32c] sm:$0xf0]  ;;  %v7344_v19 = vor.u32 %v9424_v11, %v7343_v9  ;;  %3823 = vmatpush.bf16.msra.mxu1 %v7232_v10  ;;  %v10973_v8 = vor.u32 %v9338_v5, %v7009_v6 }
  0x6d   : > { %v7215_v14 = vld [vmem:[%s10834_s15 + $0x120] sm:$0xf]  ;;  %v9392_v15 = vld [vmem:[%s10834_s15 + $0x12c] sm:$0xf0]  ;;  %v7472_v20 = vor.u32 %v9456_v13, %v7471_v12  ;;  %3810 = vmatpush.bf16.msra.mxu0 %v7088_v16 }
  0x6e   : > { %v7071_v17 = vld [vmem:[%s10834_s15] sm:$0xf]  ;;  %v9356_v18 = vld [vmem:[%s10834_s15 + $0xc] sm:$0xf0]  ;;  %v7216_v24 = vor.u32 %v9392_v15, %v7215_v14  ;;  %3838 = vmatpush.bf16.msra.mxu2 %v7344_v19 }
  0x6f   : > { %v7327_v21 = vld [vmem:[%s10834_s15 + $0x200] sm:$0xf]  ;;  %v9420_v22 = vld [vmem:[%s10834_s15 + $0x20c] sm:$0xf0]  ;;  %v7072_v31 = vor.u32 %v9356_v18, %v7071_v17  ;;  %3852 = vmatpush.bf16.msra.mxu3 %v7472_v20 }
  0x70   : > { %v7455_v23 = vld [vmem:[%s10834_s15 + $0x300] sm:$0xf]  ;;  %v9452_v25 = vld [vmem:[%s10834_s15 + $0x30c] sm:$0xf0]  ;;  %v7328_v35 = vor.u32 %v9420_v22, %v7327_v21  ;;  %3824 = vmatpush.bf16.msra.mxu1 %v7216_v24 }
  0x71   : > { %v7695_v26 = vld [vmem:[%s10834_s15 + $0x4e0] sm:$0xf]  ;;  %v9512_v27 = vld [vmem:[%s10834_s15 + $0x4ec] sm:$0xf0]  ;;  %v7456_v36 = vor.u32 %v9452_v25, %v7455_v23  ;;  %3811 = vmatpush.bf16.msra.mxu0 %v7072_v31 }
  0x72   : > { %v7951_v28 = vld [vmem:[%s10834_s15 + $0x6e0] sm:$0xf]  ;;  %v9576_v29 = vld [vmem:[%s10834_s15 + $0x6ec] sm:$0xf0]  ;;  %v7696_v39 = vor.u32 %v9512_v27, %v7695_v26  ;;  %3839 = vmatpush.bf16.msra.mxu2 %v7328_v35 }
  0x73   : > { %v8079_v30 = vld [vmem:[%s10834_s15 + $0x7e0] sm:$0xf]  ;;  %v9608_v32 = vld [vmem:[%s10834_s15 + $0x7ec] sm:$0xf0]  ;;  %v7952_v40 = vor.u32 %v9576_v29, %v7951_v28  ;;  %3853 = vmatpush.bf16.msra.mxu3 %v7456_v36 }
  0x74   : > { %v7199_v33 = vld [vmem:[%s10834_s15 + $0x100] sm:$0xf]  ;;  %v9388_v34 = vld [vmem:[%s10834_s15 + $0x10c] sm:$0xf0]  ;;  %v8080_v43 = vor.u32 %v9608_v32, %v8079_v30  ;;  %3812 = vmatmul.bf16.vlgmr.msra.gmra.mxu0 %v10953_v60 }
  0x75   : > { %v7823_v37 = vld [vmem:[%s10834_s15 + $0x5e0] sm:$0xf]  ;;  %v9544_v38 = vld [vmem:[%s10834_s15 + $0x5ec] sm:$0xf0]  ;;  %v7200_v44 = vor.u32 %v9388_v34, %v7199_v33  ;;  %3860 = vmatpush.bf16.msrb.mxu0 %v7696_v39  ;;  %3840 = vmatmul.bf16.vlgmr.msra.gmra.mxu2 %v10961_v2 }
  0x76   : > { %v7679_v41 = vld [vmem:[%s10834_s15 + $0x4c0] sm:$0xf]  ;;  %v9508_v42 = vld [vmem:[%s10834_s15 + $0x4cc] sm:$0xf0]  ;;  %v7824_v48 = vor.u32 %v9544_v38, %v7823_v37  ;;  %3888 = vmatpush.bf16.msrb.mxu2 %v7952_v40 }
  0x77   : > { %v7935_v45 = vld [vmem:[%s10834_s15 + $0x6c0] sm:$0xf]  ;;  %v9572_v46 = vld [vmem:[%s10834_s15 + $0x6cc] sm:$0xf0]  ;;  %v7680_v56 = vor.u32 %v9508_v42, %v7679_v41  ;;  %3902 = vmatpush.bf16.msrb.mxu3 %v8080_v43  ;;  %3825 = vmatpush.bf16.msra.mxu1 %v7200_v44 }
  0x78   : > { %v8063_v47 = vld [vmem:[%s10834_s15 + $0x7c0] sm:$0xf]  ;;  %v9604_v49 = vld [vmem:[%s10834_s15 + $0x7cc] sm:$0xf0]  ;;  %v7936_v57 = vor.u32 %v9572_v46, %v7935_v45 }
  0x79   : > { %v7807_v50 = vld [vmem:[%s10834_s15 + $0x5c0] sm:$0xf]  ;;  %v9540_v51 = vld [vmem:[%s10834_s15 + $0x5cc] sm:$0xf0]  ;;  %v8064_v62 = vor.u32 %v9604_v49, %v8063_v47  ;;  %3861 = vmatpush.bf16.msrb.mxu0 %v7680_v56 }
  0x7a   : > { %v7663_v52 = vld [vmem:[%s10834_s15 + $0x4a0] sm:$0xf]  ;;  %v9504_v58 = vld [vmem:[%s10834_s15 + $0x4ac] sm:$0xf0]  ;;  %v7808_v3 = vor.u32 %v9540_v51, %v7807_v50  ;;  %3889 = vmatpush.bf16.msrb.mxu2 %v7936_v57  ;;  %3826 = vmatmul.bf16.vlgmr.msra.gmra.mxu1 %v10973_v8 }
  0x7b   : > { %v7919_v59 = vld [vmem:[%s10834_s15 + $0x6a0] sm:$0xf]  ;;  %v9568_v63 = vld [vmem:[%s10834_s15 + $0x6ac] sm:$0xf0]  ;;  %3874 = vmatpush.bf16.msrb.mxu1 %v7824_v48  ;;  %v7664_v11 = vor.u32 %v9504_v58, %v7663_v52  ;;  %3903 = vmatpush.bf16.msrb.mxu3 %v8064_v62 }
  0x7c   : > { %v8047_v0 = vld [vmem:[%s10834_s15 + $0x7a0] sm:$0xf]  ;;  %v9600_v1 = vld [vmem:[%s10834_s15 + $0x7ac] sm:$0xf0]  ;;  %v7920_v12 = vor.u32 %v9568_v63, %v7919_v59 }
  0x7d   : > { %v7791_v4 = vld [vmem:[%s10834_s15 + $0x5a0] sm:$0xf]  ;;  %v9536_v7 = vld [vmem:[%s10834_s15 + $0x5ac] sm:$0xf0]  ;;  %v8048_v15 = vor.u32 %v9600_v1, %v8047_v0  ;;  %3862 = vmatpush.bf16.msrb.mxu0 %v7664_v11 }
  0x7e   : > { %v9339_v9 = vld [vmem:[%s13514_s0 + $0xc] sm:$0xf]  ;;  %v9500_v16 = vld [vmem:[%s10834_s15 + $0x48c] sm:$0xf0]  ;;  %v7792_v19 = vor.u32 %v9536_v7, %v7791_v4  ;;  %3890 = vmatpush.bf16.msrb.mxu2 %v7920_v12 }
  0x7f   : > { %v7017_v10 = vld [vmem:[%s13514_s0 + $0x48] sm:$0xf0]  ;;  %v9564_v18 = vld [vmem:[%s10834_s15 + $0x68c] sm:$0xf0]  ;;  %3875 = vmatpush.bf16.msrb.mxu1 %v7808_v3  ;;  %3904 = vmatpush.bf16.msrb.mxu3 %v8048_v15 }
  0x80   : > { %v7647_v13 = vld [vmem:[%s10834_s15 + $0x480] sm:$0xf]  ;;  %v10982_v14 = vor.u32 %v9339_v9, %v7017_v10  ;;  %v9596_v21 = vld [vmem:[%s10834_s15 + $0x78c] sm:$0xf0] }
  0x81   : > { %v7903_v17 = vld [vmem:[%s10834_s15 + $0x680] sm:$0xf]  ;;  %v9532_v23 = vld [vmem:[%s10834_s15 + $0x58c] sm:$0xf0]  ;;  %v7648_v24 = vor.u32 %v9500_v16, %v7647_v13 }
  0x82   : > { %v8031_v20 = vld [vmem:[%s10834_s15 + $0x780] sm:$0xf]  ;;  %3854 = vmatmul.bf16.vlgmr.msra.gmra.mxu3 %v10982_v14  ;;  %v7904_v25 = vor.u32 %v9564_v18, %v7903_v17  ;;  %v9496_v28 = vld [vmem:[%s10834_s15 + $0x46c] sm:$0xf0]  ;;  %v7023_v18 = vld [vmem:[%s13514_s0 + $0x10] sm:$0xf] }
  0x83   : > { %v7775_v22 = vld [vmem:[%s10834_s15 + $0x580] sm:$0xf]  ;;  %v8032_v27 = vor.u32 %v9596_v21, %v8031_v20  ;;  %v9560_v30 = vld [vmem:[%s10834_s15 + $0x66c] sm:$0xf0]  ;;  %3876 = vmatpush.bf16.msrb.mxu1 %v7792_v19  ;;  %3863 = vmatpush.bf16.msrb.mxu0 %v7648_v24  ;;  %v9348_v19 = vld [vmem:[%s13514_s0 + $0x4c] sm:$0xf0] }
  0x84   : > { %v7631_v26 = vld [vmem:[%s10834_s15 + $0x460] sm:$0xf]  ;;  %v7776_v31 = vor.u32 %v9532_v23, %v7775_v22  ;;  %v9592_v33 = vld [vmem:[%s10834_s15 + $0x76c] sm:$0xf0]  ;;  %3891 = vmatpush.bf16.msrb.mxu2 %v7904_v25  ;;  %v7031_v22 = vld [vmem:[%s13514_s0 + $0x18] sm:$0xf] }
  0x85   : > { %v7887_v29 = vld [vmem:[%s10834_s15 + $0x660] sm:$0xf]  ;;  %v9528_v35 = vld [vmem:[%s10834_s15 + $0x56c] sm:$0xf0]  ;;  %v7632_v36 = vor.u32 %v9496_v28, %v7631_v26  ;;  %3905 = vmatpush.bf16.msrb.mxu3 %v8032_v27  ;;  %v9349_v23 = vld [vmem:[%s13514_s0 + $0x54] sm:$0xf0] }
  0x86   : > { %v8015_v32 = vld [vmem:[%s10834_s15 + $0x760] sm:$0xf]  ;;  %v7888_v37 = vor.u32 %v9560_v30, %v7887_v29  ;;  %v9492_v40 = vld [vmem:[%s10834_s15 + $0x44c] sm:$0xf0]  ;;  %v9340_v28 = vld [vmem:[%s13514_s0 + $0x14] sm:$0xf] }
  0x87   : > { %v7759_v34 = vld [vmem:[%s10834_s15 + $0x560] sm:$0xf]  ;;  %v8016_v39 = vor.u32 %v9592_v33, %v8015_v32  ;;  %v9556_v42 = vld [vmem:[%s10834_s15 + $0x64c] sm:$0xf0]  ;;  %3877 = vmatpush.bf16.msrb.mxu1 %v7776_v31  ;;  %3864 = vmatpush.bf16.msrb.mxu0 %v7632_v36  ;;  %v11056_v36 = vor.u32 %v9348_v19, %v7023_v18 }
  0x88   : > { %v7615_v38 = vld [vmem:[%s10834_s15 + $0x440] sm:$0xf]  ;;  %v7760_v43 = vor.u32 %v9528_v35, %v7759_v34  ;;  %v9588_v45 = vld [vmem:[%s10834_s15 + $0x74c] sm:$0xf0]  ;;  %3892 = vmatpush.bf16.msrb.mxu2 %v7888_v37  ;;  %v7025_v37 = vld [vmem:[%s13514_s0 + $0x50] sm:$0xf0] }
  0x89   : > { %v7871_v41 = vld [vmem:[%s10834_s15 + $0x640] sm:$0xf]  ;;  %v9524_v47 = vld [vmem:[%s10834_s15 + $0x54c] sm:$0xf0]  ;;  %v7616_v48 = vor.u32 %v9492_v40, %v7615_v38  ;;  %3906 = vmatpush.bf16.msrb.mxu3 %v8016_v39  ;;  %v11063_v40 = vor.u32 %v9349_v23, %v7031_v22 }
  0x8a   : > { %v7999_v44 = vld [vmem:[%s10834_s15 + $0x740] sm:$0xf]  ;;  %v7872_v49 = vor.u32 %v9556_v42, %v7871_v41  ;;  %v9488_v51 = vld [vmem:[%s10834_s15 + $0x42c] sm:$0xf0] }
  0x8b   : > { %v7743_v46 = vld [vmem:[%s10834_s15 + $0x540] sm:$0xf]  ;;  %v8000_v52 = vor.u32 %v9588_v45, %v7999_v44  ;;  %v9552_v54 = vld [vmem:[%s10834_s15 + $0x62c] sm:$0xf0]  ;;  %3878 = vmatpush.bf16.msrb.mxu1 %v7760_v43  ;;  %3865 = vmatpush.bf16.msrb.mxu0 %v7616_v48  ;;  %v11071_v48 = vor.u32 %v9340_v28, %v7025_v37 }
  0x8c   : > { %v7599_v50 = vld [vmem:[%s10834_s15 + $0x420] sm:$0xf]  ;;  %v7744_v56 = vor.u32 %v9524_v47, %v7743_v46  ;;  %v9584_v57 = vld [vmem:[%s10834_s15 + $0x72c] sm:$0xf0]  ;;  %3893 = vmatpush.bf16.msrb.mxu2 %v7872_v49 }
  0x8d   : > { %v7855_v53 = vld [vmem:[%s10834_s15 + $0x620] sm:$0xf]  ;;  %v9520_v59 = vld [vmem:[%s10834_s15 + $0x52c] sm:$0xf0]  ;;  %v7600_v1 = vor.u32 %v9488_v51, %v7599_v50  ;;  %3907 = vmatpush.bf16.msrb.mxu3 %v8000_v52 }
  0x8e   : > { %v7983_v55 = vld [vmem:[%s10834_s15 + $0x720] sm:$0xf]  ;;  %v9484_v62 = vld [vmem:[%s10834_s15 + $0x40c] sm:$0xf0]  ;;  %v7856_v3 = vor.u32 %v9552_v54, %v7855_v53 }
  0x8f   : > { %v7727_v58 = vld [vmem:[%s10834_s15 + $0x520] sm:$0xf]  ;;  %v9548_v0 = vld [vmem:[%s10834_s15 + $0x60c] sm:$0xf0]  ;;  %v7984_v7 = vor.u32 %v9584_v57, %v7983_v55  ;;  %3879 = vmatpush.bf16.msrb.mxu1 %v7744_v56  ;;  %3866 = vmatpush.bf16.msrb.mxu0 %v7600_v1 }
  0x90   : > { %v7583_v61 = vld [vmem:[%s10834_s15 + $0x400] sm:$0xf]  ;;  %v9580_v5 = vld [vmem:[%s10834_s15 + $0x70c] sm:$0xf0]  ;;  %v7728_v12 = vor.u32 %v9520_v59, %v7727_v58  ;;  %3894 = vmatpush.bf16.msrb.mxu2 %v7856_v3 }
  0x91   : > { %v7839_v63 = vld [vmem:[%s10834_s15 + $0x600] sm:$0xf]  ;;  %v9640_v9 = vld [vmem:[%s10834_s15 + $0x8ec] sm:$0xf0]  ;;  %v7584_v20 = vor.u32 %v9484_v62, %v7583_v61  ;;  %3908 = vmatpush.bf16.msrb.mxu3 %v7984_v7 }
  0x92   : > { %v7967_v4 = vld [vmem:[%s10834_s15 + $0x700] sm:$0xf]  ;;  %v9704_v11 = vld [vmem:[%s10834_s15 + $0xaec] sm:$0xf0]  ;;  %v7840_v21 = vor.u32 %v9548_v0, %v7839_v63 }
  0x93   : > { %v8207_v6 = vld [vmem:[%s10834_s15 + $0x8e0] sm:$0xf]  ;;  %v9736_v15 = vld [vmem:[%s10834_s15 + $0xbec] sm:$0xf0]  ;;  %v7968_v25 = vor.u32 %v9580_v5, %v7967_v4  ;;  %3880 = vmatpush.bf16.msrb.mxu1 %v7728_v12  ;;  %3867 = vmatpush.bf16.msrb.mxu0 %v7584_v20 }
  0x94   : > { %v8463_v10 = vld [vmem:[%s10834_s15 + $0xae0] sm:$0xf]  ;;  %v9516_v17 = vld [vmem:[%s10834_s15 + $0x50c] sm:$0xf0]  ;;  %v8208_v26 = vor.u32 %v9640_v9, %v8207_v6  ;;  %3895 = vmatpush.bf16.msrb.mxu2 %v7840_v21 }
  0x95   : > { %v8591_v13 = vld [vmem:[%s10834_s15 + $0xbe0] sm:$0xf]  ;;  %v9672_v27 = vld [vmem:[%s10834_s15 + $0x9ec] sm:$0xf0]  ;;  %v8464_v30 = vor.u32 %v9704_v11, %v8463_v10  ;;  %3909 = vmatpush.bf16.msrb.mxu3 %v7968_v25 }
  0x96   : > { %v7711_v16 = vld [vmem:[%s10834_s15 + $0x500] sm:$0xf]  ;;  %v9341_v29 = vld [vmem:[%s13514_s0 + $0x1c] sm:$0xf]  ;;  %v8592_v31 = vor.u32 %v9736_v15, %v8591_v13  ;;  %3868 = vmatmul.bf16.vlgmr.msrb.gmra.mxu0 %v11056_v36 }
  0x97   : > { %v8335_v24 = vld [vmem:[%s10834_s15 + $0x9e0] sm:$0xf]  ;;  %v7033_v32 = vld [vmem:[%s13514_s0 + $0x58] sm:$0xf0]  ;;  %v7712_v35 = vor.u32 %v9516_v17, %v7711_v16  ;;  %3916 = vmatpush.bf16.msra.mxu0 %v8208_v26  ;;  %3896 = vmatmul.bf16.vlgmr.msrb.gmra.mxu2 %v11063_v40 }
  0x98   : > { %v8191_v33 = vld [vmem:[%s10834_s15 + $0x8c0] sm:$0xf]  ;;  %v9636_v34 = vld [vmem:[%s10834_s15 + $0x8cc] sm:$0xf0]  ;;  %v8336_v41 = vor.u32 %v9672_v27, %v8335_v24  ;;  %v11067_v44 = vor.u32 %v9341_v29, %v7033_v32  ;;  %3944 = vmatpush.bf16.msra.mxu2 %v8464_v30 }
  0x99   : > { %v8447_v38 = vld [vmem:[%s10834_s15 + $0xac0] sm:$0xf]  ;;  %v9700_v39 = vld [vmem:[%s10834_s15 + $0xacc] sm:$0xf0]  ;;  %v8192_v45 = vor.u32 %v9636_v34, %v8191_v33  ;;  %3958 = vmatpush.bf16.msra.mxu3 %v8592_v31  ;;  %3881 = vmatpush.bf16.msrb.mxu1 %v7712_v35 }
  0x9a   : > { %v8575_v42 = vld [vmem:[%s10834_s15 + $0xbc0] sm:$0xf]  ;;  %v9732_v43 = vld [vmem:[%s10834_s15 + $0xbcc] sm:$0xf0]  ;;  %v8448_v49 = vor.u32 %v9700_v39, %v8447_v38  ;;  %3910 = vmatmul.bf16.vlgmr.msrb.gmra.mxu3 %v11067_v44 }
  0x9b   : > { %v8319_v46 = vld [vmem:[%s10834_s15 + $0x9c0] sm:$0xf]  ;;  %v9668_v47 = vld [vmem:[%s10834_s15 + $0x9cc] sm:$0xf0]  ;;  %v8576_v52 = vor.u32 %v9732_v43, %v8575_v42  ;;  %3917 = vmatpush.bf16.msra.mxu0 %v8192_v45 }
  0x9c   : > { %v8175_v50 = vld [vmem:[%s10834_s15 + $0x8a0] sm:$0xf]  ;;  %v9632_v51 = vld [vmem:[%s10834_s15 + $0x8ac] sm:$0xf0]  ;;  %v8320_v55 = vor.u32 %v9668_v47, %v8319_v46  ;;  %3882 = vmatmul.bf16.vlgmr.msrb.gmra.mxu1 %v11071_v48  ;;  %3945 = vmatpush.bf16.msra.mxu2 %v8448_v49 }
  0x9d   : > { %v8431_v53 = vld [vmem:[%s10834_s15 + $0xaa0] sm:$0xf]  ;;  %v9696_v54 = vld [vmem:[%s10834_s15 + $0xaac] sm:$0xf0]  ;;  %3930 = vmatpush.bf16.msra.mxu1 %v8336_v41  ;;  %v8176_v58 = vor.u32 %v9632_v51, %v8175_v50  ;;  %3959 = vmatpush.bf16.msra.mxu3 %v8576_v52 }
  0x9e   : > { %v8559_v56 = vld [vmem:[%s10834_s15 + $0xba0] sm:$0xf]  ;;  %v9728_v57 = vld [vmem:[%s10834_s15 + $0xbac] sm:$0xf0]  ;;  %v8432_v62 = vor.u32 %v9696_v54, %v8431_v53 }
  0x9f   : > { %v8303_v59 = vld [vmem:[%s10834_s15 + $0x9a0] sm:$0xf]  ;;  %v9664_v61 = vld [vmem:[%s10834_s15 + $0x9ac] sm:$0xf0]  ;;  %v8560_v1 = vor.u32 %v9728_v57, %v8559_v56  ;;  %3918 = vmatpush.bf16.msra.mxu0 %v8176_v58 }
  0xa0   : > { %v8159_v63 = vld [vmem:[%s10834_s15 + $0x880] sm:$0xf]  ;;  %v9628_v0 = vld [vmem:[%s10834_s15 + $0x88c] sm:$0xf0]  ;;  %v8304_v5 = vor.u32 %v9664_v61, %v8303_v59  ;;  %3946 = vmatpush.bf16.msra.mxu2 %v8432_v62 }
  0xa1   : > { %v8415_v3 = vld [vmem:[%s10834_s15 + $0xa80] sm:$0xf]  ;;  %v9692_v4 = vld [vmem:[%s10834_s15 + $0xa8c] sm:$0xf0]  ;;  %3931 = vmatpush.bf16.msra.mxu1 %v8320_v55  ;;  %v8160_v9 = vor.u32 %v9628_v0, %v8159_v63  ;;  %3960 = vmatpush.bf16.msra.mxu3 %v8560_v1 }
  0xa2   : > { %v8543_v6 = vld [vmem:[%s10834_s15 + $0xb80] sm:$0xf]  ;;  %v9724_v7 = vld [vmem:[%s10834_s15 + $0xb8c] sm:$0xf0]  ;;  %v8416_v12 = vor.u32 %v9692_v4, %v8415_v3 }
  0xa3   : > { %v8287_v10 = vld [vmem:[%s10834_s15 + $0x980] sm:$0xf]  ;;  %v9660_v11 = vld [vmem:[%s10834_s15 + $0x98c] sm:$0xf0]  ;;  %v8544_v16 = vor.u32 %v9724_v7, %v8543_v6  ;;  %3919 = vmatpush.bf16.msra.mxu0 %v8160_v9  ;;  %v7039_v9 = vld [vmem:[%s13514_s0 + $0x20] sm:$0xf] }
  0xa4   : > { %v8143_v13 = vld [vmem:[%s10834_s15 + $0x860] sm:$0xf]  ;;  %v9624_v15 = vld [vmem:[%s10834_s15 + $0x86c] sm:$0xf0]  ;;  %v8288_v19 = vor.u32 %v9660_v11, %v8287_v10  ;;  %3947 = vmatpush.bf16.msra.mxu2 %v8416_v12  ;;  %v9350_v11 = vld [vmem:[%s13514_s0 + $0x5c] sm:$0xf0] }
  0xa5   : > { %v8399_v17 = vld [vmem:[%s10834_s15 + $0xa60] sm:$0xf]  ;;  %v9688_v18 = vld [vmem:[%s10834_s15 + $0xa6c] sm:$0xf0]  ;;  %3932 = vmatpush.bf16.msra.mxu1 %v8304_v5  ;;  %v8144_v22 = vor.u32 %v9624_v15, %v8143_v13  ;;  %3961 = vmatpush.bf16.msra.mxu3 %v8544_v16  ;;  %v7047_v12 = vld [vmem:[%s13514_s0 + $0x28] sm:$0xf] }
  0xa6   : > { %v8527_v20 = vld [vmem:[%s10834_s15 + $0xb60] sm:$0xf]  ;;  %v9720_v21 = vld [vmem:[%s10834_s15 + $0xb6c] sm:$0xf0]  ;;  %v8400_v25 = vor.u32 %v9688_v18, %v8399_v17  ;;  %v9351_v13 = vld [vmem:[%s13514_s0 + $0x64] sm:$0xf0] }
  0xa7   : > { %v8271_v23 = vld [vmem:[%s10834_s15 + $0x960] sm:$0xf]  ;;  %v9656_v24 = vld [vmem:[%s10834_s15 + $0x96c] sm:$0xf0]  ;;  %v8528_v28 = vor.u32 %v9720_v21, %v8527_v20  ;;  %3920 = vmatpush.bf16.msra.mxu0 %v8144_v22  ;;  %v7041_v22 = vld [vmem:[%s13514_s0 + $0x60] sm:$0xf0] }
  0xa8   : > { %v8127_v26 = vld [vmem:[%s10834_s15 + $0x840] sm:$0xf]  ;;  %v9620_v27 = vld [vmem:[%s10834_s15 + $0x84c] sm:$0xf0]  ;;  %v8272_v31 = vor.u32 %v9656_v24, %v8271_v23  ;;  %3948 = vmatpush.bf16.msra.mxu2 %v8400_v25 }
  0xa9   : > { %v8383_v29 = vld [vmem:[%s10834_s15 + $0xa40] sm:$0xf]  ;;  %v9684_v30 = vld [vmem:[%s10834_s15 + $0xa4c] sm:$0xf0]  ;;  %3933 = vmatpush.bf16.msra.mxu1 %v8288_v19  ;;  %v8128_v34 = vor.u32 %v9620_v27, %v8127_v26  ;;  %3962 = vmatpush.bf16.msra.mxu3 %v8528_v28  ;;  %v9342_v19 = vld [vmem:[%s13514_s0 + $0x24] sm:$0xf] }
  0xaa   : > { %v8511_v32 = vld [vmem:[%s10834_s15 + $0xb40] sm:$0xf]  ;;  %v9716_v33 = vld [vmem:[%s10834_s15 + $0xb4c] sm:$0xf0]  ;;  %v8384_v38 = vor.u32 %v9684_v30, %v8383_v29  ;;  %v11160_v30 = vor.u32 %v9350_v11, %v7039_v9 }
  0xab   : > { %v8255_v35 = vld [vmem:[%s10834_s15 + $0x940] sm:$0xf]  ;;  %v9652_v37 = vld [vmem:[%s10834_s15 + $0x94c] sm:$0xf0]  ;;  %v8512_v43 = vor.u32 %v9716_v33, %v8511_v32  ;;  %3921 = vmatpush.bf16.msra.mxu0 %v8128_v34 }
  0xac   : > { %v8111_v39 = vld [vmem:[%s10834_s15 + $0x820] sm:$0xf]  ;;  %v9616_v41 = vld [vmem:[%s10834_s15 + $0x82c] sm:$0xf0]  ;;  %v8256_v49 = vor.u32 %v9652_v37, %v8255_v35  ;;  %3949 = vmatpush.bf16.msra.mxu2 %v8384_v38  ;;  %v11169_v38 = vor.u32 %v9342_v19, %v7041_v22 }
  0xad   : > { %v8367_v42 = vld [vmem:[%s10834_s15 + $0xa20] sm:$0xf]  ;;  %v9680_v45 = vld [vmem:[%s10834_s15 + $0xa2c] sm:$0xf0]  ;;  %3934 = vmatpush.bf16.msra.mxu1 %v8272_v31  ;;  %v8112_v53 = vor.u32 %v9616_v41, %v8111_v39  ;;  %3963 = vmatpush.bf16.msra.mxu3 %v8512_v43  ;;  %v11162_v31 = vor.u32 %v9351_v13, %v7047_v12 }
  0xae   : > { %v8495_v46 = vld [vmem:[%s10834_s15 + $0xb20] sm:$0xf]  ;;  %v9712_v47 = vld [vmem:[%s10834_s15 + $0xb2c] sm:$0xf0]  ;;  %v8368_v57 = vor.u32 %v9680_v45, %v8367_v42 }
  0xaf   : > { %v8239_v50 = vld [vmem:[%s10834_s15 + $0x920] sm:$0xf]  ;;  %v9648_v51 = vld [vmem:[%s10834_s15 + $0x92c] sm:$0xf0]  ;;  %v8496_v0 = vor.u32 %v9712_v47, %v8495_v46  ;;  %3922 = vmatpush.bf16.msra.mxu0 %v8112_v53 }
  0xb0   : > { %v8095_v52 = vld [vmem:[%s10834_s15 + $0x800] sm:$0xf]  ;;  %v9612_v54 = vld [vmem:[%s10834_s15 + $0x80c] sm:$0xf0]  ;;  %v8240_v5 = vor.u32 %v9648_v51, %v8239_v50  ;;  %3950 = vmatpush.bf16.msra.mxu2 %v8368_v57 }
  0xb1   : > { %v8351_v55 = vld [vmem:[%s10834_s15 + $0xa00] sm:$0xf]  ;;  %v9676_v56 = vld [vmem:[%s10834_s15 + $0xa0c] sm:$0xf0]  ;;  %3935 = vmatpush.bf16.msra.mxu1 %v8256_v49  ;;  %v8096_v10 = vor.u32 %v9612_v54, %v8095_v52  ;;  %3964 = vmatpush.bf16.msra.mxu3 %v8496_v0 }
  0xb2   : > { %v8479_v58 = vld [vmem:[%s10834_s15 + $0xb00] sm:$0xf]  ;;  %v9708_v59 = vld [vmem:[%s10834_s15 + $0xb0c] sm:$0xf0]  ;;  %v8352_v15 = vor.u32 %v9676_v56, %v8351_v55 }
  0xb3   : > { %v8719_v61 = vld [vmem:[%s10834_s15 + $0xce0] sm:$0xf]  ;;  %v9768_v62 = vld [vmem:[%s10834_s15 + $0xcec] sm:$0xf0]  ;;  %v8480_v20 = vor.u32 %v9708_v59, %v8479_v58  ;;  %3923 = vmatpush.bf16.msra.mxu0 %v8096_v10 }
  0xb4   : > { %v8975_v63 = vld [vmem:[%s10834_s15 + $0xee0] sm:$0xf]  ;;  %v9832_v1 = vld [vmem:[%s10834_s15 + $0xeec] sm:$0xf0]  ;;  %v8720_v16 = vor.u32 %v9768_v62, %v8719_v61  ;;  %3951 = vmatpush.bf16.msra.mxu2 %v8352_v15 }
  0xb5   : > { %v9103_v3 = vld [vmem:[%s10834_s15 + $0xfe0] sm:$0xf]  ;;  %v9864_v4 = vld [vmem:[%s10834_s15 + $0xfec] sm:$0xf0]  ;;  %v8976_v21 = vor.u32 %v9832_v1, %v8975_v63  ;;  %3936 = vmatpush.bf16.msra.mxu1 %v8240_v5  ;;  %3965 = vmatpush.bf16.msra.mxu3 %v8480_v20 }
  0xb6   : > { %v8223_v6 = vld [vmem:[%s10834_s15 + $0x900] sm:$0xf]  ;;  %v9644_v7 = vld [vmem:[%s10834_s15 + $0x90c] sm:$0xf0]  ;;  %v9104_v25 = vor.u32 %v9864_v4, %v9103_v3  ;;  %3924 = vmatmul.bf16.vlgmr.msra.gmra.mxu0 %v11160_v30 }
  0xb7   : > { %v8847_v17 = vld [vmem:[%s10834_s15 + $0xde0] sm:$0xf]  ;;  %v9800_v18 = vld [vmem:[%s10834_s15 + $0xdec] sm:$0xf0]  ;;  %v8224_v26 = vor.u32 %v9644_v7, %v8223_v6  ;;  %3972 = vmatpush.bf16.msrb.mxu0 %v8720_v16  ;;  %3952 = vmatmul.bf16.vlgmr.msra.gmra.mxu2 %v11162_v31 }
  0xb8   : > { %v9343_v23 = vld [vmem:[%s13514_s0 + $0x2c] sm:$0xf]  ;;  %v9764_v28 = vld [vmem:[%s10834_s15 + $0xccc] sm:$0xf0]  ;;  %v8848_v35 = vor.u32 %v9800_v18, %v8847_v17  ;;  %4000 = vmatpush.bf16.msrb.mxu2 %v8976_v21 }
  0xb9   : > { %v7049_v24 = vld [vmem:[%s13514_s0 + $0x68] sm:$0xf0]  ;;  %v9828_v32 = vld [vmem:[%s10834_s15 + $0xecc] sm:$0xf0]  ;;  %4014 = vmatpush.bf16.msrb.mxu3 %v9104_v25  ;;  %3937 = vmatpush.bf16.msra.mxu1 %v8224_v26 }
  0xba   : > { %v8703_v27 = vld [vmem:[%s10834_s15 + $0xcc0] sm:$0xf]  ;;  %v9860_v34 = vld [vmem:[%s10834_s15 + $0xfcc] sm:$0xf0]  ;;  %v11167_v37 = vor.u32 %v9343_v23, %v7049_v24 }
  0xbb   : > { %v8959_v29 = vld [vmem:[%s10834_s15 + $0xec0] sm:$0xf]  ;;  %v8704_v39 = vor.u32 %v9764_v28, %v8703_v27  ;;  %v9796_v42 = vld [vmem:[%s10834_s15 + $0xdcc] sm:$0xf0] }
  0xbc   : > { %v9087_v33 = vld [vmem:[%s10834_s15 + $0xfc0] sm:$0xf]  ;;  %v8960_v43 = vor.u32 %v9828_v32, %v8959_v29  ;;  %v9760_v47 = vld [vmem:[%s10834_s15 + $0xcac] sm:$0xf0]  ;;  %3966 = vmatmul.bf16.vlgmr.msra.gmra.mxu3 %v11167_v37  ;;  %3938 = vmatmul.bf16.vlgmr.msra.gmra.mxu1 %v11169_v38 }
  0xbd   : > { %v8831_v41 = vld [vmem:[%s10834_s15 + $0xdc0] sm:$0xf]  ;;  %v9088_v45 = vor.u32 %v9860_v34, %v9087_v33  ;;  %v9824_v50 = vld [vmem:[%s10834_s15 + $0xeac] sm:$0xf0]  ;;  %3986 = vmatpush.bf16.msrb.mxu1 %v8848_v35  ;;  %3973 = vmatpush.bf16.msrb.mxu0 %v8704_v39 }
  0xbe   : > { %v8687_v46 = vld [vmem:[%s10834_s15 + $0xca0] sm:$0xf]  ;;  %v9856_v52 = vld [vmem:[%s10834_s15 + $0xfac] sm:$0xf0]  ;;  %v8832_v53 = vor.u32 %v9796_v42, %v8831_v41  ;;  %4001 = vmatpush.bf16.msrb.mxu2 %v8960_v43 }
  0xbf   : > { %v8943_v49 = vld [vmem:[%s10834_s15 + $0xea0] sm:$0xf]  ;;  %v8688_v54 = vor.u32 %v9760_v47, %v8687_v46  ;;  %v9792_v56 = vld [vmem:[%s10834_s15 + $0xdac] sm:$0xf0]  ;;  %4015 = vmatpush.bf16.msrb.mxu3 %v9088_v45 }
  0xc0   : > { %v9071_v51 = vld [vmem:[%s10834_s15 + $0xfa0] sm:$0xf]  ;;  %v8944_v57 = vor.u32 %v9824_v50, %v8943_v49  ;;  %v9756_v61 = vld [vmem:[%s10834_s15 + $0xc8c] sm:$0xf0] }
  0xc1   : > { %v8815_v55 = vld [vmem:[%s10834_s15 + $0xda0] sm:$0xf]  ;;  %v9072_v58 = vor.u32 %v9856_v52, %v9071_v51  ;;  %v9820_v63 = vld [vmem:[%s10834_s15 + $0xe8c] sm:$0xf0]  ;;  %3987 = vmatpush.bf16.msrb.mxu1 %v8832_v53  ;;  %3974 = vmatpush.bf16.msrb.mxu0 %v8688_v54 }
  0xc2   : > { %v8671_v59 = vld [vmem:[%s10834_s15 + $0xc80] sm:$0xf]  ;;  %v9852_v1 = vld [vmem:[%s10834_s15 + $0xf8c] sm:$0xf0]  ;;  %v8816_v3 = vor.u32 %v9792_v56, %v8815_v55  ;;  %4002 = vmatpush.bf16.msrb.mxu2 %v8944_v57 }
  0xc3   : > { %v8927_v62 = vld [vmem:[%s10834_s15 + $0xe80] sm:$0xf]  ;;  %v8672_v4 = vor.u32 %v9756_v61, %v8671_v59  ;;  %v9788_v6 = vld [vmem:[%s10834_s15 + $0xd8c] sm:$0xf0]  ;;  %4016 = vmatpush.bf16.msrb.mxu3 %v9072_v58 }
  0xc4   : > { %v9055_v0 = vld [vmem:[%s10834_s15 + $0xf80] sm:$0xf]  ;;  %v8928_v7 = vor.u32 %v9820_v63, %v8927_v62  ;;  %v9752_v11 = vld [vmem:[%s10834_s15 + $0xc6c] sm:$0xf0]  ;;  %v9382_v62 = vld [vmem:[%s10834_s15 + $0xe4] sm:$0xf] }
  0xc5   : > { %v8799_v5 = vld [vmem:[%s10834_s15 + $0xd80] sm:$0xf]  ;;  %v9056_v9 = vor.u32 %v9852_v1, %v9055_v0  ;;  %v9816_v13 = vld [vmem:[%s10834_s15 + $0xe6c] sm:$0xf0]  ;;  %3988 = vmatpush.bf16.msrb.mxu1 %v8816_v3  ;;  %3975 = vmatpush.bf16.msrb.mxu0 %v8672_v4  ;;  %v7185_v63 = vld [vmem:[%s10834_s15 + $0xf0] sm:$0xf0] }
  0xc6   : > { %v8655_v10 = vld [vmem:[%s10834_s15 + $0xc60] sm:$0xf]  ;;  %v9848_v16 = vld [vmem:[%s10834_s15 + $0xf6c] sm:$0xf0]  ;;  %v8800_v17 = vor.u32 %v9788_v6, %v8799_v5  ;;  %4003 = vmatpush.bf16.msrb.mxu2 %v8928_v7  ;;  %v9446_v0 = vld [vmem:[%s10834_s15 + $0x2e4] sm:$0xf] }
  0xc7   : > { %v8911_v12 = vld [vmem:[%s10834_s15 + $0xe60] sm:$0xf]  ;;  %v8656_v18 = vor.u32 %v9752_v11, %v8655_v10  ;;  %v9784_v20 = vld [vmem:[%s10834_s15 + $0xd6c] sm:$0xf0]  ;;  %4017 = vmatpush.bf16.msrb.mxu3 %v9056_v9  ;;  %v7441_v1 = vld [vmem:[%s10834_s15 + $0x2f0] sm:$0xf0] }
  0xc8   : > { %v9039_v15 = vld [vmem:[%s10834_s15 + $0xf60] sm:$0xf]  ;;  %v8912_v21 = vor.u32 %v9816_v13, %v8911_v12  ;;  %v9748_v24 = vld [vmem:[%s10834_s15 + $0xc4c] sm:$0xf0]  ;;  %v9478_v3 = vld [vmem:[%s10834_s15 + $0x3e4] sm:$0xf] }
  0xc9   : > { %v8783_v19 = vld [vmem:[%s10834_s15 + $0xd60] sm:$0xf]  ;;  %v9040_v22 = vor.u32 %v9848_v16, %v9039_v15  ;;  %v9812_v26 = vld [vmem:[%s10834_s15 + $0xe4c] sm:$0xf0]  ;;  %3989 = vmatpush.bf16.msrb.mxu1 %v8800_v17  ;;  %3976 = vmatpush.bf16.msrb.mxu0 %v8656_v18  ;;  %v7569_v4 = vld [vmem:[%s10834_s15 + $0x3f0] sm:$0xf0] }
  0xca   : > { %v8639_v23 = vld [vmem:[%s10834_s15 + $0xc40] sm:$0xf]  ;;  %v9844_v28 = vld [vmem:[%s10834_s15 + $0xf4c] sm:$0xf0]  ;;  %v8784_v29 = vor.u32 %v9784_v20, %v8783_v19  ;;  %4004 = vmatpush.bf16.msrb.mxu2 %v8912_v21  ;;  %v7055_v9 = vld [vmem:[%s13514_s0 + $0x30] sm:$0xf]  ;;  %v7188_v20 = vor.u32 %v9382_v62, %v7185_v63  ;;  %v7444_v21 = vor.u32 %v9446_v0, %v7441_v1 }
  0xcb   : > { %v8895_v25 = vld [vmem:[%s10834_s15 + $0xe40] sm:$0xf]  ;;  %v8640_v32 = vor.u32 %v9748_v24, %v8639_v23  ;;  %v9780_v34 = vld [vmem:[%s10834_s15 + $0xd4c] sm:$0xf0]  ;;  %4018 = vmatpush.bf16.msrb.mxu3 %v9040_v22  ;;  %v9352_v11 = vld [vmem:[%s13514_s0 + $0x6c] sm:$0xf0] }
  0xcc   : > { %v9023_v27 = vld [vmem:[%s10834_s15 + $0xf40] sm:$0xf]  ;;  %v8896_v39 = vor.u32 %v9812_v26, %v8895_v25  ;;  %v9744_v42 = vld [vmem:[%s10834_s15 + $0xc2c] sm:$0xf0]  ;;  %v7063_v12 = vld [vmem:[%s13514_s0 + $0x38] sm:$0xf]  ;;  %v7572_v25 = vor.u32 %v9478_v3, %v7569_v4 }
  0xcd   : > { %v8767_v33 = vld [vmem:[%s10834_s15 + $0xd40] sm:$0xf]  ;;  %v9024_v41 = vor.u32 %v9844_v28, %v9023_v27  ;;  %v9808_v45 = vld [vmem:[%s10834_s15 + $0xe2c] sm:$0xf0]  ;;  %3990 = vmatpush.bf16.msrb.mxu1 %v8784_v29  ;;  %3977 = vmatpush.bf16.msrb.mxu0 %v8640_v32  ;;  %v9353_v13 = vld [vmem:[%s13514_s0 + $0x74] sm:$0xf0]  ;;  %v11260_v32 = vor.u32 %v9352_v11, %v7055_v9 }
  0xce   : > { %v8623_v35 = vld [vmem:[%s10834_s15 + $0xc20] sm:$0xf]  ;;  %v9840_v47 = vld [vmem:[%s10834_s15 + $0xf2c] sm:$0xf0]  ;;  %v8768_v50 = vor.u32 %v9780_v34, %v8767_v33  ;;  %4005 = vmatpush.bf16.msrb.mxu2 %v8896_v39  ;;  %v9414_v17 = vld [vmem:[%s10834_s15 + $0x1e4] sm:$0xf]  ;;  %v11262_v33 = vor.u32 %v9353_v13, %v7063_v12 }
  0xcf   : > { %v8879_v43 = vld [vmem:[%s10834_s15 + $0xe20] sm:$0xf]  ;;  %v9776_v51 = vld [vmem:[%s10834_s15 + $0xd2c] sm:$0xf0]  ;;  %v8624_v54 = vor.u32 %v9744_v42, %v8623_v35  ;;  %4019 = vmatpush.bf16.msrb.mxu3 %v9024_v41  ;;  %v7313_v18 = vld [vmem:[%s10834_s15 + $0x1f0] sm:$0xf0] }
  0xd0   : > { %v9007_v46 = vld [vmem:[%s10834_s15 + $0xf20] sm:$0xf]  ;;  %v9740_v53 = vld [vmem:[%s10834_s15 + $0xc0c] sm:$0xf0]  ;;  %v8880_v59 = vor.u32 %v9808_v45, %v8879_v43  ;;  %v9344_v19 = vld [vmem:[%s13514_s0 + $0x34] sm:$0xf]  ;;  %v7316_v41 = vor.u32 %v9414_v17, %v7313_v18 }
  0xd1   : > { %v8751_v49 = vld [vmem:[%s10834_s15 + $0xd20] sm:$0xf]  ;;  %v9804_v56 = vld [vmem:[%s10834_s15 + $0xe0c] sm:$0xf0]  ;;  %v9008_v61 = vor.u32 %v9840_v47, %v9007_v46  ;;  %3991 = vmatpush.bf16.msrb.mxu1 %v8768_v50  ;;  %3978 = vmatpush.bf16.msrb.mxu0 %v8624_v54  ;;  %v7057_v22 = vld [vmem:[%s13514_s0 + $0x70] sm:$0xf0] }
  0xd2   : > { %v8607_v52 = vld [vmem:[%s10834_s15 + $0xc00] sm:$0xf]  ;;  %v9836_v58 = vld [vmem:[%s10834_s15 + $0xf0c] sm:$0xf0]  ;;  %v8752_v5 = vor.u32 %v9776_v51, %v8751_v49  ;;  %4006 = vmatpush.bf16.msrb.mxu2 %v8880_v59  ;;  %v9378_v27 = vld [vmem:[%s10834_s15 + $0xc4] sm:$0xf]  ;;  %v11269_v43 = vor.u32 %v9344_v19, %v7057_v22 }
  0xd3   : > { %v8863_v55 = vld [vmem:[%s10834_s15 + $0xe00] sm:$0xf]  ;;  %v9772_v7 = vld [vmem:[%s10834_s15 + $0xd0c] sm:$0xf0]  ;;  %v8608_v10 = vor.u32 %v9740_v53, %v8607_v52  ;;  %4020 = vmatpush.bf16.msrb.mxu3 %v9008_v61  ;;  %v7169_v28 = vld [vmem:[%s10834_s15 + $0xd0] sm:$0xf0] }
  0xd4   : > { %v8991_v57 = vld [vmem:[%s10834_s15 + $0xf00] sm:$0xf]  ;;  %v8864_v15 = vor.u32 %v9804_v56, %v8863_v55  ;;  %v9345_v23 = vld [vmem:[%s13514_s0 + $0x3c] sm:$0xf]  ;;  %v9442_v29 = vld [vmem:[%s10834_s15 + $0x2c4] sm:$0xf]  ;;  %v7172_v45 = vor.u32 %v9378_v27, %v7169_v28 }
  0xd5   : > { %v8735_v6 = vld [vmem:[%s10834_s15 + $0xd00] sm:$0xf]  ;;  %v8992_v16 = vor.u32 %v9836_v58, %v8991_v57  ;;  %v7065_v24 = vld [vmem:[%s13514_s0 + $0x78] sm:$0xf0]  ;;  %3992 = vmatpush.bf16.msrb.mxu1 %v8752_v5  ;;  %3979 = vmatpush.bf16.msrb.mxu0 %v8608_v10  ;;  %v7425_v34 = vld [vmem:[%s10834_s15 + $0x2d0] sm:$0xf0] }
  0xd6   : > { %v8736_v26 = vor.u32 %v9772_v7, %v8735_v6  ;;  %v9474_v35 = vld [vmem:[%s10834_s15 + $0x3c4] sm:$0xf]  ;;  %v7553_v39 = vld [vmem:[%s10834_s15 + $0x3d0] sm:$0xf0]  ;;  %4007 = vmatpush.bf16.msrb.mxu2 %v8864_v15  ;;  %v11267_v42 = vor.u32 %v9345_v23, %v7065_v24  ;;  %v7428_v49 = vor.u32 %v9442_v29, %v7425_v34 }
  0xd7   : > { %4021 = vmatpush.bf16.msrb.mxu3 %v8992_v16  ;;  %v9410_v46 = vld [vmem:[%s10834_s15 + $0x1c4] sm:$0xf]  ;;  %v7297_v47 = vld [vmem:[%s10834_s15 + $0x1d0] sm:$0xf0]  ;;  %v7556_v50 = vor.u32 %v9474_v35, %v7553_v39 }
  0xd8   : > { %v9374_v51 = vld [vmem:[%s10834_s15 + $0xa4] sm:$0xf]  ;;  %v7153_v52 = vld [vmem:[%s10834_s15 + $0xb0] sm:$0xf0]  ;;  %3980 = vmatmul.bf16.vlgmr.msrb.gmra.mxu0 %v11260_v32  ;;  %v7300_v57 = vor.u32 %v9410_v46, %v7297_v47 }
  0xd9   : > { %4028 = vmatpush.bf16.msra.mxu0 %v7188_v20  ;;  %3993 = vmatpush.bf16.msrb.mxu1 %v8736_v26  ;;  %v9438_v53 = vld [vmem:[%s10834_s15 + $0x2a4] sm:$0xf]  ;;  %v7409_v54 = vld [vmem:[%s10834_s15 + $0x2b0] sm:$0xf0]  ;;  %v7156_v58 = vor.u32 %v9374_v51, %v7153_v52 }
  0xda   : > { %4056 = vmatpush.bf16.msra.mxu2 %v7444_v21  ;;  %v9470_v55 = vld [vmem:[%s10834_s15 + $0x3a4] sm:$0xf]  ;;  %v7537_v56 = vld [vmem:[%s10834_s15 + $0x3b0] sm:$0xf0]  ;;  %4022 = vmatmul.bf16.vlgmr.msrb.gmra.mxu3 %v11267_v42  ;;  %v7412_v62 = vor.u32 %v9438_v53, %v7409_v54 }
  0xdb   : > { %4070 = vmatpush.bf16.msra.mxu3 %v7572_v25  ;;  %4008 = vmatmul.bf16.vlgmr.msrb.gmra.mxu2 %v11262_v33  ;;  %v9406_v59 = vld [vmem:[%s10834_s15 + $0x1a4] sm:$0xf]  ;;  %v7281_v61 = vld [vmem:[%s10834_s15 + $0x1b0] sm:$0xf0]  ;;  %v7540_v63 = vor.u32 %v9470_v55, %v7537_v56 }
  0xdc   : > { %3994 = vmatmul.bf16.vlgmr.msrb.gmra.mxu1 %v11269_v43  ;;  %v9370_v0 = vld [vmem:[%s10834_s15 + $0x84] sm:$0xf]  ;;  %v7137_v1 = vld [vmem:[%s10834_s15 + $0x90] sm:$0xf0]  ;;  %v7284_v7 = vor.u32 %v9406_v59, %v7281_v61 }
  0xdd   : > { %4042 = vmatpush.bf16.msra.mxu1 %v7316_v41  ;;  %4029 = vmatpush.bf16.msra.mxu0 %v7172_v45  ;;  %v9434_v3 = vld [vmem:[%s10834_s15 + $0x284] sm:$0xf]  ;;  %v7393_v4 = vld [vmem:[%s10834_s15 + $0x290] sm:$0xf0]  ;;  %v7140_v9 = vor.u32 %v9370_v0, %v7137_v1 }
  0xde   : > { %4057 = vmatpush.bf16.msra.mxu2 %v7428_v49  ;;  %v9466_v5 = vld [vmem:[%s10834_s15 + $0x384] sm:$0xf]  ;;  %v7521_v6 = vld [vmem:[%s10834_s15 + $0x390] sm:$0xf0]  ;;  %v7396_v12 = vor.u32 %v9434_v3, %v7393_v4 }
  0xdf   : > { %4071 = vmatpush.bf16.msra.mxu3 %v7556_v50  ;;  %v9402_v10 = vld [vmem:[%s10834_s15 + $0x184] sm:$0xf]  ;;  %v7265_v11 = vld [vmem:[%s10834_s15 + $0x190] sm:$0xf0]  ;;  %v7524_v13 = vor.u32 %v9466_v5, %v7521_v6 }
  0xe0   : > { %v9366_v15 = vld [vmem:[%s10834_s15 + $0x64] sm:$0xf]  ;;  %v7121_v16 = vld [vmem:[%s10834_s15 + $0x70] sm:$0xf0]  ;;  %v7268_v21 = vor.u32 %v9402_v10, %v7265_v11 }
  0xe1   : > { %4043 = vmatpush.bf16.msra.mxu1 %v7300_v57  ;;  %4030 = vmatpush.bf16.msra.mxu0 %v7156_v58  ;;  %v9430_v17 = vld [vmem:[%s10834_s15 + $0x264] sm:$0xf]  ;;  %v7377_v18 = vld [vmem:[%s10834_s15 + $0x270] sm:$0xf0]  ;;  %v7124_v22 = vor.u32 %v9366_v15, %v7121_v16 }
  0xe2   : > { %4058 = vmatpush.bf16.msra.mxu2 %v7412_v62  ;;  %v9462_v19 = vld [vmem:[%s10834_s15 + $0x364] sm:$0xf]  ;;  %v7505_v20 = vld [vmem:[%s10834_s15 + $0x370] sm:$0xf0]  ;;  %v7380_v25 = vor.u32 %v9430_v17, %v7377_v18 }
  0xe3   : > { %4072 = vmatpush.bf16.msra.mxu3 %v7540_v63  ;;  %v9398_v23 = vld [vmem:[%s10834_s15 + $0x164] sm:$0xf]  ;;  %v7249_v24 = vld [vmem:[%s10834_s15 + $0x170] sm:$0xf0]  ;;  %v7508_v26 = vor.u32 %v9462_v19, %v7505_v20 }
  0xe4   : > { %v9362_v27 = vld [vmem:[%s10834_s15 + $0x44] sm:$0xf]  ;;  %v7105_v28 = vld [vmem:[%s10834_s15 + $0x50] sm:$0xf0]  ;;  %v7252_v41 = vor.u32 %v9398_v23, %v7249_v24 }
  0xe5   : > { %4044 = vmatpush.bf16.msra.mxu1 %v7284_v7  ;;  %4031 = vmatpush.bf16.msra.mxu0 %v7140_v9  ;;  %v9426_v29 = vld [vmem:[%s10834_s15 + $0x244] sm:$0xf]  ;;  %v7361_v34 = vld [vmem:[%s10834_s15 + $0x250] sm:$0xf0]  ;;  %v7108_v45 = vor.u32 %v9362_v27, %v7105_v28 }
  0xe6   : > { %4059 = vmatpush.bf16.msra.mxu2 %v7396_v12  ;;  %v9458_v35 = vld [vmem:[%s10834_s15 + $0x344] sm:$0xf]  ;;  %v7489_v39 = vld [vmem:[%s10834_s15 + $0x350] sm:$0xf0]  ;;  %v7364_v49 = vor.u32 %v9426_v29, %v7361_v34 }
  0xe7   : > { %4073 = vmatpush.bf16.msra.mxu3 %v7524_v13  ;;  %v9394_v46 = vld [vmem:[%s10834_s15 + $0x144] sm:$0xf]  ;;  %v7233_v47 = vld [vmem:[%s10834_s15 + $0x150] sm:$0xf0]  ;;  %v7492_v50 = vor.u32 %v9458_v35, %v7489_v39 }
  0xe8   : > { %v9358_v51 = vld [vmem:[%s10834_s15 + $0x24] sm:$0xf]  ;;  %v7089_v52 = vld [vmem:[%s10834_s15 + $0x30] sm:$0xf0]  ;;  %v7236_v57 = vor.u32 %v9394_v46, %v7233_v47 }
  0xe9   : > { %4045 = vmatpush.bf16.msra.mxu1 %v7268_v21  ;;  %4032 = vmatpush.bf16.msra.mxu0 %v7124_v22  ;;  %v9422_v53 = vld [vmem:[%s10834_s15 + $0x224] sm:$0xf]  ;;  %v7345_v54 = vld [vmem:[%s10834_s15 + $0x230] sm:$0xf0]  ;;  %v7092_v59 = vor.u32 %v9358_v51, %v7089_v52 }
  0xea   : > { %4060 = vmatpush.bf16.msra.mxu2 %v7380_v25  ;;  %v9454_v55 = vld [vmem:[%s10834_s15 + $0x324] sm:$0xf]  ;;  %v7473_v56 = vld [vmem:[%s10834_s15 + $0x330] sm:$0xf0]  ;;  %v7348_v0 = vor.u32 %v9422_v53, %v7345_v54 }
  0xeb   : > { %4074 = vmatpush.bf16.msra.mxu3 %v7508_v26  ;;  %v9390_v58 = vld [vmem:[%s10834_s15 + $0x124] sm:$0xf]  ;;  %v7217_v61 = vld [vmem:[%s10834_s15 + $0x130] sm:$0xf0]  ;;  %v7476_v1 = vor.u32 %v9454_v55, %v7473_v56 }
  0xec   : > { %v9354_v62 = vld [vmem:[%s10834_s15 + $0x4] sm:$0xf]  ;;  %v7073_v63 = vld [vmem:[%s10834_s15 + $0x10] sm:$0xf0]  ;;  %v7220_v10 = vor.u32 %v9390_v58, %v7217_v61 }
  0xed   : > { %4046 = vmatpush.bf16.msra.mxu1 %v7252_v41  ;;  %4033 = vmatpush.bf16.msra.mxu0 %v7108_v45  ;;  %v9418_v3 = vld [vmem:[%s10834_s15 + $0x204] sm:$0xf]  ;;  %v7329_v4 = vld [vmem:[%s10834_s15 + $0x210] sm:$0xf0]  ;;  %v7076_v15 = vor.u32 %v9354_v62, %v7073_v63 }
  0xee   : > { %4061 = vmatpush.bf16.msra.mxu2 %v7364_v49  ;;  %v9450_v5 = vld [vmem:[%s10834_s15 + $0x304] sm:$0xf]  ;;  %v7457_v6 = vld [vmem:[%s10834_s15 + $0x310] sm:$0xf0]  ;;  %v7332_v19 = vor.u32 %v9418_v3, %v7329_v4 }
  0xef   : > { %4075 = vmatpush.bf16.msra.mxu3 %v7492_v50  ;;  %v9510_v7 = vld [vmem:[%s10834_s15 + $0x4e4] sm:$0xf]  ;;  %v7697_v9 = vld [vmem:[%s10834_s15 + $0x4f0] sm:$0xf0]  ;;  %v7460_v20 = vor.u32 %v9450_v5, %v7457_v6 }
  0xf0   : > { %v9574_v11 = vld [vmem:[%s10834_s15 + $0x6e4] sm:$0xf]  ;;  %v7953_v12 = vld [vmem:[%s10834_s15 + $0x6f0] sm:$0xf0]  ;;  %v7700_v23 = vor.u32 %v9510_v7, %v7697_v9 }
  0xf1   : > { %4047 = vmatpush.bf16.msra.mxu1 %v7236_v57  ;;  %v9606_v13 = vld [vmem:[%s10834_s15 + $0x7e4] sm:$0xf]  ;;  %4034 = vmatpush.bf16.msra.mxu0 %v7092_v59  ;;  %v8081_v16 = vld [vmem:[%s10834_s15 + $0x7f0] sm:$0xf0]  ;;  %v7956_v24 = vor.u32 %v9574_v11, %v7953_v12 }
  0xf2   : > { %v9386_v17 = vld [vmem:[%s10834_s15 + $0x104] sm:$0xf]  ;;  %v7201_v18 = vld [vmem:[%s10834_s15 + $0x110] sm:$0xf0]  ;;  %4062 = vmatpush.bf16.msra.mxu2 %v7348_v0  ;;  %v8084_v26 = vor.u32 %v9606_v13, %v8081_v16 }
  0xf3   : > { %4076 = vmatpush.bf16.msra.mxu3 %v7476_v1  ;;  %v9542_v21 = vld [vmem:[%s10834_s15 + $0x5e4] sm:$0xf]  ;;  %v7825_v22 = vld [vmem:[%s10834_s15 + $0x5f0] sm:$0xf0]  ;;  %v7204_v27 = vor.u32 %v9386_v17, %v7201_v18 }
  0xf4   : > { %v9506_v25 = vld [vmem:[%s10834_s15 + $0x4c4] sm:$0xf]  ;;  %v7681_v28 = vld [vmem:[%s10834_s15 + $0x4d0] sm:$0xf0]  ;;  %v7828_v35 = vor.u32 %v9542_v21, %v7825_v22 }
  0xf5   : > { %4048 = vmatpush.bf16.msra.mxu1 %v7220_v10  ;;  %v9570_v29 = vld [vmem:[%s10834_s15 + $0x6c4] sm:$0xf]  ;;  %v7937_v34 = vld [vmem:[%s10834_s15 + $0x6d0] sm:$0xf0]  ;;  %4035 = vmatpush.bf16.msra.mxu0 %v7076_v15  ;;  %v7684_v47 = vor.u32 %v9506_v25, %v7681_v28 }
  0xf6   : > { %v9602_v39 = vld [vmem:[%s10834_s15 + $0x7c4] sm:$0xf]  ;;  %v8065_v41 = vld [vmem:[%s10834_s15 + $0x7d0] sm:$0xf0]  ;;  %4063 = vmatpush.bf16.msra.mxu2 %v7332_v19  ;;  %v7940_v49 = vor.u32 %v9570_v29, %v7937_v34 }
  0xf7   : > { %4077 = vmatpush.bf16.msra.mxu3 %v7460_v20  ;;  %v9538_v45 = vld [vmem:[%s10834_s15 + $0x5c4] sm:$0xf]  ;;  %v7809_v46 = vld [vmem:[%s10834_s15 + $0x5d0] sm:$0xf0]  ;;  %v8068_v51 = vor.u32 %v9602_v39, %v8065_v41 }
  0xf8   : > { %v9502_v50 = vld [vmem:[%s10834_s15 + $0x4a4] sm:$0xf]  ;;  %v7665_v52 = vld [vmem:[%s10834_s15 + $0x4b0] sm:$0xf0]  ;;  %v7812_v55 = vor.u32 %v9538_v45, %v7809_v46  ;;  %4036 = vmatmul.bf16.vlgmr.msra.gmra.mxu0 %v10953_v60 }
  0xf9   : > { %4084 = vmatpush.bf16.msrb.mxu0 %v7700_v23  ;;  %4049 = vmatpush.bf16.msra.mxu1 %v7204_v27  ;;  %v9566_v53 = vld [vmem:[%s10834_s15 + $0x6a4] sm:$0xf]  ;;  %v7921_v54 = vld [vmem:[%s10834_s15 + $0x6b0] sm:$0xf0]  ;;  %v7668_v61 = vor.u32 %v9502_v50, %v7665_v52 }
  0xfa   : > { %4112 = vmatpush.bf16.msrb.mxu2 %v7956_v24  ;;  %v9598_v56 = vld [vmem:[%s10834_s15 + $0x7a4] sm:$0xf]  ;;  %v8049_v57 = vld [vmem:[%s10834_s15 + $0x7b0] sm:$0xf0]  ;;  %4078 = vmatmul.bf16.vlgmr.msra.gmra.mxu3 %v10982_v14  ;;  %v7924_v62 = vor.u32 %v9566_v53, %v7921_v54 }
  0xfb   : > { %4126 = vmatpush.bf16.msrb.mxu3 %v8084_v26  ;;  %v9534_v58 = vld [vmem:[%s10834_s15 + $0x5a4] sm:$0xf]  ;;  %v7793_v59 = vld [vmem:[%s10834_s15 + $0x5b0] sm:$0xf0]  ;;  %4064 = vmatmul.bf16.vlgmr.msra.gmra.mxu2 %v10961_v2  ;;  %v8052_v0 = vor.u32 %v9598_v56, %v8049_v57 }
  0xfc   : > { %v9498_v63 = vld [vmem:[%s10834_s15 + $0x484] sm:$0xf]  ;;  %v7649_v1 = vld [vmem:[%s10834_s15 + $0x490] sm:$0xf0]  ;;  %4050 = vmatmul.bf16.vlgmr.msra.gmra.mxu1 %v10973_v8  ;;  %v7796_v5 = vor.u32 %v9534_v58, %v7793_v59 }
  0xfd   : > { %4098 = vmatpush.bf16.msrb.mxu1 %v7828_v35  ;;  %4085 = vmatpush.bf16.msrb.mxu0 %v7684_v47  ;;  %v9562_v3 = vld [vmem:[%s10834_s15 + $0x684] sm:$0xf]  ;;  %v7905_v4 = vld [vmem:[%s10834_s15 + $0x690] sm:$0xf0]  ;;  %v7652_v11 = vor.u32 %v9498_v63, %v7649_v1 }
  0xfe   : > { %4113 = vmatpush.bf16.msrb.mxu2 %v7940_v49  ;;  %v9594_v6 = vld [vmem:[%s10834_s15 + $0x784] sm:$0xf]  ;;  %v8033_v7 = vld [vmem:[%s10834_s15 + $0x790] sm:$0xf0]  ;;  %v7908_v12 = vor.u32 %v9562_v3, %v7905_v4 }
  0xff   : > { %4127 = vmatpush.bf16.msrb.mxu3 %v8068_v51  ;;  %v9530_v9 = vld [vmem:[%s10834_s15 + $0x584] sm:$0xf]  ;;  %v7777_v10 = vld [vmem:[%s10834_s15 + $0x590] sm:$0xf0]  ;;  %v8036_v15 = vor.u32 %v9594_v6, %v8033_v7 }
 0x100   : > { %v9494_v13 = vld [vmem:[%s10834_s15 + $0x464] sm:$0xf]  ;;  %v7633_v16 = vld [vmem:[%s10834_s15 + $0x470] sm:$0xf0]  ;;  %v7780_v19 = vor.u32 %v9530_v9, %v7777_v10 }
 0x101   : > { %4099 = vmatpush.bf16.msrb.mxu1 %v7812_v55  ;;  %4086 = vmatpush.bf16.msrb.mxu0 %v7668_v61  ;;  %v9558_v17 = vld [vmem:[%s10834_s15 + $0x664] sm:$0xf]  ;;  %v7889_v18 = vld [vmem:[%s10834_s15 + $0x670] sm:$0xf0]  ;;  %v7636_v24 = vor.u32 %v9494_v13, %v7633_v16 }
 0x102   : > { %4114 = vmatpush.bf16.msrb.mxu2 %v7924_v62  ;;  %v9590_v20 = vld [vmem:[%s10834_s15 + $0x764] sm:$0xf]  ;;  %v8017_v21 = vld [vmem:[%s10834_s15 + $0x770] sm:$0xf0]  ;;  %v7892_v25 = vor.u32 %v9558_v17, %v7889_v18 }
 0x103   : > { %4128 = vmatpush.bf16.msrb.mxu3 %v8052_v0  ;;  %v9526_v22 = vld [vmem:[%s10834_s15 + $0x564] sm:$0xf]  ;;  %v7761_v23 = vld [vmem:[%s10834_s15 + $0x570] sm:$0xf0]  ;;  %v8020_v27 = vor.u32 %v9590_v20, %v8017_v21 }
 0x104   : > { %v9490_v26 = vld [vmem:[%s10834_s15 + $0x444] sm:$0xf]  ;;  %v7617_v28 = vld [vmem:[%s10834_s15 + $0x450] sm:$0xf0]  ;;  %v7764_v35 = vor.u32 %v9526_v22, %v7761_v23 }
 0x105   : > { %4100 = vmatpush.bf16.msrb.mxu1 %v7796_v5  ;;  %4087 = vmatpush.bf16.msrb.mxu0 %v7652_v11  ;;  %v9554_v29 = vld [vmem:[%s10834_s15 + $0x644] sm:$0xf]  ;;  %v7873_v34 = vld [vmem:[%s10834_s15 + $0x650] sm:$0xf0]  ;;  %v7620_v47 = vor.u32 %v9490_v26, %v7617_v28 }
 0x106   : > { %4115 = vmatpush.bf16.msrb.mxu2 %v7908_v12  ;;  %v9586_v39 = vld [vmem:[%s10834_s15 + $0x744] sm:$0xf]  ;;  %v8001_v41 = vld [vmem:[%s10834_s15 + $0x750] sm:$0xf0]  ;;  %v7876_v49 = vor.u32 %v9554_v29, %v7873_v34 }
 0x107   : > { %4129 = vmatpush.bf16.msrb.mxu3 %v8036_v15  ;;  %v9522_v45 = vld [vmem:[%s10834_s15 + $0x544] sm:$0xf]  ;;  %v7745_v46 = vld [vmem:[%s10834_s15 + $0x550] sm:$0xf0]  ;;  %v8004_v51 = vor.u32 %v9586_v39, %v8001_v41 }
 0x108   : > { %v9486_v50 = vld [vmem:[%s10834_s15 + $0x424] sm:$0xf]  ;;  %v7601_v52 = vld [vmem:[%s10834_s15 + $0x430] sm:$0xf0]  ;;  %v7748_v55 = vor.u32 %v9522_v45, %v7745_v46 }
 0x109   : > { %4101 = vmatpush.bf16.msrb.mxu1 %v7780_v19  ;;  %4088 = vmatpush.bf16.msrb.mxu0 %v7636_v24  ;;  %v9550_v53 = vld [vmem:[%s10834_s15 + $0x624] sm:$0xf]  ;;  %v7857_v54 = vld [vmem:[%s10834_s15 + $0x630] sm:$0xf0]  ;;  %v7604_v61 = vor.u32 %v9486_v50, %v7601_v52 }
 0x10a   : > { %4116 = vmatpush.bf16.msrb.mxu2 %v7892_v25  ;;  %v9582_v56 = vld [vmem:[%s10834_s15 + $0x724] sm:$0xf]  ;;  %v7985_v57 = vld [vmem:[%s10834_s15 + $0x730] sm:$0xf0]  ;;  %v7860_v62 = vor.u32 %v9550_v53, %v7857_v54 }
 0x10b   : > { %4130 = vmatpush.bf16.msrb.mxu3 %v8020_v27  ;;  %v9518_v58 = vld [vmem:[%s10834_s15 + $0x524] sm:$0xf]  ;;  %v7729_v59 = vld [vmem:[%s10834_s15 + $0x530] sm:$0xf0]  ;;  %v7988_v3 = vor.u32 %v9582_v56, %v7985_v57 }
 0x10c   : > { %v9482_v63 = vld [vmem:[%s10834_s15 + $0x404] sm:$0xf]  ;;  %v7585_v0 = vld [vmem:[%s10834_s15 + $0x410] sm:$0xf0]  ;;  %v7732_v7 = vor.u32 %v9518_v58, %v7729_v59 }
 0x10d   : > { %4102 = vmatpush.bf16.msrb.mxu1 %v7764_v35  ;;  %4089 = vmatpush.bf16.msrb.mxu0 %v7620_v47  ;;  %v9546_v1 = vld [vmem:[%s10834_s15 + $0x604] sm:$0xf]  ;;  %v7841_v4 = vld [vmem:[%s10834_s15 + $0x610] sm:$0xf0]  ;;  %v7588_v16 = vor.u32 %v9482_v63, %v7585_v0 }
 0x10e   : > { %4117 = vmatpush.bf16.msrb.mxu2 %v7876_v49  ;;  %v9578_v5 = vld [vmem:[%s10834_s15 + $0x704] sm:$0xf]  ;;  %v7969_v6 = vld [vmem:[%s10834_s15 + $0x710] sm:$0xf0]  ;;  %v7844_v17 = vor.u32 %v9546_v1, %v7841_v4 }
 0x10f   : > { %4131 = vmatpush.bf16.msrb.mxu3 %v8004_v51  ;;  %v9638_v9 = vld [vmem:[%s10834_s15 + $0x8e4] sm:$0xf]  ;;  %v8209_v10 = vld [vmem:[%s10834_s15 + $0x8f0] sm:$0xf0]  ;;  %v7972_v20 = vor.u32 %v9578_v5, %v7969_v6 }
 0x110   : > { %v9702_v11 = vld [vmem:[%s10834_s15 + $0xae4] sm:$0xf]  ;;  %v8465_v12 = vld [vmem:[%s10834_s15 + $0xaf0] sm:$0xf0]  ;;  %v8212_v21 = vor.u32 %v9638_v9, %v8209_v10 }
 0x111   : > { %4103 = vmatpush.bf16.msrb.mxu1 %v7748_v55  ;;  %v9734_v13 = vld [vmem:[%s10834_s15 + $0xbe4] sm:$0xf]  ;;  %v8593_v15 = vld [vmem:[%s10834_s15 + $0xbf0] sm:$0xf0]  ;;  %4090 = vmatpush.bf16.msrb.mxu0 %v7604_v61  ;;  %v8468_v24 = vor.u32 %v9702_v11, %v8465_v12 }
 0x112   : > { %4118 = vmatpush.bf16.msrb.mxu2 %v7860_v62  ;;  %v9514_v18 = vld [vmem:[%s10834_s15 + $0x504] sm:$0xf]  ;;  %v7713_v19 = vld [vmem:[%s10834_s15 + $0x510] sm:$0xf0]  ;;  %v8596_v25 = vor.u32 %v9734_v13, %v8593_v15 }
 0x113   : > { %4132 = vmatpush.bf16.msrb.mxu3 %v7988_v3  ;;  %v9670_v22 = vld [vmem:[%s10834_s15 + $0x9e4] sm:$0xf]  ;;  %v8337_v23 = vld [vmem:[%s10834_s15 + $0x9f0] sm:$0xf0]  ;;  %v7716_v28 = vor.u32 %v9514_v18, %v7713_v19 }
 0x114   : > { %v9634_v26 = vld [vmem:[%s10834_s15 + $0x8c4] sm:$0xf]  ;;  %v8193_v27 = vld [vmem:[%s10834_s15 + $0x8d0] sm:$0xf0]  ;;  %v8340_v35 = vor.u32 %v9670_v22, %v8337_v23  ;;  %v11435_v22 = vpop.f32.mrf.mxu0 }
 0x115   : > { %4104 = vmatpush.bf16.msrb.mxu1 %v7732_v7  ;;  %v9698_v29 = vld [vmem:[%s10834_s15 + $0xac4] sm:$0xf]  ;;  %v8449_v34 = vld [vmem:[%s10834_s15 + $0xad0] sm:$0xf0]  ;;  %4091 = vmatpush.bf16.msrb.mxu0 %v7588_v16  ;;  %v8196_v45 = vor.u32 %v9634_v26, %v8193_v27 }
 0x116   : > { %4119 = vmatpush.bf16.msrb.mxu2 %v7844_v17  ;;  %v9730_v39 = vld [vmem:[%s10834_s15 + $0xbc4] sm:$0xf]  ;;  %v8577_v41 = vld [vmem:[%s10834_s15 + $0xbd0] sm:$0xf0]  ;;  %v8452_v49 = vor.u32 %v9698_v29, %v8449_v34  ;;  %v11441_v29 = vpop.f32.mrf.mxu1 }
 0x117   : > { %4133 = vmatpush.bf16.msrb.mxu3 %v7972_v20  ;;  %v9666_v46 = vld [vmem:[%s10834_s15 + $0x9c4] sm:$0xf]  ;;  %v8321_v47 = vld [vmem:[%s10834_s15 + $0x9d0] sm:$0xf0]  ;;  %v8580_v52 = vor.u32 %v9730_v39, %v8577_v41 }
 0x118   : > { %v9630_v50 = vld [vmem:[%s10834_s15 + $0x8a4] sm:$0xf]  ;;  %v8177_v51 = vld [vmem:[%s10834_s15 + $0x8b0] sm:$0xf0]  ;;  %4092 = vmatmul.bf16.vlgmr.msrb.gmra.mxu0 %v11056_v36  ;;  %v8324_v55 = vor.u32 %v9666_v46, %v8321_v47 }
 0x119   : > { %4140 = vmatpush.bf16.msra.mxu0 %v8212_v21  ;;  %4105 = vmatpush.bf16.msrb.mxu1 %v7716_v28  ;;  %v9694_v53 = vld [vmem:[%s10834_s15 + $0xaa4] sm:$0xf]  ;;  %v8433_v54 = vld [vmem:[%s10834_s15 + $0xab0] sm:$0xf0]  ;;  %v8180_v58 = vor.u32 %v9630_v50, %v8177_v51 }
 0x11a   : > { %4168 = vmatpush.bf16.msra.mxu2 %v8468_v24  ;;  %v9726_v56 = vld [vmem:[%s10834_s15 + $0xba4] sm:$0xf]  ;;  %v8561_v57 = vld [vmem:[%s10834_s15 + $0xbb0] sm:$0xf0]  ;;  %4134 = vmatmul.bf16.vlgmr.msrb.gmra.mxu3 %v11067_v44  ;;  %v8436_v62 = vor.u32 %v9694_v53, %v8433_v54 }
 0x11b   : > { %4182 = vmatpush.bf16.msra.mxu3 %v8596_v25  ;;  %4120 = vmatmul.bf16.vlgmr.msrb.gmra.mxu2 %v11063_v40  ;;  %v9662_v59 = vld [vmem:[%s10834_s15 + $0x9a4] sm:$0xf]  ;;  %v8305_v61 = vld [vmem:[%s10834_s15 + $0x9b0] sm:$0xf0]  ;;  %v8564_v1 = vor.u32 %v9726_v56, %v8561_v57  ;;  %v11455_v56 = vpop.f32.mrf.mxu2 }
 0x11c   : > { %4106 = vmatmul.bf16.vlgmr.msrb.gmra.mxu1 %v11071_v48  ;;  %v9626_v63 = vld [vmem:[%s10834_s15 + $0x884] sm:$0xf]  ;;  %v8161_v0 = vld [vmem:[%s10834_s15 + $0x890] sm:$0xf0]  ;;  %v8308_v5 = vor.u32 %v9662_v59, %v8305_v61  ;;  %v11459_v61 = vpop.f32.mrf.mxu3 }
 0x11d   : > { %4154 = vmatpush.bf16.msra.mxu1 %v8340_v35  ;;  %4141 = vmatpush.bf16.msra.mxu0 %v8196_v45  ;;  %v9690_v3 = vld [vmem:[%s10834_s15 + $0xa84] sm:$0xf]  ;;  %v8417_v4 = vld [vmem:[%s10834_s15 + $0xa90] sm:$0xf0]  ;;  %v8164_v9 = vor.u32 %v9626_v63, %v8161_v0 }
 0x11e   : > { %4169 = vmatpush.bf16.msra.mxu2 %v8452_v49  ;;  %v9722_v6 = vld [vmem:[%s10834_s15 + $0xb84] sm:$0xf]  ;;  %v8545_v7 = vld [vmem:[%s10834_s15 + $0xb90] sm:$0xf0]  ;;  %v8420_v12 = vor.u32 %v9690_v3, %v8417_v4 }
 0x11f   : > { %4183 = vmatpush.bf16.msra.mxu3 %v8580_v52  ;;  %v9658_v10 = vld [vmem:[%s10834_s15 + $0x984] sm:$0xf]  ;;  %v8289_v11 = vld [vmem:[%s10834_s15 + $0x990] sm:$0xf0]  ;;  %v8548_v16 = vor.u32 %v9722_v6, %v8545_v7 }
 0x120   : > { %v9622_v13 = vld [vmem:[%s10834_s15 + $0x864] sm:$0xf]  ;;  %v8145_v15 = vld [vmem:[%s10834_s15 + $0x870] sm:$0xf0]  ;;  %v8292_v19 = vor.u32 %v9658_v10, %v8289_v11 }
 0x121   : > { %4155 = vmatpush.bf16.msra.mxu1 %v8324_v55  ;;  %4142 = vmatpush.bf16.msra.mxu0 %v8180_v58  ;;  %v9686_v17 = vld [vmem:[%s10834_s15 + $0xa64] sm:$0xf]  ;;  %v8401_v18 = vld [vmem:[%s10834_s15 + $0xa70] sm:$0xf0]  ;;  %v8148_v23 = vor.u32 %v9622_v13, %v8145_v15 }
 0x122   : > { %4170 = vmatpush.bf16.msra.mxu2 %v8436_v62  ;;  %v9718_v20 = vld [vmem:[%s10834_s15 + $0xb64] sm:$0xf]  ;;  %v8529_v21 = vld [vmem:[%s10834_s15 + $0xb70] sm:$0xf0]  ;;  %v8404_v26 = vor.u32 %v9686_v17, %v8401_v18 }
 0x123   : > { %4184 = vmatpush.bf16.msra.mxu3 %v8564_v1  ;;  %v9654_v24 = vld [vmem:[%s10834_s15 + $0x964] sm:$0xf]  ;;  %v8273_v25 = vld [vmem:[%s10834_s15 + $0x970] sm:$0xf0]  ;;  %v8532_v34 = vor.u32 %v9718_v20, %v8529_v21 }
 0x124   : > { %v9618_v27 = vld [vmem:[%s10834_s15 + $0x844] sm:$0xf]  ;;  %v8129_v28 = vld [vmem:[%s10834_s15 + $0x850] sm:$0xf0]  ;;  %v8276_v45 = vor.u32 %v9654_v24, %v8273_v25 }
 0x125   : > { %4156 = vmatpush.bf16.msra.mxu1 %v8308_v5  ;;  %4143 = vmatpush.bf16.msra.mxu0 %v8164_v9  ;;  %v9682_v35 = vld [vmem:[%s10834_s15 + $0xa44] sm:$0xf]  ;;  %v8385_v39 = vld [vmem:[%s10834_s15 + $0xa50] sm:$0xf0]  ;;  %v8132_v49 = vor.u32 %v9618_v27, %v8129_v28 }
 0x126   : > { %4171 = vmatpush.bf16.msra.mxu2 %v8420_v12  ;;  %v11446_v41 = vld [vmem:[%s10851_s6] sm:$0xf]  ;;  %v8513_v47 = vld [vmem:[%s10834_s15 + $0xb50] sm:$0xf0]  ;;  %v8388_v52 = vor.u32 %v9682_v35, %v8385_v39  ;;  %v11470_v12 = vpop.f32.mrf.mxu0 }
 0x127   : > { %4185 = vmatpush.bf16.msra.mxu3 %v8548_v16  ;;  %v9714_v46 = vld [vmem:[%s10834_s15 + $0xb44] sm:$0xf]  ;;  %v8257_v51 = vld [vmem:[%s10834_s15 + $0x950] sm:$0xf0]  ;;  %v1156_v55 = vperm.slane %v11446_v41, 0 }
 0x128   : > { %v9650_v50 = vld [vmem:[%s10834_s15 + $0x944] sm:$0xf]  ;;  %v8113_v54 = vld [vmem:[%s10834_s15 + $0x830] sm:$0xf0]  ;;  %v8516_v57 = vor.u32 %v9714_v46, %v8513_v47 }
 0x129   : > { %4157 = vmatpush.bf16.msra.mxu1 %v8292_v19  ;;  %4144 = vmatpush.bf16.msra.mxu0 %v8148_v23  ;;  %v9614_v53 = vld [vmem:[%s10834_s15 + $0x824] sm:$0xf]  ;;  %v8369_v59 = vld [vmem:[%s10834_s15 + $0xa30] sm:$0xf0]  ;;  %v8260_v62 = vor.u32 %v9650_v50, %v8257_v51  ;;  %v11478_v23 = vpop.f32.mrf.mxu1  ;;  %v3814_v47 = vadd.f32 %v11435_v22, %v1156_v55 }
 0x12a   : > { %4172 = vmatpush.bf16.msra.mxu2 %v8404_v26  ;;  %v9678_v58 = vld [vmem:[%s10834_s15 + $0xa24] sm:$0xf]  ;;  %v8497_v0 = vld [vmem:[%s10834_s15 + $0xb30] sm:$0xf0]  ;;  %v8116_v3 = vor.u32 %v9614_v53, %v8113_v54  ;;  %v11491_v54 = vpop.f32.mrf.mxu2 }
 0x12b   : > { %4186 = vmatpush.bf16.msra.mxu3 %v8532_v34  ;;  %v9710_v63 = vld [vmem:[%s10834_s15 + $0xb24] sm:$0xf]  ;;  %v8241_v4 = vld [vmem:[%s10834_s15 + $0x930] sm:$0xf0]  ;;  %v8372_v7 = vor.u32 %v9678_v58, %v8369_v59 }
 0x12c   : > { %v9646_v1 = vld [vmem:[%s10834_s15 + $0x924] sm:$0xf]  ;;  %v8097_v6 = vld [vmem:[%s10834_s15 + $0x810] sm:$0xf0]  ;;  %v8500_v13 = vor.u32 %v9710_v63, %v8497_v0 }
 0x12d   : > { %4158 = vmatpush.bf16.msra.mxu1 %v8276_v45  ;;  %4145 = vmatpush.bf16.msra.mxu0 %v8132_v49  ;;  %v9610_v5 = vld [vmem:[%s10834_s15 + $0x804] sm:$0xf]  ;;  %v8353_v10 = vld [vmem:[%s10834_s15 + $0xa10] sm:$0xf0]  ;;  %v8244_v18 = vor.u32 %v9646_v1, %v8241_v4 }
 0x12e   : > { %4173 = vmatpush.bf16.msra.mxu2 %v8388_v52  ;;  %v9674_v9 = vld [vmem:[%s10834_s15 + $0xa04] sm:$0xf]  ;;  %v8481_v15 = vld [vmem:[%s10834_s15 + $0xb10] sm:$0xf0]  ;;  %v8100_v24 = vor.u32 %v9610_v5, %v8097_v6 }
 0x12f   : > { %v9706_v11 = vld [vmem:[%s10834_s15 + $0xb04] sm:$0xf]  ;;  %4187 = vmatpush.bf16.msra.mxu3 %v8516_v57  ;;  %v8721_v17 = vld [vmem:[%s10834_s15 + $0xcf0] sm:$0xf0]  ;;  %v8356_v28 = vor.u32 %v9674_v9, %v8353_v10  ;;  %v3869_v10 = vpop.f32.mrf.mxu0 }
 0x130   : > { %v9766_v16 = vld [vmem:[%s10834_s15 + $0xce4] sm:$0xf]  ;;  %v8977_v20 = vld [vmem:[%s10834_s15 + $0xef0] sm:$0xf0]  ;;  %v8484_v35 = vor.u32 %v9706_v11, %v8481_v15 }
 0x131   : > { %4159 = vmatpush.bf16.msra.mxu1 %v8260_v62  ;;  %v9830_v19 = vld [vmem:[%s10834_s15 + $0xee4] sm:$0xf]  ;;  %4146 = vmatpush.bf16.msra.mxu0 %v8116_v3  ;;  %v9105_v25 = vld [vmem:[%s10834_s15 + $0xff0] sm:$0xf0]  ;;  %v8724_v34 = vor.u32 %v9766_v16, %v8721_v17  ;;  %v11496_v62 = vpop.f32.mrf.mxu3  ;;  %v3828_v3 = vadd.f32 %v11441_v29, %v3814_v47  ;;  %v11510_v16 = vpop.f32.mrf.mxu1 }
 0x132   : > { %v9862_v21 = vld [vmem:[%s10834_s15 + $0xfe4] sm:$0xf]  ;;  %v8225_v27 = vld [vmem:[%s10834_s15 + $0x910] sm:$0xf0]  ;;  %4174 = vmatpush.bf16.msra.mxu2 %v8372_v7  ;;  %v8980_v39 = vor.u32 %v9830_v19, %v8977_v20 }
 0x133   : > { %v9642_v26 = vld [vmem:[%s10834_s15 + $0x904] sm:$0xf]  ;;  %4188 = vmatpush.bf16.msra.mxu3 %v8500_v13  ;;  %v8849_v46 = vld [vmem:[%s10834_s15 + $0xdf0] sm:$0xf0]  ;;  %v9108_v49 = vor.u32 %v9862_v21, %v9105_v25  ;;  %v3842_v20 = vadd.f32 %v11455_v56, %v3828_v3  ;;  %v3816_v56 = vadd.f32 %v11470_v12, %v1156_v55 }
 0x134   : > { %v9798_v45 = vld [vmem:[%s10834_s15 + $0xde4] sm:$0xf]  ;;  %v8228_v50 = vor.u32 %v9642_v26, %v8225_v27  ;;  %v8705_v52 = vld [vmem:[%s10834_s15 + $0xcd0] sm:$0xf0] }
 0x135   : > { %4160 = vmatpush.bf16.msra.mxu1 %v8244_v18  ;;  %v9762_v51 = vld [vmem:[%s10834_s15 + $0xcc4] sm:$0xf]  ;;  %4147 = vmatpush.bf16.msra.mxu0 %v8100_v24  ;;  %v8961_v57 = vld [vmem:[%s10834_s15 + $0xed0] sm:$0xf0]  ;;  %v8852_v22 = vor.u32 %v9798_v45, %v8849_v46  ;;  %v11525_v45 = vpop.f32.mrf.mxu2 }
 0x136   : > { %v9826_v53 = vld [vmem:[%s10834_s15 + $0xec4] sm:$0xf]  ;;  %v9089_v59 = vld [vmem:[%s10834_s15 + $0xfd0] sm:$0xf0]  ;;  %4175 = vmatpush.bf16.msra.mxu2 %v8356_v28  ;;  %v8708_v63 = vor.u32 %v9762_v51, %v8705_v52 }
 0x137   : > { %v9858_v58 = vld [vmem:[%s10834_s15 + $0xfc4] sm:$0xf]  ;;  %4189 = vmatpush.bf16.msra.mxu3 %v8484_v35  ;;  %v8833_v1 = vld [vmem:[%s10834_s15 + $0xdd0] sm:$0xf0]  ;;  %v8964_v4 = vor.u32 %v9826_v53, %v8961_v57 }
 0x138   : > { %v9794_v0 = vld [vmem:[%s10834_s15 + $0xdc4] sm:$0xf]  ;;  %v9092_v5 = vor.u32 %v9858_v58, %v9089_v59  ;;  %v8689_v7 = vld [vmem:[%s10834_s15 + $0xcb0] sm:$0xf0]  ;;  %4148 = vmatmul.bf16.vlgmr.msra.gmra.mxu0 %v11160_v30 }
 0x139   : > { %4196 = vmatpush.bf16.msrb.mxu0 %v8724_v34  ;;  %4161 = vmatpush.bf16.msra.mxu1 %v8228_v50  ;;  %v9758_v6 = vld [vmem:[%s10834_s15 + $0xca4] sm:$0xf]  ;;  %v8945_v11 = vld [vmem:[%s10834_s15 + $0xeb0] sm:$0xf0]  ;;  %v8836_v29 = vor.u32 %v9794_v0, %v8833_v1  ;;  %v3856_v50 = vadd.f32 %v11459_v61, %v3842_v20  ;;  %v11530_v51 = vpop.f32.mrf.mxu3  ;;  %v3830_v61 = vadd.f32 %v11478_v23, %v3816_v56 }
 0x13a   : > { %4224 = vmatpush.bf16.msrb.mxu2 %v8980_v39  ;;  %v9822_v9 = vld [vmem:[%s10834_s15 + $0xea4] sm:$0xf]  ;;  %v9073_v15 = vld [vmem:[%s10834_s15 + $0xfb0] sm:$0xf0]  ;;  %4190 = vmatmul.bf16.vlgmr.msra.gmra.mxu3 %v11167_v37  ;;  %v8692_v17 = vor.u32 %v9758_v6, %v8689_v7 }
 0x13b   : > { %4238 = vmatpush.bf16.msrb.mxu3 %v9108_v49  ;;  %4176 = vmatmul.bf16.vlgmr.msra.gmra.mxu2 %v11162_v31  ;;  %v9854_v13 = vld [vmem:[%s10834_s15 + $0xfa4] sm:$0xf]  ;;  %v8817_v19 = vld [vmem:[%s10834_s15 + $0xdb0] sm:$0xf0]  ;;  %v8948_v21 = vor.u32 %v9822_v9, %v8945_v11 }
 0x13c   : > { %4162 = vmatmul.bf16.vlgmr.msra.gmra.mxu1 %v11169_v38  ;;  %v9790_v18 = vld [vmem:[%s10834_s15 + $0xda4] sm:$0xf]  ;;  %v9076_v24 = vor.u32 %v9854_v13, %v9073_v15  ;;  %v8673_v26 = vld [vmem:[%s10834_s15 + $0xc90] sm:$0xf0]  ;;  %v11544_v13 = vpop.f32.mrf.mxu1 }
 0x13d   : > { %4210 = vmatpush.bf16.msrb.mxu1 %v8852_v22  ;;  %4197 = vmatpush.bf16.msrb.mxu0 %v8708_v63  ;;  %v9754_v25 = vld [vmem:[%s10834_s15 + $0xc84] sm:$0xf]  ;;  %v8929_v28 = vld [vmem:[%s10834_s15 + $0xe90] sm:$0xf0]  ;;  %v8820_v39 = vor.u32 %v9790_v18, %v8817_v19  ;;  %v3871_v63 = vpop.f32.mrf.mxu0 }
 0x13e   : > { %4225 = vmatpush.bf16.msrb.mxu2 %v8964_v4  ;;  %v9818_v27 = vld [vmem:[%s10834_s15 + $0xe84] sm:$0xf]  ;;  %v9057_v35 = vld [vmem:[%s10834_s15 + $0xf90] sm:$0xf0]  ;;  %v8676_v46 = vor.u32 %v9754_v25, %v8673_v26  ;;  %v3870_v4 = vadd.f32 %v3869_v10, %v3856_v50 }
 0x13f   : > { %4239 = vmatpush.bf16.msrb.mxu3 %v9092_v5  ;;  %v9850_v34 = vld [vmem:[%s10834_s15 + $0xf84] sm:$0xf]  ;;  %v8801_v49 = vld [vmem:[%s10834_s15 + $0xd90] sm:$0xf0]  ;;  %v8932_v41 = vor.u32 %v9818_v27, %v8929_v28 }
 0x140   : > { %v9786_v47 = vld [vmem:[%s10834_s15 + $0xd84] sm:$0xf]  ;;  %v9060_v52 = vor.u32 %v9850_v34, %v9057_v35  ;;  %v8657_v55 = vld [vmem:[%s10834_s15 + $0xc70] sm:$0xf0]  ;;  %v3899_v34 = vpop.f32.mrf.mxu2 }
 0x141   : > { %4211 = vmatpush.bf16.msrb.mxu1 %v8836_v29  ;;  %4198 = vmatpush.bf16.msrb.mxu0 %v8692_v17  ;;  %v9750_v53 = vld [vmem:[%s10834_s15 + $0xc64] sm:$0xf]  ;;  %v8913_v57 = vld [vmem:[%s10834_s15 + $0xe70] sm:$0xf0]  ;;  %v8804_v22 = vor.u32 %v9786_v47, %v8801_v49  ;;  %v3844_v17 = vadd.f32 %v11491_v54, %v3830_v61  ;;  %v11559_v56 = vpop.f32.mrf.mxu3 }
 0x142   : > { %4226 = vmatpush.bf16.msrb.mxu2 %v8948_v21  ;;  %v9814_v12 = vld [vmem:[%s10834_s15 + $0xe64] sm:$0xf]  ;;  %v9041_v59 = vld [vmem:[%s10834_s15 + $0xf70] sm:$0xf0]  ;;  %v8660_v0 = vor.u32 %v9750_v53, %v8657_v55  ;;  %v3884_v21 = vadd.f32 %v11510_v16, %v3870_v4 }
 0x143   : > { %4240 = vmatpush.bf16.msrb.mxu3 %v9076_v24  ;;  %v9846_v58 = vld [vmem:[%s10834_s15 + $0xf64] sm:$0xf]  ;;  %v8785_v3 = vld [vmem:[%s10834_s15 + $0xd70] sm:$0xf0]  ;;  %v8916_v5 = vor.u32 %v9814_v12, %v8913_v57  ;;  %v3858_v47 = vadd.f32 %v11496_v62, %v3844_v17 }
 0x144   : > { %v9782_v1 = vld [vmem:[%s10834_s15 + $0xd64] sm:$0xf]  ;;  %v9044_v6 = vor.u32 %v9846_v58, %v9041_v59  ;;  %v8641_v9 = vld [vmem:[%s10834_s15 + $0xc50] sm:$0xf0]  ;;  %v3898_v55 = vadd.f32 %v11525_v45, %v3884_v21  ;;  %v7447_v45 = vld [vmem:[%s10834_s15 + $0x2e8] sm:$0xf] }
 0x145   : > { %4212 = vmatpush.bf16.msrb.mxu1 %v8820_v39  ;;  %4199 = vmatpush.bf16.msrb.mxu0 %v8676_v46  ;;  %v9746_v7 = vld [vmem:[%s10834_s15 + $0xc44] sm:$0xf]  ;;  %v8897_v23 = vld [vmem:[%s10834_s15 + $0xe50] sm:$0xf0]  ;;  %v8788_v10 = vor.u32 %v9782_v1, %v8785_v3  ;;  %v3925_v49 = vpop.f32.mrf.mxu0  ;;  %v9385_v1 = vld [vmem:[%s10834_s15 + $0xf4] sm:$0xf0]  ;;  %v3872_v3 = vadd.f32 %v3871_v63, %v3858_v47 }
 0x146   : > { %4227 = vmatpush.bf16.msrb.mxu2 %v8932_v41  ;;  %v9810_v11 = vld [vmem:[%s10834_s15 + $0xe44] sm:$0xf]  ;;  %v9025_v29 = vld [vmem:[%s10834_s15 + $0xf50] sm:$0xf0]  ;;  %v8644_v18 = vor.u32 %v9746_v7, %v8641_v9  ;;  %v9481_v9 = vld [vmem:[%s10834_s15 + $0x3f4] sm:$0xf0] }
 0x147   : > { %4241 = vmatpush.bf16.msrb.mxu3 %v9060_v52  ;;  %v9842_v15 = vld [vmem:[%s10834_s15 + $0xf44] sm:$0xf]  ;;  %v8769_v20 = vld [vmem:[%s10834_s15 + $0xd50] sm:$0xf0]  ;;  %v8900_v24 = vor.u32 %v9810_v11, %v8897_v23  ;;  %v3886_v21 = vadd.f32 %v11544_v13, %v3872_v3 }
 0x148   : > { %v9778_v19 = vld [vmem:[%s10834_s15 + $0xd44] sm:$0xf]  ;;  %v9028_v25 = vor.u32 %v9842_v15, %v9025_v29  ;;  %v8625_v27 = vld [vmem:[%s10834_s15 + $0xc30] sm:$0xf0]  ;;  %v3912_v15 = vadd.f32 %v11530_v51, %v3898_v55 }
 0x149   : > { %4213 = vmatpush.bf16.msrb.mxu1 %v8804_v22  ;;  %4200 = vmatpush.bf16.msrb.mxu0 %v8660_v0  ;;  %v9742_v26 = vld [vmem:[%s10834_s15 + $0xc24] sm:$0xf]  ;;  %v8881_v54 = vld [vmem:[%s10834_s15 + $0xe30] sm:$0xf0]  ;;  %v8772_v16 = vor.u32 %v9778_v19, %v8769_v20  ;;  %v3939_v22 = vpop.f32.mrf.mxu1  ;;  %v7191_v0 = vld [vmem:[%s10834_s15 + $0xe8] sm:$0xf] }
 0x14a   : > { %4228 = vmatpush.bf16.msrb.mxu2 %v8916_v5  ;;  %v9806_v28 = vld [vmem:[%s10834_s15 + $0xe24] sm:$0xf]  ;;  %v9009_v39 = vld [vmem:[%s10834_s15 + $0xf30] sm:$0xf0]  ;;  %v8628_v50 = vor.u32 %v9742_v26, %v8625_v27  ;;  %v9449_v5 = vld [vmem:[%s10834_s15 + $0x2f4] sm:$0xf0]  ;;  %v7192_v17 = vor.u32 %v9385_v1, %v7191_v0 }
 0x14b   : > { %4242 = vmatpush.bf16.msrb.mxu3 %v9044_v6  ;;  %v9838_v35 = vld [vmem:[%s10834_s15 + $0xf24] sm:$0xf]  ;;  %v8753_v41 = vld [vmem:[%s10834_s15 + $0xd30] sm:$0xf0]  ;;  %v8884_v12 = vor.u32 %v9806_v28, %v8881_v54  ;;  %v7575_v6 = vld [vmem:[%s10834_s15 + $0x3e8] sm:$0xf] }
 0x14c   : > { %v9774_v46 = vld [vmem:[%s10834_s15 + $0xd24] sm:$0xf]  ;;  %v8609_v53 = vld [vmem:[%s10834_s15 + $0xc10] sm:$0xf0]  ;;  %v9012_v57 = vor.u32 %v9838_v35, %v9009_v39  ;;  %v7319_v19 = vld [vmem:[%s10834_s15 + $0x1e8] sm:$0xf]  ;;  %v7576_v51 = vor.u32 %v9481_v9, %v7575_v6 }
 0x14d   : > { %4214 = vmatpush.bf16.msrb.mxu1 %v8788_v10  ;;  %4201 = vmatpush.bf16.msrb.mxu0 %v8644_v18  ;;  %v9738_v52 = vld [vmem:[%s10834_s15 + $0xc04] sm:$0xf]  ;;  %v8865_v58 = vld [vmem:[%s10834_s15 + $0xe10] sm:$0xf0]  ;;  %v8756_v4 = vor.u32 %v9774_v46, %v8753_v41  ;;  %v3953_v10 = vpop.f32.mrf.mxu2  ;;  %v7448_v18 = vor.u32 %v9449_v5, %v7447_v45  ;;  %v9417_v20 = vld [vmem:[%s10834_s15 + $0x1f4] sm:$0xf0]  ;;  %v3900_v46 = vadd.f32 %v3899_v34, %v3886_v21  ;;  %v3927_v47 = vpop.f32.mrf.mxu0 }
 0x14e   : > { %4229 = vmatpush.bf16.msrb.mxu2 %v8900_v24  ;;  %v9802_v62 = vld [vmem:[%s10834_s15 + $0xe04] sm:$0xf]  ;;  %v8993_v61 = vld [vmem:[%s10834_s15 + $0xf10] sm:$0xf0]  ;;  %v8612_v7 = vor.u32 %v9738_v52, %v8609_v53  ;;  %v3926_v24 = vadd.f32 %v3925_v49, %v3912_v15  ;;  %v7175_v27 = vld [vmem:[%s10834_s15 + $0xc8] sm:$0xf]  ;;  %v7320_v13 = vor.u32 %v9417_v20, %v7319_v19 }
 0x14f   : > { %4243 = vmatpush.bf16.msrb.mxu3 %v9028_v25  ;;  %v9834_v59 = vld [vmem:[%s10834_s15 + $0xf04] sm:$0xf]  ;;  %v8737_v23 = vld [vmem:[%s10834_s15 + $0xd10] sm:$0xf0]  ;;  %v8868_v63 = vor.u32 %v9802_v62, %v8865_v58  ;;  %v3967_v25 = vpop.f32.mrf.mxu3  ;;  %v9381_v28 = vld [vmem:[%s10834_s15 + $0xd4] sm:$0xf0] }
 0x150   : > { %v9770_v11 = vld [vmem:[%s10834_s15 + $0xd04] sm:$0xf]  ;;  %v8996_v29 = vor.u32 %v9834_v59, %v8993_v61  ;;  %v7431_v54 = vld [vmem:[%s10834_s15 + $0x2c8] sm:$0xf]  ;;  %v9445_v35 = vld [vmem:[%s10834_s15 + $0x2d4] sm:$0xf0]  ;;  %v7176_v49 = vor.u32 %v9381_v28, %v7175_v27  ;;  %v3940_v52 = vadd.f32 %v3939_v22, %v3926_v24  ;;  %v3914_v22 = vadd.f32 %v11559_v56, %v3900_v46 }
 0x151   : > { %4215 = vmatpush.bf16.msrb.mxu1 %v8772_v16  ;;  %4202 = vmatpush.bf16.msrb.mxu0 %v8628_v50  ;;  %v8740_v26 = vor.u32 %v9770_v11, %v8737_v23  ;;  %v7559_v39 = vld [vmem:[%s10834_s15 + $0x3c8] sm:$0xf]  ;;  %v9477_v16 = vld [vmem:[%s10834_s15 + $0x3d4] sm:$0xf0]  ;;  %v7432_v53 = vor.u32 %v9445_v35, %v7431_v54  ;;  %v3941_v62 = vpop.f32.mrf.mxu1 }
 0x152   : > { %4230 = vmatpush.bf16.msrb.mxu2 %v8884_v12  ;;  %v7303_v50 = vld [vmem:[%s10834_s15 + $0x1c8] sm:$0xf]  ;;  %v9413_v41 = vld [vmem:[%s10834_s15 + $0x1d4] sm:$0xf0]  ;;  %v7560_v55 = vor.u32 %v9477_v16, %v7559_v39  ;;  %v3954_v0 = vadd.f32 %v3953_v10, %v3940_v52  ;;  %v3928_v6 = vadd.f32 %v3927_v47, %v3914_v22 }
 0x153   : > { %4244 = vmatpush.bf16.msrb.mxu3 %v9012_v57  ;;  %v7159_v34 = vld [vmem:[%s10834_s15 + $0xa8] sm:$0xf]  ;;  %v9377_v12 = vld [vmem:[%s10834_s15 + $0xb4] sm:$0xf0]  ;;  %v7304_v1 = vor.u32 %v9413_v41, %v7303_v50 }
 0x154   : > { %v7415_v57 = vld [vmem:[%s10834_s15 + $0x2a8] sm:$0xf]  ;;  %v9441_v58 = vld [vmem:[%s10834_s15 + $0x2b4] sm:$0xf0]  ;;  %v7160_v3 = vor.u32 %v9377_v12, %v7159_v34  ;;  %v3968_v10 = vadd.f32 %v3967_v25, %v3954_v0 }
 0x155   : > { %4216 = vmatpush.bf16.msrb.mxu1 %v8756_v4  ;;  %4203 = vmatpush.bf16.msrb.mxu0 %v8612_v7  ;;  %v7543_v59 = vld [vmem:[%s10834_s15 + $0x3a8] sm:$0xf]  ;;  %v9473_v61 = vld [vmem:[%s10834_s15 + $0x3b4] sm:$0xf0]  ;;  %v7416_v56 = vor.u32 %v9441_v58, %v7415_v57  ;;  %v3955_v15 = vpop.f32.mrf.mxu2  ;;  %v3981_v19 = vpop.f32.mrf.mxu0 }
 0x156   : > { %4231 = vmatpush.bf16.msrb.mxu2 %v8868_v63  ;;  %v7287_v4 = vld [vmem:[%s10834_s15 + $0x1a8] sm:$0xf]  ;;  %v9409_v45 = vld [vmem:[%s10834_s15 + $0x1b4] sm:$0xf0]  ;;  %v7544_v7 = vor.u32 %v9473_v61, %v7543_v59  ;;  %v3982_v25 = vadd.f32 %v3981_v19, %v3968_v10 }
 0x157   : > { %4245 = vmatpush.bf16.msrb.mxu3 %v8996_v29  ;;  %v7143_v5 = vld [vmem:[%s10834_s15 + $0x88] sm:$0xf]  ;;  %v9373_v9 = vld [vmem:[%s10834_s15 + $0x94] sm:$0xf0] }
 0x158   : > { %4204 = vmatmul.bf16.vlgmr.msrb.gmra.mxu0 %v11260_v32  ;;  %v7399_v11 = vld [vmem:[%s10834_s15 + $0x288] sm:$0xf]  ;;  %v9437_v23 = vld [vmem:[%s10834_s15 + $0x294] sm:$0xf0]  ;;  %v7144_v20 = vor.u32 %v9373_v9, %v7143_v5 }
 0x159   : > { %4252 = vmatpush.bf16.msra.mxu0 %v7192_v17  ;;  %4217 = vmatpush.bf16.msrb.mxu1 %v8740_v26  ;;  %v7527_v63 = vld [vmem:[%s10834_s15 + $0x388] sm:$0xf]  ;;  %v9469_v29 = vld [vmem:[%s10834_s15 + $0x394] sm:$0xf0]  ;;  %v3969_v17 = vpop.f32.mrf.mxu3  ;;  %v7400_v21 = vor.u32 %v9437_v23, %v7399_v11  ;;  %v3942_v26 = vadd.f32 %v3941_v62, %v3928_v6  ;;  %v3995_v39 = vpop.f32.mrf.mxu1 }
 0x15a   : > { %4280 = vmatpush.bf16.msra.mxu2 %v7448_v18  ;;  %4246 = vmatmul.bf16.vlgmr.msrb.gmra.mxu3 %v11267_v42  ;;  %v7288_v18 = vor.u32 %v9409_v45, %v7287_v4  ;;  %v7271_v24 = vld [vmem:[%s10834_s15 + $0x188] sm:$0xf]  ;;  %v7528_v27 = vor.u32 %v9469_v29, %v7527_v63  ;;  %v9369_v54 = vld [vmem:[%s10834_s15 + $0x74] sm:$0xf0] }
 0x15b   : > { %4294 = vmatpush.bf16.msra.mxu3 %v7576_v51  ;;  %4232 = vmatmul.bf16.vlgmr.msrb.gmra.mxu2 %v11262_v33  ;;  %v9405_v51 = vld [vmem:[%s10834_s15 + $0x194] sm:$0xf0]  ;;  %v7127_v28 = vld [vmem:[%s10834_s15 + $0x68] sm:$0xf]  ;;  %v3956_v47 = vadd.f32 %v3955_v15, %v3942_v26 }
 0x15c   : > { %4218 = vmatmul.bf16.vlgmr.msrb.gmra.mxu1 %v11269_v43  ;;  %v7383_v35 = vld [vmem:[%s10834_s15 + $0x268] sm:$0xf]  ;;  %v9433_v16 = vld [vmem:[%s10834_s15 + $0x274] sm:$0xf0]  ;;  %v7128_v50 = vor.u32 %v9369_v54, %v7127_v28 }
 0x15d   : > { %4266 = vmatpush.bf16.msra.mxu1 %v7320_v13  ;;  %4253 = vmatpush.bf16.msra.mxu0 %v7176_v49  ;;  %v7511_v46 = vld [vmem:[%s10834_s15 + $0x368] sm:$0xf]  ;;  %v9465_v13 = vld [vmem:[%s10834_s15 + $0x374] sm:$0xf0]  ;;  %v7272_v49 = vor.u32 %v9405_v51, %v7271_v24  ;;  %v7384_v34 = vor.u32 %v9433_v16, %v7383_v35  ;;  %v3970_v0 = vadd.f32 %v3969_v17, %v3956_v47  ;;  %v3983_v45 = vpop.f32.mrf.mxu0 }
 0x15e   : > { %4281 = vmatpush.bf16.msra.mxu2 %v7432_v53  ;;  %v7255_v41 = vld [vmem:[%s10834_s15 + $0x168] sm:$0xf]  ;;  %v9401_v52 = vld [vmem:[%s10834_s15 + $0x174] sm:$0xf0]  ;;  %v7512_v12 = vor.u32 %v9465_v13, %v7511_v46  ;;  %v4009_v59 = vpop.f32.mrf.mxu2 }
 0x15f   : > { %4295 = vmatpush.bf16.msra.mxu3 %v7560_v55  ;;  %v7111_v53 = vld [vmem:[%s10834_s15 + $0x48] sm:$0xf]  ;;  %v3996_v55 = vadd.f32 %v3995_v39, %v3982_v25  ;;  %v9365_v57 = vld [vmem:[%s10834_s15 + $0x54] sm:$0xf0]  ;;  %v3984_v9 = vadd.f32 %v3983_v45, %v3970_v0 }
 0x160   : > { %v7367_v62 = vld [vmem:[%s10834_s15 + $0x248] sm:$0xf]  ;;  %v9429_v58 = vld [vmem:[%s10834_s15 + $0x254] sm:$0xf0]  ;;  %v7112_v5 = vor.u32 %v9365_v57, %v7111_v53 }
 0x161   : > { %4267 = vmatpush.bf16.msra.mxu1 %v7304_v1  ;;  %4254 = vmatpush.bf16.msra.mxu0 %v7160_v3  ;;  %v7495_v61 = vld [vmem:[%s10834_s15 + $0x348] sm:$0xf]  ;;  %v9461_v22 = vld [vmem:[%s10834_s15 + $0x354] sm:$0xf0]  ;;  %v4010_v1 = vadd.f32 %v4009_v59, %v3996_v55  ;;  %v7256_v3 = vor.u32 %v9401_v52, %v7255_v41  ;;  %v4023_v4 = vpop.f32.mrf.mxu3  ;;  %v7368_v6 = vor.u32 %v9429_v58, %v7367_v62  ;;  %v3997_v10 = vpop.f32.mrf.mxu1 }
 0x162   : > { %4282 = vmatpush.bf16.msra.mxu2 %v7416_v56  ;;  %v7239_v56 = vld [vmem:[%s10834_s15 + $0x148] sm:$0xf]  ;;  %v7496_v23 = vor.u32 %v9461_v22, %v7495_v61  ;;  %v9361_v63 = vld [vmem:[%s10834_s15 + $0x34] sm:$0xf0] }
 0x163   : > { %4296 = vmatpush.bf16.msra.mxu3 %v7544_v7  ;;  %v9397_v7 = vld [vmem:[%s10834_s15 + $0x154] sm:$0xf0]  ;;  %v4024_v11 = vadd.f32 %v4023_v4, %v4010_v1  ;;  %v7095_v15 = vld [vmem:[%s10834_s15 + $0x28] sm:$0xf] }
 0x164   : > { %v7351_v29 = vld [vmem:[%s10834_s15 + $0x228] sm:$0xf]  ;;  %v9425_v17 = vld [vmem:[%s10834_s15 + $0x234] sm:$0xf0]  ;;  %v7096_v24 = vor.u32 %v9361_v63, %v7095_v15 }
 0x165   : > { %4268 = vmatpush.bf16.msra.mxu1 %v7288_v18  ;;  %4255 = vmatpush.bf16.msra.mxu0 %v7144_v20  ;;  %v7479_v18 = vld [vmem:[%s10834_s15 + $0x328] sm:$0xf]  ;;  %v9457_v19 = vld [vmem:[%s10834_s15 + $0x334] sm:$0xf0]  ;;  %4700 = vst [vmem:[#allocation2] sm:$0xff] %v4024_v11  ;;  %v7240_v20 = vor.u32 %v9397_v7, %v7239_v56  ;;  %v7352_v28 = vor.u32 %v9425_v17, %v7351_v29 }
 0x166   : > { %4283 = vmatpush.bf16.msra.mxu2 %v7400_v21  ;;  %v7223_v21 = vld [vmem:[%s10834_s15 + $0x128] sm:$0xf]  ;;  %v9393_v51 = vld [vmem:[%s10834_s15 + $0x134] sm:$0xf0]  ;;  %v7480_v54 = vor.u32 %v9457_v19, %v7479_v18  ;;  %v4011_v46 = vpop.f32.mrf.mxu2 }
 0x167   : > { %4297 = vmatpush.bf16.msra.mxu3 %v7528_v27  ;;  %v7079_v26 = vld [vmem:[%s10834_s15 + $0x8] sm:$0xf]  ;;  %v9357_v25 = vld [vmem:[%s10834_s15 + $0x14] sm:$0xf0]  ;;  %v3998_v27 = vadd.f32 %v3997_v10, %v3984_v9  ;;  %v7224_v41 = vor.u32 %v9393_v51, %v7223_v21 }
 0x168   : > { %v7335_v35 = vld [vmem:[%s10834_s15 + $0x208] sm:$0xf]  ;;  %v9421_v39 = vld [vmem:[%s10834_s15 + $0x214] sm:$0xf0] }
 0x169   : > { %4269 = vmatpush.bf16.msra.mxu1 %v7272_v49  ;;  %4256 = vmatpush.bf16.msra.mxu0 %v7128_v50  ;;  %v7463_v16 = vld [vmem:[%s10834_s15 + $0x308] sm:$0xf]  ;;  %v9453_v13 = vld [vmem:[%s10834_s15 + $0x314] sm:$0xf0]  ;;  %v4012_v50 = vadd.f32 %v4011_v46, %v3998_v27  ;;  %v4025_v52 = vpop.f32.mrf.mxu3  ;;  %v7336_v61 = vor.u32 %v9421_v39, %v7335_v35 }
 0x16a   : > { %4284 = vmatpush.bf16.msra.mxu2 %v7384_v34  ;;  %v7703_v47 = vld [vmem:[%s10834_s15 + $0x4e8] sm:$0xf]  ;;  %v9513_v49 = vld [vmem:[%s10834_s15 + $0x4f4] sm:$0xf0]  ;;  %v7464_v22 = vor.u32 %v9453_v13, %v7463_v16 }
 0x16b   : > { %4298 = vmatpush.bf16.msra.mxu3 %v7512_v12  ;;  %v7959_v53 = vld [vmem:[%s10834_s15 + $0x6e8] sm:$0xf]  ;;  %v9577_v55 = vld [vmem:[%s10834_s15 + $0x6f4] sm:$0xf0]  ;;  %v7080_v12 = vor.u32 %v9357_v25, %v7079_v26  ;;  %v4026_v59 = vadd.f32 %v4025_v52, %v4012_v50 }
 0x16c   : > { %v8087_v34 = vld [vmem:[%s10834_s15 + $0x7e8] sm:$0xf]  ;;  %v9609_v57 = vld [vmem:[%s10834_s15 + $0x7f4] sm:$0xf0]  ;;  %v7960_v4 = vor.u32 %v9577_v55, %v7959_v53 }
 0x16d   : > { %4270 = vmatpush.bf16.msra.mxu1 %v7256_v3  ;;  %4257 = vmatpush.bf16.msra.mxu0 %v7112_v5  ;;  %v7207_v62 = vld [vmem:[%s10834_s15 + $0x108] sm:$0xf]  ;;  %v9389_v58 = vld [vmem:[%s10834_s15 + $0x114] sm:$0xf0]  ;;  %v7704_v3 = vor.u32 %v9513_v49, %v7703_v47  ;;  %4704 = vst [vmem:[#allocation2 + $0x20] sm:$0xff] %v4026_v59 }
 0x16e   : > { %4285 = vmatpush.bf16.msra.mxu2 %v7368_v6  ;;  %v7831_v0 = vld [vmem:[%s10834_s15 + $0x5e8] sm:$0xf]  ;;  %v9545_v1 = vld [vmem:[%s10834_s15 + $0x5f4] sm:$0xf0]  ;;  %v8088_v6 = vor.u32 %v9609_v57, %v8087_v34  ;;  %v7208_v56 = vor.u32 %v9389_v58, %v7207_v62 }
 0x16f   : > { %4299 = vmatpush.bf16.msra.mxu3 %v7496_v23  ;;  %v7687_v45 = vld [vmem:[%s10834_s15 + $0x4c8] sm:$0xf]  ;;  %v9509_v5 = vld [vmem:[%s10834_s15 + $0x4d4] sm:$0xf0]  ;;  %v7832_v11 = vor.u32 %v9545_v1, %v7831_v0 }
 0x170   : > { %v7943_v7 = vld [vmem:[%s10834_s15 + $0x6c8] sm:$0xf]  ;;  %v9573_v9 = vld [vmem:[%s10834_s15 + $0x6d4] sm:$0xf0]  ;;  %v7688_v10 = vor.u32 %v9509_v5, %v7687_v45 }
 0x171   : > { %4271 = vmatpush.bf16.msra.mxu1 %v7240_v20  ;;  %4258 = vmatpush.bf16.msra.mxu0 %v7096_v24  ;;  %v8071_v23 = vld [vmem:[%s10834_s15 + $0x7c8] sm:$0xf]  ;;  %v9605_v15 = vld [vmem:[%s10834_s15 + $0x7d4] sm:$0xf0]  ;;  %v7944_v17 = vor.u32 %v9573_v9, %v7943_v7 }
 0x172   : > { %4286 = vmatpush.bf16.msra.mxu2 %v7352_v28  ;;  %v7815_v63 = vld [vmem:[%s10834_s15 + $0x5c8] sm:$0xf]  ;;  %v9541_v29 = vld [vmem:[%s10834_s15 + $0x5d4] sm:$0xf0]  ;;  %v8072_v19 = vor.u32 %v9605_v15, %v8071_v23 }
 0x173   : > { %4300 = vmatpush.bf16.msra.mxu3 %v7480_v54  ;;  %v7671_v18 = vld [vmem:[%s10834_s15 + $0x4a8] sm:$0xf]  ;;  %v9505_v20 = vld [vmem:[%s10834_s15 + $0x4b4] sm:$0xf0]  ;;  %v7816_v51 = vor.u32 %v9541_v29, %v7815_v63 }
 0x174   : > { %v7927_v21 = vld [vmem:[%s10834_s15 + $0x6a8] sm:$0xf]  ;;  %v9569_v24 = vld [vmem:[%s10834_s15 + $0x6b4] sm:$0xf0]  ;;  %v7672_v54 = vor.u32 %v9505_v20, %v7671_v18 }
 0x175   : > { %4272 = vmatpush.bf16.msra.mxu1 %v7224_v41  ;;  %4259 = vmatpush.bf16.msra.mxu0 %v7080_v12  ;;  %v8055_v26 = vld [vmem:[%s10834_s15 + $0x7a8] sm:$0xf]  ;;  %v9601_v25 = vld [vmem:[%s10834_s15 + $0x7b4] sm:$0xf0]  ;;  %v7928_v35 = vor.u32 %v9569_v24, %v7927_v21 }
 0x176   : > { %4287 = vmatpush.bf16.msra.mxu2 %v7336_v61  ;;  %v7799_v27 = vld [vmem:[%s10834_s15 + $0x5a8] sm:$0xf]  ;;  %v9537_v28 = vld [vmem:[%s10834_s15 + $0x5b4] sm:$0xf0]  ;;  %v8056_v16 = vor.u32 %v9601_v25, %v8055_v26 }
 0x177   : > { %4301 = vmatpush.bf16.msra.mxu3 %v7464_v22  ;;  %v7655_v39 = vld [vmem:[%s10834_s15 + $0x488] sm:$0xf]  ;;  %v9501_v46 = vld [vmem:[%s10834_s15 + $0x494] sm:$0xf0]  ;;  %v7800_v49 = vor.u32 %v9537_v28, %v7799_v27 }
 0x178   : > { %4260 = vmatmul.bf16.vlgmr.msra.gmra.mxu0 %v10953_v60  ;;  %v7911_v13 = vld [vmem:[%s10834_s15 + $0x688] sm:$0xf]  ;;  %v9565_v47 = vld [vmem:[%s10834_s15 + $0x694] sm:$0xf0]  ;;  %v7656_v55 = vor.u32 %v9501_v46, %v7655_v39 }
 0x179   : > { %4308 = vmatpush.bf16.msrb.mxu0 %v7704_v3  ;;  %4273 = vmatpush.bf16.msra.mxu1 %v7208_v56  ;;  %v8039_v50 = vld [vmem:[%s10834_s15 + $0x788] sm:$0xf]  ;;  %v9597_v41 = vld [vmem:[%s10834_s15 + $0x794] sm:$0xf0]  ;;  %v7912_v34 = vor.u32 %v9565_v47, %v7911_v13 }
 0x17a   : > { %4336 = vmatpush.bf16.msrb.mxu2 %v7960_v4  ;;  %4302 = vmatmul.bf16.vlgmr.msra.gmra.mxu3 %v10982_v14  ;;  %v7783_v52 = vld [vmem:[%s10834_s15 + $0x588] sm:$0xf]  ;;  %v9533_v53 = vld [vmem:[%s10834_s15 + $0x594] sm:$0xf0]  ;;  %v8040_v57 = vor.u32 %v9597_v41, %v8039_v50 }
 0x17b   : > { %4350 = vmatpush.bf16.msrb.mxu3 %v8088_v6  ;;  %4288 = vmatmul.bf16.vlgmr.msra.gmra.mxu2 %v10961_v2  ;;  %v7639_v12 = vld [vmem:[%s10834_s15 + $0x468] sm:$0xf]  ;;  %v9497_v62 = vld [vmem:[%s10834_s15 + $0x474] sm:$0xf0]  ;;  %v7784_v61 = vor.u32 %v9533_v53, %v7783_v52 }
 0x17c   : > { %4274 = vmatmul.bf16.vlgmr.msra.gmra.mxu1 %v10973_v8  ;;  %v7895_v58 = vld [vmem:[%s10834_s15 + $0x668] sm:$0xf]  ;;  %v9561_v59 = vld [vmem:[%s10834_s15 + $0x674] sm:$0xf0]  ;;  %v7640_v4 = vor.u32 %v9497_v62, %v7639_v12 }
 0x17d   : > { %4322 = vmatpush.bf16.msrb.mxu1 %v7832_v11  ;;  %4309 = vmatpush.bf16.msrb.mxu0 %v7688_v10  ;;  %v8023_v22 = vld [vmem:[%s10834_s15 + $0x768] sm:$0xf]  ;;  %v9593_v0 = vld [vmem:[%s10834_s15 + $0x774] sm:$0xf0]  ;;  %v7896_v45 = vor.u32 %v9561_v59, %v7895_v58 }
 0x17e   : > { %4337 = vmatpush.bf16.msrb.mxu2 %v7944_v17  ;;  %v7767_v1 = vld [vmem:[%s10834_s15 + $0x568] sm:$0xf]  ;;  %v9529_v3 = vld [vmem:[%s10834_s15 + $0x574] sm:$0xf0]  ;;  %v8024_v6 = vor.u32 %v9593_v0, %v8023_v22 }
 0x17f   : > { %4351 = vmatpush.bf16.msrb.mxu3 %v8072_v19  ;;  %v7623_v5 = vld [vmem:[%s10834_s15 + $0x448] sm:$0xf]  ;;  %v9493_v56 = vld [vmem:[%s10834_s15 + $0x454] sm:$0xf0]  ;;  %v7768_v11 = vor.u32 %v9529_v3, %v7767_v1 }
 0x180   : > { %v7879_v7 = vld [vmem:[%s10834_s15 + $0x648] sm:$0xf]  ;;  %v9557_v9 = vld [vmem:[%s10834_s15 + $0x654] sm:$0xf0]  ;;  %v7624_v10 = vor.u32 %v9493_v56, %v7623_v5 }
 0x181   : > { %4323 = vmatpush.bf16.msrb.mxu1 %v7816_v51  ;;  %4310 = vmatpush.bf16.msrb.mxu0 %v7672_v54  ;;  %v8007_v23 = vld [vmem:[%s10834_s15 + $0x748] sm:$0xf]  ;;  %v9589_v15 = vld [vmem:[%s10834_s15 + $0x754] sm:$0xf0]  ;;  %v7880_v17 = vor.u32 %v9557_v9, %v7879_v7 }
 0x182   : > { %4338 = vmatpush.bf16.msrb.mxu2 %v7928_v35  ;;  %v7751_v63 = vld [vmem:[%s10834_s15 + $0x548] sm:$0xf]  ;;  %v9525_v29 = vld [vmem:[%s10834_s15 + $0x554] sm:$0xf0]  ;;  %v8008_v19 = vor.u32 %v9589_v15, %v8007_v23 }
 0x183   : > { %4352 = vmatpush.bf16.msrb.mxu3 %v8056_v16  ;;  %v7607_v18 = vld [vmem:[%s10834_s15 + $0x428] sm:$0xf]  ;;  %v9489_v20 = vld [vmem:[%s10834_s15 + $0x434] sm:$0xf0]  ;;  %v7752_v51 = vor.u32 %v9525_v29, %v7751_v63 }
 0x184   : > { %v7863_v21 = vld [vmem:[%s10834_s15 + $0x628] sm:$0xf]  ;;  %v9553_v24 = vld [vmem:[%s10834_s15 + $0x634] sm:$0xf0]  ;;  %v7608_v54 = vor.u32 %v9489_v20, %v7607_v18 }
 0x185   : > { %4324 = vmatpush.bf16.msrb.mxu1 %v7800_v49  ;;  %4311 = vmatpush.bf16.msrb.mxu0 %v7656_v55  ;;  %v7991_v26 = vld [vmem:[%s10834_s15 + $0x728] sm:$0xf]  ;;  %v9585_v25 = vld [vmem:[%s10834_s15 + $0x734] sm:$0xf0]  ;;  %v7864_v35 = vor.u32 %v9553_v24, %v7863_v21 }
 0x186   : > { %4339 = vmatpush.bf16.msrb.mxu2 %v7912_v34  ;;  %v7735_v27 = vld [vmem:[%s10834_s15 + $0x528] sm:$0xf]  ;;  %v9521_v28 = vld [vmem:[%s10834_s15 + $0x534] sm:$0xf0]  ;;  %v7992_v13 = vor.u32 %v9585_v25, %v7991_v26 }
 0x187   : > { %4353 = vmatpush.bf16.msrb.mxu3 %v8040_v57  ;;  %v7591_v39 = vld [vmem:[%s10834_s15 + $0x408] sm:$0xf]  ;;  %v9485_v16 = vld [vmem:[%s10834_s15 + $0x414] sm:$0xf0]  ;;  %v7736_v41 = vor.u32 %v9521_v28, %v7735_v27 }
 0x188   : > { %v7847_v46 = vld [vmem:[%s10834_s15 + $0x608] sm:$0xf]  ;;  %v9549_v47 = vld [vmem:[%s10834_s15 + $0x614] sm:$0xf0]  ;;  %v7592_v62 = vor.u32 %v9485_v16, %v7591_v39 }
 0x189   : > { %4325 = vmatpush.bf16.msrb.mxu1 %v7784_v61  ;;  %4312 = vmatpush.bf16.msrb.mxu0 %v7640_v4  ;;  %v7975_v49 = vld [vmem:[%s10834_s15 + $0x708] sm:$0xf]  ;;  %v9581_v50 = vld [vmem:[%s10834_s15 + $0x714] sm:$0xf0]  ;;  %v7848_v58 = vor.u32 %v9549_v47, %v7847_v46 }
 0x18a   : > { %4340 = vmatpush.bf16.msrb.mxu2 %v7896_v45  ;;  %v8215_v52 = vld [vmem:[%s10834_s15 + $0x8e8] sm:$0xf]  ;;  %v9641_v53 = vld [vmem:[%s10834_s15 + $0x8f4] sm:$0xf0]  ;;  %v7976_v22 = vor.u32 %v9581_v50, %v7975_v49 }
 0x18b   : > { %4354 = vmatpush.bf16.msrb.mxu3 %v8024_v6  ;;  %v8471_v55 = vld [vmem:[%s10834_s15 + $0xae8] sm:$0xf]  ;;  %v9705_v34 = vld [vmem:[%s10834_s15 + $0xaf4] sm:$0xf0]  ;;  %v8216_v0 = vor.u32 %v9641_v53, %v8215_v52 }
 0x18c   : > { %v8599_v12 = vld [vmem:[%s10834_s15 + $0xbe8] sm:$0xf]  ;;  %v9737_v57 = vld [vmem:[%s10834_s15 + $0xbf4] sm:$0xf0]  ;;  %v8472_v4 = vor.u32 %v9705_v34, %v8471_v55 }
 0x18d   : > { %4326 = vmatpush.bf16.msrb.mxu1 %v7768_v11  ;;  %4313 = vmatpush.bf16.msrb.mxu0 %v7624_v10  ;;  %v7719_v59 = vld [vmem:[%s10834_s15 + $0x508] sm:$0xf]  ;;  %v9517_v61 = vld [vmem:[%s10834_s15 + $0x514] sm:$0xf0]  ;;  %v8600_v45 = vor.u32 %v9737_v57, %v8599_v12 }
 0x18e   : > { %4341 = vmatpush.bf16.msrb.mxu2 %v7880_v17  ;;  %v8343_v1 = vld [vmem:[%s10834_s15 + $0x9e8] sm:$0xf]  ;;  %v9673_v3 = vld [vmem:[%s10834_s15 + $0x9f4] sm:$0xf0]  ;;  %v7720_v56 = vor.u32 %v9517_v61, %v7719_v59 }
 0x18f   : > { %4355 = vmatpush.bf16.msrb.mxu3 %v8008_v19  ;;  %v8199_v5 = vld [vmem:[%s10834_s15 + $0x8c8] sm:$0xf]  ;;  %v9637_v6 = vld [vmem:[%s10834_s15 + $0x8d4] sm:$0xf0]  ;;  %v8344_v11 = vor.u32 %v9673_v3, %v8343_v1  ;;  %v11754_v1 = vpop.f32.mrf.mxu0 }
 0x190   : > { %v8455_v7 = vld [vmem:[%s10834_s15 + $0xac8] sm:$0xf]  ;;  %v9701_v9 = vld [vmem:[%s10834_s15 + $0xad4] sm:$0xf0]  ;;  %v8200_v63 = vor.u32 %v9637_v6, %v8199_v5 }
 0x191   : > { %4327 = vmatpush.bf16.msrb.mxu1 %v7752_v51  ;;  %4314 = vmatpush.bf16.msrb.mxu0 %v7608_v54  ;;  %v8583_v23 = vld [vmem:[%s10834_s15 + $0xbc8] sm:$0xf]  ;;  %v9733_v15 = vld [vmem:[%s10834_s15 + $0xbd4] sm:$0xf0]  ;;  %v8456_v17 = vor.u32 %v9701_v9, %v8455_v7  ;;  %v11760_v7 = vpop.f32.mrf.mxu1 }
 0x192   : > { %4342 = vmatpush.bf16.msrb.mxu2 %v7864_v35  ;;  %v8327_v29 = vld [vmem:[%s10834_s15 + $0x9c8] sm:$0xf]  ;;  %v9669_v10 = vld [vmem:[%s10834_s15 + $0x9d4] sm:$0xf0]  ;;  %v8584_v20 = vor.u32 %v9733_v15, %v8583_v23 }
 0x193   : > { %4356 = vmatpush.bf16.msrb.mxu3 %v7992_v13  ;;  %v8183_v18 = vld [vmem:[%s10834_s15 + $0x8a8] sm:$0xf]  ;;  %v9633_v19 = vld [vmem:[%s10834_s15 + $0x8b4] sm:$0xf0]  ;;  %v8328_v51 = vor.u32 %v9669_v10, %v8327_v29 }
 0x194   : > { %v8439_v21 = vld [vmem:[%s10834_s15 + $0xaa8] sm:$0xf]  ;;  %v9697_v24 = vld [vmem:[%s10834_s15 + $0xab4] sm:$0xf0]  ;;  %v8184_v27 = vor.u32 %v9633_v19, %v8183_v18 }
 0x195   : > { %4328 = vmatpush.bf16.msrb.mxu1 %v7736_v41  ;;  %4315 = vmatpush.bf16.msrb.mxu0 %v7592_v62  ;;  %v8567_v26 = vld [vmem:[%s10834_s15 + $0xba8] sm:$0xf]  ;;  %v9729_v25 = vld [vmem:[%s10834_s15 + $0xbb4] sm:$0xf0]  ;;  %v8440_v35 = vor.u32 %v9697_v24, %v8439_v21  ;;  %v11771_v24 = vld [vmem:[%s10851_s6] sm:$0xf] }
 0x196   : > { %4343 = vmatpush.bf16.msrb.mxu2 %v7848_v58  ;;  %v8311_v28 = vld [vmem:[%s10834_s15 + $0x9a8] sm:$0xf]  ;;  %v9665_v54 = vld [vmem:[%s10834_s15 + $0x9b4] sm:$0xf0]  ;;  %v8568_v46 = vor.u32 %v9729_v25, %v8567_v26  ;;  %v11774_v26 = vpop.f32.mrf.mxu2 }
 0x197   : > { %4357 = vmatpush.bf16.msrb.mxu3 %v7976_v22  ;;  %v8167_v39 = vld [vmem:[%s10834_s15 + $0x888] sm:$0xf]  ;;  %v9629_v16 = vld [vmem:[%s10834_s15 + $0x894] sm:$0xf0]  ;;  %v8312_v49 = vor.u32 %v9665_v54, %v8311_v28  ;;  %v11778_v54 = vpop.f32.mrf.mxu3 }
 0x198   : > { %4316 = vmatmul.bf16.vlgmr.msrb.gmra.mxu0 %v11056_v36  ;;  %v8423_v13 = vld [vmem:[%s10834_s15 + $0xa88] sm:$0xf]  ;;  %v9693_v47 = vld [vmem:[%s10834_s15 + $0xa94] sm:$0xf0]  ;;  %v8168_v52 = vor.u32 %v9629_v16, %v8167_v39 }
 0x199   : > { %4364 = vmatpush.bf16.msra.mxu0 %v8216_v0  ;;  %4329 = vmatpush.bf16.msrb.mxu1 %v7720_v56  ;;  %v8551_v50 = vld [vmem:[%s10834_s15 + $0xb88] sm:$0xf]  ;;  %v9725_v41 = vld [vmem:[%s10834_s15 + $0xb94] sm:$0xf0]  ;;  %v8424_v34 = vor.u32 %v9693_v47, %v8423_v13 }
 0x19a   : > { %4392 = vmatpush.bf16.msra.mxu2 %v8472_v4  ;;  %4358 = vmatmul.bf16.vlgmr.msrb.gmra.mxu3 %v11067_v44  ;;  %v8295_v53 = vld [vmem:[%s10834_s15 + $0x988] sm:$0xf]  ;;  %v9661_v55 = vld [vmem:[%s10834_s15 + $0x994] sm:$0xf0]  ;;  %v8552_v62 = vor.u32 %v9725_v41, %v8551_v50 }
 0x19b   : > { %4406 = vmatpush.bf16.msra.mxu3 %v8600_v45  ;;  %4344 = vmatmul.bf16.vlgmr.msrb.gmra.mxu2 %v11063_v40  ;;  %v8151_v12 = vld [vmem:[%s10834_s15 + $0x868] sm:$0xf]  ;;  %v9625_v57 = vld [vmem:[%s10834_s15 + $0x874] sm:$0xf0]  ;;  %v8296_v61 = vor.u32 %v9661_v55, %v8295_v53 }
 0x19c   : > { %4330 = vmatmul.bf16.vlgmr.msrb.gmra.mxu1 %v11071_v48  ;;  %v8407_v58 = vld [vmem:[%s10834_s15 + $0xa68] sm:$0xf]  ;;  %v9689_v59 = vld [vmem:[%s10834_s15 + $0xa74] sm:$0xf0]  ;;  %v8152_v3 = vor.u32 %v9625_v57, %v8151_v12 }
 0x19d   : > { %4378 = vmatpush.bf16.msra.mxu1 %v8344_v11  ;;  %4365 = vmatpush.bf16.msra.mxu0 %v8200_v63  ;;  %v8535_v22 = vld [vmem:[%s10834_s15 + $0xb68] sm:$0xf]  ;;  %v9721_v0 = vld [vmem:[%s10834_s15 + $0xb74] sm:$0xf0]  ;;  %v8408_v5 = vor.u32 %v9689_v59, %v8407_v58 }
 0x19e   : > { %4393 = vmatpush.bf16.msra.mxu2 %v8456_v17  ;;  %v8279_v4 = vld [vmem:[%s10834_s15 + $0x968] sm:$0xf]  ;;  %v9657_v45 = vld [vmem:[%s10834_s15 + $0x974] sm:$0xf0]  ;;  %v8536_v9 = vor.u32 %v9721_v0, %v8535_v22 }
 0x19f   : > { %4407 = vmatpush.bf16.msra.mxu3 %v8584_v20  ;;  %v8135_v6 = vld [vmem:[%s10834_s15 + $0x848] sm:$0xf]  ;;  %v9621_v56 = vld [vmem:[%s10834_s15 + $0x854] sm:$0xf0]  ;;  %v8280_v15 = vor.u32 %v9657_v45, %v8279_v4 }
 0x1a0   : > { %v8391_v11 = vld [vmem:[%s10834_s15 + $0xa48] sm:$0xf]  ;;  %v9685_v23 = vld [vmem:[%s10834_s15 + $0xa54] sm:$0xf0]  ;;  %v8136_v10 = vor.u32 %v9621_v56, %v8135_v6 }
 0x1a1   : > { %4379 = vmatpush.bf16.msra.mxu1 %v8328_v51  ;;  %4366 = vmatpush.bf16.msra.mxu0 %v8184_v27  ;;  %v8519_v63 = vld [vmem:[%s10834_s15 + $0xb48] sm:$0xf]  ;;  %v9717_v29 = vld [vmem:[%s10834_s15 + $0xb54] sm:$0xf0]  ;;  %v8392_v19 = vor.u32 %v9685_v23, %v8391_v11  ;;  %v1157_v51 = vperm.slane %v11771_v24, 1 }
 0x1a2   : > { %4394 = vmatpush.bf16.msra.mxu2 %v8440_v35  ;;  %v8263_v17 = vld [vmem:[%s10834_s15 + $0x948] sm:$0xf]  ;;  %v9653_v18 = vld [vmem:[%s10834_s15 + $0x954] sm:$0xf0]  ;;  %v8520_v25 = vor.u32 %v9717_v29, %v8519_v63 }
 0x1a3   : > { %4408 = vmatpush.bf16.msra.mxu3 %v8568_v46  ;;  %v8119_v20 = vld [vmem:[%s10834_s15 + $0x828] sm:$0xf]  ;;  %v9617_v21 = vld [vmem:[%s10834_s15 + $0x834] sm:$0xf0]  ;;  %v8264_v35 = vor.u32 %v9653_v18, %v8263_v17  ;;  %v4038_v29 = vadd.f32 %v11754_v1, %v1157_v51 }
 0x1a4   : > { %v8375_v27 = vld [vmem:[%s10834_s15 + $0xa28] sm:$0xf]  ;;  %v9681_v28 = vld [vmem:[%s10834_s15 + $0xa34] sm:$0xf0]  ;;  %v8120_v13 = vor.u32 %v9617_v21, %v8119_v20  ;;  %v11810_v21 = vpop.f32.mrf.mxu2 }
 0x1a5   : > { %4380 = vmatpush.bf16.msra.mxu1 %v8312_v49  ;;  %4367 = vmatpush.bf16.msra.mxu0 %v8168_v52  ;;  %v8503_v39 = vld [vmem:[%s10834_s15 + $0xb28] sm:$0xf]  ;;  %v9713_v16 = vld [vmem:[%s10834_s15 + $0xb34] sm:$0xf0]  ;;  %v8376_v41 = vor.u32 %v9681_v28, %v8375_v27 }
 0x1a6   : > { %4395 = vmatpush.bf16.msra.mxu2 %v8424_v34  ;;  %v8247_v46 = vld [vmem:[%s10834_s15 + $0x928] sm:$0xf]  ;;  %v9649_v47 = vld [vmem:[%s10834_s15 + $0x934] sm:$0xf0]  ;;  %v11789_v34 = vpop.f32.mrf.mxu0  ;;  %v8504_v12 = vor.u32 %v9713_v16, %v8503_v39 }
 0x1a7   : > { %4409 = vmatpush.bf16.msra.mxu3 %v8552_v62  ;;  %v8103_v49 = vld [vmem:[%s10834_s15 + $0x808] sm:$0xf]  ;;  %v9613_v50 = vld [vmem:[%s10834_s15 + $0x814] sm:$0xf0]  ;;  %v8248_v59 = vor.u32 %v9649_v47, %v8247_v46 }
 0x1a8   : > { %v8359_v52 = vld [vmem:[%s10834_s15 + $0xa08] sm:$0xf]  ;;  %v9677_v53 = vld [vmem:[%s10834_s15 + $0xa14] sm:$0xf0]  ;;  %v8104_v4 = vor.u32 %v9613_v50, %v8103_v49 }
 0x1a9   : > { %4381 = vmatpush.bf16.msra.mxu1 %v8296_v61  ;;  %4368 = vmatpush.bf16.msra.mxu0 %v8152_v3  ;;  %v8487_v55 = vld [vmem:[%s10834_s15 + $0xb08] sm:$0xf]  ;;  %v9709_v57 = vld [vmem:[%s10834_s15 + $0xb14] sm:$0xf0]  ;;  %v11797_v3 = vpop.f32.mrf.mxu1  ;;  %v8360_v56 = vor.u32 %v9677_v53, %v8359_v52 }
 0x1aa   : > { %4396 = vmatpush.bf16.msra.mxu2 %v8408_v5  ;;  %v8727_v62 = vld [vmem:[%s10834_s15 + $0xce8] sm:$0xf]  ;;  %v9769_v58 = vld [vmem:[%s10834_s15 + $0xcf4] sm:$0xf0]  ;;  %v8488_v11 = vor.u32 %v9709_v57, %v8487_v55 }
 0x1ab   : > { %4410 = vmatpush.bf16.msra.mxu3 %v8536_v9  ;;  %v8983_v61 = vld [vmem:[%s10834_s15 + $0xee8] sm:$0xf]  ;;  %v9833_v22 = vld [vmem:[%s10834_s15 + $0xef4] sm:$0xf0]  ;;  %v8728_v9 = vor.u32 %v9769_v58, %v8727_v62 }
 0x1ac   : > { %v9111_v0 = vld [vmem:[%s10834_s15 + $0xfe8] sm:$0xf]  ;;  %v9865_v45 = vld [vmem:[%s10834_s15 + $0xff4] sm:$0xf0]  ;;  %v8984_v23 = vor.u32 %v9833_v22, %v8983_v61 }
 0x1ad   : > { %4382 = vmatpush.bf16.msra.mxu1 %v8280_v15  ;;  %4369 = vmatpush.bf16.msra.mxu0 %v8136_v10  ;;  %v8231_v5 = vld [vmem:[%s10834_s15 + $0x908] sm:$0xf]  ;;  %v9645_v6 = vld [vmem:[%s10834_s15 + $0x914] sm:$0xf0]  ;;  %v9112_v10 = vor.u32 %v9865_v45, %v9111_v0 }
 0x1ae   : > { %4397 = vmatpush.bf16.msra.mxu2 %v8392_v19  ;;  %v8855_v15 = vld [vmem:[%s10834_s15 + $0xde8] sm:$0xf]  ;;  %v9801_v63 = vld [vmem:[%s10834_s15 + $0xdf4] sm:$0xf0]  ;;  %v8232_v17 = vor.u32 %v9645_v6, %v8231_v5  ;;  %v4093_v53 = vpop.f32.mrf.mxu0 }
 0x1af   : > { %4411 = vmatpush.bf16.msra.mxu3 %v8520_v25  ;;  %v8711_v18 = vld [vmem:[%s10834_s15 + $0xcc8] sm:$0xf]  ;;  %v9765_v19 = vld [vmem:[%s10834_s15 + $0xcd4] sm:$0xf0]  ;;  %v8856_v1 = vor.u32 %v9801_v63, %v8855_v15  ;;  %v11844_v15 = vpop.f32.mrf.mxu2 }
 0x1b0   : > { %v8967_v20 = vld [vmem:[%s10834_s15 + $0xec8] sm:$0xf]  ;;  %v9829_v25 = vld [vmem:[%s10834_s15 + $0xed4] sm:$0xf0]  ;;  %v8712_v39 = vor.u32 %v9765_v19, %v8711_v18 }
 0x1b1   : > { %4383 = vmatpush.bf16.msra.mxu1 %v8264_v35  ;;  %4370 = vmatpush.bf16.msra.mxu0 %v8120_v13  ;;  %v9095_v27 = vld [vmem:[%s10834_s15 + $0xfc8] sm:$0xf]  ;;  %v9861_v28 = vld [vmem:[%s10834_s15 + $0xfd4] sm:$0xf0]  ;;  %v11815_v35 = vpop.f32.mrf.mxu3  ;;  %v4052_v13 = vadd.f32 %v11760_v7, %v4038_v29  ;;  %v8968_v47 = vor.u32 %v9829_v25, %v8967_v20  ;;  %v11829_v62 = vpop.f32.mrf.mxu1 }
 0x1b2   : > { %4398 = vmatpush.bf16.msra.mxu2 %v8376_v41  ;;  %v8839_v16 = vld [vmem:[%s10834_s15 + $0xdc8] sm:$0xf]  ;;  %v9797_v46 = vld [vmem:[%s10834_s15 + $0xdd4] sm:$0xf0]  ;;  %v9096_v49 = vor.u32 %v9861_v28, %v9095_v27 }
 0x1b3   : > { %4412 = vmatpush.bf16.msra.mxu3 %v8504_v12  ;;  %v8695_v50 = vld [vmem:[%s10834_s15 + $0xca8] sm:$0xf]  ;;  %v9761_v41 = vld [vmem:[%s10834_s15 + $0xcb4] sm:$0xf0]  ;;  %v8840_v7 = vor.u32 %v9797_v46, %v8839_v16  ;;  %v4066_v22 = vadd.f32 %v11774_v26, %v4052_v13  ;;  %v4040_v26 = vadd.f32 %v11789_v34, %v1157_v51 }
 0x1b4   : > { %v8951_v52 = vld [vmem:[%s10834_s15 + $0xea8] sm:$0xf]  ;;  %v9825_v55 = vld [vmem:[%s10834_s15 + $0xeb4] sm:$0xf0]  ;;  %v8696_v58 = vor.u32 %v9761_v41, %v8695_v50 }
 0x1b5   : > { %4384 = vmatpush.bf16.msra.mxu1 %v8248_v59  ;;  %4371 = vmatpush.bf16.msra.mxu0 %v8104_v4  ;;  %v9079_v12 = vld [vmem:[%s10834_s15 + $0xfa8] sm:$0xf]  ;;  %v9857_v57 = vld [vmem:[%s10834_s15 + $0xfb4] sm:$0xf0]  ;;  %v8952_v0 = vor.u32 %v9825_v55, %v8951_v52 }
 0x1b6   : > { %4399 = vmatpush.bf16.msra.mxu2 %v8360_v56  ;;  %v8823_v59 = vld [vmem:[%s10834_s15 + $0xda8] sm:$0xf]  ;;  %v9793_v61 = vld [vmem:[%s10834_s15 + $0xdb4] sm:$0xf0]  ;;  %v9080_v4 = vor.u32 %v9857_v57, %v9079_v12 }
 0x1b7   : > { %4413 = vmatpush.bf16.msra.mxu3 %v8488_v11  ;;  %v8679_v45 = vld [vmem:[%s10834_s15 + $0xc88] sm:$0xf]  ;;  %v9757_v5 = vld [vmem:[%s10834_s15 + $0xc94] sm:$0xf0] }
 0x1b8   : > { %4372 = vmatmul.bf16.vlgmr.msra.gmra.mxu0 %v11160_v30  ;;  %v8935_v6 = vld [vmem:[%s10834_s15 + $0xe88] sm:$0xf]  ;;  %v9821_v56 = vld [vmem:[%s10834_s15 + $0xe94] sm:$0xf0]  ;;  %v8680_v63 = vor.u32 %v9757_v5, %v8679_v45 }
 0x1b9   : > { %4420 = vmatpush.bf16.msrb.mxu0 %v8728_v9  ;;  %4385 = vmatpush.bf16.msra.mxu1 %v8232_v17  ;;  %v9063_v9 = vld [vmem:[%s10834_s15 + $0xf88] sm:$0xf]  ;;  %v9853_v11 = vld [vmem:[%s10834_s15 + $0xf94] sm:$0xf0]  ;;  %v4080_v17 = vadd.f32 %v11778_v54, %v4066_v22  ;;  %v11849_v18 = vpop.f32.mrf.mxu3  ;;  %v8936_v24 = vor.u32 %v9821_v56, %v8935_v6  ;;  %v4054_v54 = vadd.f32 %v11797_v3, %v4040_v26  ;;  %v11863_v12 = vpop.f32.mrf.mxu1 }
 0x1ba   : > { %4448 = vmatpush.bf16.msrb.mxu2 %v8984_v23  ;;  %4414 = vmatmul.bf16.vlgmr.msra.gmra.mxu3 %v11167_v37  ;;  %v8824_v23 = vor.u32 %v9793_v61, %v8823_v59  ;;  %v8807_v29 = vld [vmem:[%s10834_s15 + $0xd88] sm:$0xf]  ;;  %v9064_v19 = vor.u32 %v9853_v11, %v9063_v9  ;;  %v9753_v51 = vld [vmem:[%s10834_s15 + $0xc74] sm:$0xf0]  ;;  %v4123_v9 = vpop.f32.mrf.mxu2 }
 0x1bb   : > { %4462 = vmatpush.bf16.msrb.mxu3 %v9112_v10  ;;  %4400 = vmatmul.bf16.vlgmr.msra.gmra.mxu2 %v11162_v31  ;;  %v9789_v10 = vld [vmem:[%s10834_s15 + $0xd94] sm:$0xf0]  ;;  %v8663_v20 = vld [vmem:[%s10834_s15 + $0xc68] sm:$0xf] }
 0x1bc   : > { %4386 = vmatmul.bf16.vlgmr.msra.gmra.mxu1 %v11169_v38  ;;  %v8919_v34 = vld [vmem:[%s10834_s15 + $0xe68] sm:$0xf]  ;;  %v9817_v25 = vld [vmem:[%s10834_s15 + $0xe74] sm:$0xf0]  ;;  %v8664_v16 = vor.u32 %v9753_v51, %v8663_v20 }
 0x1bd   : > { %4434 = vmatpush.bf16.msrb.mxu1 %v8856_v1  ;;  %4421 = vmatpush.bf16.msrb.mxu0 %v8712_v39  ;;  %v9047_v27 = vld [vmem:[%s10834_s15 + $0xf68] sm:$0xf]  ;;  %v9849_v28 = vld [vmem:[%s10834_s15 + $0xf74] sm:$0xf0]  ;;  %v8808_v1 = vor.u32 %v9789_v10, %v8807_v29  ;;  %v4095_v39 = vpop.f32.mrf.mxu0 }
 0x1be   : > { %4449 = vmatpush.bf16.msrb.mxu2 %v8968_v47  ;;  %v8791_v46 = vld [vmem:[%s10834_s15 + $0xd68] sm:$0xf]  ;;  %v9785_v13 = vld [vmem:[%s10834_s15 + $0xd74] sm:$0xf0]  ;;  %v4094_v47 = vadd.f32 %v4093_v53, %v4080_v17  ;;  %v9048_v50 = vor.u32 %v9849_v28, %v9047_v27 }
 0x1bf   : > { %4463 = vmatpush.bf16.msrb.mxu3 %v9096_v49  ;;  %v8920_v49 = vor.u32 %v9817_v25, %v8919_v34  ;;  %v8647_v41 = vld [vmem:[%s10834_s15 + $0xc48] sm:$0xf]  ;;  %v9749_v52 = vld [vmem:[%s10834_s15 + $0xc54] sm:$0xf0]  ;;  %v8792_v53 = vor.u32 %v9785_v13, %v8791_v46  ;;  %v7193_v46 = vld [vmem:[%s10834_s15 + $0xf8] sm:$0xf0] }
 0x1c0   : > { %v8903_v55 = vld [vmem:[%s10834_s15 + $0xe48] sm:$0xf]  ;;  %v9813_v3 = vld [vmem:[%s10834_s15 + $0xe54] sm:$0xf0]  ;;  %v8648_v59 = vor.u32 %v9749_v52, %v8647_v41  ;;  %v7577_v52 = vld [vmem:[%s10834_s15 + $0x3f8] sm:$0xf0] }
 0x1c1   : > { %4435 = vmatpush.bf16.msrb.mxu1 %v8840_v7  ;;  %4422 = vmatpush.bf16.msrb.mxu0 %v8696_v58  ;;  %v9031_v57 = vld [vmem:[%s10834_s15 + $0xf48] sm:$0xf]  ;;  %v9845_v7 = vld [vmem:[%s10834_s15 + $0xf54] sm:$0xf0]  ;;  %v4068_v58 = vadd.f32 %v11810_v21, %v4054_v54  ;;  %v11878_v26 = vpop.f32.mrf.mxu3 }
 0x1c2   : > { %4450 = vmatpush.bf16.msrb.mxu2 %v8952_v0  ;;  %v8775_v61 = vld [vmem:[%s10834_s15 + $0xd48] sm:$0xf]  ;;  %v9781_v22 = vld [vmem:[%s10834_s15 + $0xd54] sm:$0xf0]  ;;  %v4108_v0 = vadd.f32 %v11829_v62, %v4094_v47  ;;  %v9032_v45 = vor.u32 %v9845_v7, %v9031_v57 }
 0x1c3   : > { %4464 = vmatpush.bf16.msrb.mxu3 %v9080_v4  ;;  %v8904_v4 = vor.u32 %v9813_v3, %v8903_v55  ;;  %v8631_v5 = vld [vmem:[%s10834_s15 + $0xc28] sm:$0xf]  ;;  %v9745_v6 = vld [vmem:[%s10834_s15 + $0xc34] sm:$0xf0]  ;;  %v8776_v62 = vor.u32 %v9781_v22, %v8775_v61  ;;  %v4082_v29 = vadd.f32 %v11815_v35, %v4068_v58  ;;  %v9415_v61 = vld [vmem:[%s10834_s15 + $0x1ec] sm:$0xf] }
 0x1c4   : > { %v8887_v56 = vld [vmem:[%s10834_s15 + $0xe28] sm:$0xf]  ;;  %v9809_v21 = vld [vmem:[%s10834_s15 + $0xe34] sm:$0xf0]  ;;  %v8632_v17 = vor.u32 %v9745_v6, %v8631_v5  ;;  %v4122_v51 = vadd.f32 %v11844_v15, %v4108_v0  ;;  %v9447_v15 = vld [vmem:[%s10834_s15 + $0x2ec] sm:$0xf] }
 0x1c5   : > { %4436 = vmatpush.bf16.msrb.mxu1 %v8824_v23  ;;  %4423 = vmatpush.bf16.msrb.mxu0 %v8680_v63  ;;  %v9015_v11 = vld [vmem:[%s10834_s15 + $0xf28] sm:$0xf]  ;;  %v9841_v23 = vld [vmem:[%s10834_s15 + $0xf34] sm:$0xf0]  ;;  %v4149_v10 = vpop.f32.mrf.mxu0  ;;  %v8888_v34 = vor.u32 %v9809_v21, %v8887_v56  ;;  %v4096_v13 = vadd.f32 %v4095_v39, %v4082_v29  ;;  %v7321_v22 = vld [vmem:[%s10834_s15 + $0x1f8] sm:$0xf0] }
 0x1c6   : > { %4451 = vmatpush.bf16.msrb.mxu2 %v8936_v24  ;;  %v8759_v63 = vld [vmem:[%s10834_s15 + $0xd28] sm:$0xf]  ;;  %v9777_v24 = vld [vmem:[%s10834_s15 + $0xd34] sm:$0xf0]  ;;  %v9016_v25 = vor.u32 %v9841_v23, %v9015_v11  ;;  %v4136_v57 = vadd.f32 %v11849_v18, %v4122_v51  ;;  %v9379_v6 = vld [vmem:[%s10834_s15 + $0xcc] sm:$0xf] }
 0x1c7   : > { %4465 = vmatpush.bf16.msrb.mxu3 %v9064_v19  ;;  %v8615_v19 = vld [vmem:[%s10834_s15 + $0xc08] sm:$0xf]  ;;  %v9741_v20 = vld [vmem:[%s10834_s15 + $0xc14] sm:$0xf0]  ;;  %v8760_v47 = vor.u32 %v9777_v24, %v8759_v63  ;;  %v4110_v0 = vadd.f32 %v11863_v12, %v4096_v13  ;;  %v7177_v56 = vld [vmem:[%s10834_s15 + $0xd8] sm:$0xf0]  ;;  %v7324_v12 = vor.u32 %v9415_v61, %v7321_v22 }
 0x1c8   : > { %v8871_v35 = vld [vmem:[%s10834_s15 + $0xe08] sm:$0xf]  ;;  %v9805_v27 = vld [vmem:[%s10834_s15 + $0xe14] sm:$0xf0]  ;;  %v8616_v41 = vor.u32 %v9741_v20, %v8615_v19  ;;  %v9443_v21 = vld [vmem:[%s10834_s15 + $0x2cc] sm:$0xf] }
 0x1c9   : > { %4437 = vmatpush.bf16.msrb.mxu1 %v8808_v1  ;;  %4424 = vmatpush.bf16.msrb.mxu0 %v8664_v16  ;;  %v8999_v28 = vld [vmem:[%s10834_s15 + $0xf08] sm:$0xf]  ;;  %v4163_v1 = vpop.f32.mrf.mxu1  ;;  %v9837_v54 = vld [vmem:[%s10834_s15 + $0xf14] sm:$0xf0]  ;;  %v9383_v16 = vld [vmem:[%s10834_s15 + $0xec] sm:$0xf]  ;;  %v8872_v39 = vor.u32 %v9805_v27, %v8871_v35  ;;  %v4124_v63 = vadd.f32 %v4123_v9, %v4110_v0 }
 0x1ca   : > { %4452 = vmatpush.bf16.msrb.mxu2 %v8920_v49  ;;  %v7449_v49 = vld [vmem:[%s10834_s15 + $0x2f8] sm:$0xf0]  ;;  %v8743_v55 = vld [vmem:[%s10834_s15 + $0xd08] sm:$0xf]  ;;  %v9773_v3 = vld [vmem:[%s10834_s15 + $0xd14] sm:$0xf0]  ;;  %v9000_v7 = vor.u32 %v9837_v54, %v8999_v28  ;;  %v7196_v58 = vor.u32 %v9383_v16, %v7193_v46 }
 0x1cb   : > { %4466 = vmatpush.bf16.msrb.mxu3 %v9048_v50  ;;  %v9479_v50 = vld [vmem:[%s10834_s15 + $0x3ec] sm:$0xf]  ;;  %v8744_v5 = vor.u32 %v9773_v3, %v8743_v55  ;;  %v7433_v11 = vld [vmem:[%s10834_s15 + $0x2d8] sm:$0xf0] }
 0x1cc   : > { %v7580_v18 = vor.u32 %v9479_v50, %v7577_v52  ;;  %v9475_v23 = vld [vmem:[%s10834_s15 + $0x3cc] sm:$0xf]  ;;  %v7305_v24 = vld [vmem:[%s10834_s15 + $0x1d8] sm:$0xf0]  ;;  %v7436_v20 = vor.u32 %v9443_v21, %v7433_v11 }
 0x1cd   : > { %4438 = vmatpush.bf16.msrb.mxu1 %v8792_v53  ;;  %4425 = vmatpush.bf16.msrb.mxu0 %v8648_v59  ;;  %v4177_v53 = vpop.f32.mrf.mxu2  ;;  %v7452_v59 = vor.u32 %v9447_v15, %v7449_v49  ;;  %v4151_v29 = vpop.f32.mrf.mxu0  ;;  %v9375_v9 = vld [vmem:[%s10834_s15 + $0xac] sm:$0xf]  ;;  %v7417_v27 = vld [vmem:[%s10834_s15 + $0x2b8] sm:$0xf0] }
 0x1ce   : > { %4453 = vmatpush.bf16.msrb.mxu2 %v8904_v4  ;;  %v4150_v4 = vadd.f32 %v4149_v10, %v4136_v57  ;;  %v7180_v10 = vor.u32 %v9379_v6, %v7177_v56  ;;  %v9471_v28 = vld [vmem:[%s10834_s15 + $0x3ac] sm:$0xf]  ;;  %v7545_v54 = vld [vmem:[%s10834_s15 + $0x3b8] sm:$0xf0] }
 0x1cf   : > { %4467 = vmatpush.bf16.msrb.mxu3 %v9032_v45  ;;  %v4191_v45 = vpop.f32.mrf.mxu3  ;;  %v7289_v15 = vld [vmem:[%s10834_s15 + $0x1b8] sm:$0xf0]  ;;  %v9371_v49 = vld [vmem:[%s10834_s15 + $0x8c] sm:$0xf] }
 0x1d0   : > { %v4164_v19 = vadd.f32 %v4163_v1, %v4150_v4  ;;  %v4138_v1 = vadd.f32 %v11878_v26, %v4124_v63  ;;  %v7145_v52 = vld [vmem:[%s10834_s15 + $0x98] sm:$0xf0]  ;;  %v9435_v55 = vld [vmem:[%s10834_s15 + $0x28c] sm:$0xf] }
 0x1d1   : > { %4439 = vmatpush.bf16.msrb.mxu1 %v8776_v62  ;;  %4426 = vmatpush.bf16.msrb.mxu0 %v8632_v17  ;;  %v7561_v62 = vld [vmem:[%s10834_s15 + $0x3d8] sm:$0xf0]  ;;  %v9411_v17 = vld [vmem:[%s10834_s15 + $0x1cc] sm:$0xf]  ;;  %v4165_v35 = vpop.f32.mrf.mxu1  ;;  %v7148_v22 = vor.u32 %v9371_v49, %v7145_v52 }
 0x1d2   : > { %4454 = vmatpush.bf16.msrb.mxu2 %v8888_v34  ;;  %v7564_v51 = vor.u32 %v9475_v23, %v7561_v62  ;;  %v7161_v34 = vld [vmem:[%s10834_s15 + $0xb8] sm:$0xf0]  ;;  %v4178_v16 = vadd.f32 %v4177_v53, %v4164_v19  ;;  %v7308_v46 = vor.u32 %v9411_v17, %v7305_v24  ;;  %v4152_v50 = vadd.f32 %v4151_v29, %v4138_v1  ;;  %v9403_v4 = vld [vmem:[%s10834_s15 + $0x18c] sm:$0xf] }
 0x1d3   : > { %4468 = vmatpush.bf16.msrb.mxu3 %v9016_v25  ;;  %v9439_v25 = vld [vmem:[%s10834_s15 + $0x2ac] sm:$0xf]  ;;  %v7164_v13 = vor.u32 %v9375_v9, %v7161_v34  ;;  %v7401_v3 = vld [vmem:[%s10834_s15 + $0x298] sm:$0xf0] }
 0x1d4   : > { %v7420_v26 = vor.u32 %v9439_v25, %v7417_v27  ;;  %v4192_v53 = vadd.f32 %v4191_v45, %v4178_v16  ;;  %v7404_v0 = vor.u32 %v9435_v55, %v7401_v3  ;;  %v9367_v56 = vld [vmem:[%s10834_s15 + $0x6c] sm:$0xf]  ;;  %v7129_v21 = vld [vmem:[%s10834_s15 + $0x78] sm:$0xf0] }
 0x1d5   : > { %4440 = vmatpush.bf16.msrb.mxu1 %v8760_v47  ;;  %4427 = vmatpush.bf16.msrb.mxu0 %v8616_v41  ;;  %v9407_v47 = vld [vmem:[%s10834_s15 + $0x1ac] sm:$0xf]  ;;  %v7548_v41 = vor.u32 %v9471_v28, %v7545_v54  ;;  %v4179_v57 = vpop.f32.mrf.mxu2  ;;  %v4205_v61 = vpop.f32.mrf.mxu0  ;;  %v7385_v62 = vld [vmem:[%s10834_s15 + $0x278] sm:$0xf0]  ;;  %v7132_v17 = vor.u32 %v9367_v56, %v7129_v21 }
 0x1d6   : > { %4455 = vmatpush.bf16.msrb.mxu2 %v8872_v39  ;;  %v9467_v39 = vld [vmem:[%s10834_s15 + $0x38c] sm:$0xf]  ;;  %v4206_v45 = vadd.f32 %v4205_v61, %v4192_v53  ;;  %v7257_v19 = vld [vmem:[%s10834_s15 + $0x178] sm:$0xf0] }
 0x1d7   : > { %4469 = vmatpush.bf16.msrb.mxu3 %v9000_v7  ;;  %v7529_v7 = vld [vmem:[%s10834_s15 + $0x398] sm:$0xf0]  ;;  %v9431_v11 = vld [vmem:[%s10834_s15 + $0x26c] sm:$0xf] }
 0x1d8   : > { %4428 = vmatmul.bf16.vlgmr.msrb.gmra.mxu0 %v11260_v32  ;;  %v7532_v6 = vor.u32 %v9467_v39, %v7529_v7  ;;  %v9463_v63 = vld [vmem:[%s10834_s15 + $0x36c] sm:$0xf]  ;;  %v7388_v9 = vor.u32 %v9431_v11, %v7385_v62  ;;  %v7113_v25 = vld [vmem:[%s10834_s15 + $0x58] sm:$0xf0] }
 0x1d9   : > { %4476 = vmatpush.bf16.msra.mxu0 %v7196_v58  ;;  %4441 = vmatpush.bf16.msrb.mxu1 %v8744_v5  ;;  %v4193_v58 = vpop.f32.mrf.mxu3  ;;  %v4166_v5 = vadd.f32 %v4165_v35, %v4152_v50  ;;  %v4219_v23 = vpop.f32.mrf.mxu1  ;;  %v9399_v24 = vld [vmem:[%s10834_s15 + $0x16c] sm:$0xf]  ;;  %v7369_v27 = vld [vmem:[%s10834_s15 + $0x258] sm:$0xf0] }
 0x1da   : > { %4504 = vmatpush.bf16.msra.mxu2 %v7452_v59  ;;  %4470 = vmatmul.bf16.vlgmr.msrb.gmra.mxu3 %v11267_v42  ;;  %v7292_v59 = vor.u32 %v9407_v47, %v7289_v15  ;;  %v9427_v35 = vld [vmem:[%s10834_s15 + $0x24c] sm:$0xf]  ;;  %v7497_v1 = vld [vmem:[%s10834_s15 + $0x358] sm:$0xf0] }
 0x1db   : > { %4518 = vmatpush.bf16.msra.mxu3 %v7580_v18  ;;  %4456 = vmatmul.bf16.vlgmr.msrb.gmra.mxu2 %v11262_v33  ;;  %v7273_v18 = vld [vmem:[%s10834_s15 + $0x198] sm:$0xf0]  ;;  %v4180_v29 = vadd.f32 %v4179_v57, %v4166_v5  ;;  %v9459_v54 = vld [vmem:[%s10834_s15 + $0x34c] sm:$0xf]  ;;  %v7372_v50 = vor.u32 %v9427_v35, %v7369_v27 }
 0x1dc   : > { %4442 = vmatmul.bf16.vlgmr.msrb.gmra.mxu1 %v11269_v43  ;;  %v7500_v3 = vor.u32 %v9459_v54, %v7497_v1  ;;  %v9359_v57 = vld [vmem:[%s10834_s15 + $0x2c] sm:$0xf]  ;;  %v7097_v39 = vld [vmem:[%s10834_s15 + $0x38] sm:$0xf0] }
 0x1dd   : > { %4490 = vmatpush.bf16.msra.mxu1 %v7324_v12  ;;  %4477 = vmatpush.bf16.msra.mxu0 %v7180_v10  ;;  %v7513_v12 = vld [vmem:[%s10834_s15 + $0x378] sm:$0xf0]  ;;  %v7276_v10 = vor.u32 %v9403_v4, %v7273_v18  ;;  %v4194_v16 = vadd.f32 %v4193_v58, %v4180_v29  ;;  %v4207_v15 = vpop.f32.mrf.mxu0  ;;  %v9423_v7 = vld [vmem:[%s10834_s15 + $0x22c] sm:$0xf]  ;;  %v7100_v4 = vor.u32 %v9359_v57, %v7097_v39 }
 0x1de   : > { %4505 = vmatpush.bf16.msra.mxu2 %v7436_v20  ;;  %v9363_v20 = vld [vmem:[%s10834_s15 + $0x4c] sm:$0xf]  ;;  %v7516_v34 = vor.u32 %v9463_v63, %v7513_v12  ;;  %v4233_v28 = vpop.f32.mrf.mxu2  ;;  %v7353_v58 = vld [vmem:[%s10834_s15 + $0x238] sm:$0xf0] }
 0x1df   : > { %4519 = vmatpush.bf16.msra.mxu3 %v7564_v51  ;;  %v4220_v51 = vadd.f32 %v4219_v23, %v4206_v45  ;;  %v7116_v49 = vor.u32 %v9363_v20, %v7113_v25  ;;  %v4208_v52 = vadd.f32 %v4207_v15, %v4194_v16  ;;  %v7481_v61 = vld [vmem:[%s10834_s15 + $0x338] sm:$0xf0]  ;;  %v9355_v5 = vld [vmem:[%s10834_s15 + $0xc] sm:$0xf]  ;;  %v7356_v56 = vor.u32 %v9423_v7, %v7353_v58 }
 0x1e0   : > { %v7225_v18 = vld [vmem:[%s10834_s15 + $0x138] sm:$0xf0]  ;;  %v9419_v11 = vld [vmem:[%s10834_s15 + $0x20c] sm:$0xf] }
 0x1e1   : > { %4491 = vmatpush.bf16.msra.mxu1 %v7308_v46  ;;  %4478 = vmatpush.bf16.msra.mxu0 %v7164_v13  ;;  %v4234_v46 = vadd.f32 %v4233_v28, %v4220_v51  ;;  %v7260_v13 = vor.u32 %v9399_v24, %v7257_v19  ;;  %v4247_v47 = vpop.f32.mrf.mxu3  ;;  %v4221_v53 = vpop.f32.mrf.mxu1  ;;  %v7081_v45 = vld [vmem:[%s10834_s15 + $0x18] sm:$0xf0]  ;;  %v9451_v62 = vld [vmem:[%s10834_s15 + $0x30c] sm:$0xf] }
 0x1e2   : > { %4506 = vmatpush.bf16.msra.mxu2 %v7420_v26  ;;  %v9395_v26 = vld [vmem:[%s10834_s15 + $0x14c] sm:$0xf]  ;;  %v7337_v23 = vld [vmem:[%s10834_s15 + $0x218] sm:$0xf0] }
 0x1e3   : > { %4520 = vmatpush.bf16.msra.mxu3 %v7548_v41  ;;  %v7241_v41 = vld [vmem:[%s10834_s15 + $0x158] sm:$0xf0]  ;;  %v4248_v55 = vadd.f32 %v4247_v47, %v4234_v46  ;;  %v9511_v29 = vld [vmem:[%s10834_s15 + $0x4ec] sm:$0xf]  ;;  %v7340_v54 = vor.u32 %v9419_v11, %v7337_v23 }
 0x1e4   : > { %v7465_v12 = vld [vmem:[%s10834_s15 + $0x318] sm:$0xf0]  ;;  %v9575_v20 = vld [vmem:[%s10834_s15 + $0x6ec] sm:$0xf] }
 0x1e5   : > { %4492 = vmatpush.bf16.msra.mxu1 %v7292_v59  ;;  %4479 = vmatpush.bf16.msra.mxu0 %v7148_v22  ;;  %v9455_v59 = vld [vmem:[%s10834_s15 + $0x32c] sm:$0xf]  ;;  %4701 = vst [vmem:[#allocation2 + $0x8] sm:$0xff] %v4248_v55  ;;  %v7244_v22 = vor.u32 %v9395_v26, %v7241_v41  ;;  %v7961_v51 = vld [vmem:[%s10834_s15 + $0x6f8] sm:$0xf0]  ;;  %v7468_v1 = vor.u32 %v9451_v62, %v7465_v12 }
 0x1e6   : > { %4507 = vmatpush.bf16.msra.mxu2 %v7404_v0  ;;  %v9391_v0 = vld [vmem:[%s10834_s15 + $0x12c] sm:$0xf]  ;;  %v7484_v21 = vor.u32 %v9455_v59, %v7481_v61  ;;  %v4235_v63 = vpop.f32.mrf.mxu2  ;;  %v8089_v25 = vld [vmem:[%s10834_s15 + $0x7f8] sm:$0xf0]  ;;  %v7964_v47 = vor.u32 %v9575_v20, %v7961_v51 }
 0x1e7   : > { %4521 = vmatpush.bf16.msra.mxu3 %v7532_v6  ;;  %v4222_v6 = vadd.f32 %v4221_v53, %v4208_v52  ;;  %v7228_v24 = vor.u32 %v9391_v0, %v7225_v18  ;;  %v9387_v35 = vld [vmem:[%s10834_s15 + $0x10c] sm:$0xf]  ;;  %v7209_v27 = vld [vmem:[%s10834_s15 + $0x118] sm:$0xf0] }
 0x1e8   : > { %v9543_v16 = vld [vmem:[%s10834_s15 + $0x5ec] sm:$0xf]  ;;  %v7833_v46 = vld [vmem:[%s10834_s15 + $0x5f8] sm:$0xf0]  ;;  %v7212_v26 = vor.u32 %v9387_v35, %v7209_v27 }
 0x1e9   : > { %4493 = vmatpush.bf16.msra.mxu1 %v7276_v10  ;;  %4480 = vmatpush.bf16.msra.mxu0 %v7132_v17  ;;  %v7705_v10 = vld [vmem:[%s10834_s15 + $0x4f8] sm:$0xf0]  ;;  %v4236_v17 = vadd.f32 %v4235_v63, %v4222_v6  ;;  %v4249_v19 = vpop.f32.mrf.mxu3  ;;  %v9507_v15 = vld [vmem:[%s10834_s15 + $0x4cc] sm:$0xf]  ;;  %v7836_v55 = vor.u32 %v9543_v16, %v7833_v46 }
 0x1ea   : > { %4508 = vmatpush.bf16.msra.mxu2 %v7388_v9  ;;  %v9607_v9 = vld [vmem:[%s10834_s15 + $0x7ec] sm:$0xf]  ;;  %v7945_v52 = vld [vmem:[%s10834_s15 + $0x6d8] sm:$0xf0] }
 0x1eb   : > { %4522 = vmatpush.bf16.msra.mxu3 %v7516_v34  ;;  %v7084_v34 = vor.u32 %v9355_v5, %v7081_v45  ;;  %v4250_v28 = vadd.f32 %v4249_v19, %v4236_v17  ;;  %v9571_v41 = vld [vmem:[%s10834_s15 + $0x6cc] sm:$0xf]  ;;  %v8073_v57 = vld [vmem:[%s10834_s15 + $0x7d8] sm:$0xf0] }
 0x1ec   : > { %v9539_v39 = vld [vmem:[%s10834_s15 + $0x5cc] sm:$0xf]  ;;  %v7817_v7 = vld [vmem:[%s10834_s15 + $0x5d8] sm:$0xf0]  ;;  %v7948_v58 = vor.u32 %v9571_v41, %v7945_v52 }
 0x1ed   : > { %4494 = vmatpush.bf16.msra.mxu1 %v7260_v13  ;;  %4481 = vmatpush.bf16.msra.mxu0 %v7116_v49  ;;  %v7708_v13 = vor.u32 %v9511_v29, %v7705_v10  ;;  %v7689_v49 = vld [vmem:[%s10834_s15 + $0x4d8] sm:$0xf0]  ;;  %4705 = vst [vmem:[#allocation2 + $0x28] sm:$0xff] %v4250_v28  ;;  %v9503_v59 = vld [vmem:[%s10834_s15 + $0x4ac] sm:$0xf]  ;;  %v7820_v18 = vor.u32 %v9539_v39, %v7817_v7 }
 0x1ee   : > { %4509 = vmatpush.bf16.msra.mxu2 %v7372_v50  ;;  %v8092_v50 = vor.u32 %v9607_v9, %v8089_v25  ;;  %v7692_v53 = vor.u32 %v9507_v15, %v7689_v49  ;;  %v9567_v0 = vld [vmem:[%s10834_s15 + $0x6ac] sm:$0xf]  ;;  %v8057_v45 = vld [vmem:[%s10834_s15 + $0x7b8] sm:$0xf0] }
 0x1ef   : > { %4523 = vmatpush.bf16.msra.mxu3 %v7500_v3  ;;  %v9603_v3 = vld [vmem:[%s10834_s15 + $0x7cc] sm:$0xf]  ;;  %v7657_v63 = vld [vmem:[%s10834_s15 + $0x498] sm:$0xf0] }
 0x1f0   : > { %v8076_v61 = vor.u32 %v9603_v3, %v8073_v57  ;;  %v9599_v5 = vld [vmem:[%s10834_s15 + $0x7ac] sm:$0xf]  ;;  %v7913_v12 = vld [vmem:[%s10834_s15 + $0x698] sm:$0xf0] }
 0x1f1   : > { %4495 = vmatpush.bf16.msra.mxu1 %v7244_v22  ;;  %4482 = vmatpush.bf16.msra.mxu0 %v7100_v4  ;;  %v7673_v22 = vld [vmem:[%s10834_s15 + $0x4b8] sm:$0xf0]  ;;  %v9535_v6 = vld [vmem:[%s10834_s15 + $0x5ac] sm:$0xf]  ;;  %v8060_v62 = vor.u32 %v9599_v5, %v8057_v45 }
 0x1f2   : > { %4510 = vmatpush.bf16.msra.mxu2 %v7356_v56  ;;  %v7929_v4 = vld [vmem:[%s10834_s15 + $0x6b8] sm:$0xf0]  ;;  %v9499_v23 = vld [vmem:[%s10834_s15 + $0x48c] sm:$0xf] }
 0x1f3   : > { %4524 = vmatpush.bf16.msra.mxu3 %v7484_v21  ;;  %v7801_v56 = vld [vmem:[%s10834_s15 + $0x5b8] sm:$0xf0]  ;;  %v7676_v21 = vor.u32 %v9503_v59, %v7673_v22  ;;  %v7932_v11 = vor.u32 %v9567_v0, %v7929_v4  ;;  %v9531_v10 = vld [vmem:[%s10834_s15 + $0x58c] sm:$0xf] }
 0x1f4   : > { %v8041_v29 = vld [vmem:[%s10834_s15 + $0x798] sm:$0xf0]  ;;  %v9495_v20 = vld [vmem:[%s10834_s15 + $0x46c] sm:$0xf] }
 0x1f5   : > { %4496 = vmatpush.bf16.msra.mxu1 %v7228_v24  ;;  %4483 = vmatpush.bf16.msra.mxu0 %v7084_v34  ;;  %v7785_v17 = vld [vmem:[%s10834_s15 + $0x598] sm:$0xf0]  ;;  %v7660_v24 = vor.u32 %v9499_v23, %v7657_v63  ;;  %v9559_v9 = vld [vmem:[%s10834_s15 + $0x66c] sm:$0xf] }
 0x1f6   : > { %4511 = vmatpush.bf16.msra.mxu2 %v7340_v54  ;;  %v7897_v34 = vld [vmem:[%s10834_s15 + $0x678] sm:$0xf0]  ;;  %v7788_v25 = vor.u32 %v9531_v10, %v7785_v17  ;;  %v9591_v35 = vld [vmem:[%s10834_s15 + $0x76c] sm:$0xf] }
 0x1f7   : > { %4525 = vmatpush.bf16.msra.mxu3 %v7468_v1  ;;  %v8025_v27 = vld [vmem:[%s10834_s15 + $0x778] sm:$0xf0]  ;;  %v9527_v28 = vld [vmem:[%s10834_s15 + $0x56c] sm:$0xf]  ;;  %v7900_v16 = vor.u32 %v9559_v9, %v7897_v34 }
 0x1f8   : > { %4484 = vmatmul.bf16.vlgmr.msra.gmra.mxu0 %v10953_v60  ;;  %v9563_v60 = vld [vmem:[%s10834_s15 + $0x68c] sm:$0xf]  ;;  %v7769_v54 = vld [vmem:[%s10834_s15 + $0x578] sm:$0xf0] }
 0x1f9   : > { %4532 = vmatpush.bf16.msrb.mxu0 %v7708_v13  ;;  %4497 = vmatpush.bf16.msra.mxu1 %v7212_v26  ;;  %v7916_v19 = vor.u32 %v9563_v60, %v7913_v12  ;;  %v9491_v46 = vld [vmem:[%s10834_s15 + $0x44c] sm:$0xf]  ;;  %v8028_v13 = vor.u32 %v9591_v35, %v8025_v27  ;;  %v7881_v49 = vld [vmem:[%s10834_s15 + $0x658] sm:$0xf0] }
 0x1fa   : > { %4560 = vmatpush.bf16.msrb.mxu2 %v7964_v47  ;;  %4526 = vmatmul.bf16.vlgmr.msra.gmra.mxu3 %v10982_v14  ;;  %v9595_v14 = vld [vmem:[%s10834_s15 + $0x78c] sm:$0xf]  ;;  %v7625_v47 = vld [vmem:[%s10834_s15 + $0x458] sm:$0xf0] }
 0x1fb   : > { %4574 = vmatpush.bf16.msrb.mxu3 %v8092_v50  ;;  %4512 = vmatmul.bf16.vlgmr.msra.gmra.mxu2 %v10961_v2  ;;  %v7804_v2 = vor.u32 %v9535_v6, %v7801_v56  ;;  %v8044_v51 = vor.u32 %v9595_v14, %v8041_v29  ;;  %v9555_v15 = vld [vmem:[%s10834_s15 + $0x64c] sm:$0xf]  ;;  %v7772_v50 = vor.u32 %v9527_v28, %v7769_v54  ;;  %v8009_v41 = vld [vmem:[%s10834_s15 + $0x758] sm:$0xf0] }
 0x1fc   : > { %4498 = vmatmul.bf16.vlgmr.msra.gmra.mxu1 %v10973_v8  ;;  %v7641_v8 = vld [vmem:[%s10834_s15 + $0x478] sm:$0xf0]  ;;  %v9587_v26 = vld [vmem:[%s10834_s15 + $0x74c] sm:$0xf]  ;;  %v7628_v3 = vor.u32 %v9491_v46, %v7625_v47  ;;  %v7884_v57 = vor.u32 %v9555_v15, %v7881_v49 }
 0x1fd   : > { %4546 = vmatpush.bf16.msrb.mxu1 %v7836_v55  ;;  %4533 = vmatpush.bf16.msrb.mxu0 %v7692_v53  ;;  %v7644_v1 = vor.u32 %v9495_v20, %v7641_v8  ;;  %v9523_v52 = vld [vmem:[%s10834_s15 + $0x54c] sm:$0xf]  ;;  %v7753_v55 = vld [vmem:[%s10834_s15 + $0x558] sm:$0xf0]  ;;  %v8012_v7 = vor.u32 %v9587_v26, %v8009_v41 }
 0x1fe   : > { %4561 = vmatpush.bf16.msrb.mxu2 %v7948_v58  ;;  %v9487_v39 = vld [vmem:[%s10834_s15 + $0x42c] sm:$0xf]  ;;  %v7609_v53 = vld [vmem:[%s10834_s15 + $0x438] sm:$0xf0] }
 0x1ff   : > { %4575 = vmatpush.bf16.msrb.mxu3 %v8076_v61  ;;  %v9551_v58 = vld [vmem:[%s10834_s15 + $0x62c] sm:$0xf]  ;;  %v7865_v59 = vld [vmem:[%s10834_s15 + $0x638] sm:$0xf0]  ;;  %v7756_v61 = vor.u32 %v9523_v52, %v7753_v55  ;;  %v7612_v5 = vor.u32 %v9487_v39, %v7609_v53 }
 0x200   : > { %v9583_v22 = vld [vmem:[%s10834_s15 + $0x72c] sm:$0xf]  ;;  %v7993_v0 = vld [vmem:[%s10834_s15 + $0x738] sm:$0xf0]  ;;  %v7868_v45 = vor.u32 %v9551_v58, %v7865_v59 }
 0x201   : > { %4547 = vmatpush.bf16.msrb.mxu1 %v7820_v18  ;;  %4534 = vmatpush.bf16.msrb.mxu0 %v7676_v21  ;;  %v9519_v4 = vld [vmem:[%s10834_s15 + $0x52c] sm:$0xf]  ;;  %v7737_v18 = vld [vmem:[%s10834_s15 + $0x538] sm:$0xf0] }
 0x202   : > { %4562 = vmatpush.bf16.msrb.mxu2 %v7932_v11  ;;  %v9483_v6 = vld [vmem:[%s10834_s15 + $0x40c] sm:$0xf]  ;;  %v7593_v56 = vld [vmem:[%s10834_s15 + $0x418] sm:$0xf0]  ;;  %v7996_v11 = vor.u32 %v9583_v22, %v7993_v0  ;;  %v7740_v60 = vor.u32 %v9519_v4, %v7737_v18 }
 0x203   : > { %4576 = vmatpush.bf16.msrb.mxu3 %v8060_v62  ;;  %v9547_v21 = vld [vmem:[%s10834_s15 + $0x60c] sm:$0xf]  ;;  %v7849_v23 = vld [vmem:[%s10834_s15 + $0x618] sm:$0xf0] }
 0x204   : > { %v9579_v62 = vld [vmem:[%s10834_s15 + $0x70c] sm:$0xf]  ;;  %v7977_v63 = vld [vmem:[%s10834_s15 + $0x718] sm:$0xf0] }
 0x205   : > { %4548 = vmatpush.bf16.msrb.mxu1 %v7804_v2  ;;  %4535 = vmatpush.bf16.msrb.mxu0 %v7660_v24  ;;  %v9639_v12 = vld [vmem:[%s10834_s15 + $0x8ec] sm:$0xf]  ;;  %v8217_v2 = vld [vmem:[%s10834_s15 + $0x8f8] sm:$0xf0]  ;;  %v7596_v24 = vor.u32 %v9483_v6, %v7593_v56  ;;  %v7980_v8 = vor.u32 %v9579_v62, %v7977_v63 }
 0x206   : > { %4563 = vmatpush.bf16.msrb.mxu2 %v7916_v19  ;;  %v9703_v14 = vld [vmem:[%s10834_s15 + $0xaec] sm:$0xf]  ;;  %v8473_v29 = vld [vmem:[%s10834_s15 + $0xaf8] sm:$0xf0]  ;;  %v7852_v19 = vor.u32 %v9547_v21, %v7849_v23  ;;  %v8220_v9 = vor.u32 %v9639_v12, %v8217_v2 }
 0x207   : > { %4577 = vmatpush.bf16.msrb.mxu3 %v8044_v51  ;;  %v9735_v10 = vld [vmem:[%s10834_s15 + $0xbec] sm:$0xf]  ;;  %v8601_v17 = vld [vmem:[%s10834_s15 + $0xbf8] sm:$0xf0]  ;;  %v8476_v35 = vor.u32 %v9703_v14, %v8473_v29 }
 0x208   : > { %v9515_v20 = vld [vmem:[%s10834_s15 + $0x50c] sm:$0xf]  ;;  %v7721_v51 = vld [vmem:[%s10834_s15 + $0x518] sm:$0xf0]  ;;  %v8604_v27 = vor.u32 %v9735_v10, %v8601_v17  ;;  %v12073_v10 = vpop.f32.mrf.mxu0 }
 0x209   : > { %4549 = vmatpush.bf16.msrb.mxu1 %v7788_v25  ;;  %4536 = vmatpush.bf16.msrb.mxu0 %v7644_v1  ;;  %v9671_v34 = vld [vmem:[%s10834_s15 + $0x9ec] sm:$0xf]  ;;  %v8345_v25 = vld [vmem:[%s10834_s15 + $0x9f8] sm:$0xf0]  ;;  %v7724_v1 = vor.u32 %v9515_v20, %v7721_v51 }
 0x20a   : > { %4564 = vmatpush.bf16.msrb.mxu2 %v7900_v16  ;;  %v9635_v28 = vld [vmem:[%s10834_s15 + $0x8cc] sm:$0xf]  ;;  %v8201_v54 = vld [vmem:[%s10834_s15 + $0x8d8] sm:$0xf0] }
 0x20b   : > { %4578 = vmatpush.bf16.msrb.mxu3 %v8028_v13  ;;  %v9699_v16 = vld [vmem:[%s10834_s15 + $0xacc] sm:$0xf]  ;;  %v8457_v46 = vld [vmem:[%s10834_s15 + $0xad8] sm:$0xf0]  ;;  %v8348_v13 = vor.u32 %v9671_v34, %v8345_v25  ;;  %v8204_v49 = vor.u32 %v9635_v28, %v8201_v54 }
 0x20c   : > { %v9731_v47 = vld [vmem:[%s10834_s15 + $0xbcc] sm:$0xf]  ;;  %v8585_v15 = vld [vmem:[%s10834_s15 + $0xbd8] sm:$0xf0]  ;;  %v8460_v41 = vor.u32 %v9699_v16, %v8457_v46 }
 0x20d   : > { %4550 = vmatpush.bf16.msrb.mxu1 %v7772_v50  ;;  %4537 = vmatpush.bf16.msrb.mxu0 %v7628_v3  ;;  %v9667_v50 = vld [vmem:[%s10834_s15 + $0x9cc] sm:$0xf]  ;;  %v8329_v26 = vld [vmem:[%s10834_s15 + $0x9d8] sm:$0xf0]  ;;  %v8588_v3 = vor.u32 %v9731_v47, %v8585_v15 }
 0x20e   : > { %4565 = vmatpush.bf16.msrb.mxu2 %v7884_v57  ;;  %v9631_v52 = vld [vmem:[%s10834_s15 + $0x8ac] sm:$0xf]  ;;  %v8185_v55 = vld [vmem:[%s10834_s15 + $0x8b8] sm:$0xf0] }
 0x20f   : > { %4579 = vmatpush.bf16.msrb.mxu3 %v8012_v7  ;;  %v9695_v57 = vld [vmem:[%s10834_s15 + $0xaac] sm:$0xf]  ;;  %v8441_v39 = vld [vmem:[%s10834_s15 + $0xab8] sm:$0xf0]  ;;  %v8332_v7 = vor.u32 %v9667_v50, %v8329_v26  ;;  %v8188_v59 = vor.u32 %v9631_v52, %v8185_v55  ;;  %v12093_v26 = vpop.f32.mrf.mxu2 }
 0x210   : > { %v9727_v53 = vld [vmem:[%s10834_s15 + $0xbac] sm:$0xf]  ;;  %v8569_v58 = vld [vmem:[%s10834_s15 + $0xbb8] sm:$0xf0] }
 0x211   : > { %4551 = vmatpush.bf16.msrb.mxu1 %v7756_v61  ;;  %4538 = vmatpush.bf16.msrb.mxu0 %v7612_v5  ;;  %v8313_v61 = vld [vmem:[%s10834_s15 + $0x9b8] sm:$0xf0]  ;;  %v9627_v22 = vld [vmem:[%s10834_s15 + $0x88c] sm:$0xf]  ;;  %v8572_v4 = vor.u32 %v9727_v53, %v8569_v58 }
 0x212   : > { %4566 = vmatpush.bf16.msrb.mxu2 %v7868_v45  ;;  %v8169_v0 = vld [vmem:[%s10834_s15 + $0x898] sm:$0xf0]  ;;  %v9691_v18 = vld [vmem:[%s10834_s15 + $0xa8c] sm:$0xf] }
 0x213   : > { %4580 = vmatpush.bf16.msrb.mxu3 %v7996_v11  ;;  %v9723_v45 = vld [vmem:[%s10834_s15 + $0xb8c] sm:$0xf]  ;;  %v8553_v6 = vld [vmem:[%s10834_s15 + $0xb98] sm:$0xf0] }
 0x214   : > { %v9659_v56 = vld [vmem:[%s10834_s15 + $0x98c] sm:$0xf]  ;;  %v8297_v21 = vld [vmem:[%s10834_s15 + $0x998] sm:$0xf0]  ;;  %v8556_v63 = vor.u32 %v9723_v45, %v8553_v6 }
 0x215   : > { %4552 = vmatpush.bf16.msrb.mxu1 %v7740_v60  ;;  %4539 = vmatpush.bf16.msrb.mxu0 %v7596_v24  ;;  %v9623_v23 = vld [vmem:[%s10834_s15 + $0x86c] sm:$0xf]  ;;  %v8153_v62 = vld [vmem:[%s10834_s15 + $0x878] sm:$0xf0]  ;;  %v8300_v2 = vor.u32 %v9659_v56, %v8297_v21 }
 0x216   : > { %4567 = vmatpush.bf16.msrb.mxu2 %v7852_v19  ;;  %v9687_v60 = vld [vmem:[%s10834_s15 + $0xa6c] sm:$0xf]  ;;  %v8409_v12 = vld [vmem:[%s10834_s15 + $0xa78] sm:$0xf0]  ;;  %v8156_v17 = vor.u32 %v9623_v23, %v8153_v62 }
 0x217   : > { %4581 = vmatpush.bf16.msrb.mxu3 %v7980_v8  ;;  %v9719_v14 = vld [vmem:[%s10834_s15 + $0xb6c] sm:$0xf]  ;;  %v8537_v29 = vld [vmem:[%s10834_s15 + $0xb78] sm:$0xf0]  ;;  %v8412_v20 = vor.u32 %v9687_v60, %v8409_v12 }
 0x218   : > { %4540 = vmatmul.bf16.vlgmr.msrb.gmra.mxu0 %v11056_v36  ;;  %v9663_v36 = vld [vmem:[%s10834_s15 + $0x9ac] sm:$0xf]  ;;  %v8281_v19 = vld [vmem:[%s10834_s15 + $0x978] sm:$0xf0]  ;;  %v8540_v34 = vor.u32 %v9719_v14, %v8537_v29 }
 0x219   : > { %4588 = vmatpush.bf16.msra.mxu0 %v8220_v9  ;;  %4553 = vmatpush.bf16.msrb.mxu1 %v7724_v1  ;;  %v8316_v5 = vor.u32 %v9663_v36, %v8313_v61  ;;  %v9655_v24 = vld [vmem:[%s10834_s15 + $0x96c] sm:$0xf]  ;;  %v8137_v8 = vld [vmem:[%s10834_s15 + $0x858] sm:$0xf0]  ;;  %v12079_v9 = vpop.f32.mrf.mxu1 }
 0x21a   : > { %4616 = vmatpush.bf16.msra.mxu2 %v8476_v35  ;;  %4582 = vmatmul.bf16.vlgmr.msrb.gmra.mxu3 %v11067_v44  ;;  %v8425_v44 = vld [vmem:[%s10834_s15 + $0xa98] sm:$0xf0]  ;;  %v9619_v51 = vld [vmem:[%s10834_s15 + $0x84c] sm:$0xf] }
 0x21b   : > { %4630 = vmatpush.bf16.msra.mxu3 %v8604_v27  ;;  %4568 = vmatmul.bf16.vlgmr.msrb.gmra.mxu2 %v11063_v40  ;;  %v8444_v40 = vor.u32 %v9695_v57, %v8441_v39  ;;  %v8428_v11 = vor.u32 %v9691_v18, %v8425_v44  ;;  %v9683_v25 = vld [vmem:[%s10834_s15 + $0xa4c] sm:$0xf]  ;;  %v8393_v35 = vld [vmem:[%s10834_s15 + $0xa58] sm:$0xf0]  ;;  %v8284_v27 = vor.u32 %v9655_v24, %v8281_v19  ;;  %v12108_v18 = vpop.f32.mrf.mxu0 }
 0x21c   : > { %4554 = vmatmul.bf16.vlgmr.msrb.gmra.mxu1 %v11071_v48  ;;  %v8172_v48 = vor.u32 %v9627_v22, %v8169_v0  ;;  %v9715_v28 = vld [vmem:[%s10834_s15 + $0xb4c] sm:$0xf]  ;;  %v8521_v54 = vld [vmem:[%s10834_s15 + $0xb58] sm:$0xf0]  ;;  %v8140_v1 = vor.u32 %v9619_v51, %v8137_v8 }
 0x21d   : > { %4602 = vmatpush.bf16.msra.mxu1 %v8348_v13  ;;  %4589 = vmatpush.bf16.msra.mxu0 %v8204_v49  ;;  %v9651_v16 = vld [vmem:[%s10834_s15 + $0x94c] sm:$0xf]  ;;  %v8265_v46 = vld [vmem:[%s10834_s15 + $0x958] sm:$0xf0]  ;;  %v8396_v13 = vor.u32 %v9683_v25, %v8393_v35  ;;  %v12090_v49 = vld [vmem:[%s10851_s6] sm:$0xf] }
 0x21e   : > { %4617 = vmatpush.bf16.msra.mxu2 %v8460_v41  ;;  %v9615_v47 = vld [vmem:[%s10834_s15 + $0x82c] sm:$0xf]  ;;  %v8121_v15 = vld [vmem:[%s10834_s15 + $0x838] sm:$0xf0]  ;;  %13673 = vst [vmem:[#allocation31_spill] sm:$0xff] %v12090_v49  ;;  %v1158_v50 = vperm.slane %v12090_v49, 2  ;;  %v8524_v41 = vor.u32 %v9715_v28, %v8521_v54  ;;  %v8268_v57 = vor.u32 %v9651_v16, %v8265_v46 }
 0x21f   : > { %4631 = vmatpush.bf16.msra.mxu3 %v8588_v3  ;;  %v9679_v52 = vld [vmem:[%s10834_s15 + $0xa2c] sm:$0xf]  ;;  %v8377_v55 = vld [vmem:[%s10834_s15 + $0xa38] sm:$0xf0]  ;;  %v12097_v3 = vpop.f32.mrf.mxu3  ;;  %v8124_v58 = vor.u32 %v9615_v47, %v8121_v15 }
 0x220   : > { %v9711_v39 = vld [vmem:[%s10834_s15 + $0xb2c] sm:$0xf]  ;;  %v8105_v61 = vld [vmem:[%s10834_s15 + $0x818] sm:$0xf0] }
 0x221   : > { %4603 = vmatpush.bf16.msra.mxu1 %v8332_v7  ;;  %4590 = vmatpush.bf16.msra.mxu0 %v8188_v59  ;;  %v8505_v7 = vld [vmem:[%s10834_s15 + $0xb38] sm:$0xf0]  ;;  %v9647_v53 = vld [vmem:[%s10834_s15 + $0x92c] sm:$0xf]  ;;  %v12116_v23 = vpop.f32.mrf.mxu1 }
 0x222   : > { %4618 = vmatpush.bf16.msra.mxu2 %v8444_v40  ;;  %v8249_v59 = vld [vmem:[%s10834_s15 + $0x938] sm:$0xf0]  ;;  %v9611_v36 = vld [vmem:[%s10834_s15 + $0x80c] sm:$0xf]  ;;  %v8380_v40 = vor.u32 %v9679_v52, %v8377_v55  ;;  %v8508_v44 = vor.u32 %v9711_v39, %v8505_v7 }
 0x223   : > { %4632 = vmatpush.bf16.msra.mxu3 %v8572_v4  ;;  %v9675_v22 = vld [vmem:[%s10834_s15 + $0xa0c] sm:$0xf]  ;;  %v8361_v0 = vld [vmem:[%s10834_s15 + $0xa18] sm:$0xf0]  ;;  %v8108_v62 = vor.u32 %v9611_v36, %v8105_v61  ;;  %v4317_v7 = vpop.f32.mrf.mxu0 }
 0x224   : > { %v9707_v4 = vld [vmem:[%s10834_s15 + $0xb0c] sm:$0xf]  ;;  %v8729_v6 = vld [vmem:[%s10834_s15 + $0xcf8] sm:$0xf0] }
 0x225   : > { %4604 = vmatpush.bf16.msra.mxu1 %v8316_v5  ;;  %4591 = vmatpush.bf16.msra.mxu0 %v8172_v48  ;;  %v8489_v5 = vld [vmem:[%s10834_s15 + $0xb18] sm:$0xf0]  ;;  %v9767_v45 = vld [vmem:[%s10834_s15 + $0xcec] sm:$0xf]  ;;  %v8252_v48 = vor.u32 %v9647_v53, %v8249_v59 }
 0x226   : > { %4619 = vmatpush.bf16.msra.mxu2 %v8428_v11  ;;  %v9831_v56 = vld [vmem:[%s10834_s15 + $0xeec] sm:$0xf]  ;;  %v8985_v21 = vld [vmem:[%s10834_s15 + $0xef8] sm:$0xf0]  ;;  %v8732_v14 = vor.u32 %v9767_v45, %v8729_v6  ;;  %v8492_v29 = vor.u32 %v9707_v4, %v8489_v5 }
 0x227   : > { %4633 = vmatpush.bf16.msra.mxu3 %v8556_v63  ;;  %v9863_v11 = vld [vmem:[%s10834_s15 + $0xfec] sm:$0xf]  ;;  %v9113_v63 = vld [vmem:[%s10834_s15 + $0xff8] sm:$0xf0]  ;;  %v12134_v16 = vpop.f32.mrf.mxu3 }
 0x228   : > { %v9643_v60 = vld [vmem:[%s10834_s15 + $0x90c] sm:$0xf]  ;;  %v8233_v12 = vld [vmem:[%s10834_s15 + $0x918] sm:$0xf0]  ;;  %v9116_v51 = vor.u32 %v9863_v11, %v9113_v63 }
 0x229   : > { %4605 = vmatpush.bf16.msra.mxu1 %v8300_v2  ;;  %4592 = vmatpush.bf16.msra.mxu0 %v8156_v17  ;;  %v8364_v2 = vor.u32 %v9675_v22, %v8361_v0  ;;  %v8988_v17 = vor.u32 %v9831_v56, %v8985_v21  ;;  %v9799_v24 = vld [vmem:[%s10834_s15 + $0xdec] sm:$0xf]  ;;  %v8857_v19 = vld [vmem:[%s10834_s15 + $0xdf8] sm:$0xf0]  ;;  %v8236_v8 = vor.u32 %v9643_v60, %v8233_v12  ;;  %v12148_v36 = vpop.f32.mrf.mxu1 }
 0x22a   : > { %4620 = vmatpush.bf16.msra.mxu2 %v8412_v20  ;;  %v4262_v20 = vadd.f32 %v12073_v10, %v1158_v50  ;;  %v8713_v25 = vld [vmem:[%s10834_s15 + $0xcd8] sm:$0xf0]  ;;  %v9827_v35 = vld [vmem:[%s10834_s15 + $0xecc] sm:$0xf]  ;;  %v8860_v10 = vor.u32 %v9799_v24, %v8857_v19 }
 0x22b   : > { %4634 = vmatpush.bf16.msra.mxu3 %v8540_v34  ;;  %v9763_v34 = vld [vmem:[%s10834_s15 + $0xccc] sm:$0xf]  ;;  %v8969_v28 = vld [vmem:[%s10834_s15 + $0xed8] sm:$0xf0]  ;;  %v4319_v19 = vpop.f32.mrf.mxu0 }
 0x22c   : > { %v9859_v54 = vld [vmem:[%s10834_s15 + $0xfcc] sm:$0xf]  ;;  %v8716_v46 = vor.u32 %v9763_v34, %v8713_v25  ;;  %v8841_v47 = vld [vmem:[%s10834_s15 + $0xdd8] sm:$0xf0]  ;;  %v4276_v15 = vadd.f32 %v12079_v9, %v4262_v20 }
 0x22d   : > { %4606 = vmatpush.bf16.msra.mxu1 %v8284_v27  ;;  %4593 = vmatpush.bf16.msra.mxu0 %v8140_v1  ;;  %v12129_v27 = vpop.f32.mrf.mxu2  ;;  %v9097_v1 = vld [vmem:[%s10834_s15 + $0xfd8] sm:$0xf0]  ;;  %v9759_v55 = vld [vmem:[%s10834_s15 + $0xcac] sm:$0xf] }
 0x22e   : > { %4621 = vmatpush.bf16.msra.mxu2 %v8396_v13  ;;  %v9795_v13 = vld [vmem:[%s10834_s15 + $0xdcc] sm:$0xf]  ;;  %v9100_v52 = vor.u32 %v9859_v54, %v9097_v1  ;;  %v8953_v53 = vld [vmem:[%s10834_s15 + $0xeb8] sm:$0xf0] }
 0x22f   : > { %4635 = vmatpush.bf16.msra.mxu3 %v8524_v41  ;;  %v8972_v41 = vor.u32 %v9827_v35, %v8969_v28  ;;  %v9823_v39 = vld [vmem:[%s10834_s15 + $0xeac] sm:$0xf]  ;;  %v9081_v59 = vld [vmem:[%s10834_s15 + $0xfb8] sm:$0xf0]  ;;  %v8844_v9 = vor.u32 %v9795_v13, %v8841_v47  ;;  %v12168_v63 = vpop.f32.mrf.mxu3 }
 0x230   : > { %v8825_v61 = vld [vmem:[%s10834_s15 + $0xdb8] sm:$0xf0]  ;;  %v8956_v22 = vor.u32 %v9823_v39, %v8953_v53  ;;  %v9755_v0 = vld [vmem:[%s10834_s15 + $0xc8c] sm:$0xf] }
 0x231   : > { %4607 = vmatpush.bf16.msra.mxu1 %v8268_v57  ;;  %4594 = vmatpush.bf16.msra.mxu0 %v8124_v58  ;;  %v8697_v57 = vld [vmem:[%s10834_s15 + $0xcb8] sm:$0xf0]  ;;  %v9855_v58 = vld [vmem:[%s10834_s15 + $0xfac] sm:$0xf] }
 0x232   : > { %4622 = vmatpush.bf16.msra.mxu2 %v8380_v40  ;;  %v4290_v40 = vadd.f32 %v12093_v26, %v4276_v15  ;;  %v8681_v4 = vld [vmem:[%s10834_s15 + $0xc98] sm:$0xf0]  ;;  %v9851_v45 = vld [vmem:[%s10834_s15 + $0xf8c] sm:$0xf]  ;;  %v4264_v26 = vadd.f32 %v12108_v18, %v1158_v50 }
 0x233   : > { %4636 = vmatpush.bf16.msra.mxu3 %v8508_v44  ;;  %v9819_v44 = vld [vmem:[%s10834_s15 + $0xe8c] sm:$0xf]  ;;  %v8937_v5 = vld [vmem:[%s10834_s15 + $0xe98] sm:$0xf0]  ;;  %v8684_v56 = vor.u32 %v9755_v0, %v8681_v4 }
 0x234   : > { %v9065_v6 = vld [vmem:[%s10834_s15 + $0xf98] sm:$0xf0]  ;;  %v9787_v21 = vld [vmem:[%s10834_s15 + $0xd8c] sm:$0xf]  ;;  %v8940_v60 = vor.u32 %v9819_v44, %v8937_v5 }
 0x235   : > { %4608 = vmatpush.bf16.msra.mxu1 %v8252_v48  ;;  %4595 = vmatpush.bf16.msra.mxu0 %v8108_v62  ;;  %v12163_v48 = vpop.f32.mrf.mxu2  ;;  %v8809_v11 = vld [vmem:[%s10834_s15 + $0xd98] sm:$0xf0]  ;;  %v4304_v62 = vadd.f32 %v12097_v3, %v4290_v40  ;;  %v9068_v12 = vor.u32 %v9851_v45, %v9065_v6  ;;  %v9815_v18 = vld [vmem:[%s10834_s15 + $0xe6c] sm:$0xf]  ;;  %v4278_v3 = vadd.f32 %v12116_v23, %v4264_v26 }
 0x236   : > { %4623 = vmatpush.bf16.msra.mxu2 %v8364_v2  ;;  %v9751_v2 = vld [vmem:[%s10834_s15 + $0xc6c] sm:$0xf]  ;;  %v8665_v50 = vld [vmem:[%s10834_s15 + $0xc78] sm:$0xf0]  ;;  %v8812_v24 = vor.u32 %v9787_v21, %v8809_v11 }
 0x237   : > { %4637 = vmatpush.bf16.msra.mxu3 %v8492_v29  ;;  %v9847_v29 = vld [vmem:[%s10834_s15 + $0xf6c] sm:$0xf]  ;;  %v8668_v20 = vor.u32 %v9751_v2, %v8665_v50  ;;  %v4318_v34 = vadd.f32 %v4317_v7, %v4304_v62  ;;  %v8649_v54 = vld [vmem:[%s10834_s15 + $0xc58] sm:$0xf0]  ;;  %v4292_v15 = vadd.f32 %v12129_v27, %v4278_v3 }
 0x238   : > { %4596 = vmatmul.bf16.vlgmr.msra.gmra.mxu0 %v11160_v30  ;;  %v8700_v30 = vor.u32 %v9759_v55, %v8697_v57  ;;  %v9747_v28 = vld [vmem:[%s10834_s15 + $0xc4c] sm:$0xf]  ;;  %v8905_v23 = vld [vmem:[%s10834_s15 + $0xe58] sm:$0xf0] }
 0x239   : > { %4644 = vmatpush.bf16.msrb.mxu0 %v8732_v14  ;;  %4609 = vmatpush.bf16.msra.mxu1 %v8236_v8  ;;  %v8921_v14 = vld [vmem:[%s10834_s15 + $0xe78] sm:$0xf0]  ;;  %v9811_v1 = vld [vmem:[%s10834_s15 + $0xe4c] sm:$0xf]  ;;  %v4332_v57 = vadd.f32 %v12148_v36, %v4318_v34  ;;  %v4306_v36 = vadd.f32 %v12134_v16, %v4292_v15 }
 0x23a   : > { %4672 = vmatpush.bf16.msrb.mxu2 %v8988_v17  ;;  %4638 = vmatmul.bf16.vlgmr.msra.gmra.mxu3 %v11167_v37  ;;  %v9084_v37 = vor.u32 %v9855_v58, %v9081_v59  ;;  %v9049_v17 = vld [vmem:[%s10834_s15 + $0xf78] sm:$0xf0]  ;;  %v8924_v25 = vor.u32 %v9815_v18, %v8921_v14  ;;  %v8908_v39 = vor.u32 %v9811_v1, %v8905_v23  ;;  %v9743_v53 = vld [vmem:[%s10834_s15 + $0xc2c] sm:$0xf]  ;;  %v12229_v1 = vld [vmem:[%s10844_s12 + $0x1b0] sm:$0xff] }
 0x23b   : > { %4686 = vmatpush.bf16.msrb.mxu3 %v9116_v51  ;;  %4624 = vmatmul.bf16.vlgmr.msra.gmra.mxu2 %v11162_v31  ;;  %v9791_v31 = vld [vmem:[%s10834_s15 + $0xdac] sm:$0xf]  ;;  %v8793_v8 = vld [vmem:[%s10834_s15 + $0xd78] sm:$0xf0]  ;;  %v9052_v35 = vor.u32 %v9847_v29, %v9049_v17  ;;  %v4346_v44 = vadd.f32 %v12163_v48, %v4332_v57  ;;  %v4320_v62 = vadd.f32 %v4319_v19, %v4306_v36  ;;  %v12209_v19 = vld [vmem:[%s10844_s12 + $0x1f0] sm:$0xff] }
 0x23c   : > { %4610 = vmatmul.bf16.vlgmr.msra.gmra.mxu1 %v11169_v38  ;;  %v8828_v38 = vor.u32 %v9791_v31, %v8825_v61  ;;  %v9783_v51 = vld [vmem:[%s10834_s15 + $0xd6c] sm:$0xf]  ;;  %v9033_v13 = vld [vmem:[%s10834_s15 + $0xf58] sm:$0xf0]  ;;  %v4361_v61 = vpop.f32.mrf.mxu3  ;;  %13674 = vst [vmem:[#allocation32_spill] sm:$0xff] %v12209_v19 }
 0x23d   : > { %4658 = vmatpush.bf16.msrb.mxu1 %v8860_v10  ;;  %4645 = vmatpush.bf16.msrb.mxu0 %v8716_v46  ;;  %v4333_v10 = vpop.f32.mrf.mxu1  ;;  %v9843_v46 = vld [vmem:[%s10834_s15 + $0xf4c] sm:$0xf]  ;;  %v8796_v47 = vor.u32 %v9783_v51, %v8793_v8  ;;  %v8777_v55 = vld [vmem:[%s10834_s15 + $0xd58] sm:$0xf0]  ;;  %v4360_v50 = vadd.f32 %v12168_v63, %v4346_v44  ;;  %13676 = vst [vmem:[#allocation34_spill] sm:$0xff] %v12229_v1  ;;  %v12309_v44 = vld [vmem:[%s10844_s12 + $0x110] sm:$0xff] }
 0x23e   : > { %4673 = vmatpush.bf16.msrb.mxu2 %v8972_v41  ;;  %v8652_v41 = vor.u32 %v9747_v28, %v8649_v54  ;;  %v9036_v7 = vor.u32 %v9843_v46, %v9033_v13  ;;  %v8633_v58 = vld [vmem:[%s10834_s15 + $0xc38] sm:$0xf0]  ;;  %v9807_v59 = vld [vmem:[%s10834_s15 + $0xe2c] sm:$0xf]  ;;  %v4334_v17 = vadd.f32 %v4333_v10, %v4320_v62  ;;  %v12240_v13 = vld [vmem:[%s10844_s12 + $0x1e0] sm:$0xff]  ;;  %13682 = vst [vmem:[#allocation40_spill] sm:$0xff] %v12309_v44 }
 0x23f   : > { %4687 = vmatpush.bf16.msrb.mxu3 %v9100_v52  ;;  %v9779_v52 = vld [vmem:[%s10834_s15 + $0xd4c] sm:$0xf]  ;;  %v9017_v27 = vld [vmem:[%s10834_s15 + $0xf38] sm:$0xf0] }
 0x240   : > { %v9839_v31 = vld [vmem:[%s10834_s15 + $0xf2c] sm:$0xf]  ;;  %v8780_v40 = vor.u32 %v9779_v52, %v8777_v55  ;;  %v8761_v4 = vld [vmem:[%s10834_s15 + $0xd38] sm:$0xf0]  ;;  %v12261_v52 = vld [vmem:[%s10844_s12 + $0x170] sm:$0xff] }
 0x241   : > { %4659 = vmatpush.bf16.msrb.mxu1 %v8844_v9  ;;  %4646 = vmatpush.bf16.msrb.mxu0 %v8700_v30  ;;  %v4347_v9 = vpop.f32.mrf.mxu2  ;;  %v8889_v30 = vld [vmem:[%s10834_s15 + $0xe38] sm:$0xf0]  ;;  %v9775_v0 = vld [vmem:[%s10834_s15 + $0xd2c] sm:$0xf]  ;;  %v9020_v45 = vor.u32 %v9839_v31, %v9017_v27  ;;  %13679 = vst [vmem:[#allocation37_spill] sm:$0xff] %v12261_v52 }
 0x242   : > { %4674 = vmatpush.bf16.msrb.mxu2 %v8956_v22  ;;  %v4373_v22 = vpop.f32.mrf.mxu0  ;;  %v8892_v5 = vor.u32 %v9807_v59, %v8889_v30  ;;  %v9739_v6 = vld [vmem:[%s10834_s15 + $0xc0c] sm:$0xf]  ;;  %v8873_v16 = vld [vmem:[%s10834_s15 + $0xe18] sm:$0xf0]  ;;  %v4348_v63 = vadd.f32 %v4347_v9, %v4334_v17  ;;  %v12352_v17 = vld [vmem:[%s10844_s12 + $0x100] sm:$0xff] }
 0x243   : > { %4688 = vmatpush.bf16.msrb.mxu3 %v9084_v37  ;;  %v8636_v37 = vor.u32 %v9743_v53, %v8633_v58  ;;  %v9803_v26 = vld [vmem:[%s10834_s15 + $0xe0c] sm:$0xf]  ;;  %v9001_v11 = vld [vmem:[%s10834_s15 + $0xf18] sm:$0xf0]  ;;  %v12272_v53 = vld [vmem:[%s10844_s12 + $0x1a0] sm:$0xff] }
 0x244   : > { %v9835_v21 = vld [vmem:[%s10834_s15 + $0xf0c] sm:$0xf]  ;;  %v8745_v2 = vld [vmem:[%s10834_s15 + $0xd18] sm:$0xf0]  ;;  %v8876_v18 = vor.u32 %v9803_v26, %v8873_v16  ;;  %v4415_v3 = vpop.f32.mrf.mxu3  ;;  %v4362_v23 = vadd.f32 %v4361_v61, %v4348_v63  ;;  %v12277_v58 = vld [vmem:[%s10844_s12 + $0x150] sm:$0xff] }
 0x245   : > { %4660 = vmatpush.bf16.msrb.mxu1 %v8828_v38  ;;  %4647 = vmatpush.bf16.msrb.mxu0 %v8684_v56  ;;  %v8617_v38 = vld [vmem:[%s10834_s15 + $0xc18] sm:$0xf0]  ;;  %v4387_v56 = vpop.f32.mrf.mxu1  ;;  %v9004_v14 = vor.u32 %v9835_v21, %v9001_v11  ;;  %v12232_v10 = vld [vmem:[%s10844_s12 + $0x1e8] sm:$0xff]  ;;  %13680 = vst [vmem:[#allocation38_spill] sm:$0xff] %v12277_v58  ;;  %v12288_v61 = vld [vmem:[%s10844_s12 + $0x180] sm:$0xff] }
 0x246   : > { %4675 = vmatpush.bf16.msrb.mxu2 %v8940_v60  ;;  %v8764_v60 = vor.u32 %v9775_v0, %v8761_v4  ;;  %v8620_v48 = vor.u32 %v9739_v6, %v8617_v38  ;;  %v12215_v8 = vld [vmem:[%s10844_s12 + $0x1d8] sm:$0xff]  ;;  %v12264_v55 = vld [vmem:[%s10844_s12 + $0x1a8] sm:$0xff]  ;;  %v12304_v4 = vld [vmem:[%s10844_s12 + $0x160] sm:$0xff] }
 0x247   : > { %4689 = vmatpush.bf16.msrb.mxu3 %v9068_v12  ;;  %v9771_v12 = vld [vmem:[%s10834_s15 + $0xd0c] sm:$0xf]  ;;  %13675 = vst [vmem:[#allocation33_spill] sm:$0xff] %v12215_v8  ;;  %v12224_v28 = vld [vmem:[%s10844_s12 + $0x1b8] sm:$0xff]  ;;  %v12320_v38 = vld [vmem:[%s10844_s12 + $0x140] sm:$0xff] }
 0x248   : > { %v8748_v51 = vor.u32 %v9771_v12, %v8745_v2  ;;  %v12280_v9 = vld [vmem:[%s10844_s12 + $0x188] sm:$0xff]  ;;  %v12285_v27 = vld [vmem:[%s10844_s12 + $0x138] sm:$0xff]  ;;  %v12325_v26 = vld [vmem:[%s10844_s12 + $0xf0] sm:$0xff]  ;;  %s4779_s15 = scalar_select %p625_p1, 1, 0 }
 0x249   : > { %4661 = vmatpush.bf16.msrb.mxu1 %v8812_v24  ;;  %4648 = vmatpush.bf16.msrb.mxu0 %v8668_v20  ;;  %v4401_v29 = vpop.f32.mrf.mxu2  ;;  %v4374_v24 = vadd.f32 %v4373_v22, %v4360_v50  ;;  %v12212_v20 = vld [vmem:[%s10844_s12 + $0x1f8] sm:$0xff]  ;;  %13681 = vst [vmem:[#allocation39_spill] sm:$0xff] %v12285_v27  ;;  %v12296_v22 = vld [vmem:[%s10844_s12 + $0x168] sm:$0xff]  ;;  %v12341_v12 = vld [vmem:[%s10844_s12 + $0xd0] sm:$0xff] }
 0x24a   : > { %4676 = vmatpush.bf16.msrb.mxu2 %v8924_v25  ;;  %v4375_v34 = vpop.f32.mrf.mxu0  ;;  %v12220_v25 = vld [vmem:[%s10844_s12 + $0x1d0] sm:$0xff]  ;;  %v12301_v0 = vld [vmem:[%s10844_s12 + $0x118] sm:$0xff]  ;;  %v12328_v16 = vld [vmem:[%s10844_s12 + $0x128] sm:$0xff] }
 0x24b   : > { %4690 = vmatpush.bf16.msrb.mxu3 %v9052_v35  ;;  %v4388_v35 = vadd.f32 %v4387_v56, %v4374_v24  ;;  %v4376_v15 = vadd.f32 %v4375_v34, %v4362_v23  ;;  %v12317_v6 = vld [vmem:[%s10844_s12 + $0xf8] sm:$0xff]  ;;  %v12344_v50 = vld [vmem:[%s10844_s12 + $0x108] sm:$0xff]  ;;  %v12357_v24 = vld [vmem:[%s10844_s12 + $0xb0] sm:$0xff] }
 0x24c   : > { %13683 = vst [vmem:[#allocation41_spill] sm:$0xff] %v12317_v6  ;;  %v12333_v62 = vld [vmem:[%s10844_s12 + $0xd8] sm:$0xff]  ;;  %v12368_v34 = vld [vmem:[%s10844_s12 + $0xe0] sm:$0xff]  ;;  %v12459_v49 = vld [vmem:[%s10844_s12 + $0x8] sm:$0xff] }
 0x24d   : > { %4662 = vmatpush.bf16.msrb.mxu1 %v8796_v47  ;;  %4649 = vmatpush.bf16.msrb.mxu0 %v8652_v41  ;;  %v4389_v54 = vpop.f32.mrf.mxu1  ;;  %v4402_v46 = vadd.f32 %v4401_v29, %v4388_v35  ;;  %v12248_v47 = vld [vmem:[%s10844_s12 + $0x1c8] sm:$0xff]  ;;  %v12256_v41 = vld [vmem:[%s10844_s12 + $0x1c0] sm:$0xff]  ;;  %13684 = vst [vmem:[#allocation42_spill] sm:$0xff] %v12333_v62  ;;  %v12349_v29 = vld [vmem:[%s10844_s12 + $0xb8] sm:$0xff] }
 0x24e   : > { %4677 = vmatpush.bf16.msrb.mxu2 %v8908_v39  ;;  %v4417_v39 = vpop.f32.mrf.mxu3  ;;  %v4390_v30 = vadd.f32 %v4389_v54, %v4376_v15  ;;  %13685 = vst [vmem:[#allocation43_spill] sm:$0xff] %v12349_v29  ;;  %v12365_v63 = vld [vmem:[%s10844_s12 + $0x98] sm:$0xff]  ;;  %v12373_v35 = vld [vmem:[%s10844_s12 + $0x90] sm:$0xff]  ;;  %v12376_v54 = vld [vmem:[%s10844_s12 + $0xc8] sm:$0xff] }
 0x24f   : > { %4691 = vmatpush.bf16.msrb.mxu3 %v9036_v7  ;;  %v4416_v57 = vadd.f32 %v4415_v3, %v4402_v46  ;;  %v12269_v7 = vld [vmem:[%s10844_s12 + $0x158] sm:$0xff]  ;;  %13686 = vst [vmem:[#allocation44_spill] sm:$0xff] %v12365_v63  ;;  %v12384_v15 = vld [vmem:[%s10844_s12 + $0xc0] sm:$0xff] }
 0x250   : > { %v12381_v46 = vld [vmem:[%s10844_s12 + $0x78] sm:$0xff]  ;;  %13701 = vst [vmem:[#allocation59_spill] sm:$0xff] %v12459_v49 }
 0x251   : > { %4663 = vmatpush.bf16.msrb.mxu1 %v8780_v40  ;;  %4650 = vmatpush.bf16.msrb.mxu0 %v8636_v37  ;;  %v12293_v40 = vld [vmem:[%s10844_s12 + $0x130] sm:$0xff]  ;;  %13687 = vst [vmem:[#allocation45_spill] sm:$0xff] %v12381_v46 }
 0x252   : > { %4678 = vmatpush.bf16.msrb.mxu2 %v8892_v5  ;;  %v12312_v5 = vld [vmem:[%s10844_s12 + $0x148] sm:$0xff] }
 0x253   : > { %4692 = vmatpush.bf16.msrb.mxu3 %v9020_v45 }
 0x255   : > { %4664 = vmatpush.bf16.msrb.mxu1 %v8764_v60  ;;  %4651 = vmatpush.bf16.msrb.mxu0 %v8620_v48  ;;  %v4429_v59 = vpop.f32.mrf.mxu0  ;;  %v12336_v48 = vld [vmem:[%s10844_s12 + $0x120] sm:$0xff] }
 0x256   : > { %4679 = vmatpush.bf16.msrb.mxu2 %v8876_v18  ;;  %v4430_v31 = vadd.f32 %v4429_v59, %v4416_v57 }
 0x257   : > { %4693 = vmatpush.bf16.msrb.mxu3 %v9004_v14 }
 0x258   : > { %4652 = vmatmul.bf16.vlgmr.msrb.gmra.mxu0 %v11260_v32  ;;  %v12237_v32 = vld [vmem:[%s10844_s12 + $0x198] sm:$0xff] }
 0x259   : > { %4665 = vmatpush.bf16.msrb.mxu1 %v8748_v51  ;;  %4680 = vmatmul.bf16.vlgmr.msrb.gmra.mxu2 %v11262_v33  ;;  %v12245_v33 = vld [vmem:[%s10844_s12 + $0x190] sm:$0xff]  ;;  %v4443_v36 = vpop.f32.mrf.mxu1  ;;  %v12360_v51 = vld [vmem:[%s10844_s12 + $0xe8] sm:$0xff] }
 0x25a   : > { %4824 = vmatpush.msra.mxu2 %v12209_v19  ;;  %4694 = vmatmul.bf16.vlgmr.msrb.gmra.mxu3 %v11267_v42  ;;  %13677 = vst [vmem:[#allocation35_spill] sm:$0xff] %v12245_v33  ;;  %v12253_v42 = vld [vmem:[%s10844_s12 + $0x178] sm:$0xff]  ;;  %v4444_v45 = vadd.f32 %v4443_v36, %v4430_v31  ;;  %v12400_v36 = vld [vmem:[%s10844_s12 + $0xa0] sm:$0xff] }
 0x25b   : > { %4844 = vmatpush.msra.mxu3 %v12212_v20  ;;  %13678 = vst [vmem:[#allocation36_spill] sm:$0xff] %v12253_v42  ;;  %4784 = vmatpush.msra.mxu0 %v12240_v13 }
 0x25c   : > { %4825 = vmatpush.msra.mxu2 %v12220_v25  ;;  %4666 = vmatmul.bf16.vlgmr.msrb.gmra.mxu1 %v11269_v43  ;;  %v4403_v43 = vpop.f32.mrf.mxu2 }
 0x25d   : > { %4845 = vmatpush.msra.mxu3 %v12215_v8  ;;  %4804 = vmatpush.msra.mxu1 %v12232_v10  ;;  %v4404_v37 = vadd.f32 %v4403_v43, %v4390_v30  ;;  %v4471_v60 = vpop.f32.mrf.mxu3  ;;  %v4431_v2 = vpop.f32.mrf.mxu0  ;;  %v12389_v43 = vld [vmem:[%s10844_s12 + $0x70] sm:$0xff]  ;;  %v12397_v30 = vld [vmem:[%s10844_s12 + $0x58] sm:$0xff] }
 0x25e   : > { %4826 = vmatpush.msra.mxu2 %v12229_v1  ;;  %4785 = vmatpush.msra.mxu0 %v12256_v41  ;;  %13688 = vst [vmem:[#allocation46_spill] sm:$0xff] %v12389_v43 }
 0x25f   : > { %4846 = vmatpush.msra.mxu3 %v12224_v28  ;;  %4805 = vmatpush.msra.mxu1 %v12248_v47  ;;  %v4418_v21 = vadd.f32 %v4417_v39, %v4404_v37  ;;  %v12392_v39 = vld [vmem:[%s10844_s12 + $0xa8] sm:$0xff]  ;;  %13689 = vst [vmem:[#allocation47_spill] sm:$0xff] %v12397_v30  ;;  %v12405_v37 = vld [vmem:[%s10844_s12 + $0x50] sm:$0xff] }
 0x260   : > { %4827 = vmatpush.msra.mxu2 %v12245_v33  ;;  %4786 = vmatpush.msra.mxu0 %v12272_v53  ;;  %13690 = vst [vmem:[#allocation48_spill] sm:$0xff] %v12405_v37 }
 0x261   : > { %4847 = vmatpush.msra.mxu3 %v12237_v32  ;;  %4806 = vmatpush.msra.mxu1 %v12264_v55  ;;  %v4432_v18 = vadd.f32 %v4431_v2, %v4418_v21  ;;  %v4445_v3 = vpop.f32.mrf.mxu1  ;;  %v12413_v21 = vld [vmem:[%s10844_s12 + $0x38] sm:$0xff]  ;;  %v12424_v2 = vld [vmem:[%s10844_s12 + $0x68] sm:$0xff] }
 0x262   : > { %4828 = vmatpush.msra.mxu2 %v12261_v52  ;;  %4787 = vmatpush.msra.mxu0 %v12288_v61  ;;  %13691 = vst [vmem:[#allocation49_spill] sm:$0xff] %v12413_v21 }
 0x263   : > { %4848 = vmatpush.msra.mxu3 %v12253_v42  ;;  %4807 = vmatpush.msra.mxu1 %v12280_v9  ;;  %v4446_v23 = vadd.f32 %v4445_v3, %v4432_v18  ;;  %13693 = vst [vmem:[#allocation51_spill] sm:$0xff] %v12424_v2  ;;  %v12429_v18 = vld [vmem:[%s10844_s12 + $0x18] sm:$0xff]  ;;  %v12437_v3 = vld [vmem:[%s10844_s12 + $0x10] sm:$0xff] }
 0x264   : > { %4829 = vmatpush.msra.mxu2 %v12277_v58  ;;  %4788 = vmatpush.msra.mxu0 %v12304_v4  ;;  %v4457_v56 = vpop.f32.mrf.mxu2  ;;  %13694 = vst [vmem:[#allocation52_spill] sm:$0xff] %v12429_v18 }
 0x265   : > { %4849 = vmatpush.msra.mxu3 %v12269_v7  ;;  %4808 = vmatpush.msra.mxu1 %v12296_v22  ;;  %v4458_v11 = vadd.f32 %v4457_v56, %v4444_v45  ;;  %v4473_v31 = vpop.f32.mrf.mxu3  ;;  %v12408_v45 = vld [vmem:[%s10844_s12 + $0x88] sm:$0xff]  ;;  %13696 = vst [vmem:[#allocation54_spill] sm:$0xff] %v12437_v3 }
 0x266   : > { %4830 = vmatpush.msra.mxu2 %v12293_v40  ;;  %4789 = vmatpush.msra.mxu0 %v12320_v38 }
 0x267   : > { %4850 = vmatpush.msra.mxu3 %v12285_v27  ;;  %4809 = vmatpush.msra.mxu1 %v12312_v5  ;;  %v4472_v14 = vadd.f32 %v4471_v60, %v4458_v11  ;;  %v12416_v11 = vld [vmem:[%s10844_s12 + $0x80] sm:$0xff]  ;;  %v12421_v60 = vld [vmem:[%s10844_s12 + $0x30] sm:$0xff] }
 0x268   : > { %4831 = vmatpush.msra.mxu2 %v12309_v44  ;;  %4790 = vmatpush.msra.mxu0 %v12336_v48  ;;  %13692 = vst [vmem:[#allocation50_spill] sm:$0xff] %v12421_v60 }
 0x269   : > { %4851 = vmatpush.msra.mxu3 %v12301_v0  ;;  %4810 = vmatpush.msra.mxu1 %v12328_v16  ;;  %4702 = vst [vmem:[#allocation2 + $0x10] sm:$0xff] %v4472_v14  ;;  %v12432_v14 = vld [vmem:[%s10844_s12 + $0x60] sm:$0xff] }
 0x26a   : > { %4832 = vmatpush.msra.mxu2 %v12325_v26  ;;  %4791 = vmatpush.msra.mxu0 %v12352_v17  ;;  %13695 = vst [vmem:[#allocation53_spill] sm:$0xff] %v12432_v14 }
 0x26b   : > { %4852 = vmatpush.msra.mxu3 %v12317_v6  ;;  %4811 = vmatpush.msra.mxu1 %v12344_v50 }
 0x26c   : > { %4833 = vmatpush.msra.mxu2 %v12341_v12  ;;  %4792 = vmatpush.msra.mxu0 %v12368_v34  ;;  %v4459_v57 = vpop.f32.mrf.mxu2 }
 0x26d   : > { %4853 = vmatpush.msra.mxu3 %v12333_v62  ;;  %4812 = vmatpush.msra.mxu1 %v12360_v51  ;;  %v4460_v59 = vadd.f32 %v4459_v57, %v4446_v23  ;;  %v12442_v23 = vld [vmem:[%s10844_s12 + $0x48] sm:$0xff]  ;;  %v12447_v57 = vld [vmem:[%s10844_s12 + $0x40] sm:$0xff] }
 0x26e   : > { %4834 = vmatpush.msra.mxu2 %v12357_v24  ;;  %4793 = vmatpush.msra.mxu0 %v12384_v15  ;;  %13697 = vst [vmem:[#allocation55_spill] sm:$0xff] %v12442_v23 }
 0x26f   : > { %4854 = vmatpush.msra.mxu3 %v12349_v29  ;;  %4813 = vmatpush.msra.mxu1 %v12376_v54  ;;  %v4474_v56 = vadd.f32 %v4473_v31, %v4460_v59  ;;  %13698 = vst [vmem:[#allocation56_spill] sm:$0xff] %v12447_v57  ;;  %v10622_v59 = vmov 0.0   ;;  %v12451_v31 = vld [vmem:[%s10844_s12 + $0x28] sm:$0xff] }
 0x270   : > { %4835 = vmatpush.msra.mxu2 %v12373_v35  ;;  %4794 = vmatpush.msra.mxu0 %v12400_v36  ;;  %13699 = vst [vmem:[#allocation57_spill] sm:$0xff] %v12451_v31 }
 0x271   : > { %4855 = vmatpush.msra.mxu3 %v12365_v63  ;;  %4814 = vmatpush.msra.mxu1 %v12392_v39  ;;  %4706 = vst [vmem:[#allocation2 + $0x30] sm:$0xff] %v4474_v56  ;;  %v12455_v56 = vld [vmem:[%s10844_s12 + $0x20] sm:$0xff] }
 0x272   : > { %4836 = vmatpush.msra.mxu2 %v12389_v43  ;;  %4795 = vmatpush.msra.mxu0 %v12416_v11  ;;  %13700 = vst [vmem:[#allocation58_spill] sm:$0xff] %v12455_v56 }
 0x273   : > { %4856 = vmatpush.msra.mxu3 %v12381_v46  ;;  %4815 = vmatpush.msra.mxu1 %v12408_v45 }
 0x274   : > { %4837 = vmatpush.msra.mxu2 %v12405_v37  ;;  %4796 = vmatpush.msra.mxu0 %v12432_v14 }
 0x275   : > { %4857 = vmatpush.msra.mxu3 %v12397_v30  ;;  %4816 = vmatpush.msra.mxu1 %v12424_v2 }
 0x276   : > { %4838 = vmatpush.msra.mxu2 %v12421_v60  ;;  %4797 = vmatpush.msra.mxu0 %v12447_v57 }
 0x277   : > { %4858 = vmatpush.msra.mxu3 %v12413_v21  ;;  %4817 = vmatpush.msra.mxu1 %v12442_v23 }
 0x278   : > { %4839 = vmatpush.msra.mxu2 %v12437_v3  ;;  %4798 = vmatpush.msra.mxu0 %v12455_v56 }
 0x279   : > { %4859 = vmatpush.msra.mxu3 %v12429_v18  ;;  %4840 = vmatmul.f32.vlgmr.msra.gmra.mxu2 %v10622_v59  ;;  %v12464_v18 = vld [vmem:[%s10844_s12] sm:$0xff] }
 0x27a   : > { %4860 = vmatmul.f32.vlgmr.msra.gmra.mxu3 %v10622_v59  ;;  %5011 = vmatpush.msrb.mxu2 %v12209_v19  ;;  %13702 = vst [vmem:[#allocation60_spill] sm:$0xff] %v12464_v18 }
 0x27b   : > { %4818 = vmatpush.msra.mxu1 %v12451_v31  ;;  %5031 = vmatpush.msrb.mxu3 %v12212_v20 }
 0x27c   : > { %5012 = vmatpush.msrb.mxu2 %v12220_v25  ;;  %4799 = vmatpush.msra.mxu0 %v12464_v18 }
 0x27d   : > { %4819 = vmatpush.msra.mxu1 %v12459_v49  ;;  %5032 = vmatpush.msrb.mxu3 %v12215_v8 }
 0x27e   : > { %4820 = vmatmul.f32.vlgmr.msra.gmra.mxu1 %v10622_v59  ;;  %4800 = vmatmul.f32.vlgmr.msra.gmra.mxu0 %v10622_v59  ;;  %v13703_v59 = vld [vmem:[#allocation52_spill] sm:$0xff] }
 0x27f   : > { %4991 = vmatpush.msrb.mxu1 %v12232_v10  ;;  %4971 = vmatpush.msrb.mxu0 %v12240_v13 }
 0x280   : > { %5013 = vmatpush.msrb.mxu2 %v12229_v1  ;;  %5033 = vmatpush.msrb.mxu3 %v12224_v28 }
 0x281   : > { %4992 = vmatpush.msrb.mxu1 %v12248_v47  ;;  %4972 = vmatpush.msrb.mxu0 %v12256_v41 }
 0x282   : > { %5014 = vmatpush.msrb.mxu2 %v12245_v33  ;;  %5034 = vmatpush.msrb.mxu3 %v12237_v32 }
 0x283   : > { %4993 = vmatpush.msrb.mxu1 %v12264_v55  ;;  %4973 = vmatpush.msrb.mxu0 %v12272_v53 }
 0x284   : > { %5015 = vmatpush.msrb.mxu2 %v12261_v52  ;;  %5035 = vmatpush.msrb.mxu3 %v12253_v42 }
 0x285   : > { %4994 = vmatpush.msrb.mxu1 %v12280_v9  ;;  %4974 = vmatpush.msrb.mxu0 %v12288_v61 }
 0x286   : > { %5016 = vmatpush.msrb.mxu2 %v12277_v58  ;;  %5036 = vmatpush.msrb.mxu3 %v12269_v7 }
 0x287   : > { %4995 = vmatpush.msrb.mxu1 %v12296_v22  ;;  %4975 = vmatpush.msrb.mxu0 %v12304_v4 }
 0x288   : > { %5017 = vmatpush.msrb.mxu2 %v12293_v40  ;;  %5037 = vmatpush.msrb.mxu3 %v12285_v27 }
 0x289   : > { %4996 = vmatpush.msrb.mxu1 %v12312_v5  ;;  %4976 = vmatpush.msrb.mxu0 %v12320_v38 }
 0x28a   : > { %5018 = vmatpush.msrb.mxu2 %v12309_v44  ;;  %5038 = vmatpush.msrb.mxu3 %v12301_v0 }
 0x28b   : > { %4997 = vmatpush.msrb.mxu1 %v12328_v16  ;;  %4977 = vmatpush.msrb.mxu0 %v12336_v48 }
 0x28c   : > { %5019 = vmatpush.msrb.mxu2 %v12325_v26  ;;  %5039 = vmatpush.msrb.mxu3 %v12317_v6 }
 0x28d   : > { %4998 = vmatpush.msrb.mxu1 %v12344_v50  ;;  %4978 = vmatpush.msrb.mxu0 %v12352_v17 }
 0x28e   : > { %5020 = vmatpush.msrb.mxu2 %v12341_v12  ;;  %5040 = vmatpush.msrb.mxu3 %v12333_v62 }
 0x28f   : > { %4999 = vmatpush.msrb.mxu1 %v12360_v51  ;;  %4979 = vmatpush.msrb.mxu0 %v12368_v34 }
 0x290   : > { %5021 = vmatpush.msrb.mxu2 %v12357_v24  ;;  %5041 = vmatpush.msrb.mxu3 %v12349_v29 }
 0x291   : > { %5000 = vmatpush.msrb.mxu1 %v12376_v54  ;;  %4980 = vmatpush.msrb.mxu0 %v12384_v15 }
 0x292   : > { %5022 = vmatpush.msrb.mxu2 %v12373_v35  ;;  %5042 = vmatpush.msrb.mxu3 %v12365_v63 }
 0x293   : > { %5001 = vmatpush.msrb.mxu1 %v12392_v39  ;;  %4981 = vmatpush.msrb.mxu0 %v12400_v36 }
 0x294   : > { %5023 = vmatpush.msrb.mxu2 %v12389_v43  ;;  %5043 = vmatpush.msrb.mxu3 %v12381_v46 }
 0x295   : > { %5002 = vmatpush.msrb.mxu1 %v12408_v45  ;;  %4982 = vmatpush.msrb.mxu0 %v12416_v11 }
 0x296   : > { %5024 = vmatpush.msrb.mxu2 %v12405_v37  ;;  %5044 = vmatpush.msrb.mxu3 %v12397_v30 }
 0x297   : > { %5003 = vmatpush.msrb.mxu1 %v12424_v2  ;;  %4983 = vmatpush.msrb.mxu0 %v12432_v14 }
 0x298   : > { %5025 = vmatpush.msrb.mxu2 %v12421_v60  ;;  %5045 = vmatpush.msrb.mxu3 %v12413_v21  ;;  %v4485_v21 = vpop.f32.mrf.mxu0 }
 0x299   : > { %5004 = vmatpush.msrb.mxu1 %v12442_v23  ;;  %4984 = vmatpush.msrb.mxu0 %v12447_v57 }
 0x29a   : > { %5026 = vmatpush.msrb.mxu2 %v12437_v3  ;;  %5046 = vmatpush.msrb.mxu3 %v13703_v59 }
 0x29b   : > { %5005 = vmatpush.msrb.mxu1 %v12451_v31  ;;  %4985 = vmatpush.msrb.mxu0 %v12455_v56 }
 0x29c   : > { %5192 = vmatpush.msra.mxu2 %v12209_v19  ;;  %5212 = vmatpush.msra.mxu3 %v12212_v20  ;;  %v4499_v19 = vpop.f32.mrf.mxu1 }
 0x29d   : > { %5006 = vmatpush.msrb.mxu1 %v12459_v49  ;;  %4986 = vmatpush.msrb.mxu0 %v12464_v18 }
 0x29e   : > { %5193 = vmatpush.msra.mxu2 %v12220_v25  ;;  %5213 = vmatpush.msra.mxu3 %v12215_v8  ;;  %v4513_v8 = vpop.f32.mrf.mxu2 }
 0x29f   : > { %5172 = vmatpush.msra.mxu1 %v12232_v10  ;;  %5152 = vmatpush.msra.mxu0 %v12240_v13 }
 0x2a0   : > { %5194 = vmatpush.msra.mxu2 %v12229_v1  ;;  %5214 = vmatpush.msra.mxu3 %v12224_v28  ;;  %v4527_v1 = vpop.f32.mrf.mxu3 }
 0x2a1   : > { %5173 = vmatpush.msra.mxu1 %v12248_v47  ;;  %5153 = vmatpush.msra.mxu0 %v12256_v41 }
 0x2a2   : > { %5195 = vmatpush.msra.mxu2 %v12245_v33  ;;  %5215 = vmatpush.msra.mxu3 %v12237_v32  ;;  %v4487_v33 = vpop.f32.mrf.mxu0 }
 0x2a3   : > { %5174 = vmatpush.msra.mxu1 %v12264_v55  ;;  %5154 = vmatpush.msra.mxu0 %v12272_v53 }
 0x2a4   : > { %5196 = vmatpush.msra.mxu2 %v12261_v52  ;;  %5216 = vmatpush.msra.mxu3 %v12253_v42  ;;  %v13704_v52 = vld [vmem:[#allocation31_spill] sm:$0xff] }
 0x2a5   : > { %5175 = vmatpush.msra.mxu1 %v12280_v9  ;;  %5155 = vmatpush.msra.mxu0 %v12288_v61  ;;  %v1159_v42 = vperm.slane %v13704_v52, 3 }
 0x2a6   : > { %5197 = vmatpush.msra.mxu2 %v12277_v58  ;;  %5217 = vmatpush.msra.mxu3 %v12269_v7  ;;  %v4501_v58 = vpop.f32.mrf.mxu1  ;;  %v4515_v52 = vpop.f32.mrf.mxu2 }
 0x2a7   : > { %5176 = vmatpush.msra.mxu1 %v12296_v22  ;;  %5156 = vmatpush.msra.mxu0 %v12304_v4 }
 0x2a8   : > { %5198 = vmatpush.msra.mxu2 %v12293_v40  ;;  %5218 = vmatpush.msra.mxu3 %v12285_v27  ;;  %v4486_v27 = vadd.f32 %v4485_v21, %v1159_v42 }
 0x2a9   : > { %5177 = vmatpush.msra.mxu1 %v12312_v5  ;;  %5157 = vmatpush.msra.mxu0 %v12320_v38 }
 0x2aa   : > { %5199 = vmatpush.msra.mxu2 %v12309_v44  ;;  %5219 = vmatpush.msra.mxu3 %v12301_v0  ;;  %v4529_v44 = vpop.f32.mrf.mxu3  ;;  %v4541_v21 = vpop.f32.mrf.mxu0 }
 0x2ab   : > { %5178 = vmatpush.msra.mxu1 %v12328_v16  ;;  %5158 = vmatpush.msra.mxu0 %v12336_v48 }
 0x2ac   : > { %5200 = vmatpush.msra.mxu2 %v12325_v26  ;;  %5220 = vmatpush.msra.mxu3 %v12317_v6  ;;  %v4500_v6 = vadd.f32 %v4499_v19, %v4486_v27  ;;  %v13705_v27 = vld [vmem:[#allocation49_spill] sm:$0xff] }
 0x2ad   : > { %5179 = vmatpush.msra.mxu1 %v12344_v50  ;;  %5159 = vmatpush.msra.mxu0 %v12352_v17 }
 0x2ae   : > { %5201 = vmatpush.msra.mxu2 %v12341_v12  ;;  %5221 = vmatpush.msra.mxu3 %v12333_v62  ;;  %v4555_v62 = vpop.f32.mrf.mxu1  ;;  %v4569_v19 = vpop.f32.mrf.mxu2 }
 0x2af   : > { %5180 = vmatpush.msra.mxu1 %v12360_v51  ;;  %5160 = vmatpush.msra.mxu0 %v12368_v34 }
 0x2b0   : > { %5202 = vmatpush.msra.mxu2 %v12357_v24  ;;  %5222 = vmatpush.msra.mxu3 %v12349_v29  ;;  %v4514_v29 = vadd.f32 %v4513_v8, %v4500_v6 }
 0x2b1   : > { %5181 = vmatpush.msra.mxu1 %v12376_v54  ;;  %5161 = vmatpush.msra.mxu0 %v12384_v15 }
 0x2b2   : > { %5203 = vmatpush.msra.mxu2 %v12373_v35  ;;  %5223 = vmatpush.msra.mxu3 %v12365_v63  ;;  %v4583_v8 = vpop.f32.mrf.mxu3  ;;  %v4543_v6 = vpop.f32.mrf.mxu0 }
 0x2b3   : > { %5182 = vmatpush.msra.mxu1 %v12392_v39  ;;  %5162 = vmatpush.msra.mxu0 %v12400_v36 }
 0x2b4   : > { %5204 = vmatpush.msra.mxu2 %v12389_v43  ;;  %5224 = vmatpush.msra.mxu3 %v12381_v46  ;;  %v4488_v43 = vadd.f32 %v4487_v33, %v1159_v42  ;;  %v4528_v46 = vadd.f32 %v4527_v1, %v4514_v29 }
 0x2b5   : > { %5183 = vmatpush.msra.mxu1 %v12408_v45  ;;  %5163 = vmatpush.msra.mxu0 %v12416_v11 }
 0x2b6   : > { %5205 = vmatpush.msra.mxu2 %v12405_v37  ;;  %5225 = vmatpush.msra.mxu3 %v12397_v30  ;;  %v4542_v30 = vadd.f32 %v4541_v21, %v4528_v46  ;;  %v4557_v37 = vpop.f32.mrf.mxu1 }
 0x2b7   : > { %5184 = vmatpush.msra.mxu1 %v12424_v2  ;;  %5164 = vmatpush.msra.mxu0 %v12432_v14 }
 0x2b8   : > { %5206 = vmatpush.msra.mxu2 %v12421_v60  ;;  %5226 = vmatpush.msra.mxu3 %v13705_v27  ;;  %v4502_v60 = vadd.f32 %v4501_v58, %v4488_v43  ;;  %v4571_v27 = vpop.f32.mrf.mxu2 }
 0x2b9   : > { %5185 = vmatpush.msra.mxu1 %v12442_v23  ;;  %5165 = vmatpush.msra.mxu0 %v12447_v57  ;;  %v4556_v23 = vadd.f32 %v4555_v62, %v4542_v30 }
 0x2ba   : > { %5207 = vmatpush.msra.mxu2 %v12437_v3  ;;  %5227 = vmatpush.msra.mxu3 %v13703_v59  ;;  %v4585_v33 = vpop.f32.mrf.mxu3  ;;  %v4597_v1 = vpop.f32.mrf.mxu0 }
 0x2bb   : > { %5186 = vmatpush.msra.mxu1 %v12451_v31  ;;  %5166 = vmatpush.msra.mxu0 %v12455_v56  ;;  %v4516_v31 = vadd.f32 %v4515_v52, %v4502_v60  ;;  %v4570_v29 = vadd.f32 %v4569_v19, %v4556_v23 }
 0x2bd   : > { %5187 = vmatpush.msra.mxu1 %v12459_v49  ;;  %5167 = vmatpush.msra.mxu0 %v12464_v18  ;;  %v4530_v42 = vadd.f32 %v4529_v44, %v4516_v31  ;;  %v4584_v3 = vadd.f32 %v4583_v8, %v4570_v29 }
 0x2be   : > { %v4611_v56 = vpop.f32.mrf.mxu1 }
 0x2bf   : > { %v4544_v57 = vadd.f32 %v4543_v6, %v4530_v42  ;;  %v4598_v14 = vadd.f32 %v4597_v1, %v4584_v3  ;;  %v13706_v42 = vmov 0 }
 0x2c0   : > { %v4625_v2 = vpop.f32.mrf.mxu2 }
 0x2c1   : > { %v4558_v49 = vadd.f32 %v4557_v37, %v4544_v57  ;;  %v4612_v58 = vadd.f32 %v4611_v56, %v4598_v14 }
 0x2c2   : > { %v4639_v59 = vpop.f32.mrf.mxu3  ;;  %v4599_v18 = vpop.f32.mrf.mxu0 }
 0x2c3   : > { %v4572_v63 = vadd.f32 %v4571_v27, %v4558_v49  ;;  %v4626_v60 = vadd.f32 %v4625_v2, %v4612_v58 }
 0x2c5   : > { %v4586_v43 = vadd.f32 %v4585_v33, %v4572_v63  ;;  %v4640_v52 = vadd.f32 %v4639_v59, %v4626_v60 }
 0x2c6   : > { %v4613_v46 = vpop.f32.mrf.mxu1 }
 0x2c7   : > { %v4600_v62 = vadd.f32 %v4599_v18, %v4586_v43  ;;  %v4780_v18 = vstv %s4779_s15 }
 0x2c8   : > { %v4627_v30 = vpop.f32.mrf.mxu2  ;;  %vm12598_vm0 = vcmp.eq.s32.totalorder %v4780_v18, 1 }
 0x2c9   : > { %v4614_v23 = vadd.f32 %v4613_v46, %v4600_v62  ;;  %v13707_v42 = vsel %vm12598_vm0, 4294967295, %v13706_v42 }
 0x2ca   : > { %v4641_v21 = vpop.f32.mrf.mxu3  ;;  %13708 = vst [vmem:[#allocation31_spill] sm:$0xff] %v13707_v42 }
 0x2cb   : > { %v4628_v8 = vadd.f32 %v4627_v30, %v4614_v23 }
 0x2cd   : > { %v4642_v3 = vadd.f32 %v4641_v21, %v4628_v8 }
 0x2d5   : > { %v4653_v44 = vpop.f32.mrf.mxu0 }
 0x2d6   : > { %v4654_v31 = vadd.f32 %v4653_v44, %v4640_v52 }
 0x2d9   : > { %v4667_v19 = vpop.f32.mrf.mxu1 }
 0x2da   : > { %v4668_v6 = vadd.f32 %v4667_v19, %v4654_v31 }
 0x2dc   : > { %v4681_v37 = vpop.f32.mrf.mxu2 }
 0x2dd   : > { %v4682_v49 = vadd.f32 %v4681_v37, %v4668_v6  ;;  %v4655_v57 = vpop.f32.mrf.mxu0  ;;  %v4695_v27 = vpop.f32.mrf.mxu3 }
 0x2de   : > { %v4656_v14 = vadd.f32 %v4655_v57, %v4642_v3 }
 0x2df   : > { %v4696_v56 = vadd.f32 %v4695_v27, %v4682_v49 }
 0x2e1   : > { %v4669_v63 = vpop.f32.mrf.mxu1  ;;  %4703 = vst [vmem:[#allocation2 + $0x18] sm:$0xff] %v4696_v56 }
 0x2e2   : > { %v4670_v2 = vadd.f32 %v4669_v63, %v4656_v14 }
 0x2e4   : > { %v4683_v59 = vpop.f32.mrf.mxu2 }
 0x2e5   : > { %v4684_v33 = vadd.f32 %v4683_v59, %v4670_v2  ;;  %v4697_v1 = vpop.f32.mrf.mxu3 }
 0x2e7   : > { %v4698_v29 = vadd.f32 %v4697_v1, %v4684_v33 }
 0x2e8   : > { %v12602_v58 = vld [vmem:[#allocation2] ss:$8 sm:$0xf]  ;;  %v12604_v46 = vld [vmem:[#allocation2 + $0x7] ss:$8 sm:$0xf] }
 0x2e9   : > { %13709 = vst [vmem:[#allocation61_spill] sm:$0xff] %v12602_v58  ;;  %v12606_v43 = vld [vmem:[#allocation2 + $0x1] ss:$8 sm:$0xf] }
 0x2ea   : > { %13710 = vst [vmem:[#allocation62_spill] sm:$0xff] %v12604_v46  ;;  %v12612_v62 = vld [vmem:[#allocation2 + $0x6] ss:$8 sm:$0xf] }
 0x2eb   : > { %4707 = vst [vmem:[#allocation2 + $0x38] sm:$0xff] %v4698_v29  ;;  %v12614_v30 = vld [vmem:[#allocation2 + $0x2] ss:$8 sm:$0xf] }
 0x2ec   : > { %13711 = vst [vmem:[#allocation63_spill] sm:$0xff] %v12606_v43  ;;  %v12616_v52 = vld [vmem:[#allocation2 + $0x5] ss:$8 sm:$0xf] }
 0x2ed   : > { %13712 = vst [vmem:[#allocation64_spill] sm:$0xff] %v12612_v62  ;;  %v12618_v21 = vld [vmem:[#allocation2 + $0x3] ss:$8 sm:$0xf] }
 0x2ee   : > { %13713 = vst [vmem:[#allocation65_spill] sm:$0xff] %v12614_v30  ;;  %v12624_v23 = vld [vmem:[#allocation2 + $0x4] ss:$8 sm:$0xf] }
 0x2ef   : > { %13714 = vst [vmem:[#allocation66_spill] sm:$0xff] %v12616_v52 }
 0x2f0   : > { %13715 = vst [vmem:[#allocation67_spill] sm:$0xff] %v12618_v21 }
 0x2f1   : > { %13716 = vst [vmem:[#allocation68_spill] sm:$0xff] %v12624_v23 }
 0x2f2   : > { %v12634_v8 = vld [vmem:[#allocation2 + $0x20] ss:$8 sm:$0xf]  ;;  %v12636_v6 = vld [vmem:[#allocation2 + $0x27] ss:$8 sm:$0xf] }
 0x2f3   : > { %13717 = vst [vmem:[#allocation69_spill] sm:$0xff] %v12634_v8  ;;  %v12638_v37 = vld [vmem:[#allocation2 + $0x21] ss:$8 sm:$0xf] }
 0x2f4   : > { %13718 = vst [vmem:[#allocation70_spill] sm:$0xff] %v12636_v6  ;;  %v12640_v3 = vld [vmem:[#allocation2 + $0x26] ss:$8 sm:$0xf] }
 0x2f5   : > { %13719 = vst [vmem:[#allocation71_spill] sm:$0xff] %v12638_v37  ;;  %v12646_v57 = vld [vmem:[#allocation2 + $0x22] ss:$8 sm:$0xf] }
 0x2f6   : > { %13720 = vst [vmem:[#allocation72_spill] sm:$0xff] %v12640_v3  ;;  %v12648_v27 = vld [vmem:[#allocation2 + $0x25] ss:$8 sm:$0xf] }
 0x2f7   : > { %13721 = vst [vmem:[#allocation73_spill] sm:$0xff] %v12646_v57  ;;  %v12654_v56 = vld [vmem:[#allocation2 + $0x23] ss:$8 sm:$0xf] }
 0x2f8   : > { %13722 = vst [vmem:[#allocation74_spill] sm:$0xff] %v12648_v27  ;;  %v12656_v63 = vld [vmem:[#allocation2 + $0x24] ss:$8 sm:$0xf] }
 0x2f9   : > { %13723 = vst [vmem:[#allocation75_spill] sm:$0xff] %v12654_v56 }
 0x2fa   : > { %13724 = vst [vmem:[#allocation76_spill] sm:$0xff] %v12656_v63 }
 0x2fb   : > { %v4821_v59 = vpop.f32.mrf.mxu1  ;;  %v4801_v60 = vpop.f32.mrf.mxu0 }
 0x2fc   : > { %v4868_v1 = vrot.slane %v4821_v59, 7  ;;  %v4841_v29 = vpop.f32.mrf.mxu2  ;;  %v4782_v59 = vsel %vm12598_vm0, %v12602_v58, %v12604_v46 }
 0x2fd   : > { %v4861_v33 = vpop.f32.mrf.mxu3  ;;  %v4869_v14 = vrot.slane %v4841_v29, 6 }
 0x2fe   : > { %v4870_v49 = vrot.slane %v4861_v33, 5  ;;  %v4872_v44 = vsel %vm4871_vm1, %v4801_v60, %v4868_v1  ;;  %v4878_v2 = vsel %vm4877_vm2, %v4801_v60, %v4868_v1  ;;  %v4783_v60 = vsel %vm12598_vm0, %v12634_v8, %v12636_v6 }
 0x300   : > { %v4874_v31 = vsel %vm4873_vm3, %v4869_v14, %v4870_v49  ;;  %v4880_v18 = vsel %vm4879_vm4, %v4869_v14, %v4870_v49 }
 0x301   : > { %v4876_v33 = vsel %vm4875_vm5, %v4872_v44, %v4874_v31  ;;  %v4882_v19 = vsel %vm4881_vm6, %v4878_v2, %v4880_v18 }
 0x302   : > { %v4883_v29 = vrot.slane %v4882_v19, 1  ;;  %v4886_v56 = vadd.f32 %v4876_v33, %v4782_v59 }
 0x304   : > { %v4887_v1 = vadd.f32 %v4883_v29, %v4783_v60  ;;  %v9117_v63 = vmul.f32 -1.442695, %v4886_v56  ;;  %v4928_v2 = vrot.slane %v4886_v56, 3 }
 0x306   : > { %10046 = vpow2.f32 %v9117_v63  ;;  %v9118_v49 = vmul.f32 -1.442695, %v4887_v1  ;;  %v4929_v46 = vrot.slane %v4887_v1, 3 }
 0x308   : > { %10048 = vpow2.f32 %v9118_v49 }
 0x30c   : > { %v10047_v14 = vpop.eup %10046 }
 0x30d   : > { %v4894_v21 = vadd.f32 1.0, %v10047_v14 }
 0x30e   : > { %v10049_v23 = vpop.eup %10048 }
 0x30f   : > { %v4895_v58 = vadd.f32 1.0, %v10049_v23  ;;  %10050 = vrcp.f32 %v4894_v21  ;;  %v4907_v33 = vand.u32 2147483648, %v4894_v21  ;;  %v4905_v29 = vand.u32 2147483647, %v4894_v21 }
 0x310   : > { %vm4901_vm8 = vweird.f32 %v4894_v21 }
 0x311   : > { %10052 = vrcp.f32 %v4895_v58  ;;  %v4922_v60 = vand.u32 2147483648, %v4895_v58  ;;  %v4920_v23 = vand.u32 2147483647, %v4895_v58  ;;  %v4908_v6 = vor.u32 1.1754944e-38, %v4907_v33 }
 0x312   : > { %10054 = vtanh.f32 %v4928_v2  ;;  %vm4906_vm11 = vcmp.eq.f32.partialorder %v4905_v29, 8.507059e+37  ;;  %vm4916_vm12 = vweird.f32 %v4895_v58 }
 0x313   : > { %10056 = vtanh.f32 %v4929_v46  ;;  %v4923_v1 = vor.u32 1.1754944e-38, %v4922_v60  ;;  %vm4921_vm14 = vcmp.eq.f32.partialorder %v4920_v23, 8.507059e+37 }
 0x315   : > { %v10051_v44 = vpop.eup %10050 }
 0x316   : > { %v4897_v31 = vmul.f32 %v10051_v44, %v4894_v21  ;;  %vm4902_vm7 = vweird.f32 %v10051_v44 }
 0x317   : > { %v10053_v19 = vpop.eup %10052  ;;  %vm4903_vm10 = vmor %vm4901_vm8, %vm4902_vm7 }
 0x318   : > { %v4898_v18 = vsub.f32 1.0, %v4897_v31  ;;  %v4912_v59 = vmul.f32 %v10053_v19, %v4895_v58  ;;  %vm4917_vm9 = vweird.f32 %v10053_v19  ;;  %v10055_v21 = vpop.eup %10054 }
 0x319   : > { %vm4918_vm13 = vmor %vm4916_vm12, %vm4917_vm9  ;;  %v10057_v30 = vpop.eup %10056 }
 0x31a   : > { %v4899_v8 = vmul.f32 %v10051_v44, %v4898_v18  ;;  %v4913_v63 = vsub.f32 1.0, %v4912_v59 }
 0x31c   : > { %v4900_v49 = vadd.f32 %v10051_v44, %v4899_v8  ;;  %v4914_v14 = vmul.f32 %v10053_v19, %v4913_v63 }
 0x31e   : > { %v4904_v57 = vsel %vm4903_vm10, %v10051_v44, %v4900_v49  ;;  %v4915_v56 = vadd.f32 %v10053_v19, %v4914_v14  ;;  %v4962_v14 = vsel %vm12598_vm0, %v12606_v43, %v12612_v62  ;;  %v13015_v43 = vld [vmem:[%s10844_s12 + $0x38] sm:$0xff]  ;;  %v13019_v62 = vld [vmem:[%s10844_s12] sm:$0xff] }
 0x31f   : > { %v4909_v31 = vsel %vm4906_vm11, %v4908_v6, %v4904_v57 }
 0x320   : > { %v4919_v18 = vsel %vm4918_vm13, %v10053_v19, %v4915_v56  ;;  %v4936_v59 = vrot.slane %v4909_v31, 1  ;;  %v4942_v63 = vmul.f32 %v10055_v21, %v4909_v31  ;;  %v4948_v58 = vrot.slane %v4909_v31, 2 }
 0x321   : > { %v4924_v27 = vsel %vm4921_vm14, %v4923_v1, %v4919_v18  ;;  %v13756_v18 = vld [vmem:[#allocation71_spill] sm:$0xff] }
 0x322   : > { %v4937_v2 = vrot.slane %v4924_v27, 1  ;;  %v4940_v8 = vmul.f32 0.0, %v4936_v59  ;;  %v4943_v37 = vmul.f32 %v10057_v30, %v4924_v27  ;;  %v4949_v57 = vrot.slane %v4924_v27, 2  ;;  %v13729_v27 = vld [vmem:[#allocation34_spill] sm:$0xff] }
 0x323   : > { %v4963_v59 = vsel %vm12598_vm0, %v13756_v18, %v12640_v3  ;;  %v13007_v18 = vld [vmem:[%s10844_s12 + $0x28] sm:$0xff]  ;;  %v13011_v3 = vld [vmem:[%s10844_s12 + $0x30] sm:$0xff] }
 0x324   : > { %v4941_v52 = vmul.f32 0.0, %v4937_v2  ;;  %v12680_v33 = vadd.f32 %v4942_v63, %v4940_v8 }
 0x326   : > { %v12682_v46 = vadd.f32 %v4943_v37, %v4941_v52  ;;  %10058 = vtanh.f32 %v12680_v33  ;;  %v13727_v52 = vld [vmem:[#allocation32_spill] sm:$0xff]  ;;  %v13728_v37 = vld [vmem:[#allocation33_spill] sm:$0xff] }
 0x328   : > { %10060 = vtanh.f32 %v12682_v46 }
 0x32c   : > { %v10059_v6 = vpop.eup %10058 }
 0x32d   : > { %v12686_v44 = vmul.f32 %v10059_v6, %v4948_v58 }
 0x32e   : > { %v10061_v19 = vpop.eup %10060 }
 0x32f   : > { %13725 = vst [vmem:[#allocation77_spill] sm:$0xff] %v12686_v44  ;;  %v12688_v29 = vmul.f32 %v10061_v19, %v4949_v57 }
 0x330   : > { %4966 = vst [vmem:[#allocation1] ss:$9 sm:$0xff] %v12686_v44  ;;  %v13003_v44 = vld [vmem:[%s10844_s12 + $0x20] sm:$0xff] }
 0x331   : > { %13726 = vst [vmem:[#allocation78_spill] sm:$0xff] %v12688_v29 }
 0x332   : > { %4968 = vst [vmem:[#allocation1 + $0x1] ss:$9 sm:$0xff] %v12688_v29  ;;  %v12999_v29 = vld [vmem:[%s10844_s12 + $0x58] sm:$0xff] }
 0x339   : > { %v4969_v30 = vld [vmem:[#allocation1] sm:$0xff] }
 0x33a   : > { %4987 = vmatmul.f32.vlgmr.msrb.gmra.mxu0 %v4969_v30  ;;  %5007 = vmatmul.f32.vlgmr.msrb.gmra.mxu1 %v4969_v30 }
 0x33b   : > { %5027 = vmatmul.f32.vlgmr.msrb.gmra.mxu2 %v4969_v30  ;;  %5047 = vmatmul.f32.vlgmr.msrb.gmra.mxu3 %v4969_v30 }
 0x33c   : > { %5333 = vmatpush.msrb.mxu0 %v12240_v13  ;;  %5353 = vmatpush.msrb.mxu1 %v12232_v10  ;;  %v13732_v10 = vld [vmem:[#allocation36_spill] sm:$0xff] }
 0x33d   : > { %5373 = vmatpush.msrb.mxu2 %v13727_v52  ;;  %5393 = vmatpush.msrb.mxu3 %v12212_v20  ;;  %v13730_v20 = vld [vmem:[#allocation35_spill] sm:$0xff]  ;;  %v13735_v13 = vld [vmem:[#allocation40_spill] sm:$0xff] }
 0x33e   : > { %5334 = vmatpush.msrb.mxu0 %v12256_v41  ;;  %5354 = vmatpush.msrb.mxu1 %v12248_v47  ;;  %v13736_v47 = vld [vmem:[#allocation41_spill] sm:$0xff]  ;;  %v13737_v41 = vld [vmem:[#allocation42_spill] sm:$0xff] }
 0x33f   : > { %5374 = vmatpush.msrb.mxu2 %v12220_v25  ;;  %5394 = vmatpush.msrb.mxu3 %v13728_v37  ;;  %v13731_v25 = vld [vmem:[#allocation37_spill] sm:$0xff] }
 0x340   : > { %5335 = vmatpush.msrb.mxu0 %v12272_v53  ;;  %5355 = vmatpush.msrb.mxu1 %v12264_v55  ;;  %v13738_v55 = vld [vmem:[#allocation43_spill] sm:$0xff]  ;;  %v13740_v53 = vld [vmem:[#allocation53_spill] sm:$0xff] }
 0x341   : > { %5375 = vmatpush.msrb.mxu2 %v13729_v27  ;;  %5395 = vmatpush.msrb.mxu3 %v12224_v28  ;;  %v13733_v28 = vld [vmem:[#allocation38_spill] sm:$0xff] }
 0x342   : > { %5336 = vmatpush.msrb.mxu0 %v12288_v61  ;;  %5356 = vmatpush.msrb.mxu1 %v12280_v9  ;;  %v13741_v9 = vld [vmem:[#allocation51_spill] sm:$0xff]  ;;  %v13742_v61 = vld [vmem:[#allocation46_spill] sm:$0xff] }
 0x343   : > { %5376 = vmatpush.msrb.mxu2 %v13730_v20  ;;  %5396 = vmatpush.msrb.mxu3 %v12237_v32  ;;  %v13734_v32 = vld [vmem:[#allocation39_spill] sm:$0xff] }
 0x344   : > { %5337 = vmatpush.msrb.mxu0 %v12304_v4  ;;  %5357 = vmatpush.msrb.mxu1 %v12296_v22  ;;  %v13744_v22 = vld [vmem:[#allocation56_spill] sm:$0xff] }
 0x345   : > { %5377 = vmatpush.msrb.mxu2 %v13731_v25  ;;  %5397 = vmatpush.msrb.mxu3 %v13732_v10  ;;  %v13746_v4 = vld [vmem:[#allocation48_spill] sm:$0xff]  ;;  %13774 = vst [vmem:[#allocation56_spill] sm:$0xff] %v13003_v44 }
 0x346   : > { %5338 = vmatpush.msrb.mxu0 %v12320_v38  ;;  %5358 = vmatpush.msrb.mxu1 %v12312_v5  ;;  %v13747_v5 = vld [vmem:[#allocation47_spill] sm:$0xff]  ;;  %v13748_v38 = vld [vmem:[#allocation58_spill] sm:$0xff]  ;;  %13776 = vst [vmem:[#allocation48_spill] sm:$0xff] %v13011_v3 }
 0x347   : > { %5378 = vmatpush.msrb.mxu2 %v13733_v28  ;;  %5398 = vmatpush.msrb.mxu3 %v12269_v7  ;;  %v13739_v7 = vld [vmem:[#allocation44_spill] sm:$0xff]  ;;  %13777 = vst [vmem:[#allocation47_spill] sm:$0xff] %v13015_v43 }
 0x348   : > { %5339 = vmatpush.msrb.mxu0 %v12336_v48  ;;  %5359 = vmatpush.msrb.mxu1 %v12328_v16  ;;  %v13750_v16 = vld [vmem:[#allocation50_spill] sm:$0xff]  ;;  %v13751_v48 = vld [vmem:[#allocation49_spill] sm:$0xff]  ;;  %13778 = vst [vmem:[#allocation58_spill] sm:$0xff] %v13019_v62 }
 0x349   : > { %5379 = vmatpush.msrb.mxu2 %v12293_v40  ;;  %5399 = vmatpush.msrb.mxu3 %v13734_v32  ;;  %v13743_v40 = vld [vmem:[#allocation45_spill] sm:$0xff] }
 0x34a   : > { %5340 = vmatpush.msrb.mxu0 %v12352_v17  ;;  %5360 = vmatpush.msrb.mxu1 %v12344_v50  ;;  %v13753_v50 = vld [vmem:[#allocation59_spill] sm:$0xff]  ;;  %v13754_v17 = vld [vmem:[#allocation54_spill] sm:$0xff]  ;;  %13773 = vst [vmem:[#allocation45_spill] sm:$0xff] %v12999_v29 }
 0x34b   : > { %5380 = vmatpush.msrb.mxu2 %v13735_v13  ;;  %5400 = vmatpush.msrb.mxu3 %v12301_v0  ;;  %v13745_v0 = vld [vmem:[#allocation55_spill] sm:$0xff] }
 0x34c   : > { %5341 = vmatpush.msrb.mxu0 %v12368_v34  ;;  %5361 = vmatpush.msrb.mxu1 %v12360_v51  ;;  %13775 = vst [vmem:[#allocation55_spill] sm:$0xff] %v13007_v18 }
 0x34d   : > { %5381 = vmatpush.msrb.mxu2 %v12325_v26  ;;  %5401 = vmatpush.msrb.mxu3 %v13736_v47  ;;  %v13749_v26 = vld [vmem:[#allocation57_spill] sm:$0xff] }
 0x34e   : > { %5342 = vmatpush.msrb.mxu0 %v12384_v15  ;;  %5362 = vmatpush.msrb.mxu1 %v12376_v54 }
 0x34f   : > { %5382 = vmatpush.msrb.mxu2 %v12341_v12  ;;  %5402 = vmatpush.msrb.mxu3 %v13737_v41  ;;  %v13752_v12 = vld [vmem:[#allocation60_spill] sm:$0xff] }
 0x350   : > { %5343 = vmatpush.msrb.mxu0 %v12400_v36  ;;  %5363 = vmatpush.msrb.mxu1 %v12392_v39 }
 0x351   : > { %5383 = vmatpush.msrb.mxu2 %v12357_v24  ;;  %5403 = vmatpush.msrb.mxu3 %v13738_v55  ;;  %v13755_v24 = vld [vmem:[#allocation52_spill] sm:$0xff] }
 0x352   : > { %5344 = vmatpush.msrb.mxu0 %v12416_v11  ;;  %5364 = vmatpush.msrb.mxu1 %v12408_v45 }
 0x353   : > { %5384 = vmatpush.msrb.mxu2 %v12373_v35  ;;  %5404 = vmatpush.msrb.mxu3 %v13739_v7 }
 0x354   : > { %5345 = vmatpush.msrb.mxu0 %v13740_v53  ;;  %5365 = vmatpush.msrb.mxu1 %v13741_v9 }
 0x355   : > { %5385 = vmatpush.msrb.mxu2 %v13742_v61  ;;  %5405 = vmatpush.msrb.mxu3 %v13743_v40 }
 0x356   : > { %5346 = vmatpush.msrb.mxu0 %v13744_v22  ;;  %5366 = vmatpush.msrb.mxu1 %v13745_v0 }
 0x357   : > { %5386 = vmatpush.msrb.mxu2 %v13746_v4  ;;  %5406 = vmatpush.msrb.mxu3 %v13747_v5 }
 0x358   : > { %5347 = vmatpush.msrb.mxu0 %v13748_v38  ;;  %5367 = vmatpush.msrb.mxu1 %v13749_v26 }
 0x359   : > { %5387 = vmatpush.msrb.mxu2 %v13750_v16  ;;  %5407 = vmatpush.msrb.mxu3 %v13751_v48 }
 0x35a   : > { %5348 = vmatpush.msrb.mxu0 %v13752_v12  ;;  %5368 = vmatpush.msrb.mxu1 %v13753_v50 }
 0x35b   : > { %5388 = vmatpush.msrb.mxu2 %v13754_v17  ;;  %5408 = vmatpush.msrb.mxu3 %v13755_v24 }
 0x3b7   : > { %v5008_v51 = vpop.f32.mrf.mxu1  ;;  %v4988_v36 = vpop.f32.mrf.mxu0 }
 0x3b8   : > { %v5055_v34 = vrot.slane %v5008_v51, 7 }
 0x3ba   : > { %v5058_v45 = vsel %vm4871_vm1, %v4988_v36, %v5055_v34  ;;  %v5061_v11 = vsel %vm4877_vm2, %v4988_v36, %v5055_v34  ;;  %v12779_v36 = vld [vmem:[%s10844_s12 + $0x1e0] sm:$0xff] }
 0x3be   : > { %v5028_v35 = vpop.f32.mrf.mxu2  ;;  %v5048_v54 = vpop.f32.mrf.mxu3 }
 0x3bf   : > { %v5056_v15 = vrot.slane %v5028_v35, 6  ;;  %v5057_v39 = vrot.slane %v5048_v54, 5 }
 0x3c1   : > { %v5059_v60 = vsel %vm4873_vm3, %v5056_v15, %v5057_v39  ;;  %v5062_v49 = vsel %vm4879_vm4, %v5056_v15, %v5057_v39 }
 0x3c2   : > { %v5060_v23 = vsel %vm4875_vm5, %v5058_v45, %v5059_v60  ;;  %v5063_v56 = vsel %vm4881_vm6, %v5061_v11, %v5062_v49  ;;  %v12783_v45 = vld [vmem:[%s10844_s12 + $0x1e8] sm:$0xff]  ;;  %v12787_v11 = vld [vmem:[%s10844_s12 + $0x1f0] sm:$0xff]  ;;  %v12791_v60 = vld [vmem:[%s10844_s12 + $0x1f8] sm:$0xff] }
 0x3c3   : > { %v5064_v31 = vrot.slane %v5063_v56, 1  ;;  %v5067_v1 = vadd.f32 %v5060_v23, %v4962_v14  ;;  %v12795_v49 = vld [vmem:[%s10844_s12 + $0x1c0] sm:$0xff]  ;;  %v12799_v14 = vld [vmem:[%s10844_s12 + $0x1c8] sm:$0xff]  ;;  %v12803_v23 = vld [vmem:[%s10844_s12 + $0x1d0] sm:$0xff] }
 0x3c4   : > { %v12807_v56 = vld [vmem:[%s10844_s12 + $0x1d8] sm:$0xff] }
 0x3c5   : > { %v5068_v21 = vadd.f32 %v5064_v31, %v4963_v59  ;;  %v9119_v2 = vmul.f32 -1.442695, %v5067_v1  ;;  %v5109_v37 = vrot.slane %v5067_v1, 3  ;;  %v12811_v31 = vld [vmem:[%s10844_s12 + $0x1a0] sm:$0xff]  ;;  %v12815_v1 = vld [vmem:[%s10844_s12 + $0x1a8] sm:$0xff]  ;;  %v12819_v59 = vld [vmem:[%s10844_s12 + $0x1b0] sm:$0xff] }
 0x3c7   : > { %10062 = vpow2.f32 %v9119_v2  ;;  %v9120_v8 = vmul.f32 -1.442695, %v5068_v21  ;;  %v5110_v10 = vrot.slane %v5068_v21, 3  ;;  %v12823_v21 = vld [vmem:[%s10844_s12 + $0x1b8] sm:$0xff]  ;;  %v12827_v2 = vld [vmem:[%s10844_s12 + $0x180] sm:$0xff] }
 0x3c9   : > { %10064 = vpow2.f32 %v9120_v8  ;;  %v12831_v8 = vld [vmem:[%s10844_s12 + $0x188] sm:$0xff] }
 0x3cd   : > { %v10063_v63 = vpop.eup %10062 }
 0x3ce   : > { %v5075_v58 = vadd.f32 1.0, %v10063_v63  ;;  %v12835_v63 = vld [vmem:[%s10844_s12 + $0x190] sm:$0xff] }
 0x3cf   : > { %v10065_v6 = vpop.eup %10064 }
 0x3d0   : > { %v5076_v57 = vadd.f32 1.0, %v10065_v6  ;;  %10066 = vrcp.f32 %v5075_v58  ;;  %v5088_v25 = vand.u32 2147483648, %v5075_v58  ;;  %v5086_v32 = vand.u32 2147483647, %v5075_v58  ;;  %v12843_v6 = vld [vmem:[%s10844_s12 + $0x160] sm:$0xff] }
 0x3d1   : > { %vm5082_vm7 = vweird.f32 %v5075_v58 }
 0x3d2   : > { %10068 = vrcp.f32 %v5076_v57  ;;  %v5103_v47 = vand.u32 2147483648, %v5076_v57  ;;  %v5101_v7 = vand.u32 2147483647, %v5076_v57  ;;  %v5089_v53 = vor.u32 1.1754944e-38, %v5088_v25  ;;  %v12875_v25 = vld [vmem:[%s10844_s12 + $0x120] sm:$0xff] }
 0x3d3   : > { %10070 = vtanh.f32 %v5109_v37  ;;  %vm5087_vm10 = vcmp.eq.f32.partialorder %v5086_v32, 8.507059e+37  ;;  %vm5097_vm11 = vweird.f32 %v5076_v57  ;;  %v12863_v37 = vld [vmem:[%s10844_s12 + $0x148] sm:$0xff]  ;;  %v12887_v32 = vld [vmem:[%s10844_s12 + $0x138] sm:$0xff] }
 0x3d4   : > { %10072 = vtanh.f32 %v5110_v10  ;;  %v5104_v22 = vor.u32 1.1754944e-38, %v5103_v47  ;;  %vm5102_vm13 = vcmp.eq.f32.partialorder %v5101_v7, 8.507059e+37  ;;  %v12879_v10 = vld [vmem:[%s10844_s12 + $0x128] sm:$0xff]  ;;  %v12907_v7 = vld [vmem:[%s10844_s12 + $0xe0] sm:$0xff] }
 0x3d5   : > { %v12895_v47 = vld [vmem:[%s10844_s12 + $0x108] sm:$0xff] }
 0x3d6   : > { %v10067_v19 = vpop.eup %10066 }
 0x3d7   : > { %v5078_v30 = vmul.f32 %v10067_v19, %v5075_v58  ;;  %vm5083_vm15 = vweird.f32 %v10067_v19  ;;  %v12839_v58 = vld [vmem:[%s10844_s12 + $0x198] sm:$0xff] }
 0x3d8   : > { %v10069_v52 = vpop.eup %10068  ;;  %vm5084_vm9 = vmor %vm5082_vm7, %vm5083_vm15 }
 0x3d9   : > { %v5079_v27 = vsub.f32 1.0, %v5078_v30  ;;  %v5093_v20 = vmul.f32 %v10069_v52, %v5076_v57  ;;  %vm5098_vm8 = vweird.f32 %v10069_v52  ;;  %v10071_v5 = vpop.eup %10070  ;;  %v12847_v57 = vld [vmem:[%s10844_s12 + $0x168] sm:$0xff]  ;;  %v12855_v30 = vld [vmem:[%s10844_s12 + $0x178] sm:$0xff] }
 0x3da   : > { %vm5099_vm12 = vmor %vm5097_vm11, %vm5098_vm8  ;;  %v10073_v12 = vpop.eup %10072 }
 0x3db   : > { %v5080_v28 = vmul.f32 %v10067_v19, %v5079_v27  ;;  %v5094_v13 = vsub.f32 1.0, %v5093_v20  ;;  %v12867_v27 = vld [vmem:[%s10844_s12 + $0x150] sm:$0xff]  ;;  %v12871_v20 = vld [vmem:[%s10844_s12 + $0x158] sm:$0xff] }
 0x3dd   : > { %v5081_v41 = vadd.f32 %v10067_v19, %v5080_v28  ;;  %v5095_v55 = vmul.f32 %v10069_v52, %v5094_v13  ;;  %v12883_v28 = vld [vmem:[%s10844_s12 + $0x130] sm:$0xff]  ;;  %v12891_v13 = vld [vmem:[%s10844_s12 + $0x100] sm:$0xff] }
 0x3df   : > { %v5085_v9 = vsel %vm5084_vm9, %v10067_v19, %v5081_v41  ;;  %v5096_v61 = vadd.f32 %v10069_v52, %v5095_v55  ;;  %v12851_v19 = vld [vmem:[%s10844_s12 + $0x170] sm:$0xff]  ;;  %v12903_v55 = vld [vmem:[%s10844_s12 + $0x118] sm:$0xff] }
 0x3e0   : > { %v5090_v40 = vsel %vm5087_vm10, %v5089_v53, %v5085_v9  ;;  %v12899_v41 = vld [vmem:[%s10844_s12 + $0x110] sm:$0xff]  ;;  %v12911_v53 = vld [vmem:[%s10844_s12 + $0xe8] sm:$0xff] }
 0x3e1   : > { %v5100_v0 = vsel %vm5099_vm12, %v10069_v52, %v5096_v61  ;;  %v5117_v4 = vrot.slane %v5090_v40, 1  ;;  %v5123_v48 = vmul.f32 %v10071_v5, %v5090_v40  ;;  %v5129_v34 = vrot.slane %v5090_v40, 2  ;;  %v12859_v52 = vld [vmem:[%s10844_s12 + $0x140] sm:$0xff]  ;;  %v12915_v9 = vld [vmem:[%s10844_s12 + $0xf0] sm:$0xff]  ;;  %v12919_v61 = vld [vmem:[%s10844_s12 + $0xf8] sm:$0xff] }
 0x3e2   : > { %v5105_v38 = vsel %vm5102_vm13, %v5104_v22, %v5100_v0  ;;  %v12923_v40 = vld [vmem:[%s10844_s12 + $0xc0] sm:$0xff]  ;;  %v12927_v22 = vld [vmem:[%s10844_s12 + $0xc8] sm:$0xff]  ;;  %v12931_v0 = vld [vmem:[%s10844_s12 + $0xd0] sm:$0xff] }
 0x3e3   : > { %v5118_v26 = vrot.slane %v5105_v38, 1  ;;  %v5121_v16 = vmul.f32 %v5117_v4, %v12680_v33  ;;  %v5124_v17 = vmul.f32 %v10073_v12, %v5105_v38  ;;  %v5130_v54 = vrot.slane %v5105_v38, 2  ;;  %v12935_v4 = vld [vmem:[%s10844_s12 + $0xd8] sm:$0xff]  ;;  %v12939_v5 = vld [vmem:[%s10844_s12 + $0xa0] sm:$0xff]  ;;  %v12943_v38 = vld [vmem:[%s10844_s12 + $0xa8] sm:$0xff] }
 0x3e4   : > { %13757 = vst [vmem:[#allocation32_spill] sm:$0xff] %v12935_v4  ;;  %v12959_v12 = vld [vmem:[%s10844_s12 + $0x88] sm:$0xff] }
 0x3e5   : > { %v5122_v50 = vmul.f32 %v5118_v26, %v12682_v46  ;;  %v12772_v24 = vadd.f32 %v5123_v48, %v5121_v16  ;;  %13758 = vst [vmem:[#allocation33_spill] sm:$0xff] %v12939_v5  ;;  %v12947_v26 = vld [vmem:[%s10844_s12 + $0xb0] sm:$0xff]  ;;  %v12951_v16 = vld [vmem:[%s10844_s12 + $0xb8] sm:$0xff]  ;;  %v12955_v48 = vld [vmem:[%s10844_s12 + $0x80] sm:$0xff] }
 0x3e6   : > { %13759 = vst [vmem:[#allocation34_spill] sm:$0xff] %v12943_v38 }
 0x3e7   : > { %v12774_v51 = vadd.f32 %v5124_v17, %v5122_v50  ;;  %10074 = vtanh.f32 %v12772_v24  ;;  %13760 = vst [vmem:[#allocation35_spill] sm:$0xff] %v12947_v26  ;;  %v12963_v50 = vld [vmem:[%s10844_s12 + $0x90] sm:$0xff]  ;;  %v12967_v17 = vld [vmem:[%s10844_s12 + $0x98] sm:$0xff] }
 0x3e8   : > { %13761 = vst [vmem:[#allocation37_spill] sm:$0xff] %v12951_v16 }
 0x3e9   : > { %10076 = vtanh.f32 %v12774_v51  ;;  %13762 = vst [vmem:[#allocation36_spill] sm:$0xff] %v12955_v48 }
 0x3ea   : > { %13763 = vst [vmem:[#allocation38_spill] sm:$0xff] %v12959_v12 }
 0x3eb   : > { %13764 = vst [vmem:[#allocation39_spill] sm:$0xff] %v12963_v50 }
 0x3ec   : > { %13765 = vst [vmem:[#allocation40_spill] sm:$0xff] %v12967_v17 }
 0x3ed   : > { %v10075_v35 = vpop.eup %10074 }
 0x3ee   : > { %v5133_v33 = vmul.f32 %v10075_v35, %v5129_v34  ;;  %v12971_v34 = vld [vmem:[%s10844_s12 + $0x60] sm:$0xff]  ;;  %v12975_v35 = vld [vmem:[%s10844_s12 + $0x68] sm:$0xff] }
 0x3ef   : > { %v10077_v15 = vpop.eup %10076  ;;  %13766 = vst [vmem:[#allocation41_spill] sm:$0xff] %v12971_v34 }
 0x3f0   : > { %v5134_v39 = vmul.f32 %v10077_v15, %v5130_v54  ;;  %5147 = vst [vmem:[#allocation1] ss:$9 sm:$0xff] %v5133_v33  ;;  %v12979_v54 = vld [vmem:[%s10844_s12 + $0x70] sm:$0xff]  ;;  %v12983_v33 = vld [vmem:[%s10844_s12 + $0x78] sm:$0xff]  ;;  %v12987_v15 = vld [vmem:[%s10844_s12 + $0x40] sm:$0xff] }
 0x3f1   : > { %13767 = vst [vmem:[#allocation42_spill] sm:$0xff] %v12975_v35 }
 0x3f2   : > { %5149 = vst [vmem:[#allocation1 + $0x1] ss:$9 sm:$0xff] %v5134_v39  ;;  %v12991_v39 = vld [vmem:[%s10844_s12 + $0x48] sm:$0xff] }
 0x3f3   : > { %13768 = vst [vmem:[#allocation43_spill] sm:$0xff] %v12979_v54 }
 0x3f4   : > { %13769 = vst [vmem:[#allocation44_spill] sm:$0xff] %v12983_v33 }
 0x3f5   : > { %13770 = vst [vmem:[#allocation53_spill] sm:$0xff] %v12987_v15 }
 0x3f6   : > { %13771 = vst [vmem:[#allocation51_spill] sm:$0xff] %v12991_v39 }
 0x3f9   : > { %v5150_v46 = vld [vmem:[#allocation1] sm:$0xff] }
 0x3fa   : > { %5168 = vmatmul.f32.vlgmr.msra.gmra.mxu0 %v5150_v46  ;;  %5188 = vmatmul.f32.vlgmr.msra.gmra.mxu1 %v5150_v46 }
 0x3fb   : > { %5208 = vmatmul.f32.vlgmr.msra.gmra.mxu2 %v5150_v46  ;;  %5228 = vmatmul.f32.vlgmr.msra.gmra.mxu3 %v5150_v46  ;;  %v12995_v46 = vld [vmem:[%s10844_s12 + $0x50] sm:$0xff] }
 0x3fc   : > { %5506 = vmatpush.msra.mxu0 %v12779_v36  ;;  %5526 = vmatpush.msra.mxu1 %v12783_v45  ;;  %13772 = vst [vmem:[#allocation46_spill] sm:$0xff] %v12995_v46 }
 0x3fd   : > { %5546 = vmatpush.msra.mxu2 %v12787_v11  ;;  %5566 = vmatpush.msra.mxu3 %v12791_v60 }
 0x3fe   : > { %5507 = vmatpush.msra.mxu0 %v12795_v49  ;;  %5527 = vmatpush.msra.mxu1 %v12799_v14 }
 0x3ff   : > { %5547 = vmatpush.msra.mxu2 %v12803_v23  ;;  %5567 = vmatpush.msra.mxu3 %v12807_v56 }
 0x400   : > { %5508 = vmatpush.msra.mxu0 %v12811_v31  ;;  %5528 = vmatpush.msra.mxu1 %v12815_v1 }
 0x401   : > { %5548 = vmatpush.msra.mxu2 %v12819_v59  ;;  %5568 = vmatpush.msra.mxu3 %v12823_v21 }
 0x402   : > { %5509 = vmatpush.msra.mxu0 %v12827_v2  ;;  %5529 = vmatpush.msra.mxu1 %v12831_v8 }
 0x403   : > { %5549 = vmatpush.msra.mxu2 %v12835_v63  ;;  %5569 = vmatpush.msra.mxu3 %v12839_v58 }
 0x404   : > { %5510 = vmatpush.msra.mxu0 %v12843_v6  ;;  %5530 = vmatpush.msra.mxu1 %v12847_v57 }
 0x405   : > { %5550 = vmatpush.msra.mxu2 %v12851_v19  ;;  %5570 = vmatpush.msra.mxu3 %v12855_v30 }
 0x406   : > { %5511 = vmatpush.msra.mxu0 %v12859_v52  ;;  %5531 = vmatpush.msra.mxu1 %v12863_v37 }
 0x407   : > { %5551 = vmatpush.msra.mxu2 %v12867_v27  ;;  %5571 = vmatpush.msra.mxu3 %v12871_v20 }
 0x408   : > { %5512 = vmatpush.msra.mxu0 %v12875_v25  ;;  %5532 = vmatpush.msra.mxu1 %v12879_v10 }
 0x409   : > { %5552 = vmatpush.msra.mxu2 %v12883_v28  ;;  %5572 = vmatpush.msra.mxu3 %v12887_v32 }
 0x40a   : > { %5513 = vmatpush.msra.mxu0 %v12891_v13  ;;  %5533 = vmatpush.msra.mxu1 %v12895_v47 }
 0x40b   : > { %5553 = vmatpush.msra.mxu2 %v12899_v41  ;;  %5573 = vmatpush.msra.mxu3 %v12903_v55 }
 0x40c   : > { %5514 = vmatpush.msra.mxu0 %v12907_v7  ;;  %5534 = vmatpush.msra.mxu1 %v12911_v53 }
 0x40d   : > { %5554 = vmatpush.msra.mxu2 %v12915_v9  ;;  %5574 = vmatpush.msra.mxu3 %v12919_v61 }
 0x40e   : > { %5515 = vmatpush.msra.mxu0 %v12923_v40  ;;  %5535 = vmatpush.msra.mxu1 %v12927_v22 }
 0x40f   : > { %5555 = vmatpush.msra.mxu2 %v12931_v0  ;;  %5575 = vmatpush.msra.mxu3 %v12935_v4 }
 0x410   : > { %5516 = vmatpush.msra.mxu0 %v12939_v5  ;;  %5536 = vmatpush.msra.mxu1 %v12943_v38 }
 0x411   : > { %5556 = vmatpush.msra.mxu2 %v12947_v26  ;;  %5576 = vmatpush.msra.mxu3 %v12951_v16 }
 0x412   : > { %5517 = vmatpush.msra.mxu0 %v12955_v48  ;;  %5537 = vmatpush.msra.mxu1 %v12959_v12  ;;  %v13784_v12 = vld [vmem:[#allocation74_spill] sm:$0xff]  ;;  %v13785_v48 = vld [vmem:[#allocation73_spill] sm:$0xff] }
 0x413   : > { %5557 = vmatpush.msra.mxu2 %v12963_v50  ;;  %5577 = vmatpush.msra.mxu3 %v12967_v17  ;;  %v13783_v17 = vld [vmem:[#allocation65_spill] sm:$0xff] }
 0x414   : > { %5518 = vmatpush.msra.mxu0 %v12971_v34  ;;  %5538 = vmatpush.msra.mxu1 %v12975_v35 }
 0x415   : > { %5558 = vmatpush.msra.mxu2 %v12979_v54  ;;  %5578 = vmatpush.msra.mxu3 %v12983_v33 }
 0x416   : > { %5519 = vmatpush.msra.mxu0 %v12987_v15  ;;  %5539 = vmatpush.msra.mxu1 %v12991_v39 }
 0x417   : > { %5559 = vmatpush.msra.mxu2 %v12995_v46  ;;  %5579 = vmatpush.msra.mxu3 %v12999_v29  ;;  %v13023_v29 = vld [vmem:[%s10844_s12 + $0x8] sm:$0xff] }
 0x418   : > { %5520 = vmatpush.msra.mxu0 %v13003_v44  ;;  %5540 = vmatpush.msra.mxu1 %v13007_v18  ;;  %13779 = vst [vmem:[#allocation57_spill] sm:$0xff] %v13023_v29  ;;  %v13027_v44 = vld [vmem:[%s10844_s12 + $0x10] sm:$0xff]  ;;  %v13031_v18 = vld [vmem:[%s10844_s12 + $0x18] sm:$0xff]  ;;  %s7003_s12 = sshll.u32 %s10830_s7, 1 }
 0x419   : > { %5560 = vmatpush.msra.mxu2 %v13011_v3  ;;  %5580 = vmatpush.msra.mxu3 %v13015_v43  ;;  %13780 = vst [vmem:[#allocation50_spill] sm:$0xff] %v13027_v44  ;;  %s13361_s6 = scalar_lea.vmem [#allocation17], %s7003_s12  ;;  %s13364_s29 = scalar_lea.vmem [#allocation19], %s7003_s12 }
 0x41a   : > { %5521 = vmatpush.msra.mxu0 %v13019_v62  ;;  %5541 = vmatpush.msra.mxu1 %v13023_v29  ;;  %13781 = vst [vmem:[#allocation49_spill] sm:$0xff] %v13031_v18 }
 0x41b   : > { %5561 = vmatpush.msra.mxu2 %v13027_v44  ;;  %5581 = vmatpush.msra.mxu3 %v13031_v18  ;;  %v13782_v44 = vld [vmem:[#allocation66_spill] sm:$0xff] }
 0x41c   : > { %v5143_v18 = vsel %vm12598_vm0, %v13783_v17, %v13782_v44 }
 0x477   : > { %v5189_v3 = vpop.f32.mrf.mxu1  ;;  %v5169_v54 = vpop.f32.mrf.mxu0 }
 0x478   : > { %v5236_v46 = vrot.slane %v5189_v3, 7 }
 0x47a   : > { %v5239_v62 = vsel %vm4871_vm1, %v5169_v54, %v5236_v46  ;;  %v5242_v35 = vsel %vm4877_vm2, %v5169_v54, %v5236_v46  ;;  %v5144_v54 = vsel %vm12598_vm0, %v13785_v48, %v13784_v12 }
 0x47e   : > { %v5209_v39 = vpop.f32.mrf.mxu2  ;;  %v5229_v43 = vpop.f32.mrf.mxu3 }
 0x47f   : > { %v5237_v15 = vrot.slane %v5209_v39, 6  ;;  %v5238_v33 = vrot.slane %v5229_v43, 5 }
 0x481   : > { %v5240_v29 = vsel %vm4873_vm3, %v5237_v15, %v5238_v33  ;;  %v5243_v34 = vsel %vm4879_vm4, %v5237_v15, %v5238_v33 }
 0x482   : > { %v5241_v3 = vsel %vm4875_vm5, %v5239_v62, %v5240_v29  ;;  %v5244_v50 = vsel %vm4881_vm6, %v5242_v35, %v5243_v34 }
 0x483   : > { %v5245_v39 = vrot.slane %v5244_v50, 1  ;;  %v5248_v43 = vadd.f32 %v5241_v3, %v5143_v18 }
 0x485   : > { %v5249_v46 = vadd.f32 %v5245_v39, %v5144_v54  ;;  %v9121_v16 = vmul.f32 -1.442695, %v5248_v43  ;;  %v5290_v18 = vrot.slane %v5248_v43, 3 }
 0x487   : > { %10078 = vpow2.f32 %v9121_v16  ;;  %v9122_v33 = vmul.f32 -1.442695, %v5249_v46  ;;  %v5291_v44 = vrot.slane %v5249_v46, 3 }
 0x489   : > { %10080 = vpow2.f32 %v9122_v33 }
 0x48d   : > { %v10079_v15 = vpop.eup %10078 }
 0x48e   : > { %v5256_v26 = vadd.f32 1.0, %v10079_v15 }
 0x48f   : > { %v10081_v38 = vpop.eup %10080 }
 0x490   : > { %v5257_v17 = vadd.f32 1.0, %v10081_v38  ;;  %10082 = vrcp.f32 %v5256_v26  ;;  %v5269_v3 = vand.u32 2147483648, %v5256_v26  ;;  %v5267_v39 = vand.u32 2147483647, %v5256_v26 }
 0x491   : > { %vm5263_vm15 = vweird.f32 %v5256_v26 }
 0x492   : > { %10084 = vrcp.f32 %v5257_v17  ;;  %v5284_v54 = vand.u32 2147483648, %v5257_v17  ;;  %v5282_v38 = vand.u32 2147483647, %v5257_v17  ;;  %v5270_v12 = vor.u32 1.1754944e-38, %v5269_v3 }
 0x493   : > { %10086 = vtanh.f32 %v5290_v18  ;;  %vm5268_vm9 = vcmp.eq.f32.partialorder %v5267_v39, 8.507059e+37  ;;  %vm5278_vm10 = vweird.f32 %v5257_v17 }
 0x494   : > { %10088 = vtanh.f32 %v5291_v44  ;;  %v5285_v46 = vor.u32 1.1754944e-38, %v5284_v54  ;;  %vm5283_vm12 = vcmp.eq.f32.partialorder %v5282_v38, 8.507059e+37  ;;  %v13790_v38 = vld [vmem:[#allocation37_spill] sm:$0xff] }
 0x496   : > { %v10083_v62 = vpop.eup %10082 }
 0x497   : > { %v5259_v29 = vmul.f32 %v10083_v62, %v5256_v26  ;;  %vm5264_vm14 = vweird.f32 %v10083_v62 }
 0x498   : > { %v10085_v50 = vpop.eup %10084  ;;  %vm5265_vm8 = vmor %vm5263_vm15, %vm5264_vm14 }
 0x499   : > { %v5260_v34 = vsub.f32 1.0, %v5259_v29  ;;  %v5274_v35 = vmul.f32 %v10085_v50, %v5257_v17  ;;  %vm5279_vm7 = vweird.f32 %v10085_v50  ;;  %v10087_v26 = vpop.eup %10086 }
 0x49a   : > { %vm5280_vm11 = vmor %vm5278_vm10, %vm5279_vm7  ;;  %v10089_v4 = vpop.eup %10088 }
 0x49b   : > { %v5261_v48 = vmul.f32 %v10083_v62, %v5260_v34  ;;  %v5275_v16 = vsub.f32 1.0, %v5274_v35 }
 0x49d   : > { %v5262_v33 = vadd.f32 %v10083_v62, %v5261_v48  ;;  %v5276_v15 = vmul.f32 %v10085_v50, %v5275_v16 }
 0x49f   : > { %v5266_v42 = vsel %vm5265_vm8, %v10083_v62, %v5262_v33  ;;  %v5277_v43 = vadd.f32 %v10085_v50, %v5276_v15  ;;  %v13789_v15 = vld [vmem:[#allocation35_spill] sm:$0xff] }
 0x4a0   : > { %v5271_v29 = vsel %vm5268_vm9, %v5270_v12, %v5266_v42 }
 0x4a1   : > { %v5281_v34 = vsel %vm5280_vm11, %v10085_v50, %v5277_v43  ;;  %v5298_v35 = vrot.slane %v5271_v29, 1  ;;  %v5304_v16 = vmul.f32 %v10087_v26, %v5271_v29  ;;  %v5310_v42 = vrot.slane %v5271_v29, 2  ;;  %v13791_v43 = vld [vmem:[#allocation36_spill] sm:$0xff]  ;;  %v13792_v29 = vld [vmem:[#allocation38_spill] sm:$0xff] }
 0x4a2   : > { %v5286_v5 = vsel %vm5283_vm12, %v5285_v46, %v5281_v34  ;;  %v13793_v46 = vld [vmem:[#allocation39_spill] sm:$0xff]  ;;  %v13794_v34 = vld [vmem:[#allocation40_spill] sm:$0xff]  ;;  %v13796_v26 = vld [vmem:[#allocation42_spill] sm:$0xff] }
 0x4a3   : > { %v5299_v18 = vrot.slane %v5286_v5, 1  ;;  %v5302_v48 = vmul.f32 %v5298_v35, %v12772_v24  ;;  %v5305_v44 = vmul.f32 %v10089_v4, %v5286_v5  ;;  %v5311_v17 = vrot.slane %v5286_v5, 2  ;;  %v13787_v4 = vld [vmem:[#allocation33_spill] sm:$0xff]  ;;  %v13788_v5 = vld [vmem:[#allocation34_spill] sm:$0xff] }
 0x4a4   : > { %v13795_v35 = vld [vmem:[#allocation41_spill] sm:$0xff] }
 0x4a5   : > { %v5303_v3 = vmul.f32 %v5299_v18, %v12774_v51  ;;  %v13050_v62 = vadd.f32 %v5304_v16, %v5302_v48  ;;  %v13786_v51 = vld [vmem:[#allocation32_spill] sm:$0xff]  ;;  %v13797_v18 = vld [vmem:[#allocation43_spill] sm:$0xff]  ;;  %v13799_v16 = vld [vmem:[#allocation53_spill] sm:$0xff] }
 0x4a6   : > { %v13798_v48 = vld [vmem:[#allocation44_spill] sm:$0xff] }
 0x4a7   : > { %v13052_v39 = vadd.f32 %v5305_v44, %v5303_v3  ;;  %10090 = vtanh.f32 %v13050_v62  ;;  %v13800_v3 = vld [vmem:[#allocation51_spill] sm:$0xff]  ;;  %v13801_v44 = vld [vmem:[#allocation46_spill] sm:$0xff] }
 0x4a9   : > { %10092 = vtanh.f32 %v13052_v39 }
 0x4ad   : > { %v10091_v12 = vpop.eup %10090 }
 0x4ae   : > { %v5314_v50 = vmul.f32 %v10091_v12, %v5310_v42  ;;  %v13802_v42 = vld [vmem:[#allocation45_spill] sm:$0xff]  ;;  %v13803_v12 = vld [vmem:[#allocation56_spill] sm:$0xff] }
 0x4af   : > { %v10093_v54 = vpop.eup %10092 }
 0x4b0   : > { %v5315_v33 = vmul.f32 %v10093_v54, %v5311_v17  ;;  %5328 = vst [vmem:[#allocation1] ss:$9 sm:$0xff] %v5314_v50  ;;  %v13804_v17 = vld [vmem:[#allocation55_spill] sm:$0xff]  ;;  %v13805_v50 = vld [vmem:[#allocation48_spill] sm:$0xff] }
 0x4b1   : > { %v13806_v54 = vld [vmem:[#allocation47_spill] sm:$0xff] }
 0x4b2   : > { %5330 = vst [vmem:[#allocation1 + $0x1] ss:$9 sm:$0xff] %v5315_v33  ;;  %v13807_v33 = vld [vmem:[#allocation58_spill] sm:$0xff] }
 0x4b9   : > { %v5331_v24 = vld [vmem:[#allocation1] sm:$0xff] }
 0x4ba   : > { %5349 = vmatmul.f32.vlgmr.msrb.gmra.mxu0 %v5331_v24  ;;  %5369 = vmatmul.f32.vlgmr.msrb.gmra.mxu1 %v5331_v24 }
 0x4bb   : > { %5389 = vmatmul.f32.vlgmr.msrb.gmra.mxu2 %v5331_v24  ;;  %5409 = vmatmul.f32.vlgmr.msrb.gmra.mxu3 %v5331_v24  ;;  %v13808_v24 = vld [vmem:[#allocation57_spill] sm:$0xff] }
 0x4bc   : > { %5679 = vmatpush.msrb.mxu0 %v12779_v36  ;;  %5699 = vmatpush.msrb.mxu1 %v12783_v45 }
 0x4bd   : > { %5719 = vmatpush.msrb.mxu2 %v12787_v11  ;;  %5739 = vmatpush.msrb.mxu3 %v12791_v60 }
 0x4be   : > { %5680 = vmatpush.msrb.mxu0 %v12795_v49  ;;  %5700 = vmatpush.msrb.mxu1 %v12799_v14 }
 0x4bf   : > { %5720 = vmatpush.msrb.mxu2 %v12803_v23  ;;  %5740 = vmatpush.msrb.mxu3 %v12807_v56 }
 0x4c0   : > { %5681 = vmatpush.msrb.mxu0 %v12811_v31  ;;  %5701 = vmatpush.msrb.mxu1 %v12815_v1 }
 0x4c1   : > { %5721 = vmatpush.msrb.mxu2 %v12819_v59  ;;  %5741 = vmatpush.msrb.mxu3 %v12823_v21 }
 0x4c2   : > { %5682 = vmatpush.msrb.mxu0 %v12827_v2  ;;  %5702 = vmatpush.msrb.mxu1 %v12831_v8 }
 0x4c3   : > { %5722 = vmatpush.msrb.mxu2 %v12835_v63  ;;  %5742 = vmatpush.msrb.mxu3 %v12839_v58 }
 0x4c4   : > { %5683 = vmatpush.msrb.mxu0 %v12843_v6  ;;  %5703 = vmatpush.msrb.mxu1 %v12847_v57 }
 0x4c5   : > { %5723 = vmatpush.msrb.mxu2 %v12851_v19  ;;  %5743 = vmatpush.msrb.mxu3 %v12855_v30 }
 0x4c6   : > { %5684 = vmatpush.msrb.mxu0 %v12859_v52  ;;  %5704 = vmatpush.msrb.mxu1 %v12863_v37 }
 0x4c7   : > { %5724 = vmatpush.msrb.mxu2 %v12867_v27  ;;  %5744 = vmatpush.msrb.mxu3 %v12871_v20 }
 0x4c8   : > { %5685 = vmatpush.msrb.mxu0 %v12875_v25  ;;  %5705 = vmatpush.msrb.mxu1 %v12879_v10 }
 0x4c9   : > { %5725 = vmatpush.msrb.mxu2 %v12883_v28  ;;  %5745 = vmatpush.msrb.mxu3 %v12887_v32 }
 0x4ca   : > { %5686 = vmatpush.msrb.mxu0 %v12891_v13  ;;  %5706 = vmatpush.msrb.mxu1 %v12895_v47 }
 0x4cb   : > { %5726 = vmatpush.msrb.mxu2 %v12899_v41  ;;  %5746 = vmatpush.msrb.mxu3 %v12903_v55 }
 0x4cc   : > { %5687 = vmatpush.msrb.mxu0 %v12907_v7  ;;  %5707 = vmatpush.msrb.mxu1 %v12911_v53 }
 0x4cd   : > { %5727 = vmatpush.msrb.mxu2 %v12915_v9  ;;  %5747 = vmatpush.msrb.mxu3 %v12919_v61 }
 0x4ce   : > { %5688 = vmatpush.msrb.mxu0 %v12923_v40  ;;  %5708 = vmatpush.msrb.mxu1 %v12927_v22 }
 0x4cf   : > { %5728 = vmatpush.msrb.mxu2 %v12931_v0  ;;  %5748 = vmatpush.msrb.mxu3 %v13786_v51 }
 0x4d0   : > { %5689 = vmatpush.msrb.mxu0 %v13787_v4  ;;  %5709 = vmatpush.msrb.mxu1 %v13788_v5 }
 0x4d1   : > { %5729 = vmatpush.msrb.mxu2 %v13789_v15  ;;  %5749 = vmatpush.msrb.mxu3 %v13790_v38 }
 0x4d2   : > { %5690 = vmatpush.msrb.mxu0 %v13791_v43  ;;  %5710 = vmatpush.msrb.mxu1 %v13792_v29  ;;  %v13814_v29 = vld [vmem:[#allocation76_spill] sm:$0xff]  ;;  %v13815_v43 = vld [vmem:[#allocation75_spill] sm:$0xff] }
 0x4d3   : > { %5730 = vmatpush.msrb.mxu2 %v13793_v46  ;;  %5750 = vmatpush.msrb.mxu3 %v13794_v34  ;;  %v13812_v34 = vld [vmem:[#allocation67_spill] sm:$0xff] }
 0x4d4   : > { %5691 = vmatpush.msrb.mxu0 %v13795_v35  ;;  %5711 = vmatpush.msrb.mxu1 %v13796_v26 }
 0x4d5   : > { %5731 = vmatpush.msrb.mxu2 %v13797_v18  ;;  %5751 = vmatpush.msrb.mxu3 %v13798_v48  ;;  %v13809_v48 = vld [vmem:[#allocation50_spill] sm:$0xff] }
 0x4d6   : > { %5692 = vmatpush.msrb.mxu0 %v13799_v16  ;;  %5712 = vmatpush.msrb.mxu1 %v13800_v3  ;;  %v13810_v16 = vld [vmem:[#allocation49_spill] sm:$0xff] }
 0x4d7   : > { %5732 = vmatpush.msrb.mxu2 %v13801_v44  ;;  %5752 = vmatpush.msrb.mxu3 %v13802_v42 }
 0x4d8   : > { %5693 = vmatpush.msrb.mxu0 %v13803_v12  ;;  %5713 = vmatpush.msrb.mxu1 %v13804_v17 }
 0x4d9   : > { %5733 = vmatpush.msrb.mxu2 %v13805_v50  ;;  %5753 = vmatpush.msrb.mxu3 %v13806_v54 }
 0x4da   : > { %5694 = vmatpush.msrb.mxu0 %v13807_v33  ;;  %5714 = vmatpush.msrb.mxu1 %v13808_v24  ;;  %v13811_v24 = vld [vmem:[#allocation68_spill] sm:$0xff] }
 0x4db   : > { %5734 = vmatpush.msrb.mxu2 %v13809_v48  ;;  %5754 = vmatpush.msrb.mxu3 %v13810_v16  ;;  %v5324_v16 = vsel %vm12598_vm0, %v13812_v34, %v13811_v24 }
 0x537   : > { %v5370_v3 = vpop.f32.mrf.mxu1  ;;  %v5350_v35 = vpop.f32.mrf.mxu0 }
 0x538   : > { %v5417_v44 = vrot.slane %v5370_v3, 7 }
 0x53a   : > { %v5420_v17 = vsel %vm4871_vm1, %v5350_v35, %v5417_v44  ;;  %v5423_v50 = vsel %vm4877_vm2, %v5350_v35, %v5417_v44  ;;  %v5325_v35 = vsel %vm12598_vm0, %v13815_v43, %v13814_v29 }
 0x53e   : > { %v5390_v18 = vpop.f32.mrf.mxu2  ;;  %v5410_v42 = vpop.f32.mrf.mxu3 }
 0x53f   : > { %v5418_v26 = vrot.slane %v5390_v18, 6  ;;  %v5419_v12 = vrot.slane %v5410_v42, 5 }
 0x541   : > { %v5421_v54 = vsel %vm4873_vm3, %v5418_v26, %v5419_v12  ;;  %v5424_v33 = vsel %vm4879_vm4, %v5418_v26, %v5419_v12 }
 0x542   : > { %v5422_v3 = vsel %vm4875_vm5, %v5420_v17, %v5421_v54  ;;  %v5425_v46 = vsel %vm4881_vm6, %v5423_v50, %v5424_v33 }
 0x543   : > { %v5426_v18 = vrot.slane %v5425_v46, 1  ;;  %v5429_v42 = vadd.f32 %v5422_v3, %v5324_v16 }
 0x545   : > { %v5430_v44 = vadd.f32 %v5426_v18, %v5325_v35  ;;  %v9123_v38 = vmul.f32 -1.442695, %v5429_v42  ;;  %v5471_v16 = vrot.slane %v5429_v42, 3 }
 0x547   : > { %10094 = vpow2.f32 %v9123_v38  ;;  %v9124_v26 = vmul.f32 -1.442695, %v5430_v44  ;;  %v5472_v24 = vrot.slane %v5430_v44, 3 }
 0x549   : > { %10096 = vpow2.f32 %v9124_v26 }
 0x54d   : > { %v10095_v12 = vpop.eup %10094 }
 0x54e   : > { %v5437_v15 = vadd.f32 1.0, %v10095_v12 }
 0x54f   : > { %v10097_v5 = vpop.eup %10096 }
 0x550   : > { %v5438_v34 = vadd.f32 1.0, %v10097_v5  ;;  %10098 = vrcp.f32 %v5437_v15  ;;  %v5450_v3 = vand.u32 2147483648, %v5437_v15  ;;  %v5448_v18 = vand.u32 2147483647, %v5437_v15 }
 0x551   : > { %vm5444_vm14 = vweird.f32 %v5437_v15 }
 0x552   : > { %10100 = vrcp.f32 %v5438_v34  ;;  %v5465_v35 = vand.u32 2147483648, %v5438_v34  ;;  %v5463_v5 = vand.u32 2147483647, %v5438_v34  ;;  %v5451_v29 = vor.u32 1.1754944e-38, %v5450_v3 }
 0x553   : > { %10102 = vtanh.f32 %v5471_v16  ;;  %vm5449_vm8 = vcmp.eq.f32.partialorder %v5448_v18, 8.507059e+37  ;;  %vm5459_vm9 = vweird.f32 %v5438_v34 }
 0x554   : > { %10104 = vtanh.f32 %v5472_v24  ;;  %v5466_v44 = vor.u32 1.1754944e-38, %v5465_v35  ;;  %vm5464_vm11 = vcmp.eq.f32.partialorder %v5463_v5, 8.507059e+37  ;;  %v13820_v5 = vld [vmem:[#allocation37_spill] sm:$0xff] }
 0x556   : > { %v10099_v17 = vpop.eup %10098 }
 0x557   : > { %v5440_v50 = vmul.f32 %v10099_v17, %v5437_v15  ;;  %vm5445_vm13 = vweird.f32 %v10099_v17 }
 0x558   : > { %v10101_v46 = vpop.eup %10100  ;;  %vm5446_vm7 = vmor %vm5444_vm14, %vm5445_vm13 }
 0x559   : > { %v5441_v54 = vsub.f32 1.0, %v5440_v50  ;;  %v5455_v33 = vmul.f32 %v10101_v46, %v5438_v34  ;;  %vm5460_vm15 = vweird.f32 %v10101_v46  ;;  %v10103_v15 = vpop.eup %10102 }
 0x55a   : > { %vm5461_vm10 = vmor %vm5459_vm9, %vm5460_vm15  ;;  %v10105_v51 = vpop.eup %10104 }
 0x55b   : > { %v5442_v43 = vmul.f32 %v10099_v17, %v5441_v54  ;;  %v5456_v38 = vsub.f32 1.0, %v5455_v33 }
 0x55d   : > { %v5443_v26 = vadd.f32 %v10099_v17, %v5442_v43  ;;  %v5457_v12 = vmul.f32 %v10101_v46, %v5456_v38 }
 0x55f   : > { %v5447_v48 = vsel %vm5446_vm7, %v10099_v17, %v5443_v26  ;;  %v5458_v42 = vadd.f32 %v10101_v46, %v5457_v12  ;;  %v13819_v12 = vld [vmem:[#allocation35_spill] sm:$0xff] }
 0x560   : > { %v5452_v50 = vsel %vm5449_vm8, %v5451_v29, %v5447_v48 }
 0x561   : > { %v5462_v54 = vsel %vm5461_vm10, %v10101_v46, %v5458_v42  ;;  %v5479_v33 = vrot.slane %v5452_v50, 1  ;;  %v5485_v38 = vmul.f32 %v10103_v15, %v5452_v50  ;;  %v5491_v29 = vrot.slane %v5452_v50, 2  ;;  %v13821_v42 = vld [vmem:[#allocation36_spill] sm:$0xff]  ;;  %v13822_v50 = vld [vmem:[#allocation38_spill] sm:$0xff] }
 0x562   : > { %v5467_v4 = vsel %vm5464_vm11, %v5466_v44, %v5462_v54  ;;  %v13823_v44 = vld [vmem:[#allocation39_spill] sm:$0xff]  ;;  %v13824_v54 = vld [vmem:[#allocation40_spill] sm:$0xff]  ;;  %v13826_v15 = vld [vmem:[#allocation42_spill] sm:$0xff] }
 0x563   : > { %v5480_v16 = vrot.slane %v5467_v4, 1  ;;  %v5483_v43 = vmul.f32 %v5479_v33, %v13050_v62  ;;  %v5486_v24 = vmul.f32 %v10105_v51, %v5467_v4  ;;  %v5492_v48 = vrot.slane %v5467_v4, 2  ;;  %v13817_v51 = vld [vmem:[#allocation33_spill] sm:$0xff]  ;;  %v13818_v4 = vld [vmem:[#allocation34_spill] sm:$0xff] }
 0x564   : > { %v13825_v33 = vld [vmem:[#allocation41_spill] sm:$0xff] }
 0x565   : > { %v5484_v3 = vmul.f32 %v5480_v16, %v13052_v39  ;;  %v13136_v17 = vadd.f32 %v5485_v38, %v5483_v43  ;;  %v13816_v39 = vld [vmem:[#allocation32_spill] sm:$0xff]  ;;  %v13827_v16 = vld [vmem:[#allocation43_spill] sm:$0xff]  ;;  %v13829_v38 = vld [vmem:[#allocation53_spill] sm:$0xff] }
 0x566   : > { %v13828_v43 = vld [vmem:[#allocation44_spill] sm:$0xff] }
 0x567   : > { %v13138_v18 = vadd.f32 %v5486_v24, %v5484_v3  ;;  %10106 = vtanh.f32 %v13136_v17  ;;  %v13830_v3 = vld [vmem:[#allocation51_spill] sm:$0xff]  ;;  %v13831_v24 = vld [vmem:[#allocation46_spill] sm:$0xff] }
 0x569   : > { %10108 = vtanh.f32 %v13138_v18 }
 0x56d   : > { %v10107_v34 = vpop.eup %10106 }
 0x56e   : > { %v5495_v46 = vmul.f32 %v10107_v34, %v5491_v29  ;;  %v13832_v29 = vld [vmem:[#allocation45_spill] sm:$0xff]  ;;  %v13833_v34 = vld [vmem:[#allocation56_spill] sm:$0xff] }
 0x56f   : > { %v10109_v35 = vpop.eup %10108 }
 0x570   : > { %v5496_v26 = vmul.f32 %v10109_v35, %v5492_v48  ;;  %5501 = vst [vmem:[#allocation1] ss:$9 sm:$0xff] %v5495_v46  ;;  %v13834_v48 = vld [vmem:[#allocation55_spill] sm:$0xff]  ;;  %v13835_v46 = vld [vmem:[#allocation48_spill] sm:$0xff] }
 0x571   : > { %v13836_v35 = vld [vmem:[#allocation47_spill] sm:$0xff] }
 0x572   : > { %5503 = vst [vmem:[#allocation1 + $0x1] ss:$9 sm:$0xff] %v5496_v26  ;;  %v13837_v26 = vld [vmem:[#allocation58_spill] sm:$0xff] }
 0x579   : > { %v5504_v62 = vld [vmem:[#allocation1] sm:$0xff] }
 0x57a   : > { %5522 = vmatmul.f32.vlgmr.msra.gmra.mxu0 %v5504_v62  ;;  %5542 = vmatmul.f32.vlgmr.msra.gmra.mxu1 %v5504_v62 }
 0x57b   : > { %5562 = vmatmul.f32.vlgmr.msra.gmra.mxu2 %v5504_v62  ;;  %5582 = vmatmul.f32.vlgmr.msra.gmra.mxu3 %v5504_v62  ;;  %v13838_v62 = vld [vmem:[#allocation57_spill] sm:$0xff] }
 0x57c   : > { %5852 = vmatpush.msra.mxu0 %v12779_v36  ;;  %5872 = vmatpush.msra.mxu1 %v12783_v45 }
 0x57d   : > { %5892 = vmatpush.msra.mxu2 %v12787_v11  ;;  %5912 = vmatpush.msra.mxu3 %v12791_v60 }
 0x57e   : > { %5853 = vmatpush.msra.mxu0 %v12795_v49  ;;  %5873 = vmatpush.msra.mxu1 %v12799_v14 }
 0x57f   : > { %5893 = vmatpush.msra.mxu2 %v12803_v23  ;;  %5913 = vmatpush.msra.mxu3 %v12807_v56 }
 0x580   : > { %5854 = vmatpush.msra.mxu0 %v12811_v31  ;;  %5874 = vmatpush.msra.mxu1 %v12815_v1 }
 0x581   : > { %5894 = vmatpush.msra.mxu2 %v12819_v59  ;;  %5914 = vmatpush.msra.mxu3 %v12823_v21 }
 0x582   : > { %5855 = vmatpush.msra.mxu0 %v12827_v2  ;;  %5875 = vmatpush.msra.mxu1 %v12831_v8 }
 0x583   : > { %5895 = vmatpush.msra.mxu2 %v12835_v63  ;;  %5915 = vmatpush.msra.mxu3 %v12839_v58 }
 0x584   : > { %5856 = vmatpush.msra.mxu0 %v12843_v6  ;;  %5876 = vmatpush.msra.mxu1 %v12847_v57 }
 0x585   : > { %5896 = vmatpush.msra.mxu2 %v12851_v19  ;;  %5916 = vmatpush.msra.mxu3 %v12855_v30 }
 0x586   : > { %5857 = vmatpush.msra.mxu0 %v12859_v52  ;;  %5877 = vmatpush.msra.mxu1 %v12863_v37 }
 0x587   : > { %5897 = vmatpush.msra.mxu2 %v12867_v27  ;;  %5917 = vmatpush.msra.mxu3 %v12871_v20 }
 0x588   : > { %5858 = vmatpush.msra.mxu0 %v12875_v25  ;;  %5878 = vmatpush.msra.mxu1 %v12879_v10 }
 0x589   : > { %5898 = vmatpush.msra.mxu2 %v12883_v28  ;;  %5918 = vmatpush.msra.mxu3 %v12887_v32 }
 0x58a   : > { %5859 = vmatpush.msra.mxu0 %v12891_v13  ;;  %5879 = vmatpush.msra.mxu1 %v12895_v47 }
 0x58b   : > { %5899 = vmatpush.msra.mxu2 %v12899_v41  ;;  %5919 = vmatpush.msra.mxu3 %v12903_v55 }
 0x58c   : > { %5860 = vmatpush.msra.mxu0 %v12907_v7  ;;  %5880 = vmatpush.msra.mxu1 %v12911_v53 }
 0x58d   : > { %5900 = vmatpush.msra.mxu2 %v12915_v9  ;;  %5920 = vmatpush.msra.mxu3 %v12919_v61 }
 0x58e   : > { %5861 = vmatpush.msra.mxu0 %v12923_v40  ;;  %5881 = vmatpush.msra.mxu1 %v12927_v22 }
 0x58f   : > { %5901 = vmatpush.msra.mxu2 %v12931_v0  ;;  %5921 = vmatpush.msra.mxu3 %v13816_v39 }
 0x590   : > { %5862 = vmatpush.msra.mxu0 %v13817_v51  ;;  %5882 = vmatpush.msra.mxu1 %v13818_v4 }
 0x591   : > { %5902 = vmatpush.msra.mxu2 %v13819_v12  ;;  %5922 = vmatpush.msra.mxu3 %v13820_v5 }
 0x592   : > { %5863 = vmatpush.msra.mxu0 %v13821_v42  ;;  %5883 = vmatpush.msra.mxu1 %v13822_v50  ;;  %v13845_v50 = vld [vmem:[#allocation76_spill] sm:$0xff]  ;;  %v13846_v42 = vld [vmem:[#allocation75_spill] sm:$0xff] }
 0x593   : > { %5903 = vmatpush.msra.mxu2 %v13823_v44  ;;  %5923 = vmatpush.msra.mxu3 %v13824_v54  ;;  %v13843_v44 = vld [vmem:[#allocation67_spill] sm:$0xff] }
 0x594   : > { %5864 = vmatpush.msra.mxu0 %v13825_v33  ;;  %5884 = vmatpush.msra.mxu1 %v13826_v15 }
 0x595   : > { %5904 = vmatpush.msra.mxu2 %v13827_v16  ;;  %5924 = vmatpush.msra.mxu3 %v13828_v43  ;;  %v13839_v43 = vld [vmem:[#allocation50_spill] sm:$0xff] }
 0x596   : > { %5865 = vmatpush.msra.mxu0 %v13829_v38  ;;  %5885 = vmatpush.msra.mxu1 %v13830_v3  ;;  %v13840_v38 = vld [vmem:[#allocation49_spill] sm:$0xff] }
 0x597   : > { %5905 = vmatpush.msra.mxu2 %v13831_v24  ;;  %5925 = vmatpush.msra.mxu3 %v13832_v29 }
 0x598   : > { %5866 = vmatpush.msra.mxu0 %v13833_v34  ;;  %5886 = vmatpush.msra.mxu1 %v13834_v48 }
 0x599   : > { %5906 = vmatpush.msra.mxu2 %v13835_v46  ;;  %5926 = vmatpush.msra.mxu3 %v13836_v35 }
 0x59a   : > { %5867 = vmatpush.msra.mxu0 %v13837_v26  ;;  %5887 = vmatpush.msra.mxu1 %v13838_v62 }
 0x59b   : > { %5907 = vmatpush.msra.mxu2 %v13839_v43  ;;  %5927 = vmatpush.msra.mxu3 %v13840_v38 }
 0x5f7   : > { %v5543_v3 = vpop.f32.mrf.mxu1  ;;  %v5523_v33 = vpop.f32.mrf.mxu0 }
 0x5f8   : > { %v5590_v24 = vrot.slane %v5543_v3, 7  ;;  %v13842_v3 = vld [vmem:[#allocation68_spill] sm:$0xff] }
 0x5fa   : > { %v5593_v48 = vsel %vm4871_vm1, %v5523_v33, %v5590_v24  ;;  %v5596_v46 = vsel %vm4877_vm2, %v5523_v33, %v5590_v24  ;;  %v13847_v33 = vsel %vm12598_vm0, %v13845_v50, %v13846_v42 }
 0x5fe   : > { %v5563_v16 = vpop.f32.mrf.mxu2  ;;  %v5583_v29 = vpop.f32.mrf.mxu3 }
 0x5ff   : > { %v5591_v15 = vrot.slane %v5563_v16, 6  ;;  %v5592_v34 = vrot.slane %v5583_v29, 5  ;;  %v13844_v16 = vsel %vm12598_vm0, %v13842_v3, %v13843_v44 }
 0x601   : > { %v5594_v35 = vsel %vm4873_vm3, %v5591_v15, %v5592_v34  ;;  %v5597_v26 = vsel %vm4879_vm4, %v5591_v15, %v5592_v34 }
 0x602   : > { %v5595_v62 = vsel %vm4875_vm5, %v5593_v48, %v5594_v35  ;;  %v5598_v43 = vsel %vm4881_vm6, %v5596_v46, %v5597_v26 }
 0x603   : > { %v5599_v38 = vrot.slane %v5598_v43, 1  ;;  %v5602_v29 = vadd.f32 %v5595_v62, %v13844_v16 }
 0x605   : > { %v5603_v24 = vadd.f32 %v5599_v38, %v13847_v33  ;;  %v9125_v5 = vmul.f32 -1.442695, %v5602_v29  ;;  %v5644_v62 = vrot.slane %v5602_v29, 3 }
 0x607   : > { %10110 = vpow2.f32 %v9125_v5  ;;  %v9126_v15 = vmul.f32 -1.442695, %v5603_v24  ;;  %v5645_v12 = vrot.slane %v5603_v24, 3 }
 0x609   : > { %10112 = vpow2.f32 %v9126_v15 }
 0x60d   : > { %v10111_v34 = vpop.eup %10110 }
 0x60e   : > { %v5610_v48 = vadd.f32 1.0, %v10111_v34 }
 0x60f   : > { %v10113_v46 = vpop.eup %10112 }
 0x610   : > { %v5611_v43 = vadd.f32 1.0, %v10113_v46  ;;  %10114 = vrcp.f32 %v5610_v48  ;;  %v5623_v54 = vand.u32 2147483648, %v5610_v48  ;;  %v5621_v50 = vand.u32 2147483647, %v5610_v48 }
 0x611   : > { %vm5617_vm13 = vweird.f32 %v5610_v48 }
 0x612   : > { %10116 = vrcp.f32 %v5611_v43  ;;  %v5638_v38 = vand.u32 2147483648, %v5611_v43  ;;  %v5636_v34 = vand.u32 2147483647, %v5611_v43  ;;  %v5624_v46 = vor.u32 1.1754944e-38, %v5623_v54 }
 0x613   : > { %10118 = vtanh.f32 %v5644_v62  ;;  %vm5622_vm7 = vcmp.eq.f32.partialorder %v5621_v50, 8.507059e+37  ;;  %vm5632_vm8 = vweird.f32 %v5611_v43 }
 0x614   : > { %10120 = vtanh.f32 %v5645_v12  ;;  %v5639_v24 = vor.u32 1.1754944e-38, %v5638_v38  ;;  %vm5637_vm10 = vcmp.eq.f32.partialorder %v5636_v34, 8.507059e+37 }
 0x616   : > { %v10115_v35 = vpop.eup %10114 }
 0x617   : > { %v5613_v26 = vmul.f32 %v10115_v35, %v5610_v48  ;;  %vm5618_vm12 = vweird.f32 %v10115_v35 }
 0x618   : > { %v10117_v44 = vpop.eup %10116  ;;  %vm5619_vm15 = vmor %vm5617_vm13, %vm5618_vm12 }
 0x619   : > { %v5614_v3 = vsub.f32 1.0, %v5613_v26  ;;  %v5628_v16 = vmul.f32 %v10117_v44, %v5611_v43  ;;  %vm5633_vm14 = vweird.f32 %v10117_v44  ;;  %v10119_v48 = vpop.eup %10118 }
 0x61a   : > { %vm5634_vm9 = vmor %vm5632_vm8, %vm5633_vm14  ;;  %v10121_v39 = vpop.eup %10120 }
 0x61b   : > { %v5615_v42 = vmul.f32 %v10115_v35, %v5614_v3  ;;  %v5629_v5 = vsub.f32 1.0, %v5628_v16 }
 0x61d   : > { %v5616_v33 = vadd.f32 %v10115_v35, %v5615_v42  ;;  %v5630_v15 = vmul.f32 %v10117_v44, %v5629_v5 }
 0x61f   : > { %v5620_v4 = vsel %vm5619_vm15, %v10115_v35, %v5616_v33  ;;  %v5631_v29 = vadd.f32 %v10117_v44, %v5630_v15 }
 0x620   : > { %v5625_v26 = vsel %vm5622_vm7, %v5624_v46, %v5620_v4 }
 0x621   : > { %v5635_v3 = vsel %vm5634_vm9, %v10117_v44, %v5631_v29  ;;  %v5652_v16 = vrot.slane %v5625_v26, 1  ;;  %v5658_v5 = vmul.f32 %v10119_v48, %v5625_v26  ;;  %v5664_v4 = vrot.slane %v5625_v26, 2  ;;  %v13877_v29 = vld [vmem:[#allocation74_spill] sm:$0xff]  ;;  %v13878_v26 = vld [vmem:[#allocation73_spill] sm:$0xff] }
 0x622   : > { %v5640_v51 = vsel %vm5637_vm10, %v5639_v24, %v5635_v3  ;;  %v13879_v24 = vsel %vm12598_vm0, %v13877_v29, %v13878_v26  ;;  %v13880_v29 = vld [vmem:[#allocation64_spill] sm:$0xff]  ;;  %v13881_v26 = vld [vmem:[#allocation63_spill] sm:$0xff] }
 0x623   : > { %v5653_v62 = vrot.slane %v5640_v51, 1  ;;  %v5656_v42 = vmul.f32 %v5652_v16, %v13136_v17  ;;  %v5659_v12 = vmul.f32 %v10121_v39, %v5640_v51  ;;  %v5665_v44 = vrot.slane %v5640_v51, 2  ;;  %v13874_v39 = vld [vmem:[#allocation66_spill] sm:$0xff]  ;;  %v13875_v51 = vld [vmem:[#allocation65_spill] sm:$0xff] }
 0x624   : > { %v13876_v34 = vsel %vm12598_vm0, %v13874_v39, %v13875_v51 }
 0x625   : > { %v5657_v54 = vmul.f32 %v5653_v62, %v13138_v18  ;;  %v13224_v35 = vadd.f32 %v5658_v5, %v5656_v42 }
 0x627   : > { %v13226_v50 = vadd.f32 %v5659_v12, %v5657_v54  ;;  %10122 = vtanh.f32 %v13224_v35 }
 0x629   : > { %10124 = vtanh.f32 %v13226_v50 }
 0x62d   : > { %v10123_v43 = vpop.eup %10122 }
 0x62e   : > { %v5668_v38 = vmul.f32 %v10123_v43, %v5664_v4 }
 0x62f   : > { %v10125_v33 = vpop.eup %10124 }
 0x630   : > { %v5669_v15 = vmul.f32 %v10125_v33, %v5665_v44  ;;  %5674 = vst [vmem:[#allocation1] ss:$9 sm:$0xff] %v5668_v38 }
 0x632   : > { %5676 = vst [vmem:[#allocation1 + $0x1] ss:$9 sm:$0xff] %v5669_v15 }
 0x639   : > { %v5677_v17 = vld [vmem:[#allocation1] sm:$0xff] }
 0x63a   : > { %5695 = vmatmul.f32.vlgmr.msrb.gmra.mxu0 %v5677_v17  ;;  %5715 = vmatmul.f32.vlgmr.msrb.gmra.mxu1 %v5677_v17 }
 0x63b   : > { %5735 = vmatmul.f32.vlgmr.msrb.gmra.mxu2 %v5677_v17  ;;  %5755 = vmatmul.f32.vlgmr.msrb.gmra.mxu3 %v5677_v17 }
 0x63c   : > { %6025 = vmatpush.msrb.mxu0 %v12779_v36  ;;  %6045 = vmatpush.msrb.mxu1 %v12783_v45  ;;  %v13848_v36 = vld [vmem:[#allocation32_spill] sm:$0xff]  ;;  %v13849_v45 = vld [vmem:[#allocation33_spill] sm:$0xff] }
 0x63d   : > { %6065 = vmatpush.msrb.mxu2 %v12787_v11  ;;  %6085 = vmatpush.msrb.mxu3 %v12791_v60  ;;  %v13850_v11 = vld [vmem:[#allocation34_spill] sm:$0xff]  ;;  %v13851_v60 = vld [vmem:[#allocation35_spill] sm:$0xff] }
 0x63e   : > { %6026 = vmatpush.msrb.mxu0 %v12795_v49  ;;  %6046 = vmatpush.msrb.mxu1 %v12799_v14  ;;  %v13852_v49 = vld [vmem:[#allocation37_spill] sm:$0xff]  ;;  %v13853_v14 = vld [vmem:[#allocation36_spill] sm:$0xff] }
 0x63f   : > { %6066 = vmatpush.msrb.mxu2 %v12803_v23  ;;  %6086 = vmatpush.msrb.mxu3 %v12807_v56  ;;  %v13854_v23 = vld [vmem:[#allocation38_spill] sm:$0xff]  ;;  %v13855_v56 = vld [vmem:[#allocation39_spill] sm:$0xff] }
 0x640   : > { %6027 = vmatpush.msrb.mxu0 %v12811_v31  ;;  %6047 = vmatpush.msrb.mxu1 %v12815_v1  ;;  %v13856_v31 = vld [vmem:[#allocation40_spill] sm:$0xff]  ;;  %v13857_v1 = vld [vmem:[#allocation41_spill] sm:$0xff] }
 0x641   : > { %6067 = vmatpush.msrb.mxu2 %v12819_v59  ;;  %6087 = vmatpush.msrb.mxu3 %v12823_v21  ;;  %v13858_v59 = vld [vmem:[#allocation42_spill] sm:$0xff]  ;;  %v13859_v21 = vld [vmem:[#allocation43_spill] sm:$0xff] }
 0x642   : > { %6028 = vmatpush.msrb.mxu0 %v12827_v2  ;;  %6048 = vmatpush.msrb.mxu1 %v12831_v8  ;;  %v13860_v2 = vld [vmem:[#allocation44_spill] sm:$0xff]  ;;  %v13861_v8 = vld [vmem:[#allocation53_spill] sm:$0xff] }
 0x643   : > { %6068 = vmatpush.msrb.mxu2 %v12835_v63  ;;  %6088 = vmatpush.msrb.mxu3 %v12839_v58  ;;  %v13862_v63 = vld [vmem:[#allocation51_spill] sm:$0xff]  ;;  %v13863_v58 = vld [vmem:[#allocation46_spill] sm:$0xff] }
 0x644   : > { %6029 = vmatpush.msrb.mxu0 %v12843_v6  ;;  %6049 = vmatpush.msrb.mxu1 %v12847_v57  ;;  %v13864_v6 = vld [vmem:[#allocation45_spill] sm:$0xff]  ;;  %v13865_v57 = vld [vmem:[#allocation56_spill] sm:$0xff] }
 0x645   : > { %6069 = vmatpush.msrb.mxu2 %v12851_v19  ;;  %6089 = vmatpush.msrb.mxu3 %v12855_v30  ;;  %v13866_v19 = vld [vmem:[#allocation55_spill] sm:$0xff]  ;;  %v13867_v30 = vld [vmem:[#allocation48_spill] sm:$0xff] }
 0x646   : > { %6030 = vmatpush.msrb.mxu0 %v12859_v52  ;;  %6050 = vmatpush.msrb.mxu1 %v12863_v37  ;;  %v13868_v52 = vld [vmem:[#allocation47_spill] sm:$0xff]  ;;  %v13869_v37 = vld [vmem:[#allocation58_spill] sm:$0xff] }
 0x647   : > { %6070 = vmatpush.msrb.mxu2 %v12867_v27  ;;  %6090 = vmatpush.msrb.mxu3 %v12871_v20  ;;  %v13870_v27 = vld [vmem:[#allocation57_spill] sm:$0xff]  ;;  %v13871_v20 = vld [vmem:[#allocation50_spill] sm:$0xff] }
 0x648   : > { %6031 = vmatpush.msrb.mxu0 %v12875_v25  ;;  %6051 = vmatpush.msrb.mxu1 %v12879_v10  ;;  %v13872_v25 = vld [vmem:[#allocation49_spill] sm:$0xff] }
 0x649   : > { %6071 = vmatpush.msrb.mxu2 %v12883_v28  ;;  %6091 = vmatpush.msrb.mxu3 %v12887_v32 }
 0x64a   : > { %6032 = vmatpush.msrb.mxu0 %v12891_v13  ;;  %6052 = vmatpush.msrb.mxu1 %v12895_v47 }
 0x64b   : > { %6072 = vmatpush.msrb.mxu2 %v12899_v41  ;;  %6092 = vmatpush.msrb.mxu3 %v12903_v55 }
 0x64c   : > { %6033 = vmatpush.msrb.mxu0 %v12907_v7  ;;  %6053 = vmatpush.msrb.mxu1 %v12911_v53 }
 0x64d   : > { %6073 = vmatpush.msrb.mxu2 %v12915_v9  ;;  %6093 = vmatpush.msrb.mxu3 %v12919_v61 }
 0x64e   : > { %6034 = vmatpush.msrb.mxu0 %v12923_v40  ;;  %6054 = vmatpush.msrb.mxu1 %v12927_v22 }
 0x64f   : > { %6074 = vmatpush.msrb.mxu2 %v12931_v0  ;;  %6094 = vmatpush.msrb.mxu3 %v13848_v36 }
 0x650   : > { %6035 = vmatpush.msrb.mxu0 %v13849_v45  ;;  %6055 = vmatpush.msrb.mxu1 %v13850_v11 }
 0x651   : > { %6075 = vmatpush.msrb.mxu2 %v13851_v60  ;;  %6095 = vmatpush.msrb.mxu3 %v13852_v49 }
 0x652   : > { %6036 = vmatpush.msrb.mxu0 %v13853_v14  ;;  %6056 = vmatpush.msrb.mxu1 %v13854_v23 }
 0x653   : > { %6076 = vmatpush.msrb.mxu2 %v13855_v56  ;;  %6096 = vmatpush.msrb.mxu3 %v13856_v31 }
 0x654   : > { %6037 = vmatpush.msrb.mxu0 %v13857_v1  ;;  %6057 = vmatpush.msrb.mxu1 %v13858_v59 }
 0x655   : > { %6077 = vmatpush.msrb.mxu2 %v13859_v21  ;;  %6097 = vmatpush.msrb.mxu3 %v13860_v2 }
 0x656   : > { %6038 = vmatpush.msrb.mxu0 %v13861_v8  ;;  %6058 = vmatpush.msrb.mxu1 %v13862_v63 }
 0x657   : > { %6078 = vmatpush.msrb.mxu2 %v13863_v58  ;;  %6098 = vmatpush.msrb.mxu3 %v13864_v6 }
 0x658   : > { %6039 = vmatpush.msrb.mxu0 %v13865_v57  ;;  %6059 = vmatpush.msrb.mxu1 %v13866_v19 }
 0x659   : > { %6079 = vmatpush.msrb.mxu2 %v13867_v30  ;;  %6099 = vmatpush.msrb.mxu3 %v13868_v52 }
 0x65a   : > { %6040 = vmatpush.msrb.mxu0 %v13869_v37  ;;  %6060 = vmatpush.msrb.mxu1 %v13870_v27 }
 0x65b   : > { %6080 = vmatpush.msrb.mxu2 %v13871_v20  ;;  %6100 = vmatpush.msrb.mxu3 %v13872_v25 }
 0x6b7   : > { %v5716_v10 = vpop.f32.mrf.mxu1  ;;  %v5696_v55 = vpop.f32.mrf.mxu0 }
 0x6b8   : > { %v5763_v28 = vrot.slane %v5716_v10, 7 }
 0x6ba   : > { %v5766_v7 = vsel %vm4871_vm1, %v5696_v55, %v5763_v28  ;;  %v5769_v53 = vsel %vm4877_vm2, %v5696_v55, %v5763_v28 }
 0x6be   : > { %v5736_v32 = vpop.f32.mrf.mxu2  ;;  %v5756_v13 = vpop.f32.mrf.mxu3 }
 0x6bf   : > { %v5764_v47 = vrot.slane %v5736_v32, 6  ;;  %v5765_v41 = vrot.slane %v5756_v13, 5 }
 0x6c1   : > { %v5767_v9 = vsel %vm4873_vm3, %v5764_v47, %v5765_v41  ;;  %v5770_v61 = vsel %vm4879_vm4, %v5764_v47, %v5765_v41 }
 0x6c2   : > { %v5768_v40 = vsel %vm4875_vm5, %v5766_v7, %v5767_v9  ;;  %v5771_v22 = vsel %vm4881_vm6, %v5769_v53, %v5770_v61 }
 0x6c3   : > { %v5772_v0 = vrot.slane %v5771_v22, 1  ;;  %v5775_v46 = vadd.f32 %v5768_v40, %v13876_v34 }
 0x6c5   : > { %v5776_v3 = vadd.f32 %v5772_v0, %v13879_v24  ;;  %v9127_v16 = vmul.f32 -1.442695, %v5775_v46  ;;  %v5817_v44 = vrot.slane %v5775_v46, 3  ;;  %v13882_v24 = vsel %vm12598_vm0, %v13880_v29, %v13881_v26 }
 0x6c7   : > { %10126 = vpow2.f32 %v9127_v16  ;;  %v9128_v48 = vmul.f32 -1.442695, %v5776_v3  ;;  %v5818_v17 = vrot.slane %v5776_v3, 3  ;;  %v13883_v16 = vld [vmem:[#allocation72_spill] sm:$0xff] }
 0x6c9   : > { %10128 = vpow2.f32 %v9128_v48  ;;  %v13884_v48 = vld [vmem:[#allocation71_spill] sm:$0xff] }
 0x6cd   : > { %v10127_v62 = vpop.eup %10126 }
 0x6ce   : > { %v5783_v42 = vadd.f32 1.0, %v10127_v62  ;;  %v13885_v62 = vsel %vm12598_vm0, %v13883_v16, %v13884_v48  ;;  %v13886_v16 = vld [vmem:[#allocation62_spill] sm:$0xff]  ;;  %v13887_v48 = vld [vmem:[#allocation61_spill] sm:$0xff] }
 0x6cf   : > { %v10129_v5 = vpop.eup %10128 }
 0x6d0   : > { %v5784_v54 = vadd.f32 1.0, %v10129_v5  ;;  %10130 = vrcp.f32 %v5783_v42  ;;  %v5796_v15 = vand.u32 2147483648, %v5783_v42  ;;  %v5794_v45 = vand.u32 2147483647, %v5783_v42 }
 0x6d1   : > { %vm5790_vm12 = vweird.f32 %v5783_v42 }
 0x6d2   : > { %10132 = vrcp.f32 %v5784_v54  ;;  %v5811_v60 = vand.u32 2147483648, %v5784_v54  ;;  %v5809_v23 = vand.u32 2147483647, %v5784_v54  ;;  %v5797_v56 = vor.u32 1.1754944e-38, %v5796_v15 }
 0x6d3   : > { %10134 = vtanh.f32 %v5817_v44  ;;  %vm5795_vm15 = vcmp.eq.f32.partialorder %v5794_v45, 8.507059e+37  ;;  %vm5805_vm7 = vweird.f32 %v5784_v54 }
 0x6d4   : > { %10136 = vtanh.f32 %v5818_v17  ;;  %v5812_v21 = vor.u32 1.1754944e-38, %v5811_v60  ;;  %vm5810_vm9 = vcmp.eq.f32.partialorder %v5809_v23, 8.507059e+37 }
 0x6d6   : > { %v10131_v12 = vpop.eup %10130 }
 0x6d7   : > { %v5786_v4 = vmul.f32 %v10131_v12, %v5783_v42  ;;  %vm5791_vm11 = vweird.f32 %v10131_v12 }
 0x6d8   : > { %v10133_v43 = vpop.eup %10132  ;;  %vm5792_vm14 = vmor %vm5790_vm12, %vm5791_vm11 }
 0x6d9   : > { %v5787_v38 = vsub.f32 1.0, %v5786_v4  ;;  %v5801_v33 = vmul.f32 %v10133_v43, %v5784_v54  ;;  %vm5806_vm13 = vweird.f32 %v10133_v43  ;;  %v10135_v63 = vpop.eup %10134 }
 0x6da   : > { %vm5807_vm8 = vmor %vm5805_vm7, %vm5806_vm13  ;;  %v10137_v30 = vpop.eup %10136 }
 0x6db   : > { %v5788_v36 = vmul.f32 %v10131_v12, %v5787_v38  ;;  %v5802_v11 = vsub.f32 1.0, %v5801_v33 }
 0x6dd   : > { %v5789_v49 = vadd.f32 %v10131_v12, %v5788_v36  ;;  %v5803_v14 = vmul.f32 %v10133_v43, %v5802_v11 }
 0x6df   : > { %v5793_v31 = vsel %vm5792_vm14, %v10131_v12, %v5789_v49  ;;  %v5804_v1 = vadd.f32 %v10133_v43, %v5803_v14 }
 0x6e0   : > { %v5798_v59 = vsel %vm5795_vm15, %v5797_v56, %v5793_v31 }
 0x6e1   : > { %v5808_v2 = vsel %vm5807_vm8, %v10133_v43, %v5804_v1  ;;  %v5825_v8 = vrot.slane %v5798_v59, 1  ;;  %v5831_v19 = vmul.f32 %v10135_v63, %v5798_v59  ;;  %v5837_v25 = vrot.slane %v5798_v59, 2 }
 0x6e2   : > { %v5813_v58 = vsel %vm5810_vm9, %v5812_v21, %v5808_v2 }
 0x6e3   : > { %v5826_v6 = vrot.slane %v5813_v58, 1  ;;  %v5829_v57 = vmul.f32 %v5825_v8, %v13224_v35  ;;  %v5832_v37 = vmul.f32 %v10137_v30, %v5813_v58  ;;  %v5838_v28 = vrot.slane %v5813_v58, 2 }
 0x6e5   : > { %v5830_v52 = vmul.f32 %v5826_v6, %v13226_v50  ;;  %v13312_v27 = vadd.f32 %v5831_v19, %v5829_v57 }
 0x6e7   : > { %v13314_v20 = vadd.f32 %v5832_v37, %v5830_v52  ;;  %10138 = vtanh.f32 %v13312_v27 }
 0x6e9   : > { %10140 = vtanh.f32 %v13314_v20 }
 0x6ed   : > { %v10139_v10 = vpop.eup %10138 }
 0x6ee   : > { %v5841_v32 = vmul.f32 %v10139_v10, %v5837_v25 }
 0x6ef   : > { %v10141_v13 = vpop.eup %10140 }
 0x6f0   : > { %v5842_v47 = vmul.f32 %v10141_v13, %v5838_v28  ;;  %5847 = vst [vmem:[#allocation1] ss:$9 sm:$0xff] %v5841_v32 }
 0x6f2   : > { %5849 = vst [vmem:[#allocation1 + $0x1] ss:$9 sm:$0xff] %v5842_v47 }
 0x6f9   : > { %v5850_v35 = vld [vmem:[#allocation1] sm:$0xff] }
 0x6fa   : > { %5868 = vmatmul.f32.vlgmr.msra.gmra.mxu0 %v5850_v35  ;;  %5888 = vmatmul.f32.vlgmr.msra.gmra.mxu1 %v5850_v35 }
 0x6fb   : > { %5908 = vmatmul.f32.vlgmr.msra.gmra.mxu2 %v5850_v35  ;;  %5928 = vmatmul.f32.vlgmr.msra.gmra.mxu3 %v5850_v35 }
 0x777   : > { %v5889_v50 = vpop.f32.mrf.mxu1  ;;  %v5869_v61 = vpop.f32.mrf.mxu0 }
 0x778   : > { %v5936_v41 = vrot.slane %v5889_v50, 7 }
 0x77a   : > { %v5939_v40 = vsel %vm4871_vm1, %v5869_v61, %v5936_v41  ;;  %v5942_v22 = vsel %vm4877_vm2, %v5869_v61, %v5936_v41 }
 0x77e   : > { %v5909_v55 = vpop.f32.mrf.mxu2  ;;  %v5929_v7 = vpop.f32.mrf.mxu3 }
 0x77f   : > { %v5937_v53 = vrot.slane %v5909_v55, 6  ;;  %v5938_v9 = vrot.slane %v5929_v7, 5 }
 0x781   : > { %v5940_v0 = vsel %vm4873_vm3, %v5937_v53, %v5938_v9  ;;  %v5943_v39 = vsel %vm4879_vm4, %v5937_v53, %v5938_v9 }
 0x782   : > { %v5941_v51 = vsel %vm4875_vm5, %v5939_v40, %v5940_v0  ;;  %v5944_v34 = vsel %vm4881_vm6, %v5942_v22, %v5943_v39 }
 0x783   : > { %v5945_v46 = vrot.slane %v5944_v34, 1  ;;  %v5948_v3 = vadd.f32 %v5941_v51, %v13882_v24 }
 0x785   : > { %v5949_v42 = vadd.f32 %v5945_v46, %v13885_v62  ;;  %v9129_v5 = vmul.f32 -1.442695, %v5948_v3  ;;  %v5990_v17 = vrot.slane %v5948_v3, 3  ;;  %v13888_v62 = vsel %vm12598_vm0, %v13886_v16, %v13887_v48 }
 0x787   : > { %10142 = vpow2.f32 %v9129_v5  ;;  %v9130_v54 = vmul.f32 -1.442695, %v5949_v42  ;;  %v5991_v60 = vrot.slane %v5949_v42, 3  ;;  %v13889_v5 = vld [vmem:[#allocation70_spill] sm:$0xff] }
 0x789   : > { %10144 = vpow2.f32 %v9130_v54  ;;  %v13890_v54 = vld [vmem:[#allocation69_spill] sm:$0xff] }
 0x78d   : > { %v10143_v12 = vpop.eup %10142 }
 0x78e   : > { %v5956_v4 = vadd.f32 1.0, %v10143_v12  ;;  %v13891_v12 = vsel %vm12598_vm0, %v13889_v5, %v13890_v54 }
 0x78f   : > { %v10145_v43 = vpop.eup %10144 }
 0x790   : > { %v5957_v44 = vadd.f32 1.0, %v10145_v43  ;;  %10146 = vrcp.f32 %v5956_v4  ;;  %v5969_v11 = vand.u32 2147483648, %v5956_v4  ;;  %v5967_v14 = vand.u32 2147483647, %v5956_v4 }
 0x791   : > { %vm5963_vm11 = vweird.f32 %v5956_v4 }
 0x792   : > { %10148 = vrcp.f32 %v5957_v44  ;;  %v5984_v56 = vand.u32 2147483648, %v5957_v44  ;;  %v5982_v59 = vand.u32 2147483647, %v5957_v44  ;;  %v5970_v21 = vor.u32 1.1754944e-38, %v5969_v11 }
 0x793   : > { %10150 = vtanh.f32 %v5990_v17  ;;  %vm5968_vm14 = vcmp.eq.f32.partialorder %v5967_v14, 8.507059e+37  ;;  %vm5978_vm15 = vweird.f32 %v5957_v44 }
 0x794   : > { %10152 = vtanh.f32 %v5991_v60  ;;  %v5985_v58 = vor.u32 1.1754944e-38, %v5984_v56  ;;  %vm5983_vm8 = vcmp.eq.f32.partialorder %v5982_v59, 8.507059e+37 }
 0x796   : > { %v10147_v38 = vpop.eup %10146 }
 0x797   : > { %v5959_v33 = vmul.f32 %v10147_v38, %v5956_v4  ;;  %vm5964_vm10 = vweird.f32 %v10147_v38 }
 0x798   : > { %v10149_v15 = vpop.eup %10148  ;;  %vm5965_vm13 = vmor %vm5963_vm11, %vm5964_vm10 }
 0x799   : > { %v5960_v36 = vsub.f32 1.0, %v5959_v33  ;;  %v5974_v45 = vmul.f32 %v10149_v15, %v5957_v44  ;;  %vm5979_vm12 = vweird.f32 %v10149_v15  ;;  %v10151_v19 = vpop.eup %10150 }
 0x79a   : > { %vm5980_vm7 = vmor %vm5978_vm15, %vm5979_vm12  ;;  %v10153_v10 = vpop.eup %10152 }
 0x79b   : > { %v5961_v49 = vmul.f32 %v10147_v38, %v5960_v36  ;;  %v5975_v23 = vsub.f32 1.0, %v5974_v45 }
 0x79d   : > { %v5962_v31 = vadd.f32 %v10147_v38, %v5961_v49  ;;  %v5976_v1 = vmul.f32 %v10149_v15, %v5975_v23 }
 0x79f   : > { %v5966_v2 = vsel %vm5965_vm13, %v10147_v38, %v5962_v31  ;;  %v5977_v8 = vadd.f32 %v10149_v15, %v5976_v1 }
 0x7a0   : > { %v5971_v63 = vsel %vm5968_vm14, %v5970_v21, %v5966_v2 }
 0x7a1   : > { %v5981_v6 = vsel %vm5980_vm7, %v10149_v15, %v5977_v8  ;;  %v5998_v57 = vrot.slane %v5971_v63, 1  ;;  %v6004_v25 = vmul.f32 %v10151_v19, %v5971_v63  ;;  %v6010_v35 = vrot.slane %v5971_v63, 2 }
 0x7a2   : > { %v5986_v30 = vsel %vm5983_vm8, %v5985_v58, %v5981_v6 }
 0x7a3   : > { %v5999_v52 = vrot.slane %v5986_v30, 1  ;;  %v6002_v37 = vmul.f32 %v5998_v57, %v13312_v27  ;;  %v6005_v32 = vmul.f32 %v10153_v10, %v5986_v30  ;;  %v6011_v41 = vrot.slane %v5986_v30, 2 }
 0x7a5   : > { %v6003_v28 = vmul.f32 %v5999_v52, %v13314_v20  ;;  %v13336_v13 = vadd.f32 %v6004_v25, %v6002_v37 }
 0x7a7   : > { %v13338_v47 = vadd.f32 %v6005_v32, %v6003_v28  ;;  %10154 = vtanh.f32 %v13336_v13 }
 0x7a9   : > { %10156 = vtanh.f32 %v13338_v47 }
 0x7ad   : > { %v10155_v50 = vpop.eup %10154 }
 0x7ae   : > { %v6014_v55 = vmul.f32 %v10155_v50, %v6010_v35 }
 0x7af   : > { %v10157_v7 = vpop.eup %10156 }
 0x7b0   : > { %v6015_v53 = vmul.f32 %v10157_v7, %v6011_v41  ;;  %6020 = vst [vmem:[#allocation1] ss:$9 sm:$0xff] %v6014_v55 }
 0x7b2   : > { %6022 = vst [vmem:[#allocation1 + $0x1] ss:$9 sm:$0xff] %v6015_v53 }
 0x7b9   : > { %v6023_v27 = vld [vmem:[#allocation1] sm:$0xff] }
 0x7ba   : > { %6041 = vmatmul.f32.vlgmr.msrb.gmra.mxu0 %v6023_v27  ;;  %6061 = vmatmul.f32.vlgmr.msrb.gmra.mxu1 %v6023_v27 }
 0x7bb   : > { %6081 = vmatmul.f32.vlgmr.msrb.gmra.mxu2 %v6023_v27  ;;  %6101 = vmatmul.f32.vlgmr.msrb.gmra.mxu3 %v6023_v27 }
 0x837   : > { %v6062_v20 = vpop.f32.mrf.mxu1  ;;  %v6042_v39 = vpop.f32.mrf.mxu0 }
 0x838   : > { %v6109_v9 = vrot.slane %v6062_v20, 7 }
 0x83a   : > { %v6112_v51 = vsel %vm4871_vm1, %v6042_v39, %v6109_v9  ;;  %v6115_v34 = vsel %vm4877_vm2, %v6042_v39, %v6109_v9 }
 0x83e   : > { %v6082_v61 = vpop.f32.mrf.mxu2  ;;  %v6102_v40 = vpop.f32.mrf.mxu3 }
 0x83f   : > { %v6110_v22 = vrot.slane %v6082_v61, 6  ;;  %v6111_v0 = vrot.slane %v6102_v40, 5 }
 0x841   : > { %v6113_v46 = vsel %vm4873_vm3, %v6110_v22, %v6111_v0  ;;  %v6116_v29 = vsel %vm4879_vm4, %v6110_v22, %v6111_v0 }
 0x842   : > { %v6114_v26 = vsel %vm4875_vm5, %v6112_v51, %v6113_v46  ;;  %v6117_v24 = vsel %vm4881_vm6, %v6115_v34, %v6116_v29 }
 0x843   : > { %v6118_v3 = vrot.slane %v6117_v24, 1  ;;  %v6121_v42 = vadd.f32 %v6114_v26, %v13888_v62 }
 0x845   : > { %v6122_v4 = vadd.f32 %v6118_v3, %v13891_v12  ;;  %v9131_v43 = vmul.f32 -1.442695, %v6121_v42  ;;  %v6163_v60 = vrot.slane %v6121_v42, 3 }
 0x847   : > { %10158 = vpow2.f32 %v9131_v43  ;;  %v9132_v44 = vmul.f32 -1.442695, %v6122_v4  ;;  %v6164_v23 = vrot.slane %v6122_v4, 3 }
 0x849   : > { %10160 = vpow2.f32 %v9132_v44 }
 0x84d   : > { %v10159_v38 = vpop.eup %10158 }
 0x84e   : > { %v6129_v33 = vadd.f32 1.0, %v10159_v38 }
 0x84f   : > { %v10161_v15 = vpop.eup %10160 }
 0x850   : > { %v6130_v17 = vadd.f32 1.0, %v10161_v15  ;;  %10162 = vrcp.f32 %v6129_v33  ;;  %v6142_v14 = vand.u32 2147483648, %v6129_v33  ;;  %v6140_v31 = vand.u32 2147483647, %v6129_v33 }
 0x851   : > { %vm6136_vm1 = vweird.f32 %v6129_v33 }
 0x852   : > { %10164 = vrcp.f32 %v6130_v17  ;;  %v6157_v59 = vand.u32 2147483648, %v6130_v17  ;;  %v6155_v8 = vand.u32 2147483647, %v6130_v17  ;;  %v6143_v63 = vor.u32 1.1754944e-38, %v6142_v14 }
 0x853   : > { %10166 = vtanh.f32 %v6163_v60  ;;  %vm6141_vm4 = vcmp.eq.f32.partialorder %v6140_v31, 8.507059e+37  ;;  %vm6151_vm5 = vweird.f32 %v6130_v17 }
 0x854   : > { %10168 = vtanh.f32 %v6164_v23  ;;  %v6158_v19 = vor.u32 1.1754944e-38, %v6157_v59  ;;  %vm6156_vm9 = vcmp.eq.f32.partialorder %v6155_v8, 8.507059e+37 }
 0x856   : > { %v10163_v36 = vpop.eup %10162 }
 0x857   : > { %v6132_v45 = vmul.f32 %v10163_v36, %v6129_v33  ;;  %vm6137_vm0 = vweird.f32 %v10163_v36 }
 0x858   : > { %v10165_v11 = vpop.eup %10164  ;;  %vm6138_vm3 = vmor %vm6136_vm1, %vm6137_vm0 }
 0x859   : > { %v6133_v49 = vsub.f32 1.0, %v6132_v45  ;;  %v6147_v18 = vmul.f32 %v10165_v11, %v6130_v17  ;;  %vm6152_vm2 = vweird.f32 %v10165_v11  ;;  %v10167_v37 = vpop.eup %10166 }
 0x85a   : > { %vm6153_vm6 = vmor %vm6151_vm5, %vm6152_vm2  ;;  %v10169_v35 = vpop.eup %10168 }
 0x85b   : > { %v6134_v56 = vmul.f32 %v10163_v36, %v6133_v49  ;;  %v6148_v1 = vsub.f32 1.0, %v6147_v18 }
 0x85d   : > { %v6135_v21 = vadd.f32 %v10163_v36, %v6134_v56  ;;  %v6149_v2 = vmul.f32 %v10165_v11, %v6148_v1 }
 0x85f   : > { %v6139_v58 = vsel %vm6138_vm3, %v10163_v36, %v6135_v21  ;;  %v6150_v6 = vadd.f32 %v10165_v11, %v6149_v2 }
 0x860   : > { %v6144_v57 = vsel %vm6141_vm4, %v6143_v63, %v6139_v58 }
 0x861   : > { %v6154_v30 = vsel %vm6153_vm6, %v10165_v11, %v6150_v6  ;;  %v6171_v52 = vrot.slane %v6144_v57, 1  ;;  %v6177_v32 = vmul.f32 %v10167_v37, %v6144_v57  ;;  %v6183_v53 = vrot.slane %v6144_v57, 2 }
 0x862   : > { %v6159_v25 = vsel %vm6156_vm9, %v6158_v19, %v6154_v30 }
 0x863   : > { %v6172_v10 = vrot.slane %v6159_v25, 1  ;;  %v6175_v28 = vmul.f32 %v6171_v52, %v13336_v13  ;;  %v6178_v41 = vmul.f32 %v10169_v35, %v6159_v25  ;;  %v6184_v20 = vrot.slane %v6159_v25, 2 }
 0x865   : > { %v6176_v50 = vmul.f32 %v6172_v10, %v13338_v47  ;;  %v6179_v55 = vadd.f32 %v6177_v32, %v6175_v28 }
 0x867   : > { %v6180_v7 = vadd.f32 %v6178_v41, %v6176_v50  ;;  %10170 = vtanh.f32 %v6179_v55 }
 0x869   : > { %10172 = vtanh.f32 %v6180_v7 }
 0x86d   : > { %v10171_v27 = vpop.eup %10170 }
 0x86e   : > { %v6187_v9 = vmul.f32 %v10171_v27, %v6183_v53 }
 0x86f   : > { %v10173_v61 = vpop.eup %10172 }
 0x870   : > { %v6188_v40 = vmul.f32 %v10173_v61, %v6184_v20  ;;  %6191 = vst [vmem:[#allocation1] ss:$9 sm:$0xff] %v6187_v9 }
 0x872   : > { %6193 = vst [vmem:[#allocation1 + $0x1] ss:$9 sm:$0xff] %v6188_v40 }
 0x879   : > { %v6194_v13 = vld [vmem:[#allocation1] sm:$0xff] }
 0x87a   : > { %6196 = vst [vmem:[%s13361_s6] sm:$0x3] %v6194_v13 }
 0x87b   : > { %6199 = vst [vmem:[#allocation1] ss:$9 sm:$0xff] %v6179_v55 }
 0x87c   : > { %6201 = vst [vmem:[#allocation1 + $0x1] ss:$9 sm:$0xff] %v6180_v7 }
 0x880   : > { %6207 = sbr.rel (%p9133_p4) target bundleno = 2191 (0x88f), region = 92 }
 0x883   : > { %v6202_v47 = vld [vmem:[#allocation1] sm:$0xff] }
 0x884   : > { %6204 = vst [vmem:[%s13364_s29] sm:$0x3] %v6202_v47 }
 0x885   : > { %6208 = vst [vmem:[#allocation1] ss:$2 sm:$0xff] %v6187_v9 }
 0x886   : > { %6210 = vst [vmem:[#allocation1 + $0x1] ss:$2 sm:$0xff] %v6188_v40 }
 0x88d   : > { %v6211_v22 = vld [vmem:[#allocation1] sm:$0xff] }
 0x88e   : > { %6213 = vst [vmem:[#allocation3] sm:$0x3] %v6211_v22 }
 0x88f PF: > { %p9134_p8 = scmp.ne.s32.totalorder %s10602_s24, 1 }
 0x890   : > { %s13894_s13 = sld [smem:[#allocation81_spill]] (!%p9134_p8) }
 0x891   : > { %6217 = sbr.rel (%p9134_p8) target bundleno = 2910 (0xb5e), region = 96  ;;  %s13895_s7 = sld [smem:[#allocation83_spill]] (!%p9134_p8) }
 0x896   : > { %v9193_v0 = vld [vmem:[#allocation10 + $0x70] sm:$0xf]  ;;  %v9881_v39 = vld [vmem:[#allocation10 + $0x74] sm:$0xf0]  ;;  %v9880_v29 = vld [vmem:[#allocation10 + $0x74] sm:$0xf] }
 0x897   : > { %v9257_v51 = vld [vmem:[#allocation10 + $0xf0] sm:$0xf]  ;;  %v9194_v34 = vor.u32 %v9881_v39, %v9193_v0  ;;  %v9897_v46 = vld [vmem:[#allocation10 + $0xf4] sm:$0xf0]  ;;  %v9195_v26 = vld [vmem:[#allocation10 + $0x78] sm:$0xf0] }
 0x898   : > { %v9258_v24 = vor.u32 %v9897_v46, %v9257_v51  ;;  %v9198_v3 = vor.u32 %v9880_v29, %v9195_v26  ;;  %v9896_v16 = vld [vmem:[#allocation10 + $0xf4] sm:$0xf]  ;;  %v9259_v48 = vld [vmem:[#allocation10 + $0xf8] sm:$0xf0]  ;;  %v9185_v62 = vld [vmem:[#allocation10 + $0x60] sm:$0xf] }
 0x899   : > { %6431 = vmatpush.bf16.msra.mxu0 %v9194_v34  ;;  %v9262_v42 = vor.u32 %v9896_v16, %v9259_v48  ;;  %v9879_v5 = vld [vmem:[#allocation10 + $0x64] sm:$0xf0]  ;;  %v9249_v54 = vld [vmem:[#allocation10 + $0xe0] sm:$0xf]  ;;  %v9878_v44 = vld [vmem:[#allocation10 + $0x64] sm:$0xf] }
 0x89a   : > { %v9895_v12 = vld [vmem:[#allocation10 + $0xe4] sm:$0xf0]  ;;  %6444 = vmatpush.bf16.msra.mxu1 %v9258_v24  ;;  %6457 = vmatpush.bf16.msra.mxu2 %v9198_v3  ;;  %v9186_v4 = vor.u32 %v9879_v5, %v9185_v62  ;;  %v9187_v38 = vld [vmem:[#allocation10 + $0x68] sm:$0xf0]  ;;  %v9894_v33 = vld [vmem:[#allocation10 + $0xe4] sm:$0xf] }
 0x89b   : > { %v9250_v43 = vor.u32 %v9895_v12, %v9249_v54  ;;  %6470 = vmatpush.bf16.msra.mxu3 %v9262_v42  ;;  %v9190_v15 = vor.u32 %v9878_v44, %v9187_v38  ;;  %v9251_v17 = vld [vmem:[#allocation10 + $0xe8] sm:$0xf0]  ;;  %v9177_v36 = vld [vmem:[#allocation10 + $0x50] sm:$0xf]  ;;  %v9877_v45 = vld [vmem:[#allocation10 + $0x54] sm:$0xf0] }
 0x89c   : > { %v9254_v11 = vor.u32 %v9894_v33, %v9251_v17  ;;  %v9241_v60 = vld [vmem:[#allocation10 + $0xd0] sm:$0xf]  ;;  %v9893_v49 = vld [vmem:[#allocation10 + $0xd4] sm:$0xf0]  ;;  %v9876_v18 = vld [vmem:[#allocation10 + $0x54] sm:$0xf]  ;;  %v9178_v14 = vor.u32 %v9877_v45, %v9177_v36 }
 0x89d   : > { %6432 = vmatpush.bf16.msra.mxu0 %v9186_v4  ;;  %v9179_v23 = vld [vmem:[#allocation10 + $0x58] sm:$0xf0]  ;;  %v9892_v56 = vld [vmem:[#allocation10 + $0xd4] sm:$0xf]  ;;  %v9242_v1 = vor.u32 %v9893_v49, %v9241_v60  ;;  %v9169_v21 = vld [vmem:[#allocation10 + $0x40] sm:$0xf] }
 0x89e   : > { %v9243_v31 = vld [vmem:[#allocation10 + $0xd8] sm:$0xf0]  ;;  %6445 = vmatpush.bf16.msra.mxu1 %v9250_v43  ;;  %6458 = vmatpush.bf16.msra.mxu2 %v9190_v15  ;;  %v9182_v59 = vor.u32 %v9876_v18, %v9179_v23  ;;  %v9875_v2 = vld [vmem:[#allocation10 + $0x44] sm:$0xf0]  ;;  %v9233_v8 = vld [vmem:[#allocation10 + $0xc0] sm:$0xf] }
 0x89f   : > { %6471 = vmatpush.bf16.msra.mxu3 %v9254_v11  ;;  %v9246_v63 = vor.u32 %v9892_v56, %v9243_v31  ;;  %v9891_v58 = vld [vmem:[#allocation10 + $0xc4] sm:$0xf0]  ;;  %v9874_v6 = vld [vmem:[#allocation10 + $0x44] sm:$0xf]  ;;  %v9171_v57 = vld [vmem:[#allocation10 + $0x48] sm:$0xf0]  ;;  %v9170_v52 = vor.u32 %v9875_v2, %v9169_v21 }
 0x8a0   : > { %v9890_v19 = vld [vmem:[#allocation10 + $0xc4] sm:$0xf]  ;;  %v9235_v30 = vld [vmem:[#allocation10 + $0xc8] sm:$0xf0]  ;;  %v9234_v37 = vor.u32 %v9891_v58, %v9233_v8  ;;  %v9174_v25 = vor.u32 %v9874_v6, %v9171_v57  ;;  %v9161_v10 = vld [vmem:[#allocation10 + $0x30] sm:$0xf] }
 0x8a1   : > { %6433 = vmatpush.bf16.msra.mxu0 %v9178_v14  ;;  %v9873_v28 = vld [vmem:[#allocation10 + $0x34] sm:$0xf0]  ;;  %v9225_v32 = vld [vmem:[#allocation10 + $0xb0] sm:$0xf]  ;;  %v9238_v35 = vor.u32 %v9890_v19, %v9235_v30  ;;  %v9872_v41 = vld [vmem:[#allocation10 + $0x34] sm:$0xf] }
 0x8a2   : > { %6446 = vmatpush.bf16.msra.mxu1 %v9242_v1  ;;  %6459 = vmatpush.bf16.msra.mxu2 %v9182_v59  ;;  %v9889_v50 = vld [vmem:[#allocation10 + $0xb4] sm:$0xf0]  ;;  %v9163_v55 = vld [vmem:[#allocation10 + $0x38] sm:$0xf0]  ;;  %v9888_v7 = vld [vmem:[#allocation10 + $0xb4] sm:$0xf]  ;;  %v9162_v27 = vor.u32 %v9873_v28, %v9161_v10 }
 0x8a3   : > { %6472 = vmatpush.bf16.msra.mxu3 %v9246_v63  ;;  %v9227_v53 = vld [vmem:[#allocation10 + $0xb8] sm:$0xf0]  ;;  %v9226_v20 = vor.u32 %v9889_v50, %v9225_v32  ;;  %v9166_v9 = vor.u32 %v9872_v41, %v9163_v55  ;;  %v9153_v61 = vld [vmem:[#allocation10 + $0x20] sm:$0xf]  ;;  %v9871_v40 = vld [vmem:[#allocation10 + $0x24] sm:$0xf0] }
 0x8a4   : > { %v9217_v13 = vld [vmem:[#allocation10 + $0xa0] sm:$0xf]  ;;  %v9230_v47 = vor.u32 %v9888_v7, %v9227_v53  ;;  %v9887_v22 = vld [vmem:[#allocation10 + $0xa4] sm:$0xf0]  ;;  %v9870_v0 = vld [vmem:[#allocation10 + $0x24] sm:$0xf]  ;;  %v9154_v46 = vor.u32 %v9871_v40, %v9153_v61 }
 0x8a5   : > { %6434 = vmatpush.bf16.msra.mxu0 %v9170_v52  ;;  %v9155_v39 = vld [vmem:[#allocation10 + $0x28] sm:$0xf0]  ;;  %v9886_v51 = vld [vmem:[#allocation10 + $0xa4] sm:$0xf]  ;;  %v9145_v29 = vld [vmem:[#allocation10 + $0x10] sm:$0xf]  ;;  %v9218_v26 = vor.u32 %v9887_v22, %v9217_v13 }
 0x8a6   : > { %6447 = vmatpush.bf16.msra.mxu1 %v9234_v37  ;;  %6460 = vmatpush.bf16.msra.mxu2 %v9174_v25  ;;  %v9219_v34 = vld [vmem:[#allocation10 + $0xa8] sm:$0xf0]  ;;  %v9158_v24 = vor.u32 %v9870_v0, %v9155_v39  ;;  %v9869_v3 = vld [vmem:[#allocation10 + $0x14] sm:$0xf0]  ;;  %v9209_v16 = vld [vmem:[#allocation10 + $0x90] sm:$0xf] }
 0x8a7   : > { %6473 = vmatpush.bf16.msra.mxu3 %v9238_v35  ;;  %v9885_v48 = vld [vmem:[#allocation10 + $0x94] sm:$0xf0]  ;;  %v9222_v62 = vor.u32 %v9886_v51, %v9219_v34  ;;  %v9868_v42 = vld [vmem:[#allocation10 + $0x14] sm:$0xf]  ;;  %v9147_v5 = vld [vmem:[#allocation10 + $0x18] sm:$0xf0]  ;;  %v9146_v44 = vor.u32 %v9869_v3, %v9145_v29 }
 0x8a8   : > { %v13892_v54 = vld [vmem:[#allocation77_spill] sm:$0xff]  ;;  %v9884_v12 = vld [vmem:[#allocation10 + $0x94] sm:$0xf]  ;;  %v9211_v4 = vld [vmem:[#allocation10 + $0x98] sm:$0xf0]  ;;  %v9210_v15 = vor.u32 %v9885_v48, %v9209_v16  ;;  %v9150_v17 = vor.u32 %v9868_v42, %v9147_v5  ;;  %vm6655_vm10 = vcmask 523264  }
 0x8a9   : > { %6435 = vmatpush.bf16.msra.mxu0 %v9162_v27  ;;  %6218 = vst [vmem:[#allocation1] ss:$2 sm:$0xff] %v13892_v54  ;;  %v13893_v43 = vld [vmem:[#allocation78_spill] sm:$0xff]  ;;  %v9137_v38 = vld [vmem:[#allocation10] sm:$0xf]  ;;  %v9214_v60 = vor.u32 %v9884_v12, %v9211_v4  ;;  %v9903_v6 = vld [vmem:[%s13894_s13 + $0x28] sm:$0xff] }
 0x8aa   : > { %6448 = vmatpush.bf16.msra.mxu1 %v9226_v20  ;;  %6461 = vmatpush.bf16.msra.mxu2 %v9166_v9  ;;  %6220 = vst [vmem:[#allocation1 + $0x1] ss:$2 sm:$0xff] %v13893_v43  ;;  %v9867_v33 = vld [vmem:[#allocation10 + $0x4] sm:$0xf0]  ;;  %v9201_v36 = vld [vmem:[#allocation10 + $0x80] sm:$0xf] }
 0x8ab   : > { %6474 = vmatpush.bf16.msra.mxu3 %v9230_v47  ;;  %v9883_v45 = vld [vmem:[#allocation10 + $0x84] sm:$0xf0]  ;;  %v9866_v11 = vld [vmem:[#allocation10 + $0x4] sm:$0xf]  ;;  %v9139_v49 = vld [vmem:[#allocation10 + $0x8] sm:$0xf0]  ;;  %v9138_v23 = vor.u32 %v9867_v33, %v9137_v38 }
 0x8ac   : > { %v9882_v18 = vld [vmem:[#allocation10 + $0x84] sm:$0xf]  ;;  %v9203_v14 = vld [vmem:[#allocation10 + $0x88] sm:$0xf0]  ;;  %v9202_v56 = vor.u32 %v9883_v45, %v9201_v36  ;;  %v9142_v31 = vor.u32 %v9866_v11, %v9139_v49  ;;  %v9904_v8 = vld [vmem:[%s13894_s13 + $0x30] sm:$0xff]  ;;  %vm6679_vm11 = vcmask 82944  }
 0x8ad   : > { %6436 = vmatpush.bf16.msra.mxu0 %v9154_v46  ;;  %v9206_v1 = vor.u32 %v9882_v18, %v9203_v14  ;;  %v9905_v21 = vld [vmem:[%s13894_s13 + $0x38] sm:$0xff]  ;;  %v9912_v63 = vld [vmem:[%s13894_s13 + $0x70] sm:$0xff]  ;;  %v9911_v57 = vld [vmem:[%s13894_s13 + $0x68] sm:$0xff] }
 0x8ae   : > { %6449 = vmatpush.bf16.msra.mxu1 %v9218_v26  ;;  %6462 = vmatpush.bf16.msra.mxu2 %v9158_v24  ;;  %v9913_v2 = vld [vmem:[%s13894_s13 + $0x78] sm:$0xff]  ;;  %v9902_v19 = vld [vmem:[%s13894_s13 + $0x20] sm:$0xff]  ;;  %v9900_v35 = vld [vmem:[%s13894_s13 + $0x10] sm:$0xff] }
 0x8af   : > { %6475 = vmatpush.bf16.msra.mxu3 %v9222_v62  ;;  %v9910_v30 = vld [vmem:[%s13894_s13 + $0x60] sm:$0xff]  ;;  %v9901_v28 = vld [vmem:[%s13894_s13 + $0x18] sm:$0xff]  ;;  %v9899_v50 = vld [vmem:[%s13894_s13 + $0x8] sm:$0xff] }
 0x8b0   : > { %v9909_v32 = vld [vmem:[%s13894_s13 + $0x58] sm:$0xff]  ;;  %v9908_v41 = vld [vmem:[%s13894_s13 + $0x50] sm:$0xff]  ;;  %v9898_v55 = vld [vmem:[%s13894_s13] sm:$0xff] }
 0x8b1   : > { %6437 = vmatpush.bf16.msra.mxu0 %v9146_v44  ;;  %v6221_v59 = vld [vmem:[#allocation1] sm:$0xff]  ;;  %v9907_v7 = vld [vmem:[%s13894_s13 + $0x48] sm:$0xff]  ;;  %v6650_v27 = vld [vmem:[%s13895_s7 + $0x38] sm:$0xff] }
 0x8b2   : > { %6450 = vmatpush.bf16.msra.mxu1 %v9210_v15  ;;  %6463 = vmatpush.bf16.msra.mxu2 %v9150_v17  ;;  %6223 = vst [vmem:[#allocation3 + $0x2] sm:$0x3] %v6221_v59  ;;  %v9906_v53 = vld [vmem:[%s13894_s13 + $0x40] sm:$0xff]  ;;  %v6649_v20 = vld [vmem:[%s13895_s7 + $0x30] sm:$0xff]  ;;  %v6648_v9 = vld [vmem:[%s13895_s7 + $0x28] sm:$0xff] }
 0x8b3   : > { %6476 = vmatpush.bf16.msra.mxu3 %v9214_v60  ;;  %v6647_v61 = vld [vmem:[%s13895_s7 + $0x20] sm:$0xff]  ;;  %v6265_v40 = vld [vmem:[#allocation12] sm:$0x3]  ;;  %v6646_v5 = vld [vmem:[%s13895_s7 + $0x18] sm:$0xff] }
 0x8b4   : > { %v6267_v13 = vperm.slane %v6265_v40, 0  ;;  %v6268_v51 = vperm.slane %v6265_v40, 1  ;;  %v6645_v54 = vld [vmem:[%s13895_s7 + $0x10] sm:$0xff]  ;;  %v6644_v12 = vld [vmem:[%s13895_s7 + $0x8] sm:$0xff]  ;;  %v6643_v4 = vld [vmem:[%s13895_s7] sm:$0xff] }
 0x8b5   : > { %6438 = vmatpush.bf16.msra.mxu0 %v9138_v23  ;;  %v10240_v43 = vld [vmem:[#allocation13] ss:$0 sm:$0xff]  ;;  %v10241_v45 = vld [vmem:[#allocation15] ss:$0 sm:$0xff] }
 0x8b6   : > { %6451 = vmatpush.bf16.msra.mxu1 %v9202_v56  ;;  %6464 = vmatpush.bf16.msra.mxu2 %v9142_v31 }
 0x8b7   : > { %6477 = vmatpush.bf16.msra.mxu3 %v9206_v1 }
 0x8b9   : > { %6617 = vmatpush.bf16.msrb.mxu0 %v9905_v21  ;;  %v6224_v58 = vld [vmem:[#allocation3] sm:$0xf] }
 0x8ba   : > { %6630 = vmatpush.bf16.msrb.mxu1 %v9913_v2  ;;  %6226 = vst [vmem:[#allocation1] ss:$4 sm:$0xff] %v6224_v58  ;;  %6667 = vmatpush.msrb.mxu2 %v6650_v27 }
 0x8bc   : > { %6668 = vmatpush.msrb.mxu2 %v6649_v20 }
 0x8bd   : > { %6618 = vmatpush.bf16.msrb.mxu0 %v9904_v8 }
 0x8be   : > { %6631 = vmatpush.bf16.msrb.mxu1 %v9912_v63  ;;  %6669 = vmatpush.msrb.mxu2 %v6648_v9 }
 0x8c0   : > { %6670 = vmatpush.msrb.mxu2 %v6647_v61 }
 0x8c1   : > { %6619 = vmatpush.bf16.msrb.mxu0 %v9903_v6  ;;  %v6227_v52 = vld.sshfl [vmem:[#allocation1] sm:$0xff pattern:$0x73625140]  ;;  %v6228_v37 = vld.sshfl [vmem:[#allocation1 + $0x8] sm:$0xff pattern:$0x73625140] }
 0x8c2   : > { %6632 = vmatpush.bf16.msrb.mxu1 %v9911_v57  ;;  %v6231_v25 = vpack.c.bf16 %v6227_v52, %v6227_v52  ;;  %v6232_v10 = vpack.c.bf16 %v6228_v37, %v6228_v37  ;;  %6671 = vmatpush.msrb.mxu2 %v6646_v5 }
 0x8c4   : > { %6439 = vmatmul.bf16.vlgmr.msra.gmra.mxu0 %v6231_v25  ;;  %6452 = vmatmul.bf16.vlgmr.msra.gmra.mxu1 %v6232_v10 }
 0x8c5   : > { %6620 = vmatpush.bf16.msrb.mxu0 %v9902_v19  ;;  %6465 = vmatmul.bf16.vlgmr.msra.gmra.mxu2 %v6231_v25 }
 0x8c6   : > { %6633 = vmatpush.bf16.msrb.mxu1 %v9910_v30  ;;  %6478 = vmatmul.bf16.vlgmr.msra.gmra.mxu3 %v6232_v10 }
 0x8c7   : > { %6672 = vmatpush.msrb.mxu2 %v6645_v54 }
 0x8c9   : > { %6621 = vmatpush.bf16.msrb.mxu0 %v9901_v28  ;;  %6673 = vmatpush.msrb.mxu2 %v6644_v12 }
 0x8ca   : > { %6634 = vmatpush.bf16.msrb.mxu1 %v9909_v32 }
 0x8cb   : > { %6674 = vmatpush.msrb.mxu2 %v6643_v4 }
 0x8cd   : > { %6622 = vmatpush.bf16.msrb.mxu0 %v9900_v35 }
 0x8ce   : > { %6635 = vmatpush.bf16.msrb.mxu1 %v9908_v41 }
 0x8d1   : > { %6623 = vmatpush.bf16.msrb.mxu0 %v9899_v50 }
 0x8d2   : > { %6636 = vmatpush.bf16.msrb.mxu1 %v9907_v7 }
 0x8d5   : > { %6624 = vmatpush.bf16.msrb.mxu0 %v9898_v55 }
 0x8d6   : > { %6637 = vmatpush.bf16.msrb.mxu1 %v9906_v53 }
 0x941   : > { %v6440_v47 = vpop.f32.mrf.mxu0  ;;  %v6453_v22 = vpop.f32.mrf.mxu1 }
 0x942   : > { %v6441_v0 = vadd.f32 %v6440_v47, %v6267_v13 }
 0x944   : > { %v6454_v39 = vadd.f32 %v6453_v22, %v6441_v0 }
 0x946   : > { %v6483_v34 = vpack.c.bf16 %v6454_v39, %v6454_v39 }
 0x948   : > { %v6466_v46 = vpop.f32.mrf.mxu2  ;;  %6625 = vmatmul.bf16.vlgmr.msrb.gmra.mxu0 %v6483_v34 }
 0x949   : > { %v6479_v29 = vpop.f32.mrf.mxu3  ;;  %v6467_v26 = vadd.f32 %v6466_v46, %v6268_v51  ;;  %v6442_v24 = vpop.f32.mrf.mxu0 }
 0x94a   : > { %v6455_v3 = vpop.f32.mrf.mxu1 }
 0x94b   : > { %v6480_v16 = vadd.f32 %v6479_v29, %v6467_v26 }
 0x94d   : > { %v6484_v48 = vpack.c.bf16 %v6480_v16, %v6480_v16 }
 0x94f   : > { %6638 = vmatmul.bf16.vlgmr.msrb.gmra.mxu1 %v6484_v48 }
 0x950   : > { %v6468_v62 = vpop.f32.mrf.mxu2 }
 0x951   : > { %v6481_v42 = vpop.f32.mrf.mxu3 }
 0x9c5   : > { %v6626_v44 = vpop.f32.mrf.mxu0 }
 0x9c6   : > { %v6627_v38 = vadd.f32 %v10240_v43, %v6626_v44 }
 0x9cc   : > { %v6639_v33 = vpop.f32.mrf.mxu1 }
 0x9cd   : > { %v6640_v15 = vadd.f32 %v6639_v33, %v6627_v38  ;;  %v6628_v17 = vpop.f32.mrf.mxu0 }
 0x9cf   : > { %9327 = vmatmul.msk.f32.vlgmr.msrb.gmra.mxu2 %vm6655_vm10, %v6640_v15 }
 0x9d4   : > { %v6641_v36 = vpop.f32.mrf.mxu1 }
 0xa52   : > { %v6676_v11 = vpop.f32.mrf.mxu2 }
 0xa53   : > { %v6677_v60 = vadd.f32 %v10241_v45, %v6676_v11 }
 0xa55   : > { %v6680_v49 = vsel %vm6679_vm11, %v6677_v60, -inf }
 0xa56   : > { %6681 = vmax.xlane.f32.xlu0 %v6680_v49 }
 0xac9   : > { %v6682_v18 = vpop.xlane.xlu0 %6681 }
 0xaca   : > { %v6683_v14 = vsub.f32 %v6677_v60, %v6682_v18 }
 0xacc   : > { %v6684_v23 = vmul.f32 1.442695, %v6683_v14 }
 0xace   : > { %10242 = vpow2.f32 %v6684_v23 }
 0xad4   : > { %v10243_v56 = vpop.eup %10242 }
 0xad5   : > { %v6686_v31 = vsel %vm6679_vm11, %v10243_v56, 0.0 }
 0xad6   : > { %6687 = vadd.xlane.f32.xlu0 %v6686_v31 }
 0xb49   : > { %v6688_v1 = vpop.xlane.xlu0 %6687 }
 0xb4a   : > { %10244 = vrcp.f32 %v6688_v1  ;;  %v6700_v8 = vand.u32 2147483648, %v6688_v1  ;;  %v6698_v58 = vand.u32 2147483647, %v6688_v1  ;;  %vm6694_vm13 = vweird.f32 %v6688_v1 }
 0xb4c   : > { %v6701_v57 = vor.u32 1.1754944e-38, %v6700_v8  ;;  %vm6699_vm15 = vcmp.eq.f32.partialorder %v6698_v58, 8.507059e+37 }
 0xb50   : > { %v10245_v59 = vpop.eup %10244 }
 0xb51   : > { %v6690_v21 = vmul.f32 %v10245_v59, %v6688_v1  ;;  %vm6695_vm12 = vweird.f32 %v10245_v59 }
 0xb52   : > { %vm6696_vm14 = vmor %vm6694_vm13, %vm6695_vm12 }
 0xb53   : > { %v6691_v2 = vsub.f32 1.0, %v6690_v21 }
 0xb55   : > { %v6692_v63 = vmul.f32 %v10245_v59, %v6691_v2 }
 0xb57   : > { %v6693_v6 = vadd.f32 %v10245_v59, %v6692_v63 }
 0xb59   : > { %v6697_v19 = vsel %vm6696_vm14, %v10245_v59, %v6693_v6 }
 0xb5a   : > { %v6702_v30 = vsel %vm6699_vm15, %v6701_v57, %v6697_v19 }
 0xb5b   : > { %v6703_v52 = vmul.f32 %v10243_v56, %v6702_v30 }
 0xb5d   : > { %6704 = vst.msk [vmem:[#allocation16] sm:$0x3] %vm6679_vm11, %v6703_v52 }
 0xb5e PF: > { %s9331_s12 = sshll.u32 %s10602_s24, 1  ;;  %s13897_s19 = sld [smem:[#allocation85_spill]] }
 0xb5f   : > { %s6738_s20 = sshll.u32 %s13361_s6, 4  ;;  %s13453_s23 = scalar_lea.sflag [#allocation18], %s520_s2  ;;  %s6739_s20 = int_to_ptr.vmem [resolvable:$true] %s6738_s20 }
 0xb64   : > { %s6736_s14 = scalar_lea.hbm %s13897_s19, %s9331_s12  ;;  %s10476_s21 = scalar_lea.hbm %s13897_s19, 4 }
 0xb65   : > { %s6740_s17 = sshll.u32 %s6736_s14, 4  ;;  %s6741_s17 = int_to_ptr.hbm [resolvable:$true] %s6740_s17 }
 0xb66   : > { %s10470_s28 = sshra.s32 %s6741_s17, 4  ;;  %s10471_s28 = int_to_ptr.hbm [resolvable:$true] %s10470_s28 }
 0xb67   : > { %s10472_s11 = scalar_lea.hbm %s10471_s28, 2  ;;  %p10477_p13 = scmp.lt.s32.totalorder %s10471_s28, %s13897_s19 }
 0xb68   : > { %p10473_p10 = scmp.ne.s32.totalorder %s10471_s28, %s10472_s11  ;;  %p10478_p0 = scmp.lt.s32.totalorder %s10476_s21, %s10472_s11 }
 0xb6a   : > { %p10474_p11 = pnand %p10473_p10, %p10771_p7  ;;  %p10479_p3 = por %p10478_p0, %p10477_p13 }
 0xb6c   : > { %p10475_p12 = pneg %p10474_p11 }
 0xb6e   : > { %p10480_p5 = pnand %p10479_p3, %p10475_p12 }
 0xb70   : > { %10483 = shalt.err (!%p10480_p5)
}
 0xb71   : > { %9938 = dma.vmem_to_hbm [thread:$0]  (%p10771_p7), %s6739_s20, 32, %s6741_s17, %s13453_s23  }
 0xb72   : > { %s13898_s30 = sld [smem:[#allocation84_spill]]  ;;  %s10623_s8 = smov [#allocation16]  }
 0xb73   : > { %s6723_s14 = sshll.u32 %s10623_s8, 4  ;;  %s13899_s18 = sld [smem:[#allocation86_spill]]  ;;  %s6724_s14 = int_to_ptr.vmem [resolvable:$true] %s6723_s14 }
 0xb74   : > { %s6753_s21 = sshll.u32 %s13364_s29, 4  ;;  %s6754_s21 = int_to_ptr.vmem [resolvable:$true] %s6753_s21 }
 0xb78   : > { %s6725_s10 = sshll.u32 %s13898_s30, 4  ;;  %s6726_s10 = int_to_ptr.hbm [resolvable:$true] %s6725_s10 }
 0xb79   : > { %s6751_s24 = scalar_lea.hbm %s13899_s18, %s9331_s12  ;;  %s10532_s6 = scalar_lea.hbm %s13899_s18, 4 }
 0xb7a   : > { %9937 = dma.vmem_to_hbm [thread:$0]  (%p323_p2), %s6724_s14, 32, %s6726_s10, [#allocation6]  }
 0xb7b   : > { %s6755_s16 = sshll.u32 %s6751_s24, 4  ;;  %s6756_s16 = int_to_ptr.hbm [resolvable:$true] %s6755_s16 }
 0xb7c   : > { %s10526_s20 = sshra.s32 %s6756_s16, 4  ;;  %s10527_s20 = int_to_ptr.hbm [resolvable:$true] %s10526_s20 }
 0xb7d   : > { %s10528_s17 = scalar_lea.hbm %s10527_s20, 2  ;;  %p10533_p8 = scmp.lt.s32.totalorder %s10527_s20, %s13899_s18 }
 0xb7e   : > { %p10529_p9 = scmp.ne.s32.totalorder %s10527_s20, %s10528_s17  ;;  %p10534_p10 = scmp.lt.s32.totalorder %s10532_s6, %s10528_s17 }
 0xb80   : > { %p10530_p1 = pnand %p10529_p9, %p10771_p7  ;;  %p10535_p11 = por %p10534_p10, %p10533_p8 }
 0xb82   : > { %p10531_p4 = pneg %p10530_p1 }
 0xb84   : > { %p10536_p12 = pnand %p10535_p11, %p10531_p4 }
 0xb86   : > { %10539 = shalt.err (!%p10536_p12)
}
 0xb87   : > { %9939 = dma.vmem_to_hbm [thread:$0]  (%p10771_p7), %s6754_s21, 32, %s6756_s16, %s13453_s23  }
 0xb88   : > { %10581 = dma.done.wait (%p323_p2), [#allocation6], 32  }
 0xb89   : > { %10583 = vsyncadd (%p323_p2), [#allocation6], 4294967264 }
 0xb8a PF: > { %s13900_s29 = sadd.s32 4294967294, %s10610_s26   ;;  %p13902_p13 = scmp.ge.s32.totalorder %s10610_s26, 2 }
 0xb8b   : > { %s6772_s10 = sand.u32 1, %s13900_s29  }
 0xb8c   : > { %p9968_p0 = pnand %p13902_p13, %p10733_p6  ;;  %s6773_s14 = scalar_lea.sflag [#allocation18], %s6772_s10 }
 0xb8e   : > { %p9969_p3 = pneg %p9968_p0 }
 0xb90   : > { %10585 = dma.done.wait (%p9969_p3), %s6773_s14, 64  }
 0xb91   : > { %10587 = vsyncadd (%p9969_p3), %s6773_s14, 4294967232  ;;  %s35_s26 = sadd.s32 1, %s10610_s26   ;;  %s13903_s15 = sld [smem:[#allocation26_spill]] }
 0xb92   : > { %p32_p7 = scmp.ge.s32.totalorder %s35_s26, 4   ;;  %s13904_s23 = sld [smem:[#allocation30_spill]] }
 0xb93   : > { %s13905_s27 = sld [smem:[#allocation28_spill]]  ;;  %s13906_s21 = smov %s10594_s22 }
 0xb94   : > { %s13908_s24 = smov %s10606_s25 }
 0xb95   :  { %34 = sbr.rel (!%p32_p7) target bundleno = 20 (0x14), region = 207 }
 0xb97   : > { %s13907_s22 = smov %s13903_s15 }
 0xb99   : > { %s13909_s25 = smov %s13905_s27 }
 0xb9a   :  { %6789 = vsyncpa [#allocation5], 1 }
 0xb9b   :  { %6791 = vsyncpa [#allocation5 + $0x1], 1 }
 0xb9c   :  { %6792 = vsyncpa [#allocation8], 1 }
 0xb9d   :  { %6794 = vsyncpa [#allocation8 + $0x1], 1 }
 0xb9e   :  { %6795 = vsyncpa [#allocation11], 1 }
 0xb9f   :  { %6796 = vsyncpa [#allocation14], 1 }
 0xba0   :  { %6797 = vsyncpa [#allocation6], 1 }
 0xba1   :  { %6799 = vsyncpa [#allocation6 + $0x1], 1 }
 0xba2   :  { %6800 = vsyncpa [#allocation18], 1 }
 0xba3   :  { %6802 = vsyncpa [#allocation18 + $0x1], 1 }

</bundles_post_ra>
